<compile_context>
chip_gen: v7x
topology: tpu7x:2x2x1
jax: 0.10.0
libtpu: 0.0.40
codegen_flags: <defaults>
</compile_context>

<pallas_src>
from functools import partial

import jax
import jax.numpy as jnp
from jax import lax
from jax.experimental import pallas as pl
from jax.experimental.pallas import tpu as pltpu

DILATIONS = (1, 2, 4, 8, 16)
MAXD = max(DILATIONS)


def dblock_kernel(x_ref, w_ref, out_ref, pad_ref, col_ref, *, H, W, C, dilations):
    # x_ref:   (1, H, W, C)            current batch element (f32)
    # w_ref:   (S, 9*C, C)             stacked, im2col-flattened HWIO weights (bf16)
    # out_ref: (1, H, W, C)            output block, used directly as the running sum
    # pad_ref: (H+2*MAXD, W+2*MAXD, C) bf16 zero-padded feature scratch
    # col_ref: (H, W, 9*C)             bf16 im2col scratch
    x = x_ref[0]
    out_ref[0] = x                       # running sum starts at x
    feat = x.astype(jnp.float32)         # stage input, kept f32 for ReLU / sum

    # Zero the padded scratch once per image.  The interior is fully overwritten
    # every stage and the halo is never written elsewhere, so it stays zero.
    pad_ref[...] = jnp.zeros_like(pad_ref)

    for s, d in enumerate(dilations):
        # Current stage input -> bf16 interior of the padded buffer (MXU operand).
        pad_ref[MAXD:MAXD + H, MAXD:MAXD + W, :] = feat.astype(jnp.bfloat16)

        # im2col: gather the 9 dilated taps side-by-side along the channel axis.
        # All offsets are Python ints -> static slices.
        for t in range(9):
            ky, kx = divmod(t, 3)
            dy = d * (ky - 1)
            dx = d * (kx - 1)
            col_ref[:, :, t * C:(t + 1) * C] = pad_ref[
                MAXD + dy:MAXD + dy + H, MAXD + dx:MAXD + dx + W, :]

        # One bf16 MXU matmul per stage, f32 accumulation.
        acc = jnp.dot(
            col_ref[...].reshape(H * W, 9 * C),
            w_ref[s],
            preferred_element_type=jnp.float32,
        )

        # Conv bias is zeroed in the module __init__, so just ReLU.
        feat = jnp.maximum(acc, 0.0).reshape(H, W, C)

        # Accumulate the stage output directly into the output block.
        out_ref[0] = out_ref[0] + feat.astype(out_ref.dtype)


def dblock_forward(x_nchw, weights):
    """x_nchw: (N, C, H, W) float32; weights: (S, 3, 3, Cin, Cout) HWIO stacked."""
    x = jnp.transpose(x_nchw, (0, 2, 3, 1))          # NCHW -> NHWC
    N, H, W, C = x.shape
    S = weights.shape[0]

    # Flatten (ky, kx, Cin) -> 9*Cin rows to match the im2col column order;
    # bf16 operands for the MXU (accumulation stays f32 inside the kernel).
    w_flat = weights.reshape(S, 9 * C, C).astype(jnp.bfloat16)

    # Explicit scoped-VMEM budget: double-buffered in/out blocks + weights plus
    # the two scratch buffers, with a generous floor to absorb (8,128) lane
    # padding for small C.
    def lane(c):
        return max(c, 128)

    blk_bytes = H * W * lane(C) * 4
    w_bytes = S * 9 * C * lane(C) * 2
    pad_bytes = (H + 2 * MAXD) * (W + 2 * MAXD) * lane(C) * 2
    col_bytes = H * W * lane(9 * C) * 2
    vmem_need = 2 * blk_bytes * 2 + 2 * w_bytes + pad_bytes + col_bytes
    vmem_limit = min(max(int(1.5 * vmem_need) + (8 << 20), 32 << 20), 56 << 20)

    out = pl.pallas_call(
        partial(dblock_kernel, H=H, W=W, C=C, dilations=DILATIONS),
        out_shape=jax.ShapeDtypeStruct((N, H, W, C), x.dtype),
        grid_spec=pltpu.PrefetchScalarGridSpec(
            num_scalar_prefetch=0,
            grid=(N,),
            in_specs=[
                pl.BlockSpec((1, H, W, C), lambda n: (n, 0, 0, 0)),
                # Constant index_map -> the pipeline only DMAs the weights once.
                pl.BlockSpec((S, 9 * C, C), lambda n: (0, 0, 0)),
            ],
            out_specs=pl.BlockSpec((1, H, W, C), lambda n: (n, 0, 0, 0)),
            scratch_shapes=[
                pltpu.VMEM((H + 2 * MAXD, W + 2 * MAXD, C), jnp.bfloat16),
                pltpu.VMEM((H, W, 9 * C), jnp.bfloat16),
            ],
        ),
        compiler_params=pltpu.CompilerParams(
            dimension_semantics=("parallel",),
            vmem_limit_bytes=vmem_limit,
        ),
    )(x, w_flat)

    return jnp.transpose(out, (0, 3, 1, 2))          # NHWC -> NCHW


def dblock_reference(x_nchw, weights, operand_dtype=jnp.float32, precision=None):
    """Pure-JAX reference. operand_dtype=bf16 mirrors the kernel's MXU precision."""
    out = x_nchw
    feat = x_nchw
    for i, d in enumerate(DILATIONS):
        w_hwio = weights[i].astype(operand_dtype)
        conv = lax.conv_general_dilated(
            feat.astype(operand_dtype), w_hwio,
            window_strides=(1, 1),
            padding=[(d, d), (d, d)],
            rhs_dilation=(d, d),
            dimension_numbers=("NCHW", "HWIO", "NCHW"),
            preferred_element_type=jnp.float32,
            precision=precision,
        )
        feat = jnp.maximum(conv, 0.0)
        out = out + feat
    return out


if __name__ == "__main__":
    key = jax.random.PRNGKey(0)
    k_x, k_w = jax.random.split(key)

    N, C, Hs, Ws = 2, 4, 16, 16  # small shapes consistent with the module
    x = jax.random.normal(k_x, (N, C, Hs, Ws), dtype=jnp.float32)

    # Deterministic weight init (kaiming-uniform-like scale), stacked per
    # dilation stage in HWIO; biases are zero (as in the module __init__).
    fan_in = C * 3 * 3
    bound = 1.0 / (fan_in ** 0.5)
    weights = jax.random.uniform(
        k_w, (len(DILATIONS), 3, 3, C, C),
        minval=-bound, maxval=bound, dtype=jnp.float32)

    out = jax.block_until_ready(dblock_forward(x, weights))

    # Primary check: reference at matching precision (bf16 operands, f32 accum).
    ref_bf16 = dblock_reference(x, weights, operand_dtype=jnp.bfloat16)
    assert out.shape == ref_bf16.shape, (out.shape, ref_bf16.shape)
    err_bf16 = float(jnp.max(jnp.abs(out - ref_bf16)))
    assert jnp.allclose(out, ref_bf16, atol=1e-2, rtol=1e-2), (
        "max abs err vs bf16-matched ref:", err_bf16)

    # Sanity check against the full-f32 reference (kernel intentionally uses
    # bf16 MXU operands, so the tolerance here is looser).
    ref_f32 = dblock_reference(x, weights, operand_dtype=jnp.float32,
                               precision=lax.Precision.HIGHEST)
    err_f32 = float(jnp.max(jnp.abs(out - ref_f32)))
    assert err_f32 < 0.25, ("max abs err vs f32 ref too large:", err_f32)

    print("KERNEL_OK")
</pallas_src>

<mosaic_0001>
module attributes {stable_mosaic.version = 11 : i64} {
  func.func @dblock_kernel(%arg0: i32, %arg1: memref<1x16x16x4xf32, #tpu.memory_space<vmem>>, %arg2: memref<5x36x4xbf16, #tpu.memory_space<vmem>>, %arg3: memref<1x16x16x4xf32, #tpu.memory_space<vmem>>, %arg4: memref<48x48x4xbf16, #tpu.memory_space<vmem>>, %arg5: memref<16x16x36xbf16, #tpu.memory_space<vmem>>) attributes {dimension_semantics = [#tpu.dimension_semantics<parallel>], iteration_bounds = array<i64: 2>, scalar_prefetch = 0 : i64, scratch_operands = 2 : i64, tpu.core_type = #tpu.core_type<tc>, window_params = [{transform_indices = @transform_0, window_bounds = array<i64: 1, 16, 16, 4>}, {pipeline_mode = #tpu.pipeline_mode<synchronous>, transform_indices = @transform_1, window_bounds = array<i64: 5, 36, 4>}, {transform_indices = @transform_2, window_bounds = array<i64: 1, 16, 16, 4>}]} {
    %c0 = arith.constant 0 : index
    %c0_0 = arith.constant 0 : index
    %c0_1 = arith.constant 0 : index
    %c0_2 = arith.constant 0 : index
    %0 = vector.load %arg1[%c0, %c0_0, %c0_1, %c0_2] : memref<1x16x16x4xf32, #tpu.memory_space<vmem>>, vector<1x16x16x4xf32>
    %1 = vector.shape_cast %0 : vector<1x16x16x4xf32> to vector<16x16x4xf32>
    %c0_3 = arith.constant 0 : index
    %c0_4 = arith.constant 0 : index
    %c0_5 = arith.constant 0 : index
    %c0_6 = arith.constant 0 : index
    %2 = vector.load %arg3[%c0_3, %c0_4, %c0_5, %c0_6] : memref<1x16x16x4xf32, #tpu.memory_space<vmem>>, vector<1x16x16x4xf32>
    %3 = vector.shape_cast %2 : vector<1x16x16x4xf32> to vector<16x16x4xf32>
    %4 = vector.shape_cast %1 : vector<16x16x4xf32> to vector<1x16x16x4xf32>
    tpu.vector_store %arg3[%c0_3, %c0_4, %c0_5, %c0_6], %4 {strides = array<i32>} : memref<1x16x16x4xf32, #tpu.memory_space<vmem>>, vector<1x16x16x4xf32>,
    %cst = arith.constant 0.000000e+00 : bf16
    %5 = vector.broadcast %cst : bf16 to vector<48x48x4xbf16>
    %c0_7 = arith.constant 0 : index
    %c0_8 = arith.constant 0 : index
    %c0_9 = arith.constant 0 : index
    %6 = vector.load %arg4[%c0_7, %c0_8, %c0_9] : memref<48x48x4xbf16, #tpu.memory_space<vmem>>, vector<48x48x4xbf16>
    tpu.vector_store %arg4[%c0_7, %c0_8, %c0_9], %5 {strides = array<i32>} : memref<48x48x4xbf16, #tpu.memory_space<vmem>>, vector<48x48x4xbf16>,
    %7 = arith.truncf %1 : vector<16x16x4xf32> to vector<16x16x4xbf16>
    %c16 = arith.constant 16 : index
    %c16_10 = arith.constant 16 : index
    %c0_11 = arith.constant 0 : index
    %8 = vector.load %arg4[%c16, %c16_10, %c0_11] : memref<48x48x4xbf16, #tpu.memory_space<vmem>>, vector<16x16x4xbf16>
    tpu.vector_store %arg4[%c16, %c16_10, %c0_11], %7 {strides = array<i32>} : memref<48x48x4xbf16, #tpu.memory_space<vmem>>, vector<16x16x4xbf16>,
    %c15 = arith.constant 15 : index
    %c15_12 = arith.constant 15 : index
    %c0_13 = arith.constant 0 : index
    %9 = vector.load %arg4[%c15, %c15_12, %c0_13] : memref<48x48x4xbf16, #tpu.memory_space<vmem>>, vector<16x16x4xbf16>
    %c0_14 = arith.constant 0 : index
    %c0_15 = arith.constant 0 : index
    %c0_16 = arith.constant 0 : index
    %10 = vector.load %arg5[%c0_14, %c0_15, %c0_16] : memref<16x16x36xbf16, #tpu.memory_space<vmem>>, vector<16x16x4xbf16>
    tpu.vector_store %arg5[%c0_14, %c0_15, %c0_16], %9 {strides = array<i32>} : memref<16x16x36xbf16, #tpu.memory_space<vmem>>, vector<16x16x4xbf16>,
    %c15_17 = arith.constant 15 : index
    %c16_18 = arith.constant 16 : index
    %c0_19 = arith.constant 0 : index
    %11 = vector.load %arg4[%c15_17, %c16_18, %c0_19] : memref<48x48x4xbf16, #tpu.memory_space<vmem>>, vector<16x16x4xbf16>
    %c0_20 = arith.constant 0 : index
    %c0_21 = arith.constant 0 : index
    %c4 = arith.constant 4 : index
    %12 = vector.load %arg5[%c0_20, %c0_21, %c4] : memref<16x16x36xbf16, #tpu.memory_space<vmem>>, vector<16x16x4xbf16>
    tpu.vector_store %arg5[%c0_20, %c0_21, %c4], %11 {strides = array<i32>} : memref<16x16x36xbf16, #tpu.memory_space<vmem>>, vector<16x16x4xbf16>,
    %c15_22 = arith.constant 15 : index
    %c17 = arith.constant 17 : index
    %c0_23 = arith.constant 0 : index
    %13 = vector.load %arg4[%c15_22, %c17, %c0_23] : memref<48x48x4xbf16, #tpu.memory_space<vmem>>, vector<16x16x4xbf16>
    %c0_24 = arith.constant 0 : index
    %c0_25 = arith.constant 0 : index
    %c8 = arith.constant 8 : index
    %14 = vector.load %arg5[%c0_24, %c0_25, %c8] : memref<16x16x36xbf16, #tpu.memory_space<vmem>>, vector<16x16x4xbf16>
    tpu.vector_store %arg5[%c0_24, %c0_25, %c8], %13 {strides = array<i32>} : memref<16x16x36xbf16, #tpu.memory_space<vmem>>, vector<16x16x4xbf16>,
    %c16_26 = arith.constant 16 : index
    %c15_27 = arith.constant 15 : index
    %c0_28 = arith.constant 0 : index
    %15 = vector.load %arg4[%c16_26, %c15_27, %c0_28] : memref<48x48x4xbf16, #tpu.memory_space<vmem>>, vector<16x16x4xbf16>
    %c0_29 = arith.constant 0 : index
    %c0_30 = arith.constant 0 : index
    %c12 = arith.constant 12 : index
    %16 = vector.load %arg5[%c0_29, %c0_30, %c12] : memref<16x16x36xbf16, #tpu.memory_space<vmem>>, vector<16x16x4xbf16>
    tpu.vector_store %arg5[%c0_29, %c0_30, %c12], %15 {strides = array<i32>} : memref<16x16x36xbf16, #tpu.memory_space<vmem>>, vector<16x16x4xbf16>,
    %c16_31 = arith.constant 16 : index
    %c16_32 = arith.constant 16 : index
    %c0_33 = arith.constant 0 : index
    %17 = vector.load %arg4[%c16_31, %c16_32, %c0_33] : memref<48x48x4xbf16, #tpu.memory_space<vmem>>, vector<16x16x4xbf16>
    %c0_34 = arith.constant 0 : index
    %c0_35 = arith.constant 0 : index
    %c16_36 = arith.constant 16 : index
    %18 = vector.load %arg5[%c0_34, %c0_35, %c16_36] : memref<16x16x36xbf16, #tpu.memory_space<vmem>>, vector<16x16x4xbf16>
    tpu.vector_store %arg5[%c0_34, %c0_35, %c16_36], %17 {strides = array<i32>} : memref<16x16x36xbf16, #tpu.memory_space<vmem>>, vector<16x16x4xbf16>,
    %c16_37 = arith.constant 16 : index
    %c17_38 = arith.constant 17 : index
    %c0_39 = arith.constant 0 : index
    %19 = vector.load %arg4[%c16_37, %c17_38, %c0_39] : memref<48x48x4xbf16, #tpu.memory_space<vmem>>, vector<16x16x4xbf16>
    %c0_40 = arith.constant 0 : index
    %c0_41 = arith.constant 0 : index
    %c20 = arith.constant 20 : index
    %20 = vector.load %arg5[%c0_40, %c0_41, %c20] : memref<16x16x36xbf16, #tpu.memory_space<vmem>>, vector<16x16x4xbf16>
    tpu.vector_store %arg5[%c0_40, %c0_41, %c20], %19 {strides = array<i32>} : memref<16x16x36xbf16, #tpu.memory_space<vmem>>, vector<16x16x4xbf16>,
    %c17_42 = arith.constant 17 : index
    %c15_43 = arith.constant 15 : index
    %c0_44 = arith.constant 0 : index
    %21 = vector.load %arg4[%c17_42, %c15_43, %c0_44] : memref<48x48x4xbf16, #tpu.memory_space<vmem>>, vector<16x16x4xbf16>
    %c0_45 = arith.constant 0 : index
    %c0_46 = arith.constant 0 : index
    %c24 = arith.constant 24 : index
    %22 = vector.load %arg5[%c0_45, %c0_46, %c24] : memref<16x16x36xbf16, #tpu.memory_space<vmem>>, vector<16x16x4xbf16>
    tpu.vector_store %arg5[%c0_45, %c0_46, %c24], %21 {strides = array<i32>} : memref<16x16x36xbf16, #tpu.memory_space<vmem>>, vector<16x16x4xbf16>,
    %c17_47 = arith.constant 17 : index
    %c16_48 = arith.constant 16 : index
    %c0_49 = arith.constant 0 : index
    %23 = vector.load %arg4[%c17_47, %c16_48, %c0_49] : memref<48x48x4xbf16, #tpu.memory_space<vmem>>, vector<16x16x4xbf16>
    %c0_50 = arith.constant 0 : index
    %c0_51 = arith.constant 0 : index
    %c28 = arith.constant 28 : index
    %24 = vector.load %arg5[%c0_50, %c0_51, %c28] : memref<16x16x36xbf16, #tpu.memory_space<vmem>>, vector<16x16x4xbf16>
    tpu.vector_store %arg5[%c0_50, %c0_51, %c28], %23 {strides = array<i32>} : memref<16x16x36xbf16, #tpu.memory_space<vmem>>, vector<16x16x4xbf16>,
    %c17_52 = arith.constant 17 : index
    %c17_53 = arith.constant 17 : index
    %c0_54 = arith.constant 0 : index
    %25 = vector.load %arg4[%c17_52, %c17_53, %c0_54] : memref<48x48x4xbf16, #tpu.memory_space<vmem>>, vector<16x16x4xbf16>
    %c0_55 = arith.constant 0 : index
    %c0_56 = arith.constant 0 : index
    %c32 = arith.constant 32 : index
    %26 = vector.load %arg5[%c0_55, %c0_56, %c32] : memref<16x16x36xbf16, #tpu.memory_space<vmem>>, vector<16x16x4xbf16>
    tpu.vector_store %arg5[%c0_55, %c0_56, %c32], %25 {strides = array<i32>} : memref<16x16x36xbf16, #tpu.memory_space<vmem>>, vector<16x16x4xbf16>,
    %c0_57 = arith.constant 0 : index
    %c0_58 = arith.constant 0 : index
    %c0_59 = arith.constant 0 : index
    %27 = vector.load %arg5[%c0_57, %c0_58, %c0_59] : memref<16x16x36xbf16, #tpu.memory_space<vmem>>, vector<16x16x36xbf16>
    %28 = vector.shape_cast %27 : vector<16x16x36xbf16> to vector<256x36xbf16>
    %c0_60 = arith.constant 0 : index
    %c0_61 = arith.constant 0 : index
    %c0_62 = arith.constant 0 : index
    %29 = vector.load %arg2[%c0_60, %c0_61, %c0_62] : memref<5x36x4xbf16, #tpu.memory_space<vmem>>, vector<1x36x4xbf16>
    %30 = vector.shape_cast %29 : vector<1x36x4xbf16> to vector<36x4xbf16>
    %cst_63 = arith.constant dense<0.000000e+00> : vector<256x4xf32>
    %31 = tpu.matmul %28, %30, %cst_63 {dimension_numbers = #tpu.dot_dimension_numbers<[1], [0], [0], [1], [0, 0, 1, 1], [], []>} : vector<256x36xbf16>, vector<36x4xbf16>, vector<256x4xf32> -> vector<256x4xf32>
    %cst_64 = arith.constant 0.000000e+00 : f32
    %32 = vector.broadcast %cst_64 : f32 to vector<256x4xf32>
    %33 = arith.maximumf %31, %32 : vector<256x4xf32>
    %34 = vector.shape_cast %33 : vector<256x4xf32> to vector<16x16x4xf32>
    %c0_65 = arith.constant 0 : index
    %c0_66 = arith.constant 0 : index
    %c0_67 = arith.constant 0 : index
    %c0_68 = arith.constant 0 : index
    %35 = vector.load %arg3[%c0_65, %c0_66, %c0_67, %c0_68] : memref<1x16x16x4xf32, #tpu.memory_space<vmem>>, vector<1x16x16x4xf32>
    %36 = vector.shape_cast %35 : vector<1x16x16x4xf32> to vector<16x16x4xf32>
    %37 = arith.addf %36, %34 : vector<16x16x4xf32>
    %c0_69 = arith.constant 0 : index
    %c0_70 = arith.constant 0 : index
    %c0_71 = arith.constant 0 : index
    %c0_72 = arith.constant 0 : index
    %38 = vector.load %arg3[%c0_69, %c0_70, %c0_71, %c0_72] : memref<1x16x16x4xf32, #tpu.memory_space<vmem>>, vector<1x16x16x4xf32>
    %39 = vector.shape_cast %38 : vector<1x16x16x4xf32> to vector<16x16x4xf32>
    %40 = vector.shape_cast %37 : vector<16x16x4xf32> to vector<1x16x16x4xf32>
    tpu.vector_store %arg3[%c0_69, %c0_70, %c0_71, %c0_72], %40 {strides = array<i32>} : memref<1x16x16x4xf32, #tpu.memory_space<vmem>>, vector<1x16x16x4xf32>,
    %41 = arith.truncf %34 : vector<16x16x4xf32> to vector<16x16x4xbf16>
    %c16_73 = arith.constant 16 : index
    %c16_74 = arith.constant 16 : index
    %c0_75 = arith.constant 0 : index
    %42 = vector.load %arg4[%c16_73, %c16_74, %c0_75] : memref<48x48x4xbf16, #tpu.memory_space<vmem>>, vector<16x16x4xbf16>
    tpu.vector_store %arg4[%c16_73, %c16_74, %c0_75], %41 {strides = array<i32>} : memref<48x48x4xbf16, #tpu.memory_space<vmem>>, vector<16x16x4xbf16>,
    %c14 = arith.constant 14 : index
    %c14_76 = arith.constant 14 : index
    %c0_77 = arith.constant 0 : index
    %43 = vector.load %arg4[%c14, %c14_76, %c0_77] : memref<48x48x4xbf16, #tpu.memory_space<vmem>>, vector<16x16x4xbf16>
    %c0_78 = arith.constant 0 : index
    %c0_79 = arith.constant 0 : index
    %c0_80 = arith.constant 0 : index
    %44 = vector.load %arg5[%c0_78, %c0_79, %c0_80] : memref<16x16x36xbf16, #tpu.memory_space<vmem>>, vector<16x16x4xbf16>
    tpu.vector_store %arg5[%c0_78, %c0_79, %c0_80], %43 {strides = array<i32>} : memref<16x16x36xbf16, #tpu.memory_space<vmem>>, vector<16x16x4xbf16>,
    %c14_81 = arith.constant 14 : index
    %c16_82 = arith.constant 16 : index
    %c0_83 = arith.constant 0 : index
    %45 = vector.load %arg4[%c14_81, %c16_82, %c0_83] : memref<48x48x4xbf16, #tpu.memory_space<vmem>>, vector<16x16x4xbf16>
    %c0_84 = arith.constant 0 : index
    %c0_85 = arith.constant 0 : index
    %c4_86 = arith.constant 4 : index
    %46 = vector.load %arg5[%c0_84, %c0_85, %c4_86] : memref<16x16x36xbf16, #tpu.memory_space<vmem>>, vector<16x16x4xbf16>
    tpu.vector_store %arg5[%c0_84, %c0_85, %c4_86], %45 {strides = array<i32>} : memref<16x16x36xbf16, #tpu.memory_space<vmem>>, vector<16x16x4xbf16>,
    %c14_87 = arith.constant 14 : index
    %c18 = arith.constant 18 : index
    %c0_88 = arith.constant 0 : index
    %47 = vector.load %arg4[%c14_87, %c18, %c0_88] : memref<48x48x4xbf16, #tpu.memory_space<vmem>>, vector<16x16x4xbf16>
    %c0_89 = arith.constant 0 : index
    %c0_90 = arith.constant 0 : index
    %c8_91 = arith.constant 8 : index
    %48 = vector.load %arg5[%c0_89, %c0_90, %c8_91] : memref<16x16x36xbf16, #tpu.memory_space<vmem>>, vector<16x16x4xbf16>
    tpu.vector_store %arg5[%c0_89, %c0_90, %c8_91], %47 {strides = array<i32>} : memref<16x16x36xbf16, #tpu.memory_space<vmem>>, vector<16x16x4xbf16>,
    %c16_92 = arith.constant 16 : index
    %c14_93 = arith.constant 14 : index
    %c0_94 = arith.constant 0 : index
    %49 = vector.load %arg4[%c16_92, %c14_93, %c0_94] : memref<48x48x4xbf16, #tpu.memory_space<vmem>>, vector<16x16x4xbf16>
    %c0_95 = arith.constant 0 : index
    %c0_96 = arith.constant 0 : index
    %c12_97 = arith.constant 12 : index
    %50 = vector.load %arg5[%c0_95, %c0_96, %c12_97] : memref<16x16x36xbf16, #tpu.memory_space<vmem>>, vector<16x16x4xbf16>
    tpu.vector_store %arg5[%c0_95, %c0_96, %c12_97], %49 {strides = array<i32>} : memref<16x16x36xbf16, #tpu.memory_space<vmem>>, vector<16x16x4xbf16>,
    %c16_98 = arith.constant 16 : index
    %c16_99 = arith.constant 16 : index
    %c0_100 = arith.constant 0 : index
    %51 = vector.load %arg4[%c16_98, %c16_99, %c0_100] : memref<48x48x4xbf16, #tpu.memory_space<vmem>>, vector<16x16x4xbf16>
    %c0_101 = arith.constant 0 : index
    %c0_102 = arith.constant 0 : index
    %c16_103 = arith.constant 16 : index
    %52 = vector.load %arg5[%c0_101, %c0_102, %c16_103] : memref<16x16x36xbf16, #tpu.memory_space<vmem>>, vector<16x16x4xbf16>
    tpu.vector_store %arg5[%c0_101, %c0_102, %c16_103], %51 {strides = array<i32>} : memref<16x16x36xbf16, #tpu.memory_space<vmem>>, vector<16x16x4xbf16>,
    %c16_104 = arith.constant 16 : index
    %c18_105 = arith.constant 18 : index
    %c0_106 = arith.constant 0 : index
    %53 = vector.load %arg4[%c16_104, %c18_105, %c0_106] : memref<48x48x4xbf16, #tpu.memory_space<vmem>>, vector<16x16x4xbf16>
    %c0_107 = arith.constant 0 : index
    %c0_108 = arith.constant 0 : index
    %c20_109 = arith.constant 20 : index
    %54 = vector.load %arg5[%c0_107, %c0_108, %c20_109] : memref<16x16x36xbf16, #tpu.memory_space<vmem>>, vector<16x16x4xbf16>
    tpu.vector_store %arg5[%c0_107, %c0_108, %c20_109], %53 {strides = array<i32>} : memref<16x16x36xbf16, #tpu.memory_space<vmem>>, vector<16x16x4xbf16>,
    %c18_110 = arith.constant 18 : index
    %c14_111 = arith.constant 14 : index
    %c0_112 = arith.constant 0 : index
    %55 = vector.load %arg4[%c18_110, %c14_111, %c0_112] : memref<48x48x4xbf16, #tpu.memory_space<vmem>>, vector<16x16x4xbf16>
    %c0_113 = arith.constant 0 : index
    %c0_114 = arith.constant 0 : index
    %c24_115 = arith.constant 24 : index
    %56 = vector.load %arg5[%c0_113, %c0_114, %c24_115] : memref<16x16x36xbf16, #tpu.memory_space<vmem>>, vector<16x16x4xbf16>
    tpu.vector_store %arg5[%c0_113, %c0_114, %c24_115], %55 {strides = array<i32>} : memref<16x16x36xbf16, #tpu.memory_space<vmem>>, vector<16x16x4xbf16>,
    %c18_116 = arith.constant 18 : index
    %c16_117 = arith.constant 16 : index
    %c0_118 = arith.constant 0 : index
    %57 = vector.load %arg4[%c18_116, %c16_117, %c0_118] : memref<48x48x4xbf16, #tpu.memory_space<vmem>>, vector<16x16x4xbf16>
    %c0_119 = arith.constant 0 : index
    %c0_120 = arith.constant 0 : index
    %c28_121 = arith.constant 28 : index
    %58 = vector.load %arg5[%c0_119, %c0_120, %c28_121] : memref<16x16x36xbf16, #tpu.memory_space<vmem>>, vector<16x16x4xbf16>
    tpu.vector_store %arg5[%c0_119, %c0_120, %c28_121], %57 {strides = array<i32>} : memref<16x16x36xbf16, #tpu.memory_space<vmem>>, vector<16x16x4xbf16>,
    %c18_122 = arith.constant 18 : index
    %c18_123 = arith.constant 18 : index
    %c0_124 = arith.constant 0 : index
    %59 = vector.load %arg4[%c18_122, %c18_123, %c0_124] : memref<48x48x4xbf16, #tpu.memory_space<vmem>>, vector<16x16x4xbf16>
    %c0_125 = arith.constant 0 : index
    %c0_126 = arith.constant 0 : index
    %c32_127 = arith.constant 32 : index
    %60 = vector.load %arg5[%c0_125, %c0_126, %c32_127] : memref<16x16x36xbf16, #tpu.memory_space<vmem>>, vector<16x16x4xbf16>
    tpu.vector_store %arg5[%c0_125, %c0_126, %c32_127], %59 {strides = array<i32>} : memref<16x16x36xbf16, #tpu.memory_space<vmem>>, vector<16x16x4xbf16>,
    %c0_128 = arith.constant 0 : index
    %c0_129 = arith.constant 0 : index
    %c0_130 = arith.constant 0 : index
    %61 = vector.load %arg5[%c0_128, %c0_129, %c0_130] : memref<16x16x36xbf16, #tpu.memory_space<vmem>>, vector<16x16x36xbf16>
    %62 = vector.shape_cast %61 : vector<16x16x36xbf16> to vector<256x36xbf16>
    %c1 = arith.constant 1 : index
    %c0_131 = arith.constant 0 : index
    %c0_132 = arith.constant 0 : index
    %63 = vector.load %arg2[%c1, %c0_131, %c0_132] : memref<5x36x4xbf16, #tpu.memory_space<vmem>>, vector<1x36x4xbf16>
    %64 = vector.shape_cast %63 : vector<1x36x4xbf16> to vector<36x4xbf16>
    %cst_133 = arith.constant dense<0.000000e+00> : vector<256x4xf32>
    %65 = tpu.matmul %62, %64, %cst_133 {dimension_numbers = #tpu.dot_dimension_numbers<[1], [0], [0], [1], [0, 0, 1, 1], [], []>} : vector<256x36xbf16>, vector<36x4xbf16>, vector<256x4xf32> -> vector<256x4xf32>
    %cst_134 = arith.constant 0.000000e+00 : f32
    %66 = vector.broadcast %cst_134 : f32 to vector<256x4xf32>
    %67 = arith.maximumf %65, %66 : vector<256x4xf32>
    %68 = vector.shape_cast %67 : vector<256x4xf32> to vector<16x16x4xf32>
    %c0_135 = arith.constant 0 : index
    %c0_136 = arith.constant 0 : index
    %c0_137 = arith.constant 0 : index
    %c0_138 = arith.constant 0 : index
    %69 = vector.load %arg3[%c0_135, %c0_136, %c0_137, %c0_138] : memref<1x16x16x4xf32, #tpu.memory_space<vmem>>, vector<1x16x16x4xf32>
    %70 = vector.shape_cast %69 : vector<1x16x16x4xf32> to vector<16x16x4xf32>
    %71 = arith.addf %70, %68 : vector<16x16x4xf32>
    %c0_139 = arith.constant 0 : index
    %c0_140 = arith.constant 0 : index
    %c0_141 = arith.constant 0 : index
    %c0_142 = arith.constant 0 : index
    %72 = vector.load %arg3[%c0_139, %c0_140, %c0_141, %c0_142] : memref<1x16x16x4xf32, #tpu.memory_space<vmem>>, vector<1x16x16x4xf32>
    %73 = vector.shape_cast %72 : vector<1x16x16x4xf32> to vector<16x16x4xf32>
    %74 = vector.shape_cast %71 : vector<16x16x4xf32> to vector<1x16x16x4xf32>
    tpu.vector_store %arg3[%c0_139, %c0_140, %c0_141, %c0_142], %74 {strides = array<i32>} : memref<1x16x16x4xf32, #tpu.memory_space<vmem>>, vector<1x16x16x4xf32>,
    %75 = arith.truncf %68 : vector<16x16x4xf32> to vector<16x16x4xbf16>
    %c16_143 = arith.constant 16 : index
    %c16_144 = arith.constant 16 : index
    %c0_145 = arith.constant 0 : index
    %76 = vector.load %arg4[%c16_143, %c16_144, %c0_145] : memref<48x48x4xbf16, #tpu.memory_space<vmem>>, vector<16x16x4xbf16>
    tpu.vector_store %arg4[%c16_143, %c16_144, %c0_145], %75 {strides = array<i32>} : memref<48x48x4xbf16, #tpu.memory_space<vmem>>, vector<16x16x4xbf16>,
    %c12_146 = arith.constant 12 : index
    %c12_147 = arith.constant 12 : index
    %c0_148 = arith.constant 0 : index
    %77 = vector.load %arg4[%c12_146, %c12_147, %c0_148] : memref<48x48x4xbf16, #tpu.memory_space<vmem>>, vector<16x16x4xbf16>
    %c0_149 = arith.constant 0 : index
    %c0_150 = arith.constant 0 : index
    %c0_151 = arith.constant 0 : index
    %78 = vector.load %arg5[%c0_149, %c0_150, %c0_151] : memref<16x16x36xbf16, #tpu.memory_space<vmem>>, vector<16x16x4xbf16>
    tpu.vector_store %arg5[%c0_149, %c0_150, %c0_151], %77 {strides = array<i32>} : memref<16x16x36xbf16, #tpu.memory_space<vmem>>, vector<16x16x4xbf16>,
    %c12_152 = arith.constant 12 : index
    %c16_153 = arith.constant 16 : index
    %c0_154 = arith.constant 0 : index
    %79 = vector.load %arg4[%c12_152, %c16_153, %c0_154] : memref<48x48x4xbf16, #tpu.memory_space<vmem>>, vector<16x16x4xbf16>
    %c0_155 = arith.constant 0 : index
    %c0_156 = arith.constant 0 : index
    %c4_157 = arith.constant 4 : index
    %80 = vector.load %arg5[%c0_155, %c0_156, %c4_157] : memref<16x16x36xbf16, #tpu.memory_space<vmem>>, vector<16x16x4xbf16>
    tpu.vector_store %arg5[%c0_155, %c0_156, %c4_157], %79 {strides = array<i32>} : memref<16x16x36xbf16, #tpu.memory_space<vmem>>, vector<16x16x4xbf16>,
    %c12_158 = arith.constant 12 : index
    %c20_159 = arith.constant 20 : index
    %c0_160 = arith.constant 0 : index
    %81 = vector.load %arg4[%c12_158, %c20_159, %c0_160] : memref<48x48x4xbf16, #tpu.memory_space<vmem>>, vector<16x16x4xbf16>
    %c0_161 = arith.constant 0 : index
    %c0_162 = arith.constant 0 : index
    %c8_163 = arith.constant 8 : index
    %82 = vector.load %arg5[%c0_161, %c0_162, %c8_163] : memref<16x16x36xbf16, #tpu.memory_space<vmem>>, vector<16x16x4xbf16>
    tpu.vector_store %arg5[%c0_161, %c0_162, %c8_163], %81 {strides = array<i32>} : memref<16x16x36xbf16, #tpu.memory_space<vmem>>, vector<16x16x4xbf16>,
    %c16_164 = arith.constant 16 : index
    %c12_165 = arith.constant 12 : index
    %c0_166 = arith.constant 0 : index
    %83 = vector.load %arg4[%c16_164, %c12_165, %c0_166] : memref<48x48x4xbf16, #tpu.memory_space<vmem>>, vector<16x16x4xbf16>
    %c0_167 = arith.constant 0 : index
    %c0_168 = arith.constant 0 : index
    %c12_169 = arith.constant 12 : index
    %84 = vector.load %arg5[%c0_167, %c0_168, %c12_169] : memref<16x16x36xbf16, #tpu.memory_space<vmem>>, vector<16x16x4xbf16>
    tpu.vector_store %arg5[%c0_167, %c0_168, %c12_169], %83 {strides = array<i32>} : memref<16x16x36xbf16, #tpu.memory_space<vmem>>, vector<16x16x4xbf16>,
    %c16_170 = arith.constant 16 : index
    %c16_171 = arith.constant 16 : index
    %c0_172 = arith.constant 0 : index
    %85 = vector.load %arg4[%c16_170, %c16_171, %c0_172] : memref<48x48x4xbf16, #tpu.memory_space<vmem>>, vector<16x16x4xbf16>
    %c0_173 = arith.constant 0 : index
    %c0_174 = arith.constant 0 : index
    %c16_175 = arith.constant 16 : index
    %86 = vector.load %arg5[%c0_173, %c0_174, %c16_175] : memref<16x16x36xbf16, #tpu.memory_space<vmem>>, vector<16x16x4xbf16>
    tpu.vector_store %arg5[%c0_173, %c0_174, %c16_175], %85 {strides = array<i32>} : memref<16x16x36xbf16, #tpu.memory_space<vmem>>, vector<16x16x4xbf16>,
    %c16_176 = arith.constant 16 : index
    %c20_177 = arith.constant 20 : index
    %c0_178 = arith.constant 0 : index
    %87 = vector.load %arg4[%c16_176, %c20_177, %c0_178] : memref<48x48x4xbf16, #tpu.memory_space<vmem>>, vector<16x16x4xbf16>
    %c0_179 = arith.constant 0 : index
    %c0_180 = arith.constant 0 : index
    %c20_181 = arith.constant 20 : index
    %88 = vector.load %arg5[%c0_179, %c0_180, %c20_181] : memref<16x16x36xbf16, #tpu.memory_space<vmem>>, vector<16x16x4xbf16>
    tpu.vector_store %arg5[%c0_179, %c0_180, %c20_181], %87 {strides = array<i32>} : memref<16x16x36xbf16, #tpu.memory_space<vmem>>, vector<16x16x4xbf16>,
    %c20_182 = arith.constant 20 : index
    %c12_183 = arith.constant 12 : index
    %c0_184 = arith.constant 0 : index
    %89 = vector.load %arg4[%c20_182, %c12_183, %c0_184] : memref<48x48x4xbf16, #tpu.memory_space<vmem>>, vector<16x16x4xbf16>
    %c0_185 = arith.constant 0 : index
    %c0_186 = arith.constant 0 : index
    %c24_187 = arith.constant 24 : index
    %90 = vector.load %arg5[%c0_185, %c0_186, %c24_187] : memref<16x16x36xbf16, #tpu.memory_space<vmem>>, vector<16x16x4xbf16>
    tpu.vector_store %arg5[%c0_185, %c0_186, %c24_187], %89 {strides = array<i32>} : memref<16x16x36xbf16, #tpu.memory_space<vmem>>, vector<16x16x4xbf16>,
    %c20_188 = arith.constant 20 : index
    %c16_189 = arith.constant 16 : index
    %c0_190 = arith.constant 0 : index
    %91 = vector.load %arg4[%c20_188, %c16_189, %c0_190] : memref<48x48x4xbf16, #tpu.memory_space<vmem>>, vector<16x16x4xbf16>
    %c0_191 = arith.constant 0 : index
    %c0_192 = arith.constant 0 : index
    %c28_193 = arith.constant 28 : index
    %92 = vector.load %arg5[%c0_191, %c0_192, %c28_193] : memref<16x16x36xbf16, #tpu.memory_space<vmem>>, vector<16x16x4xbf16>
    tpu.vector_store %arg5[%c0_191, %c0_192, %c28_193], %91 {strides = array<i32>} : memref<16x16x36xbf16, #tpu.memory_space<vmem>>, vector<16x16x4xbf16>,
    %c20_194 = arith.constant 20 : index
    %c20_195 = arith.constant 20 : index
    %c0_196 = arith.constant 0 : index
    %93 = vector.load %arg4[%c20_194, %c20_195, %c0_196] : memref<48x48x4xbf16, #tpu.memory_space<vmem>>, vector<16x16x4xbf16>
    %c0_197 = arith.constant 0 : index
    %c0_198 = arith.constant 0 : index
    %c32_199 = arith.constant 32 : index
    %94 = vector.load %arg5[%c0_197, %c0_198, %c32_199] : memref<16x16x36xbf16, #tpu.memory_space<vmem>>, vector<16x16x4xbf16>
    tpu.vector_store %arg5[%c0_197, %c0_198, %c32_199], %93 {strides = array<i32>} : memref<16x16x36xbf16, #tpu.memory_space<vmem>>, vector<16x16x4xbf16>,
    %c0_200 = arith.constant 0 : index
    %c0_201 = arith.constant 0 : index
    %c0_202 = arith.constant 0 : index
    %95 = vector.load %arg5[%c0_200, %c0_201, %c0_202] : memref<16x16x36xbf16, #tpu.memory_space<vmem>>, vector<16x16x36xbf16>
    %96 = vector.shape_cast %95 : vector<16x16x36xbf16> to vector<256x36xbf16>
    %c2 = arith.constant 2 : index
    %c0_203 = arith.constant 0 : index
    %c0_204 = arith.constant 0 : index
    %97 = vector.load %arg2[%c2, %c0_203, %c0_204] : memref<5x36x4xbf16, #tpu.memory_space<vmem>>, vector<1x36x4xbf16>
    %98 = vector.shape_cast %97 : vector<1x36x4xbf16> to vector<36x4xbf16>
    %cst_205 = arith.constant dense<0.000000e+00> : vector<256x4xf32>
    %99 = tpu.matmul %96, %98, %cst_205 {dimension_numbers = #tpu.dot_dimension_numbers<[1], [0], [0], [1], [0, 0, 1, 1], [], []>} : vector<256x36xbf16>, vector<36x4xbf16>, vector<256x4xf32> -> vector<256x4xf32>
    %cst_206 = arith.constant 0.000000e+00 : f32
    %100 = vector.broadcast %cst_206 : f32 to vector<256x4xf32>
    %101 = arith.maximumf %99, %100 : vector<256x4xf32>
    %102 = vector.shape_cast %101 : vector<256x4xf32> to vector<16x16x4xf32>
    %c0_207 = arith.constant 0 : index
    %c0_208 = arith.constant 0 : index
    %c0_209 = arith.constant 0 : index
    %c0_210 = arith.constant 0 : index
    %103 = vector.load %arg3[%c0_207, %c0_208, %c0_209, %c0_210] : memref<1x16x16x4xf32, #tpu.memory_space<vmem>>, vector<1x16x16x4xf32>
    %104 = vector.shape_cast %103 : vector<1x16x16x4xf32> to vector<16x16x4xf32>
    %105 = arith.addf %104, %102 : vector<16x16x4xf32>
    %c0_211 = arith.constant 0 : index
    %c0_212 = arith.constant 0 : index
    %c0_213 = arith.constant 0 : index
    %c0_214 = arith.constant 0 : index
    %106 = vector.load %arg3[%c0_211, %c0_212, %c0_213, %c0_214] : memref<1x16x16x4xf32, #tpu.memory_space<vmem>>, vector<1x16x16x4xf32>
    %107 = vector.shape_cast %106 : vector<1x16x16x4xf32> to vector<16x16x4xf32>
    %108 = vector.shape_cast %105 : vector<16x16x4xf32> to vector<1x16x16x4xf32>
    tpu.vector_store %arg3[%c0_211, %c0_212, %c0_213, %c0_214], %108 {strides = array<i32>} : memref<1x16x16x4xf32, #tpu.memory_space<vmem>>, vector<1x16x16x4xf32>,
    %109 = arith.truncf %102 : vector<16x16x4xf32> to vector<16x16x4xbf16>
    %c16_215 = arith.constant 16 : index
    %c16_216 = arith.constant 16 : index
    %c0_217 = arith.constant 0 : index
    %110 = vector.load %arg4[%c16_215, %c16_216, %c0_217] : memref<48x48x4xbf16, #tpu.memory_space<vmem>>, vector<16x16x4xbf16>
    tpu.vector_store %arg4[%c16_215, %c16_216, %c0_217], %109 {strides = array<i32>} : memref<48x48x4xbf16, #tpu.memory_space<vmem>>, vector<16x16x4xbf16>,
    %c8_218 = arith.constant 8 : index
    %c8_219 = arith.constant 8 : index
    %c0_220 = arith.constant 0 : index
    %111 = vector.load %arg4[%c8_218, %c8_219, %c0_220] : memref<48x48x4xbf16, #tpu.memory_space<vmem>>, vector<16x16x4xbf16>
    %c0_221 = arith.constant 0 : index
    %c0_222 = arith.constant 0 : index
    %c0_223 = arith.constant 0 : index
    %112 = vector.load %arg5[%c0_221, %c0_222, %c0_223] : memref<16x16x36xbf16, #tpu.memory_space<vmem>>, vector<16x16x4xbf16>
    tpu.vector_store %arg5[%c0_221, %c0_222, %c0_223], %111 {strides = array<i32>} : memref<16x16x36xbf16, #tpu.memory_space<vmem>>, vector<16x16x4xbf16>,
    %c8_224 = arith.constant 8 : index
    %c16_225 = arith.constant 16 : index
    %c0_226 = arith.constant 0 : index
    %113 = vector.load %arg4[%c8_224, %c16_225, %c0_226] : memref<48x48x4xbf16, #tpu.memory_space<vmem>>, vector<16x16x4xbf16>
    %c0_227 = arith.constant 0 : index
    %c0_228 = arith.constant 0 : index
    %c4_229 = arith.constant 4 : index
    %114 = vector.load %arg5[%c0_227, %c0_228, %c4_229] : memref<16x16x36xbf16, #tpu.memory_space<vmem>>, vector<16x16x4xbf16>
    tpu.vector_store %arg5[%c0_227, %c0_228, %c4_229], %113 {strides = array<i32>} : memref<16x16x36xbf16, #tpu.memory_space<vmem>>, vector<16x16x4xbf16>,
    %c8_230 = arith.constant 8 : index
    %c24_231 = arith.constant 24 : index
    %c0_232 = arith.constant 0 : index
    %115 = vector.load %arg4[%c8_230, %c24_231, %c0_232] : memref<48x48x4xbf16, #tpu.memory_space<vmem>>, vector<16x16x4xbf16>
    %c0_233 = arith.constant 0 : index
    %c0_234 = arith.constant 0 : index
    %c8_235 = arith.constant 8 : index
    %116 = vector.load %arg5[%c0_233, %c0_234, %c8_235] : memref<16x16x36xbf16, #tpu.memory_space<vmem>>, vector<16x16x4xbf16>
    tpu.vector_store %arg5[%c0_233, %c0_234, %c8_235], %115 {strides = array<i32>} : memref<16x16x36xbf16, #tpu.memory_space<vmem>>, vector<16x16x4xbf16>,
    %c16_236 = arith.constant 16 : index
    %c8_237 = arith.constant 8 : index
    %c0_238 = arith.constant 0 : index
    %117 = vector.load %arg4[%c16_236, %c8_237, %c0_238] : memref<48x48x4xbf16, #tpu.memory_space<vmem>>, vector<16x16x4xbf16>
    %c0_239 = arith.constant 0 : index
    %c0_240 = arith.constant 0 : index
    %c12_241 = arith.constant 12 : index
    %118 = vector.load %arg5[%c0_239, %c0_240, %c12_241] : memref<16x16x36xbf16, #tpu.memory_space<vmem>>, vector<16x16x4xbf16>
    tpu.vector_store %arg5[%c0_239, %c0_240, %c12_241], %117 {strides = array<i32>} : memref<16x16x36xbf16, #tpu.memory_space<vmem>>, vector<16x16x4xbf16>,
    %c16_242 = arith.constant 16 : index
    %c16_243 = arith.constant 16 : index
    %c0_244 = arith.constant 0 : index
    %119 = vector.load %arg4[%c16_242, %c16_243, %c0_244] : memref<48x48x4xbf16, #tpu.memory_space<vmem>>, vector<16x16x4xbf16>
    %c0_245 = arith.constant 0 : index
    %c0_246 = arith.constant 0 : index
    %c16_247 = arith.constant 16 : index
    %120 = vector.load %arg5[%c0_245, %c0_246, %c16_247] : memref<16x16x36xbf16, #tpu.memory_space<vmem>>, vector<16x16x4xbf16>
    tpu.vector_store %arg5[%c0_245, %c0_246, %c16_247], %119 {strides = array<i32>} : memref<16x16x36xbf16, #tpu.memory_space<vmem>>, vector<16x16x4xbf16>,
    %c16_248 = arith.constant 16 : index
    %c24_249 = arith.constant 24 : index
    %c0_250 = arith.constant 0 : index
    %121 = vector.load %arg4[%c16_248, %c24_249, %c0_250] : memref<48x48x4xbf16, #tpu.memory_space<vmem>>, vector<16x16x4xbf16>
    %c0_251 = arith.constant 0 : index
    %c0_252 = arith.constant 0 : index
    %c20_253 = arith.constant 20 : index
    %122 = vector.load %arg5[%c0_251, %c0_252, %c20_253] : memref<16x16x36xbf16, #tpu.memory_space<vmem>>, vector<16x16x4xbf16>
    tpu.vector_store %arg5[%c0_251, %c0_252, %c20_253], %121 {strides = array<i32>} : memref<16x16x36xbf16, #tpu.memory_space<vmem>>, vector<16x16x4xbf16>,
    %c24_254 = arith.constant 24 : index
    %c8_255 = arith.constant 8 : index
    %c0_256 = arith.constant 0 : index
    %123 = vector.load %arg4[%c24_254, %c8_255, %c0_256] : memref<48x48x4xbf16, #tpu.memory_space<vmem>>, vector<16x16x4xbf16>
    %c0_257 = arith.constant 0 : index
    %c0_258 = arith.constant 0 : index
    %c24_259 = arith.constant 24 : index
    %124 = vector.load %arg5[%c0_257, %c0_258, %c24_259] : memref<16x16x36xbf16, #tpu.memory_space<vmem>>, vector<16x16x4xbf16>
    tpu.vector_store %arg5[%c0_257, %c0_258, %c24_259], %123 {strides = array<i32>} : memref<16x16x36xbf16, #tpu.memory_space<vmem>>, vector<16x16x4xbf16>,
    %c24_260 = arith.constant 24 : index
    %c16_261 = arith.constant 16 : index
    %c0_262 = arith.constant 0 : index
    %125 = vector.load %arg4[%c24_260, %c16_261, %c0_262] : memref<48x48x4xbf16, #tpu.memory_space<vmem>>, vector<16x16x4xbf16>
    %c0_263 = arith.constant 0 : index
    %c0_264 = arith.constant 0 : index
    %c28_265 = arith.constant 28 : index
    %126 = vector.load %arg5[%c0_263, %c0_264, %c28_265] : memref<16x16x36xbf16, #tpu.memory_space<vmem>>, vector<16x16x4xbf16>
    tpu.vector_store %arg5[%c0_263, %c0_264, %c28_265], %125 {strides = array<i32>} : memref<16x16x36xbf16, #tpu.memory_space<vmem>>, vector<16x16x4xbf16>,
    %c24_266 = arith.constant 24 : index
    %c24_267 = arith.constant 24 : index
    %c0_268 = arith.constant 0 : index
    %127 = vector.load %arg4[%c24_266, %c24_267, %c0_268] : memref<48x48x4xbf16, #tpu.memory_space<vmem>>, vector<16x16x4xbf16>
    %c0_269 = arith.constant 0 : index
    %c0_270 = arith.constant 0 : index
    %c32_271 = arith.constant 32 : index
    %128 = vector.load %arg5[%c0_269, %c0_270, %c32_271] : memref<16x16x36xbf16, #tpu.memory_space<vmem>>, vector<16x16x4xbf16>
    tpu.vector_store %arg5[%c0_269, %c0_270, %c32_271], %127 {strides = array<i32>} : memref<16x16x36xbf16, #tpu.memory_space<vmem>>, vector<16x16x4xbf16>,
    %c0_272 = arith.constant 0 : index
    %c0_273 = arith.constant 0 : index
    %c0_274 = arith.constant 0 : index
    %129 = vector.load %arg5[%c0_272, %c0_273, %c0_274] : memref<16x16x36xbf16, #tpu.memory_space<vmem>>, vector<16x16x36xbf16>
    %130 = vector.shape_cast %129 : vector<16x16x36xbf16> to vector<256x36xbf16>
    %c3 = arith.constant 3 : index
    %c0_275 = arith.constant 0 : index
    %c0_276 = arith.constant 0 : index
    %131 = vector.load %arg2[%c3, %c0_275, %c0_276] : memref<5x36x4xbf16, #tpu.memory_space<vmem>>, vector<1x36x4xbf16>
    %132 = vector.shape_cast %131 : vector<1x36x4xbf16> to vector<36x4xbf16>
    %cst_277 = arith.constant dense<0.000000e+00> : vector<256x4xf32>
    %133 = tpu.matmul %130, %132, %cst_277 {dimension_numbers = #tpu.dot_dimension_numbers<[1], [0], [0], [1], [0, 0, 1, 1], [], []>} : vector<256x36xbf16>, vector<36x4xbf16>, vector<256x4xf32> -> vector<256x4xf32>
    %cst_278 = arith.constant 0.000000e+00 : f32
    %134 = vector.broadcast %cst_278 : f32 to vector<256x4xf32>
    %135 = arith.maximumf %133, %134 : vector<256x4xf32>
    %136 = vector.shape_cast %135 : vector<256x4xf32> to vector<16x16x4xf32>
    %c0_279 = arith.constant 0 : index
    %c0_280 = arith.constant 0 : index
    %c0_281 = arith.constant 0 : index
    %c0_282 = arith.constant 0 : index
    %137 = vector.load %arg3[%c0_279, %c0_280, %c0_281, %c0_282] : memref<1x16x16x4xf32, #tpu.memory_space<vmem>>, vector<1x16x16x4xf32>
    %138 = vector.shape_cast %137 : vector<1x16x16x4xf32> to vector<16x16x4xf32>
    %139 = arith.addf %138, %136 : vector<16x16x4xf32>
    %c0_283 = arith.constant 0 : index
    %c0_284 = arith.constant 0 : index
    %c0_285 = arith.constant 0 : index
    %c0_286 = arith.constant 0 : index
    %140 = vector.load %arg3[%c0_283, %c0_284, %c0_285, %c0_286] : memref<1x16x16x4xf32, #tpu.memory_space<vmem>>, vector<1x16x16x4xf32>
    %141 = vector.shape_cast %140 : vector<1x16x16x4xf32> to vector<16x16x4xf32>
    %142 = vector.shape_cast %139 : vector<16x16x4xf32> to vector<1x16x16x4xf32>
    tpu.vector_store %arg3[%c0_283, %c0_284, %c0_285, %c0_286], %142 {strides = array<i32>} : memref<1x16x16x4xf32, #tpu.memory_space<vmem>>, vector<1x16x16x4xf32>,
    %143 = arith.truncf %136 : vector<16x16x4xf32> to vector<16x16x4xbf16>
    %c16_287 = arith.constant 16 : index
    %c16_288 = arith.constant 16 : index
    %c0_289 = arith.constant 0 : index
    %144 = vector.load %arg4[%c16_287, %c16_288, %c0_289] : memref<48x48x4xbf16, #tpu.memory_space<vmem>>, vector<16x16x4xbf16>
    tpu.vector_store %arg4[%c16_287, %c16_288, %c0_289], %143 {strides = array<i32>} : memref<48x48x4xbf16, #tpu.memory_space<vmem>>, vector<16x16x4xbf16>,
    %c0_290 = arith.constant 0 : index
    %c0_291 = arith.constant 0 : index
    %c0_292 = arith.constant 0 : index
    %145 = vector.load %arg4[%c0_290, %c0_291, %c0_292] : memref<48x48x4xbf16, #tpu.memory_space<vmem>>, vector<16x16x4xbf16>
    %c0_293 = arith.constant 0 : index
    %c0_294 = arith.constant 0 : index
    %c0_295 = arith.constant 0 : index
    %146 = vector.load %arg5[%c0_293, %c0_294, %c0_295] : memref<16x16x36xbf16, #tpu.memory_space<vmem>>, vector<16x16x4xbf16>
    tpu.vector_store %arg5[%c0_293, %c0_294, %c0_295], %145 {strides = array<i32>} : memref<16x16x36xbf16, #tpu.memory_space<vmem>>, vector<16x16x4xbf16>,
    %c0_296 = arith.constant 0 : index
    %c16_297 = arith.constant 16 : index
    %c0_298 = arith.constant 0 : index
    %147 = vector.load %arg4[%c0_296, %c16_297, %c0_298] : memref<48x48x4xbf16, #tpu.memory_space<vmem>>, vector<16x16x4xbf16>
    %c0_299 = arith.constant 0 : index
    %c0_300 = arith.constant 0 : index
    %c4_301 = arith.constant 4 : index
    %148 = vector.load %arg5[%c0_299, %c0_300, %c4_301] : memref<16x16x36xbf16, #tpu.memory_space<vmem>>, vector<16x16x4xbf16>
    tpu.vector_store %arg5[%c0_299, %c0_300, %c4_301], %147 {strides = array<i32>} : memref<16x16x36xbf16, #tpu.memory_space<vmem>>, vector<16x16x4xbf16>,
    %c0_302 = arith.constant 0 : index
    %c32_303 = arith.constant 32 : index
    %c0_304 = arith.constant 0 : index
    %149 = vector.load %arg4[%c0_302, %c32_303, %c0_304] : memref<48x48x4xbf16, #tpu.memory_space<vmem>>, vector<16x16x4xbf16>
    %c0_305 = arith.constant 0 : index
    %c0_306 = arith.constant 0 : index
    %c8_307 = arith.constant 8 : index
    %150 = vector.load %arg5[%c0_305, %c0_306, %c8_307] : memref<16x16x36xbf16, #tpu.memory_space<vmem>>, vector<16x16x4xbf16>
    tpu.vector_store %arg5[%c0_305, %c0_306, %c8_307], %149 {strides = array<i32>} : memref<16x16x36xbf16, #tpu.memory_space<vmem>>, vector<16x16x4xbf16>,
    %c16_308 = arith.constant 16 : index
    %c0_309 = arith.constant 0 : index
    %c0_310 = arith.constant 0 : index
    %151 = vector.load %arg4[%c16_308, %c0_309, %c0_310] : memref<48x48x4xbf16, #tpu.memory_space<vmem>>, vector<16x16x4xbf16>
    %c0_311 = arith.constant 0 : index
    %c0_312 = arith.constant 0 : index
    %c12_313 = arith.constant 12 : index
    %152 = vector.load %arg5[%c0_311, %c0_312, %c12_313] : memref<16x16x36xbf16, #tpu.memory_space<vmem>>, vector<16x16x4xbf16>
    tpu.vector_store %arg5[%c0_311, %c0_312, %c12_313], %151 {strides = array<i32>} : memref<16x16x36xbf16, #tpu.memory_space<vmem>>, vector<16x16x4xbf16>,
    %c16_314 = arith.constant 16 : index
    %c16_315 = arith.constant 16 : index
    %c0_316 = arith.constant 0 : index
    %153 = vector.load %arg4[%c16_314, %c16_315, %c0_316] : memref<48x48x4xbf16, #tpu.memory_space<vmem>>, vector<16x16x4xbf16>
    %c0_317 = arith.constant 0 : index
    %c0_318 = arith.constant 0 : index
    %c16_319 = arith.constant 16 : index
    %154 = vector.load %arg5[%c0_317, %c0_318, %c16_319] : memref<16x16x36xbf16, #tpu.memory_space<vmem>>, vector<16x16x4xbf16>
    tpu.vector_store %arg5[%c0_317, %c0_318, %c16_319], %153 {strides = array<i32>} : memref<16x16x36xbf16, #tpu.memory_space<vmem>>, vector<16x16x4xbf16>,
    %c16_320 = arith.constant 16 : index
    %c32_321 = arith.constant 32 : index
    %c0_322 = arith.constant 0 : index
    %155 = vector.load %arg4[%c16_320, %c32_321, %c0_322] : memref<48x48x4xbf16, #tpu.memory_space<vmem>>, vector<16x16x4xbf16>
    %c0_323 = arith.constant 0 : index
    %c0_324 = arith.constant 0 : index
    %c20_325 = arith.constant 20 : index
    %156 = vector.load %arg5[%c0_323, %c0_324, %c20_325] : memref<16x16x36xbf16, #tpu.memory_space<vmem>>, vector<16x16x4xbf16>
    tpu.vector_store %arg5[%c0_323, %c0_324, %c20_325], %155 {strides = array<i32>} : memref<16x16x36xbf16, #tpu.memory_space<vmem>>, vector<16x16x4xbf16>,
    %c32_326 = arith.constant 32 : index
    %c0_327 = arith.constant 0 : index
    %c0_328 = arith.constant 0 : index
    %157 = vector.load %arg4[%c32_326, %c0_327, %c0_328] : memref<48x48x4xbf16, #tpu.memory_space<vmem>>, vector<16x16x4xbf16>
    %c0_329 = arith.constant 0 : index
    %c0_330 = arith.constant 0 : index
    %c24_331 = arith.constant 24 : index
    %158 = vector.load %arg5[%c0_329, %c0_330, %c24_331] : memref<16x16x36xbf16, #tpu.memory_space<vmem>>, vector<16x16x4xbf16>
    tpu.vector_store %arg5[%c0_329, %c0_330, %c24_331], %157 {strides = array<i32>} : memref<16x16x36xbf16, #tpu.memory_space<vmem>>, vector<16x16x4xbf16>,
    %c32_332 = arith.constant 32 : index
    %c16_333 = arith.constant 16 : index
    %c0_334 = arith.constant 0 : index
    %159 = vector.load %arg4[%c32_332, %c16_333, %c0_334] : memref<48x48x4xbf16, #tpu.memory_space<vmem>>, vector<16x16x4xbf16>
    %c0_335 = arith.constant 0 : index
    %c0_336 = arith.constant 0 : index
    %c28_337 = arith.constant 28 : index
    %160 = vector.load %arg5[%c0_335, %c0_336, %c28_337] : memref<16x16x36xbf16, #tpu.memory_space<vmem>>, vector<16x16x4xbf16>
    tpu.vector_store %arg5[%c0_335, %c0_336, %c28_337], %159 {strides = array<i32>} : memref<16x16x36xbf16, #tpu.memory_space<vmem>>, vector<16x16x4xbf16>,
    %c32_338 = arith.constant 32 : index
    %c32_339 = arith.constant 32 : index
    %c0_340 = arith.constant 0 : index
    %161 = vector.load %arg4[%c32_338, %c32_339, %c0_340] : memref<48x48x4xbf16, #tpu.memory_space<vmem>>, vector<16x16x4xbf16>
    %c0_341 = arith.constant 0 : index
    %c0_342 = arith.constant 0 : index
    %c32_343 = arith.constant 32 : index
    %162 = vector.load %arg5[%c0_341, %c0_342, %c32_343] : memref<16x16x36xbf16, #tpu.memory_space<vmem>>, vector<16x16x4xbf16>
    tpu.vector_store %arg5[%c0_341, %c0_342, %c32_343], %161 {strides = array<i32>} : memref<16x16x36xbf16, #tpu.memory_space<vmem>>, vector<16x16x4xbf16>,
    %c0_344 = arith.constant 0 : index
    %c0_345 = arith.constant 0 : index
    %c0_346 = arith.constant 0 : index
    %163 = vector.load %arg5[%c0_344, %c0_345, %c0_346] : memref<16x16x36xbf16, #tpu.memory_space<vmem>>, vector<16x16x36xbf16>
    %164 = vector.shape_cast %163 : vector<16x16x36xbf16> to vector<256x36xbf16>
    %c4_347 = arith.constant 4 : index
    %c0_348 = arith.constant 0 : index
    %c0_349 = arith.constant 0 : index
    %165 = vector.load %arg2[%c4_347, %c0_348, %c0_349] : memref<5x36x4xbf16, #tpu.memory_space<vmem>>, vector<1x36x4xbf16>
    %166 = vector.shape_cast %165 : vector<1x36x4xbf16> to vector<36x4xbf16>
    %cst_350 = arith.constant dense<0.000000e+00> : vector<256x4xf32>
    %167 = tpu.matmul %164, %166, %cst_350 {dimension_numbers = #tpu.dot_dimension_numbers<[1], [0], [0], [1], [0, 0, 1, 1], [], []>} : vector<256x36xbf16>, vector<36x4xbf16>, vector<256x4xf32> -> vector<256x4xf32>
    %cst_351 = arith.constant 0.000000e+00 : f32
    %168 = vector.broadcast %cst_351 : f32 to vector<256x4xf32>
    %169 = arith.maximumf %167, %168 : vector<256x4xf32>
    %170 = vector.shape_cast %169 : vector<256x4xf32> to vector<16x16x4xf32>
    %c0_352 = arith.constant 0 : index
    %c0_353 = arith.constant 0 : index
    %c0_354 = arith.constant 0 : index
    %c0_355 = arith.constant 0 : index
    %171 = vector.load %arg3[%c0_352, %c0_353, %c0_354, %c0_355] : memref<1x16x16x4xf32, #tpu.memory_space<vmem>>, vector<1x16x16x4xf32>
    %172 = vector.shape_cast %171 : vector<1x16x16x4xf32> to vector<16x16x4xf32>
    %173 = arith.addf %172, %170 : vector<16x16x4xf32>
    %c0_356 = arith.constant 0 : index
    %c0_357 = arith.constant 0 : index
    %c0_358 = arith.constant 0 : index
    %c0_359 = arith.constant 0 : index
    %174 = vector.load %arg3[%c0_356, %c0_357, %c0_358, %c0_359] : memref<1x16x16x4xf32, #tpu.memory_space<vmem>>, vector<1x16x16x4xf32>
    %175 = vector.shape_cast %174 : vector<1x16x16x4xf32> to vector<16x16x4xf32>
    %176 = vector.shape_cast %173 : vector<16x16x4xf32> to vector<1x16x16x4xf32>
    tpu.vector_store %arg3[%c0_356, %c0_357, %c0_358, %c0_359], %176 {strides = array<i32>} : memref<1x16x16x4xf32, #tpu.memory_space<vmem>>, vector<1x16x16x4xf32>,
    return
  }
  func.func @transform_0(%arg0: i32) -> (i32, i32, i32, i32) {
    %c0_i32 = arith.constant 0 : i32
    %c0_i32_0 = arith.constant 0 : i32
    %c0_i32_1 = arith.constant 0 : i32
    %c0_i32_2 = arith.constant 0 : i32
    return %arg0, %c0_i32, %c0_i32_0, %c0_i32_1 : i32, i32, i32, i32
  }
  func.func @transform_1(%arg0: i32) -> (i32, i32, i32) {
    %c0_i32 = arith.constant 0 : i32
    %c0_i32_0 = arith.constant 0 : i32
    %c0_i32_1 = arith.constant 0 : i32
    %c0_i32_2 = arith.constant 0 : i32
    return %c0_i32, %c0_i32_0, %c0_i32_1 : i32, i32, i32
  }
  func.func @transform_2(%arg0: i32) -> (i32, i32, i32, i32) {
    %c0_i32 = arith.constant 0 : i32
    %c0_i32_0 = arith.constant 0 : i32
    %c0_i32_1 = arith.constant 0 : i32
    %c0_i32_2 = arith.constant 0 : i32
    return %arg0, %c0_i32, %c0_i32_0, %c0_i32_1 : i32, i32, i32, i32
  }
}

</mosaic_0001>

<bundles_post_ra>
// kernel: tpu_custom_call.1
= control target key start
LH: loop header
LB: loop body
LE: loop exit
PB: predicated region body
PF: predicated region fallthrough
CT: control target
= control target key end

     0   :  { %s9689_s9 = smov 0   ;;  %s13224_s0 = inlined_call_operand.vmem [shape: f32[2,16,16,4], index: 0, kind: input, shape index: {}]   ;;  %s13225_s1 = inlined_call_operand.vmem [shape: bf16[5,36,4], index: 1, kind: input, shape index: {}]   ;;  %s13226_s2 = inlined_call_operand.vmem [shape: f32[2,16,16,4], index: 2, kind: output, shape index: {}]  }
   0x1 LB: > { %s9200_s10 = sadd.s32 4294967295, %s9663_s9   ;;  %p9204_p0 = scmp.ge.s32.totalorder %s9663_s9, 1  ;;  %s9663_s9 = sphi %s9689_s9, %s12_s9  }
   0x2   : > { %p112_p1 = scmp.lt.s32.totalorder %s9663_s9, 3 }
   0x4   : > { %p113_p2 = pnand %p9204_p0, %p112_p1 }
   0x6   : > { %116 = sbr.rel (%p113_p2) target bundleno = 2409 (0x969), region = 28 }
   0xd   : > { %vm177_vm0 = vcmask 31744   ;;  %v9665_v0 = vmov 0   ;;  %p134_p3 = scmp.lt.s32.totalorder %s9200_s10, 1  ;;  %s9666_s18 = smov 4   ;;  %vm774_vm1 = vsmask.f32 7424 }
   0xe   : > { %256 = vst.msk [vmem:[#allocation2 + $0x170] sm:$0xff] %vm177_vm0, %v9665_v0  ;;  %210 = vst.msk [vmem:[#allocation2] sm:$0xff] %vm177_vm0, %v9665_v0  ;;  %s9667_s19 = smov 8   ;;  %s9668_s20 = smov 16   ;;  %vm420_vm2 = vsmask.f32 256 }
   0xf   : > { %211 = vst.msk [vmem:[#allocation2 + $0x8] sm:$0xff] %vm177_vm0, %v9665_v0  ;;  %212 = vst.msk [vmem:[#allocation2 + $0x10] sm:$0xff] %vm177_vm0, %v9665_v0  ;;  %s13236_s10 = smov (!%p134_p3, %s9200_s10), 1  ;;  %s9669_s21 = smov 28   ;;  %vm2468_vm3 = vcmask 1041408   ;;  %vm725_vm4 = vcmask 64544  }
  0x10   : > { %213 = vst.msk [vmem:[#allocation2 + $0x18] sm:$0xff] %vm177_vm0, %v9665_v0  ;;  %214 = vst.msk [vmem:[#allocation2 + $0x20] sm:$0xff] %vm177_vm0, %v9665_v0  ;;  %s9326_s11 = sshll.u32 %s13236_s10, 8  ;;  %s9670_s22 = smov 12   ;;  %vm1015_vm5 = vcmask 97344   ;;  %vm1304_vm6 = vcmask 130144  }
  0x11   : > { %215 = vst.msk [vmem:[#allocation2 + $0x28] sm:$0xff] %vm177_vm0, %v9665_v0  ;;  %216 = vst.msk [vmem:[#allocation2 + $0x30] sm:$0xff] %vm177_vm0, %v9665_v0  ;;  %s9992_s14 = scalar_lea.vmem %s13224_s0, %s9326_s11  ;;  %s9997_s17 = scalar_lea.vmem %s13226_s2, %s9326_s11  ;;  %vm1401_vm7 = vcmask 162944   ;;  %vm1690_vm8 = vcmask 195744   ;;  %vm1980_vm9 = vcmask 228544   ;;  %vm2077_vm10 = vcmask 261344  }
  0x12   : > { %217 = vst.msk [vmem:[#allocation2 + $0x38] sm:$0xff] %vm177_vm0, %v9665_v0  ;;  %218 = vst.msk [vmem:[#allocation2 + $0x40] sm:$0xff] %vm177_vm0, %v9665_v0  ;;  %v145_v1 = vld [vmem:[%s9992_s14] sm:$0xff]  ;;  %v146_v2 = vld [vmem:[%s9992_s14 + $0x8] sm:$0xff]  ;;  %s9671_s23 = smov 20   ;;  %s9672_s26 = smov 24  }
  0x13   : > { %219 = vst.msk [vmem:[#allocation2 + $0x48] sm:$0xff] %vm177_vm0, %v9665_v0  ;;  %220 = vst.msk [vmem:[#allocation2 + $0x50] sm:$0xff] %vm177_vm0, %v9665_v0  ;;  %v147_v3 = vld [vmem:[%s9992_s14 + $0x10] sm:$0xff]  ;;  %v354_v6 = vpack.c.bf16 %v146_v2, %v145_v1  ;;  %v148_v7 = vld [vmem:[%s9992_s14 + $0x18] sm:$0xff]  ;;  %s9673_s27 = smov 32   ;;  %vm2366_vm11 = vcmask 294144  }
  0x14   : > { %221 = vst.msk [vmem:[#allocation2 + $0x58] sm:$0xff] %vm177_vm0, %v9665_v0  ;;  %222 = vst.msk [vmem:[#allocation2 + $0x60] sm:$0xff] %vm177_vm0, %v9665_v0  ;;  %v355_v11 = vpack.c.bf16 %v148_v7, %v147_v3  ;;  %v149_v12 = vld [vmem:[%s9992_s14 + $0x20] sm:$0xff]  ;;  %v150_v13 = vld [vmem:[%s9992_s14 + $0x28] sm:$0xff]  ;;  %vm2419_vm12 = vcmask 293888   ;;  %vm3099_vm13 = vcmask 1046528  }
  0x15   : > { %223 = vst.msk [vmem:[#allocation2 + $0x68] sm:$0xff] %vm177_vm0, %v9665_v0  ;;  %224 = vst.msk [vmem:[#allocation2 + $0x70] sm:$0xff] %vm177_vm0, %v9665_v0  ;;  %v645_v4 = vld [vmem:[#allocation2 + $0x170] sm:$0xff]  ;;  %v356_v15 = vpack.c.bf16 %v150_v13, %v149_v12  ;;  %v152_v19 = vld [vmem:[%s9992_s14 + $0x38] sm:$0xff]  ;;  %vm2858_vm14 = vcmask 1040384   ;;  %vm4824_vm15 = vcmask 1045504  }
  0x16   : > { %225 = vst.msk [vmem:[#allocation2 + $0x78] sm:$0xff] %vm177_vm0, %v9665_v0  ;;  %226 = vst.msk [vmem:[#allocation2 + $0x80] sm:$0xff] %vm177_vm0, %v9665_v0  ;;  %677 = vrot.lane.b32.xlu0 %v645_v4, %s9666_s18  ;;  %v776_v8 = vshrl.u32 %v645_v4, 16  ;;  %v778_v9 = vshll.u32 %v645_v4, 16  ;;  %v151_v14 = vld [vmem:[%s9992_s14 + $0x30] sm:$0xff]  ;;  %v10031_v27 = vld [vmem:[%s9992_s14 + $0x40] sm:$0xff] }
  0x17   : > { %227 = vst.msk [vmem:[#allocation2 + $0x88] sm:$0xff] %vm177_vm0, %v9665_v0  ;;  %228 = vst.msk [vmem:[#allocation2 + $0x90] sm:$0xff] %vm177_vm0, %v9665_v0  ;;  %v357_v22 = vpack.c.bf16 %v152_v19, %v151_v14  ;;  %v10037_v31 = vld [vmem:[%s9992_s14 + $0x48] sm:$0xff]  ;;  %v10047_v34 = vld [vmem:[%s9992_s14 + $0x50] sm:$0xff] }
  0x18   : > { %229 = vst.msk [vmem:[#allocation2 + $0x98] sm:$0xff] %vm177_vm0, %v9665_v0  ;;  %230 = vst.msk [vmem:[#allocation2 + $0xa0] sm:$0xff] %vm177_vm0, %v9665_v0  ;;  %v780_v16 = vrot.slane %v778_v9, 1  ;;  %v156_v56 = vld [vmem:[%s9992_s14 + $0x58] sm:$0xff]  ;;  %v10072_v61 = vld [vmem:[%s9992_s14 + $0x60] sm:$0xff] }
  0x19   : > { %231 = vst.msk [vmem:[#allocation2 + $0xa8] sm:$0xff] %vm177_vm0, %v9665_v0  ;;  %232 = vst.msk [vmem:[#allocation2 + $0xb0] sm:$0xff] %vm177_vm0, %v9665_v0  ;;  %v10075_v62 = vld [vmem:[%s9992_s14 + $0x68] sm:$0xff] }
  0x1a   : > { %233 = vst.msk [vmem:[#allocation2 + $0xb8] sm:$0xff] %vm177_vm0, %v9665_v0  ;;  %234 = vst.msk [vmem:[#allocation2 + $0xc0] sm:$0xff] %vm177_vm0, %v9665_v0  ;;  %v781_v18 = vor.u32 %v780_v16, %v776_v8 }
  0x1b   : > { %235 = vst.msk [vmem:[#allocation2 + $0xc8] sm:$0xff] %vm177_vm0, %v9665_v0  ;;  %236 = vst.msk [vmem:[#allocation2 + $0xd0] sm:$0xff] %vm177_vm0, %v9665_v0 }
  0x1c   : > { %237 = vst.msk [vmem:[#allocation2 + $0xd8] sm:$0xff] %vm177_vm0, %v9665_v0  ;;  %238 = vst.msk [vmem:[#allocation2 + $0xe0] sm:$0xff] %vm177_vm0, %v9665_v0 }
  0x1d   : > { %239 = vst.msk [vmem:[#allocation2 + $0xe8] sm:$0xff] %vm177_vm0, %v9665_v0  ;;  %240 = vst.msk [vmem:[#allocation2 + $0xf0] sm:$0xff] %vm177_vm0, %v9665_v0 }
  0x1e   : > { %241 = vst.msk [vmem:[#allocation2 + $0xf8] sm:$0xff] %vm177_vm0, %v9665_v0  ;;  %242 = vst.msk [vmem:[#allocation2 + $0x100] sm:$0xff] %vm177_vm0, %v9665_v0 }
  0x1f   : > { %243 = vst.msk [vmem:[#allocation2 + $0x108] sm:$0xff] %vm177_vm0, %v9665_v0  ;;  %244 = vst.msk [vmem:[#allocation2 + $0x110] sm:$0xff] %vm177_vm0, %v9665_v0 }
  0x20   : > { %245 = vst.msk [vmem:[#allocation2 + $0x118] sm:$0xff] %vm177_vm0, %v9665_v0  ;;  %246 = vst.msk [vmem:[#allocation2 + $0x120] sm:$0xff] %vm177_vm0, %v9665_v0 }
  0x21   : > { %247 = vst.msk [vmem:[#allocation2 + $0x128] sm:$0xff] %vm177_vm0, %v9665_v0  ;;  %248 = vst.msk [vmem:[#allocation2 + $0x130] sm:$0xff] %vm177_vm0, %v9665_v0 }
  0x22   : > { %249 = vst.msk [vmem:[#allocation2 + $0x138] sm:$0xff] %vm177_vm0, %v9665_v0  ;;  %250 = vst.msk [vmem:[#allocation2 + $0x140] sm:$0xff] %vm177_vm0, %v9665_v0 }
  0x23   : > { %251 = vst.msk [vmem:[#allocation2 + $0x148] sm:$0xff] %vm177_vm0, %v9665_v0  ;;  %252 = vst.msk [vmem:[#allocation2 + $0x150] sm:$0xff] %vm177_vm0, %v9665_v0 }
  0x24   : > { %253 = vst.msk [vmem:[#allocation2 + $0x158] sm:$0xff] %vm177_vm0, %v9665_v0  ;;  %254 = vst.msk [vmem:[#allocation2 + $0x160] sm:$0xff] %vm177_vm0, %v9665_v0 }
  0x25   : > { %255 = vst.msk [vmem:[#allocation2 + $0x168] sm:$0xff] %vm177_vm0, %v9665_v0  ;;  %257 = vst.msk [vmem:[#allocation2 + $0x178] sm:$0xff] %vm177_vm0, %v9665_v0 }
  0x26   : > { %258 = vst.msk [vmem:[#allocation2 + $0x180] sm:$0xff] %vm177_vm0, %v9665_v0  ;;  %259 = vst.msk [vmem:[#allocation2 + $0x188] sm:$0xff] %vm177_vm0, %v9665_v0 }
  0x27   : > { %260 = vst.msk [vmem:[#allocation2 + $0x190] sm:$0xff] %vm177_vm0, %v9665_v0  ;;  %261 = vst.msk [vmem:[#allocation2 + $0x198] sm:$0xff] %vm177_vm0, %v9665_v0 }
  0x28   : > { %262 = vst.msk [vmem:[#allocation2 + $0x1a0] sm:$0xff] %vm177_vm0, %v9665_v0  ;;  %263 = vst.msk [vmem:[#allocation2 + $0x1a8] sm:$0xff] %vm177_vm0, %v9665_v0 }
  0x29   : > { %264 = vst.msk [vmem:[#allocation2 + $0x1b0] sm:$0xff] %vm177_vm0, %v9665_v0  ;;  %265 = vst.msk [vmem:[#allocation2 + $0x1b8] sm:$0xff] %vm177_vm0, %v9665_v0 }
  0x2a   : > { %266 = vst.msk [vmem:[#allocation2 + $0x1c0] sm:$0xff] %vm177_vm0, %v9665_v0  ;;  %267 = vst.msk [vmem:[#allocation2 + $0x1c8] sm:$0xff] %vm177_vm0, %v9665_v0 }
  0x2b   : > { %268 = vst.msk [vmem:[#allocation2 + $0x1d0] sm:$0xff] %vm177_vm0, %v9665_v0  ;;  %269 = vst.msk [vmem:[#allocation2 + $0x1d8] sm:$0xff] %vm177_vm0, %v9665_v0 }
  0x2c   : > { %270 = vst.msk [vmem:[#allocation2 + $0x1e0] sm:$0xff] %vm177_vm0, %v9665_v0  ;;  %271 = vst.msk [vmem:[#allocation2 + $0x1e8] sm:$0xff] %vm177_vm0, %v9665_v0  ;;  %v743_v5 = vld [vmem:[#allocation2 + $0x178] sm:$0x1] }
  0x2d   : > { %272 = vst.msk [vmem:[#allocation2 + $0x1f0] sm:$0xff] %vm177_vm0, %v9665_v0  ;;  %273 = vst.msk [vmem:[#allocation2 + $0x1f8] sm:$0xff] %vm177_vm0, %v9665_v0  ;;  %v783_v10 = vshll.u32 %v743_v5, 16  ;;  %v1032_v23 = vld [vmem:[#allocation2 + $0x180] sm:$0x80] }
  0x2e   : > { %274 = vst.msk [vmem:[#allocation2 + $0x200] sm:$0xff] %vm177_vm0, %v9665_v0  ;;  %275 = vst.msk [vmem:[#allocation2 + $0x208] sm:$0xff] %vm177_vm0, %v9665_v0  ;;  %v745_v20 = vld [vmem:[#allocation2 + $0x190] sm:$0x1]  ;;  %v1034_v26 = vld [vmem:[#allocation2 + $0x198] sm:$0x80] }
  0x2f   : > { %276 = vst.msk [vmem:[#allocation2 + $0x210] sm:$0xff] %vm177_vm0, %v9665_v0  ;;  %277 = vst.msk [vmem:[#allocation2 + $0x218] sm:$0xff] %vm177_vm0, %v9665_v0  ;;  %v785_v17 = vrot.slane %v783_v10, 1  ;;  %v795_v25 = vshll.u32 %v745_v20, 16  ;;  %v1065_v32 = vshrl.u32 %v1032_v23, 16  ;;  %v1077_v37 = vshrl.u32 %v1034_v26, 16 }
  0x30   : > { %278 = vst.msk [vmem:[#allocation2 + $0x220] sm:$0xff] %vm177_vm0, %v9665_v0  ;;  %279 = vst.msk [vmem:[#allocation2 + $0x228] sm:$0xff] %vm177_vm0, %v9665_v0  ;;  %v1419_v38 = vld [vmem:[#allocation2 + $0x190] sm:$0x1]  ;;  %v1421_v43 = vld [vmem:[#allocation2 + $0x1a8] sm:$0x1]  ;;  %v359_v23 = vpack.c.bf16 %v156_v56, %v10047_v34 }
  0x31   : > { %280 = vst.msk [vmem:[#allocation2 + $0x230] sm:$0xff] %vm177_vm0, %v9665_v0  ;;  %281 = vst.msk [vmem:[#allocation2 + $0x238] sm:$0xff] %vm177_vm0, %v9665_v0  ;;  %v786_v21 = vsel %vm774_vm1, %v781_v18, %v785_v17  ;;  %v797_v40 = vrot.slane %v795_v25, 1  ;;  %v1067_v45 = vrot.slane %v1065_v32, 7  ;;  %v1458_v47 = vshll.u32 %v1419_v38, 16  ;;  %v10120_v17 = vld [vmem:[%s9992_s14 + $0x88] sm:$0xff] }
  0x32   : > { %282 = vst.msk [vmem:[#allocation2 + $0x240] sm:$0xff] %vm177_vm0, %v9665_v0  ;;  %283 = vst.msk [vmem:[#allocation2 + $0x248] sm:$0xff] %vm177_vm0, %v9665_v0  ;;  %967 = vrot.lane.b32.xlu1 %v786_v21, %s9667_s19  ;;  %v1079_v48 = vrot.slane %v1077_v37, 7  ;;  %v1470_v49 = vshll.u32 %v1421_v43, 16  ;;  %v1708_v50 = vld [vmem:[#allocation2 + $0x198] sm:$0x80] }
  0x33   : > { %284 = vst.msk [vmem:[#allocation2 + $0x250] sm:$0xff] %vm177_vm0, %v9665_v0  ;;  %285 = vst.msk [vmem:[#allocation2 + $0x258] sm:$0xff] %vm177_vm0, %v9665_v0  ;;  %v1710_v54 = vld [vmem:[#allocation2 + $0x1b0] sm:$0x80]  ;;  %v1460_v58 = vrot.slane %v1458_v47, 1  ;;  %v1741_v59 = vshrl.u32 %v1708_v50, 16 }
  0x34   : > { %286 = vst.msk [vmem:[#allocation2 + $0x260] sm:$0xff] %vm177_vm0, %v9665_v0  ;;  %287 = vst.msk [vmem:[#allocation2 + $0x268] sm:$0xff] %vm177_vm0, %v9665_v0  ;;  %v2095_v60 = vld [vmem:[#allocation2 + $0x1a8] sm:$0x1]  ;;  %v1472_v63 = vrot.slane %v1470_v49, 1  ;;  %v10134_v26 = vld [vmem:[%s9992_s14 + $0x90] sm:$0xff] }
  0x35   : > { %288 = vst.msk [vmem:[#allocation2 + $0x270] sm:$0xff] %vm177_vm0, %v9665_v0  ;;  %289 = vst.msk [vmem:[#allocation2 + $0x278] sm:$0xff] %vm177_vm0, %v9665_v0  ;;  %v1743_v9 = vrot.slane %v1741_v59, 7  ;;  %v2097_v10 = vld [vmem:[#allocation2 + $0x1c0] sm:$0x1] }
  0x36   : > { %290 = vst.msk [vmem:[#allocation2 + $0x280] sm:$0xff] %vm177_vm0, %v9665_v0  ;;  %291 = vst.msk [vmem:[#allocation2 + $0x288] sm:$0xff] %vm177_vm0, %v9665_v0  ;;  %v2146_v16 = vshll.u32 %v2097_v10, 16  ;;  %v747_v21 = vld [vmem:[#allocation2 + $0x1a8] sm:$0x1] }
  0x37   : > { %292 = vst.msk [vmem:[#allocation2 + $0x290] sm:$0xff] %vm177_vm0, %v9665_v0  ;;  %293 = vst.msk [vmem:[#allocation2 + $0x298] sm:$0xff] %vm177_vm0, %v9665_v0  ;;  %v749_v25 = vld [vmem:[#allocation2 + $0x1c0] sm:$0x1]  ;;  %v1038_v38 = vld [vmem:[#allocation2 + $0x1c8] sm:$0x80] }
  0x38   : > { %294 = vst.msk [vmem:[#allocation2 + $0x2a0] sm:$0xff] %vm177_vm0, %v9665_v0  ;;  %295 = vst.msk [vmem:[#allocation2 + $0x2a8] sm:$0xff] %vm177_vm0, %v9665_v0 }
  0x39   : > { %296 = vst.msk [vmem:[#allocation2 + $0x2b0] sm:$0xff] %vm177_vm0, %v9665_v0  ;;  %297 = vst.msk [vmem:[#allocation2 + $0x2b8] sm:$0xff] %vm177_vm0, %v9665_v0 }
  0x3a   : > { %298 = vst.msk [vmem:[#allocation2 + $0x2c0] sm:$0xff] %vm177_vm0, %v9665_v0  ;;  %299 = vst.msk [vmem:[#allocation2 + $0x2c8] sm:$0xff] %vm177_vm0, %v9665_v0 }
  0x3b   : > { %300 = vst.msk [vmem:[#allocation2 + $0x2d0] sm:$0xff] %vm177_vm0, %v9665_v0  ;;  %301 = vst.msk [vmem:[#allocation2 + $0x2d8] sm:$0xff] %vm177_vm0, %v9665_v0 }
  0x3c   : > { %302 = vst.msk [vmem:[#allocation2 + $0x2e0] sm:$0xff] %vm177_vm0, %v9665_v0  ;;  %303 = vst.msk [vmem:[#allocation2 + $0x2e8] sm:$0xff] %vm177_vm0, %v9665_v0 }
  0x3d   : > { %304 = vst.msk [vmem:[#allocation2 + $0x2f0] sm:$0xff] %vm177_vm0, %v9665_v0  ;;  %305 = vst.msk [vmem:[#allocation2 + $0x2f8] sm:$0xff] %vm177_vm0, %v9665_v0 }
  0x3e   : > { %306 = vst.msk [vmem:[#allocation2 + $0x300] sm:$0xff] %vm177_vm0, %v9665_v0  ;;  %307 = vst.msk [vmem:[#allocation2 + $0x308] sm:$0xff] %vm177_vm0, %v9665_v0 }
  0x3f   : > { %308 = vst.msk [vmem:[#allocation2 + $0x310] sm:$0xff] %vm177_vm0, %v9665_v0  ;;  %309 = vst.msk [vmem:[#allocation2 + $0x318] sm:$0xff] %vm177_vm0, %v9665_v0 }
  0x40   : > { %310 = vst.msk [vmem:[#allocation2 + $0x320] sm:$0xff] %vm177_vm0, %v9665_v0  ;;  %311 = vst.msk [vmem:[#allocation2 + $0x328] sm:$0xff] %vm177_vm0, %v9665_v0 }
  0x41   : > { %312 = vst.msk [vmem:[#allocation2 + $0x330] sm:$0xff] %vm177_vm0, %v9665_v0  ;;  %313 = vst.msk [vmem:[#allocation2 + $0x338] sm:$0xff] %vm177_vm0, %v9665_v0 }
  0x42   : > { %314 = vst.msk [vmem:[#allocation2 + $0x340] sm:$0xff] %vm177_vm0, %v9665_v0  ;;  %315 = vst.msk [vmem:[#allocation2 + $0x348] sm:$0xff] %vm177_vm0, %v9665_v0 }
  0x43   : > { %316 = vst.msk [vmem:[#allocation2 + $0x350] sm:$0xff] %vm177_vm0, %v9665_v0  ;;  %317 = vst.msk [vmem:[#allocation2 + $0x358] sm:$0xff] %vm177_vm0, %v9665_v0 }
  0x44   : > { %318 = vst.msk [vmem:[#allocation2 + $0x360] sm:$0xff] %vm177_vm0, %v9665_v0  ;;  %319 = vst.msk [vmem:[#allocation2 + $0x368] sm:$0xff] %vm177_vm0, %v9665_v0 }
  0x45   : > { %320 = vst.msk [vmem:[#allocation2 + $0x370] sm:$0xff] %vm177_vm0, %v9665_v0  ;;  %321 = vst.msk [vmem:[#allocation2 + $0x378] sm:$0xff] %vm177_vm0, %v9665_v0 }
  0x46   : > { %322 = vst.msk [vmem:[#allocation2 + $0x380] sm:$0xff] %vm177_vm0, %v9665_v0  ;;  %323 = vst.msk [vmem:[#allocation2 + $0x388] sm:$0xff] %vm177_vm0, %v9665_v0 }
  0x47   : > { %324 = vst.msk [vmem:[#allocation2 + $0x390] sm:$0xff] %vm177_vm0, %v9665_v0  ;;  %325 = vst.msk [vmem:[#allocation2 + $0x398] sm:$0xff] %vm177_vm0, %v9665_v0 }
  0x48   : > { %326 = vst.msk [vmem:[#allocation2 + $0x3a0] sm:$0xff] %vm177_vm0, %v9665_v0  ;;  %327 = vst.msk [vmem:[#allocation2 + $0x3a8] sm:$0xff] %vm177_vm0, %v9665_v0 }
  0x49   : > { %328 = vst.msk [vmem:[#allocation2 + $0x3b0] sm:$0xff] %vm177_vm0, %v9665_v0  ;;  %329 = vst.msk [vmem:[#allocation2 + $0x3b8] sm:$0xff] %vm177_vm0, %v9665_v0 }
  0x4a   : > { %330 = vst.msk [vmem:[#allocation2 + $0x3c0] sm:$0xff] %vm177_vm0, %v9665_v0  ;;  %331 = vst.msk [vmem:[#allocation2 + $0x3c8] sm:$0xff] %vm177_vm0, %v9665_v0 }
  0x4b   : > { %332 = vst.msk [vmem:[#allocation2 + $0x3d0] sm:$0xff] %vm177_vm0, %v9665_v0  ;;  %333 = vst.msk [vmem:[#allocation2 + $0x3d8] sm:$0xff] %vm177_vm0, %v9665_v0 }
  0x4c   : > { %334 = vst.msk [vmem:[#allocation2 + $0x3e0] sm:$0xff] %vm177_vm0, %v9665_v0  ;;  %335 = vst.msk [vmem:[#allocation2 + $0x3e8] sm:$0xff] %vm177_vm0, %v9665_v0 }
  0x4d   : > { %336 = vst.msk [vmem:[#allocation2 + $0x3f0] sm:$0xff] %vm177_vm0, %v9665_v0  ;;  %337 = vst.msk [vmem:[#allocation2 + $0x3f8] sm:$0xff] %vm177_vm0, %v9665_v0 }
  0x4e   : > { %338 = vst.msk [vmem:[#allocation2 + $0x400] sm:$0xff] %vm177_vm0, %v9665_v0  ;;  %339 = vst.msk [vmem:[#allocation2 + $0x408] sm:$0xff] %vm177_vm0, %v9665_v0 }
  0x4f   : > { %340 = vst.msk [vmem:[#allocation2 + $0x410] sm:$0xff] %vm177_vm0, %v9665_v0  ;;  %341 = vst.msk [vmem:[#allocation2 + $0x418] sm:$0xff] %vm177_vm0, %v9665_v0 }
  0x50   : > { %342 = vst.msk [vmem:[#allocation2 + $0x420] sm:$0xff] %vm177_vm0, %v9665_v0  ;;  %343 = vst.msk [vmem:[#allocation2 + $0x428] sm:$0xff] %vm177_vm0, %v9665_v0 }
  0x51   : > { %344 = vst.msk [vmem:[#allocation2 + $0x430] sm:$0xff] %vm177_vm0, %v9665_v0  ;;  %345 = vst.msk [vmem:[#allocation2 + $0x438] sm:$0xff] %vm177_vm0, %v9665_v0 }
  0x52   : > { %346 = vst.msk [vmem:[#allocation2 + $0x440] sm:$0xff] %vm177_vm0, %v9665_v0  ;;  %347 = vst.msk [vmem:[#allocation2 + $0x448] sm:$0xff] %vm177_vm0, %v9665_v0 }
  0x53   : > { %348 = vst.msk [vmem:[#allocation2 + $0x450] sm:$0xff] %vm177_vm0, %v9665_v0  ;;  %349 = vst.msk [vmem:[#allocation2 + $0x458] sm:$0xff] %vm177_vm0, %v9665_v0 }
  0x54   : > { %350 = vst.msk [vmem:[#allocation2 + $0x460] sm:$0xff] %vm177_vm0, %v9665_v0  ;;  %351 = vst.msk [vmem:[#allocation2 + $0x468] sm:$0xff] %vm177_vm0, %v9665_v0 }
  0x55   : > { %352 = vst.msk [vmem:[#allocation2 + $0x470] sm:$0xff] %vm177_vm0, %v9665_v0  ;;  %353 = vst.msk [vmem:[#allocation2 + $0x478] sm:$0xff] %vm177_vm0, %v9665_v0  ;;  %v1753_v0 = vshrl.u32 %v1710_v54, 16  ;;  %v10180_v54 = vld [vmem:[%s9992_s14 + $0xa0] sm:$0xff] }
  0x56   : > { %178 = vst.msk [vmem:[%s9997_s17] sm:$0xff] %vm177_vm0, %v145_v1  ;;  %179 = vst.msk [vmem:[%s9997_s17 + $0x8] sm:$0xff] %vm177_vm0, %v146_v2  ;;  %v10085_v1 = vld [vmem:[%s9992_s14 + $0x70] sm:$0xff] }
  0x57   : > { %180 = vst.msk [vmem:[%s9997_s17 + $0x10] sm:$0xff] %vm177_vm0, %v147_v3  ;;  %181 = vst.msk [vmem:[%s9997_s17 + $0x18] sm:$0xff] %vm177_vm0, %v148_v7  ;;  %v2134_v7 = vshll.u32 %v2095_v60, 16  ;;  %v1712_v60 = vld [vmem:[#allocation2 + $0x1c8] sm:$0x80] }
  0x58   : > { %371 = vst.msk [vmem:[#allocation2 + $0x188] sm:$0xff] %vm177_vm0, %v354_v6  ;;  %182 = vst.msk [vmem:[%s9997_s17 + $0x20] sm:$0xff] %vm177_vm0, %v149_v12  ;;  %v10094_v6 = vld [vmem:[%s9992_s14 + $0x78] sm:$0xff]  ;;  %v10107_v12 = vld [vmem:[%s9992_s14 + $0x80] sm:$0xff] }
  0x59   : > { %183 = vst.msk [vmem:[%s9997_s17 + $0x28] sm:$0xff] %vm177_vm0, %v150_v13  ;;  %184 = vst.msk [vmem:[%s9997_s17 + $0x30] sm:$0xff] %vm177_vm0, %v151_v14  ;;  %v1755_v14 = vrot.slane %v1753_v0, 7  ;;  %v361_v49 = vpack.c.bf16 %v10094_v6, %v10085_v1  ;;  %v1714_v0 = vld [vmem:[#allocation2 + $0x1e0] sm:$0x80] }
  0x5a   : > { %372 = vst.msk [vmem:[#allocation2 + $0x1a0] sm:$0xff] %vm177_vm0, %v355_v11  ;;  %373 = vst.msk [vmem:[#allocation2 + $0x1b8] sm:$0xff] %vm177_vm0, %v356_v15  ;;  %v358_v11 = vpack.c.bf16 %v10037_v31, %v10031_v27 }
  0x5b   : > { %185 = vst.msk [vmem:[%s9997_s17 + $0x38] sm:$0xff] %vm177_vm0, %v152_v19  ;;  %374 = vst.msk [vmem:[#allocation2 + $0x1d0] sm:$0xff] %vm177_vm0, %v357_v22  ;;  %v2136_v19 = vrot.slane %v2134_v7, 1  ;;  %v9642_v22 = vld [vmem:[%s13225_s1] sm:$0xff]  }
  0x5c   : > { %186 = vst.msk [vmem:[%s9997_s17 + $0x40] sm:$0xff] %vm177_vm0, %v10031_v27  ;;  %187 = vst.msk [vmem:[%s9997_s17 + $0x48] sm:$0xff] %vm177_vm0, %v10037_v31  ;;  %9423 = vmatprep.subr.bf16.mxu0 %v9642_v22  ;;  %9613 = vmatprep.subr.bf16.mxu1 %v9642_v22  ;;  %v2148_v27 = vrot.slane %v2146_v16, 1  ;;  %v390_v7 = vld [vmem:[#allocation2 + $0x180] sm:$0x80] }
  0x5d   : > { %188 = vst.msk [vmem:[%s9997_s17 + $0x50] sm:$0xff] %vm177_vm0, %v10047_v34  ;;  %189 = vst.msk [vmem:[%s9997_s17 + $0x58] sm:$0xff] %vm177_vm0, %v156_v56  ;;  %9424 = vmatpush3.bf16.msra.mxu0 %v9642_v22  ;;  %9616 = vmatpush3.bf16.msra.mxu1 %v9642_v22  ;;  %v1036_v34 = vld [vmem:[#allocation2 + $0x1b0] sm:$0x80] }
  0x5e   : > { %190 = vst.msk [vmem:[%s9997_s17 + $0x60] sm:$0xff] %vm177_vm0, %v10072_v61  ;;  %191 = vst.msk [vmem:[%s9997_s17 + $0x68] sm:$0xff] %vm177_vm0, %v10075_v62 }
  0x5f   : > { %v646_v24 = vld [vmem:[#allocation2 + $0x188] sm:$0xff]  ;;  %192 = vst.msk [vmem:[%s9997_s17 + $0x70] sm:$0xff] %vm177_vm0, %v10085_v1  ;;  %193 = vst.msk [vmem:[%s9997_s17 + $0x78] sm:$0xff] %vm177_vm0, %v10094_v6 }
  0x60   : > { %679 = vrot.lane.b32.xlu0 %v646_v24, %s9666_s18  ;;  %v788_v29 = vshrl.u32 %v646_v24, 16  ;;  %v790_v30 = vshll.u32 %v646_v24, 16  ;;  %194 = vst.msk [vmem:[%s9997_s17 + $0x80] sm:$0xff] %vm177_vm0, %v10107_v12  ;;  %375 = vst.msk [vmem:[#allocation2 + $0x1e8] sm:$0xff] %vm177_vm0, %v358_v11 }
  0x61   : > { %v10034_v28 = vld [vmem:[#allocation2 + $0x1a0] sm:$0xff]  ;;  %v10054_v39 = vld [vmem:[#allocation2 + $0x1b8] sm:$0xff]  ;;  %195 = vst.msk [vmem:[%s9997_s17 + $0x88] sm:$0xff] %vm177_vm0, %v10120_v17  ;;  %376 = vst.msk [vmem:[#allocation2 + $0x200] sm:$0xff] %vm177_vm0, %v359_v23 }
  0x62   : > { %v1081_v33 = vshrl.u32 %v10034_v28, 16  ;;  %1355 = vrot.lane.b32.xlu1 %v10034_v28, %s9668_s20  ;;  %v792_v35 = vrot.slane %v790_v30, 1  ;;  %v1071_v36 = vrot.slane %v788_v29, 7  ;;  %v1084_v42 = vshll.u32 %v10034_v28, 16  ;;  %196 = vst.msk [vmem:[%s9997_s17 + $0x90] sm:$0xff] %vm177_vm0, %v10134_v26  ;;  %378 = vst.msk [vmem:[#allocation2 + $0x230] sm:$0xff] %vm177_vm0, %v361_v49 }
  0x63   : > { %v1757_v55 = vshrl.u32 %v10054_v39, 16  ;;  %v1760_v5 = vshll.u32 %v10054_v39, 16  ;;  %198 = vst.msk [vmem:[%s9997_s17 + $0xa0] sm:$0xff] %vm177_vm0, %v10180_v54  ;;  %v2099_v23 = vld [vmem:[#allocation2 + $0x1d8] sm:$0x1] }
  0x64   : > { %v1083_v41 = vrot.slane %v1081_v33, 7  ;;  %1353 = vrot.lane.b32.xlu0 %v646_v24, %s9668_s20  ;;  %v793_v44 = vor.u32 %v792_v35, %v788_v29  ;;  %v10058_v46 = vor.u32 %v1071_v36, %v790_v30  ;;  %v1467_v53 = vrot.slane %v1084_v42, 1  ;;  %v10137_v30 = vld [vmem:[#allocation2 + $0x1d0] sm:$0xff]  ;;  %v10153_v36 = vld [vmem:[%s9992_s14 + $0x98] sm:$0xff] }
  0x65   : > { %v1759_v4 = vrot.slane %v1757_v55, 7  ;;  %v2143_v20 = vrot.slane %v1760_v5, 1  ;;  %v807_v29 = vshll.u32 %v747_v21, 16  ;;  %v819_v35 = vshll.u32 %v749_v25, 16  ;;  %197 = vst.msk [vmem:[%s9997_s17 + $0x98] sm:$0xff] %vm177_vm0, %v10153_v36 }
  0x66   : > { %2031 = vrot.lane.b32.xlu1 %v10054_v39, %s9669_s21  ;;  %v798_v51 = vsel %vm774_vm1, %v793_v44, %v797_v40  ;;  %v1086_v52 = vor.u32 %v1084_v42, %v1083_v41  ;;  %v1075_v57 = vsel %vm420_vm2, %v1067_v45, %v10058_v46  ;;  %v10088_v3 = vor.u32 %v1467_v53, %v1081_v33 }
  0x67   : > { %v1461_v8 = vsel %vm774_vm1, %v793_v44, %v1460_v58  ;;  %v10115_v15 = vor.u32 %v1760_v5, %v1759_v4  ;;  %v10147_v32 = vor.u32 %v2143_v20, %v1757_v55  ;;  %v360_v33 = vpack.c.bf16 %v10075_v62, %v10072_v61  ;;  %v9643_v44 = vld [vmem:[%s13225_s1 + $0x8] sm:$0xff]  }
  0x68   : > { %2029 = vrot.lane.b32.xlu0 %v10034_v28, %s9669_s21  ;;  %v1087_v2 = vsel %vm420_vm2, %v1079_v48, %v1086_v52  ;;  %v1473_v13 = vsel %vm774_vm1, %v10088_v3, %v1472_v63  ;;  %v1751_v18 = vsel %vm420_vm2, %v1743_v9, %v1086_v52  ;;  %v2137_v31 = vsel %vm774_vm1, %v10088_v3, %v2136_v19  ;;  %v1425_v52 = vld [vmem:[#allocation2 + $0x1d8] sm:$0x1]  ;;  %v10176_v53 = vld [vmem:[#allocation2 + $0x1e8] sm:$0xff] }
  0x69   : > { %v1763_v24 = vsel %vm420_vm2, %v1755_v14, %v10115_v15  ;;  %v1105_v37 = vshrl.u32 %v10137_v30, 16  ;;  %377 = vst.msk [vmem:[#allocation2 + $0x218] sm:$0xff] %vm177_vm0, %v360_v33  ;;  %v2149_v40 = vsel %vm774_vm1, %v10147_v32, %v2148_v27  ;;  %v809_v41 = vrot.slane %v807_v29, 1  ;;  %9425 = vmatprep.subr.bf16.mxu0 %v9643_v44  ;;  %v10183_v55 = vld [vmem:[%s9992_s14 + $0xa8] sm:$0xff]  ;;  %9614 = vmatprep.subr.bf16.mxu1 %v9643_v44 }
  0x6a   : > { %969 = vrot.lane.b32.xlu1 %v798_v51, %s9667_s19  ;;  %v1089_v42 = vshrl.u32 %v1036_v34, 16  ;;  %v821_v43 = vrot.slane %v819_v35, 1  ;;  %v1101_v45 = vshrl.u32 %v1038_v38, 16  ;;  %v1108_v48 = vshll.u32 %v10137_v30, 16  ;;  %v1423_v51 = vld [vmem:[#allocation2 + $0x1c0] sm:$0x1]  ;;  %9426 = vmatpush3.bf16.msra.mxu0 %v9643_v44 }
  0x6b   : > { %v1107_v47 = vrot.slane %v1105_v37, 7  ;;  %199 = vst.msk [vmem:[%s9997_s17 + $0xa8] sm:$0xff] %vm177_vm0, %v10183_v55  ;;  %9617 = vmatpush3.bf16.msra.mxu1 %v9643_v44  ;;  %v1482_v59 = vshll.u32 %v1423_v51, 16  ;;  %v1494_v62 = vshll.u32 %v1425_v52, 16  ;;  %v1781_v1 = vshrl.u32 %v10176_v53, 16 }
  0x6c   : > { %1256 = vrot.lane.b32.xlu0 %v1075_v57, %s9670_s22  ;;  %v1091_v50 = vrot.slane %v1089_v42, 7  ;;  %v822_v56 = vsel %vm774_vm1, %v10147_v32, %v821_v43  ;;  %v1103_v57 = vrot.slane %v1101_v45, 7  ;;  %v1491_v61 = vrot.slane %v1108_v48, 1  ;;  %v1040_v44 = vld [vmem:[#allocation2 + $0x1e0] sm:$0x80] }
  0x6d   : > { %v1110_v58 = vor.u32 %v1108_v48, %v1107_v47  ;;  %v1765_v9 = vshrl.u32 %v1712_v60, 16  ;;  %v1496_v11 = vrot.slane %v1494_v62, 1  ;;  %v1783_v14 = vrot.slane %v1781_v1, 7  ;;  %v10231_v45 = vld [vmem:[#allocation2 + $0x200] sm:$0xff]  ;;  %v753_v51 = vld [vmem:[#allocation2 + $0x1f0] sm:$0x1] }
  0x6e   : > { %1258 = vrot.lane.b32.xlu1 %v1087_v2, %s9670_s22  ;;  %v1099_v63 = vsel %vm420_vm2, %v1091_v50, %v10115_v15  ;;  %v388_v2 = vld [vmem:[#allocation2 + $0x168] sm:$0x80]  ;;  %v10200_v10 = vor.u32 %v1491_v61, %v1105_v37  ;;  %v1784_v15 = vshll.u32 %v10176_v53, 16  ;;  %v434_v20 = vshrl.u32 %v390_v7, 16  ;;  %v10247_v60 = vld [vmem:[%s9992_s14 + $0xb0] sm:$0xff]  ;;  %v10250_v61 = vld [vmem:[%s9992_s14 + $0xb8] sm:$0xff] }
  0x6f   : > { %v1111_v4 = vsel %vm420_vm2, %v1103_v57, %v1110_v58  ;;  %v422_v5 = vshrl.u32 %v388_v2, 16  ;;  %v1767_v22 = vrot.slane %v1765_v9, 7  ;;  %v362_v27 = vpack.c.bf16 %v10120_v17, %v10107_v12  ;;  %v2101_v17 = vld [vmem:[#allocation2 + $0x1f0] sm:$0x1]  ;;  %200 = vst.msk [vmem:[%s9997_s17 + $0xb0] sm:$0xff] %vm177_vm0, %v10247_v60  ;;  %201 = vst.msk [vmem:[%s9997_s17 + $0xb8] sm:$0xff] %vm177_vm0, %v10250_v61 }
  0x70   : > { %1642 = vrot.lane.b32.xlu0 %v1461_v8, %s9671_s23  ;;  %v1484_v8 = vrot.slane %v1482_v59, 1  ;;  %v436_v25 = vrot.slane %v434_v20, 7  ;;  %v1497_v29 = vsel %vm774_vm1, %v10200_v10, %v1496_v11  ;;  %v10214_v33 = vor.u32 %v1784_v15, %v1783_v14  ;;  %v9644_v57 = vld [vmem:[%s13225_s1 + $0x10] ss:$0 sps:$4 sm:$0x33]  }
  0x71   : > { %v424_v16 = vrot.slane %v422_v5, 7  ;;  %379 = vst.msk [vmem:[#allocation2 + $0x248] sm:$0xff] %vm177_vm0, %v362_v27  ;;  %v1775_v12 = vsel %vm420_vm2, %v1767_v22, %v1110_v58  ;;  %v2170_v38 = vshll.u32 %v2101_v17, 16  ;;  %v2167_v42 = vrot.slane %v1784_v15, 1  ;;  %v394_v59 = vld [vmem:[#allocation2 + $0x1b0] sm:$0x80]  ;;  %9619 = vmatprep.subr.msk.bf16.mxu0 %vm2468_vm3, %v9644_v57  ;;  %9620 = vmatprep.subr.msk.bf16.mxu1 %vm2468_vm3, %v9644_v57 }
  0x72   : > { %1644 = vrot.lane.b32.xlu1 %v1473_v13, %s9671_s23  ;;  %v1777_v13 = vshrl.u32 %v1714_v0, 16  ;;  %v1485_v21 = vsel %vm774_vm1, %v10147_v32, %v1484_v8  ;;  %v2158_v32 = vshll.u32 %v2099_v23, 16  ;;  %v444_v34 = vsel %vm420_vm2, %v436_v25, %v10058_v46  ;;  %v751_v46 = vld [vmem:[#allocation2 + $0x1d8] sm:$0x1] }
  0x73   : > { %630 = vst.msk [vmem:[#allocation3 + $0x8] sm:$0xff] %vm177_vm0, %v444_v34  ;;  %v363_v43 = vpack.c.bf16 %v10153_v36, %v10134_v26  ;;  %v831_v50 = vshll.u32 %v751_v46, 16  ;;  %v10238_v26 = vor.u32 %v2167_v42, %v1781_v1  ;;  %v1129_v58 = vshrl.u32 %v10231_v45, 16 }
  0x74   : > { %1932 = vrot.lane.b32.xlu0 %v1751_v18, %s9672_s26  ;;  %v2160_v37 = vrot.slane %v2158_v32, 1  ;;  %v843_v62 = vshll.u32 %v753_v51, 16  ;;  %v1113_v2 = vshrl.u32 %v1040_v44, 16  ;;  %v458_v7 = vshrl.u32 %v394_v59, 16  ;;  %v169_v44 = vld [vmem:[%s9992_s14 + $0xc0] sm:$0xff] }
  0x75   : > { %380 = vst.msk [vmem:[#allocation2 + $0x260] sm:$0xff] %vm177_vm0, %v363_v43  ;;  %v833_v1 = vrot.slane %v831_v50, 1  ;;  %v1131_v9 = vrot.slane %v1129_v58, 7  ;;  %v1132_v11 = vshll.u32 %v10231_v45, 16  ;;  %202 = vst.msk [vmem:[%s9997_s17 + $0xc0] sm:$0xff] %vm177_vm0, %v169_v44  ;;  %v365_v59 = vpack.c.bf16 %v10250_v61, %v10247_v60 }
  0x76   : > { %1934 = vrot.lane.b32.xlu1 %v1763_v24, %s9672_s26  ;;  %v2161_v49 = vsel %vm774_vm1, %v10200_v10, %v2160_v37  ;;  %v460_v22 = vrot.slane %v458_v7, 7  ;;  %v2103_v61 = vld [vmem:[#allocation2 + $0x208] sm:$0x1] }
  0x77   : > { %v834_v20 = vsel %vm774_vm1, %v10200_v10, %v833_v1  ;;  %v10278_v27 = vor.u32 %v1132_v11, %v1131_v9  ;;  %v10283_v10 = vld [vmem:[#allocation2 + $0x218] sm:$0xff]  ;;  %v1515_v46 = vrot.slane %v1132_v11, 1  ;;  %382 = vst.msk [vmem:[#allocation2 + $0x290] sm:$0xff] %vm177_vm0, %v365_v59  ;;  %v2182_v11 = vshll.u32 %v2103_v61, 16  ;;  %v1722_v61 = vld [vmem:[#allocation2 + $0x240] sm:$0x80] }
  0x78   : > { %2318 = vrot.lane.b32.xlu0 %v2137_v31, %s9673_s27  ;;  %v1779_v31 = vrot.slane %v1777_v13, 7  ;;  %v845_v13 = vrot.slane %v843_v62, 1  ;;  %v1805_v43 = vshrl.u32 %v10283_v10, 16 }
  0x79   : > { %v10307_v1 = vor.u32 %v1515_v46, %v1129_v58 }
  0x7a   : > { %681 = vrot.lane.b32.xlu1 %v10034_v28, %s9666_s18  ;;  %v810_v28 = vsel %vm774_vm1, %v10088_v3, %v809_v41  ;;  %v389_v3 = vld [vmem:[#allocation2 + $0x170] sm:$0xff]  ;;  %v1787_v35 = vsel %vm420_vm2, %v1779_v31, %v10214_v33  ;;  %v393_v41 = vld [vmem:[#allocation2 + $0x1a0] sm:$0xff] }
  0x7b   : > { %v426_v6 = vshrl.u32 %v389_v3, 16  ;;  %v429_v19 = vshll.u32 %v389_v3, 16  ;;  %v450_v48 = vshrl.u32 %v393_v41, 16  ;;  %v395_v3 = vld [vmem:[#allocation2 + $0x1b8] sm:$0xff]  ;;  %v398_v31 = vld [vmem:[#allocation2 + $0x1e0] sm:$0x80] }
  0x7c   : > { %2320 = vrot.lane.b32.xlu0 %v2149_v40, %s9673_s27  ;;  %v392_v40 = vld [vmem:[#allocation2 + $0x198] sm:$0x80]  ;;  %v462_v14 = vshrl.u32 %v395_v3, 16  ;;  %v465_v15 = vshll.u32 %v395_v3, 16 }
  0x7d   : > { %v428_v18 = vrot.slane %v426_v6, 7  ;;  %v446_v47 = vshrl.u32 %v392_v40, 16  ;;  %v452_v52 = vrot.slane %v450_v48, 7  ;;  %v2470_v6 = vsel %vm2468_vm3, %v9644_v57, 0  ;;  %v1718_v48 = vld [vmem:[#allocation2 + $0x210] sm:$0x80] }
  0x7e   : > { %683 = vrot.lane.b32.xlu1 %v10054_v39, %s9666_s18  ;;  %9428 = vmatpush3.bf16.msra.mxu0 %v2470_v6  ;;  %v464_v23 = vrot.slane %v462_v14, 7  ;;  %v482_v40 = vshrl.u32 %v398_v31, 16 }
  0x7f   : > { %v431_v24 = vor.u32 %v429_v19, %v428_v18  ;;  %v448_v36 = vrot.slane %v446_v47, 7  ;;  %9618 = vmatpush3.bf16.msra.mxu1 %v2470_v6  ;;  %v1115_v18 = vrot.slane %v1113_v2, 7  ;;  %v1427_v19 = vld [vmem:[#allocation2 + $0x1f0] sm:$0x1]  ;;  %v170_v47 = vld [vmem:[%s9992_s14 + $0xc8] sm:$0xff]  ;;  %v1807_v2 = vrot.slane %v1805_v43, 7 }
  0x80   : > { %971 = vrot.lane.b32.xlu0 %v810_v28, %s9667_s19  ;;  %v2172_v28 = vrot.slane %v2170_v38, 1  ;;  %v467_v32 = vor.u32 %v465_v15, %v464_v23  ;;  %203 = vst.msk [vmem:[%s9997_s17 + $0xc8] sm:$0xff] %vm177_vm0, %v170_v47  ;;  %v403_v15 = vld [vmem:[#allocation2 + $0x218] sm:$0xff] }
  0x81   : > { %v1123_v34 = vsel %vm420_vm2, %v1115_v18, %v10214_v33 }
  0x82   : > { %973 = vrot.lane.b32.xlu1 %v822_v56, %s9667_s19  ;;  %v453_v56 = vshll.u32 %v393_v41, 16  ;;  %v468_v37 = vsel %vm420_vm2, %v460_v22, %v467_v32  ;;  %v402_v22 = vld [vmem:[#allocation2 + $0x210] sm:$0x80] }
  0x83   : > { %632 = vst.msk [vmem:[#allocation3 + $0x18] sm:$0xff] %vm177_vm0, %v468_v37 }
  0x84   : > { %1260 = vrot.lane.b32.xlu0 %v1099_v63, %s9670_s22  ;;  %v1042_v63 = vld [vmem:[#allocation2 + $0x1f8] sm:$0x80]  ;;  %v455_v0 = vor.u32 %v453_v56, %v452_v52 }
  0x85   : > { %v1125_v8 = vshrl.u32 %v1042_v63, 16  ;;  %v1801_v63 = vshrl.u32 %v1718_v48, 16 }
  0x86   : > { %1262 = vrot.lane.b32.xlu1 %v1111_v4, %s9670_s22  ;;  %v2173_v4 = vsel %vm774_vm1, %v10238_v26, %v2172_v28  ;;  %v456_v5 = vsel %vm420_vm2, %v448_v36, %v455_v0  ;;  %v484_v28 = vrot.slane %v482_v40, 7  ;;  %v1808_v0 = vshll.u32 %v10283_v10, 16 }
  0x87   : > { %631 = vst.msk [vmem:[#allocation3 + $0x10] sm:$0xff] %vm177_vm0, %v456_v5  ;;  %v1127_v25 = vrot.slane %v1125_v8, 7  ;;  %v401_v5 = vld [vmem:[#allocation2 + $0x200] sm:$0xff]  ;;  %v1803_v8 = vrot.slane %v1801_v63, 7  ;;  %v10362_v63 = vld [vmem:[#allocation2 + $0x248] sm:$0xff] }
  0x88   : > { %1357 = vrot.lane.b32.xlu0 %v10054_v39, %s9668_s20  ;;  %v432_v39 = vsel %vm420_vm2, %v424_v16, %v431_v24  ;;  %v396_v16 = vld [vmem:[#allocation2 + $0x1c8] sm:$0x80]  ;;  %v397_v24 = vld [vmem:[#allocation2 + $0x1d0] sm:$0xff]  ;;  %v498_v6 = vshrl.u32 %v401_v5, 16  ;;  %v10324_v9 = vor.u32 %v1808_v0, %v1807_v2  ;;  %v501_v18 = vshll.u32 %v401_v5, 16 }
  0x89   : > { %629 = vst.msk [vmem:[#allocation3] sm:$0xff] %vm177_vm0, %v432_v39  ;;  %v399_v39 = vld [vmem:[#allocation2 + $0x1e8] sm:$0xff]  ;;  %v474_v17 = vshrl.u32 %v397_v24, 16  ;;  %v477_v38 = vshll.u32 %v397_v24, 16  ;;  %v1135_v42 = vsel %vm420_vm2, %v1127_v25, %v10278_v27  ;;  %v506_v24 = vshrl.u32 %v402_v22, 16 }
  0x8a   : > { %1359 = vrot.lane.b32.xlu1 %v10137_v30, %s9668_s20  ;;  %v486_v41 = vshrl.u32 %v399_v39, 16  ;;  %v489_v51 = vshll.u32 %v399_v39, 16  ;;  %v500_v14 = vrot.slane %v498_v6, 7  ;;  %v2191_v31 = vrot.slane %v1808_v0, 1 }
  0x8b   : > { %v508_v32 = vrot.slane %v506_v24, 7 }
  0x8c   : > { %1646 = vrot.lane.b32.xlu0 %v1485_v21, %s9671_s23  ;;  %v1429_v21 = vld [vmem:[#allocation2 + $0x208] sm:$0x1]  ;;  %v488_v50 = vrot.slane %v486_v41, 7  ;;  %v503_v23 = vor.u32 %v501_v18, %v500_v14  ;;  %v2192_v40 = vor.u32 %v2191_v31, %v1805_v43 }
  0x8e   : > { %1648 = vrot.lane.b32.xlu1 %v1497_v29, %s9671_s23  ;;  %v470_v29 = vshrl.u32 %v396_v16, 16  ;;  %v491_v57 = vor.u32 %v489_v51, %v488_v50  ;;  %v2105_v16 = vld [vmem:[#allocation2 + $0x220] sm:$0x1] }
  0x8f   : > { %v2194_v39 = vshll.u32 %v2105_v16, 16  ;;  %v2107_v16 = vld [vmem:[#allocation2 + $0x238] sm:$0x1] }
  0x90   : > { %1936 = vrot.lane.b32.xlu0 %v1775_v12, %s9672_s26  ;;  %v1518_v12 = vshll.u32 %v1429_v21, 16  ;;  %v472_v33 = vrot.slane %v470_v29, 7  ;;  %v2184_v29 = vrot.slane %v2182_v11, 1  ;;  %v1832_v11 = vshll.u32 %v10362_v63, 16 }
  0x91   : > { %v2196_v41 = vrot.slane %v2194_v39, 1 }
  0x92   : > { %1938 = vrot.lane.b32.xlu1 %v1787_v35, %s9672_s26  ;;  %v1716_v35 = vld [vmem:[#allocation2 + $0x1f8] sm:$0x80]  ;;  %v1520_v62 = vrot.slane %v1518_v12, 1  ;;  %v757_v12 = vld [vmem:[#allocation2 + $0x220] sm:$0x1] }
  0x93   : > { %v1789_v52 = vshrl.u32 %v1716_v35, 16  ;;  %v10339_v35 = vld [vmem:[#allocation2 + $0x230] sm:$0xff]  ;;  %v867_v46 = vshll.u32 %v757_v12, 16 }
  0x94   : > { %2033 = vrot.lane.b32.xlu0 %v10137_v30, %s9669_s21  ;;  %v1521_v7 = vsel %vm774_vm1, %v10307_v1, %v1520_v62  ;;  %v1156_v51 = vshll.u32 %v10339_v35, 16 }
  0x95   : > { %v1791_v60 = vrot.slane %v1789_v52, 7  ;;  %v869_v43 = vrot.slane %v867_v46, 1 }
  0x96   : > { %2035 = vrot.lane.b32.xlu1 %v10176_v53, %s9669_s21 }
  0x98   : > { %2322 = vrot.lane.b32.xlu0 %v2161_v49, %s9673_s27  ;;  %v476_v49 = vrot.slane %v474_v17, 7 }
  0x9a   : > { %685 = vrot.lane.b32.xlu1 %v10137_v30, %s9666_s18  ;;  %v364_v30 = vpack.c.bf16 %v10183_v55, %v10180_v54  ;;  %v846_v54 = vsel %vm774_vm1, %v10238_v26, %v845_v13  ;;  %v1506_v55 = vshll.u32 %v1427_v19, 16  ;;  %v479_v56 = vor.u32 %v477_v38, %v476_v49 }
  0x9b   : > { %v366_v19 = vpack.c.bf16 %v170_v47, %v169_v44  ;;  %v2185_v38 = vsel %vm774_vm1, %v10307_v1, %v2184_v29  ;;  %v1046_v44 = vld [vmem:[#allocation2 + $0x228] sm:$0x80]  ;;  %v2197_v47 = vsel %vm774_vm1, %v2192_v40, %v2196_v41  ;;  %v2109_v29 = vld [vmem:[#allocation2 + $0x250] sm:$0x1]  ;;  %v2215_v41 = vrot.slane %v1832_v11, 1 }
  0x9c   : > { %2324 = vrot.lane.b32.xlu0 %v2173_v4, %s9673_s27  ;;  %381 = vst.msk [vmem:[#allocation2 + $0x278] sm:$0xff] %vm177_vm0, %v364_v30  ;;  %v1508_v36 = vrot.slane %v1506_v55, 1  ;;  %v480_v3 = vsel %vm420_vm2, %v472_v33, %v479_v56  ;;  %v492_v4 = vsel %vm420_vm2, %v484_v28, %v491_v57  ;;  %v510_v30 = vshrl.u32 %v403_v15, 16  ;;  %v1431_v56 = vld [vmem:[#allocation2 + $0x220] sm:$0x1] }
  0x9d   : > { %633 = vst.msk [vmem:[#allocation3 + $0x20] sm:$0xff] %vm177_vm0, %v480_v3  ;;  %634 = vst.msk [vmem:[#allocation3 + $0x28] sm:$0xff] %vm177_vm0, %v492_v4  ;;  %v1153_v33 = vshrl.u32 %v10339_v35, 16  ;;  %v1149_v28 = vshrl.u32 %v1046_v44, 16  ;;  %v870_v57 = vsel %vm774_vm1, %v2192_v40, %v869_v43  ;;  %v1530_v2 = vshll.u32 %v1431_v56, 16  ;;  %v10399_v43 = vld [vmem:[#allocation2 + $0x260] sm:$0xff] }
  0x9e   : > { %687 = vrot.lane.b32.xlu1 %v10176_v53, %s9666_s18  ;;  %v1509_v58 = vsel %vm774_vm1, %v10238_v26, %v1508_v36  ;;  %v1799_v26 = vsel %vm420_vm2, %v1791_v60, %v10278_v27  ;;  %383 = vst.msk [vmem:[#allocation2 + $0x2a8] sm:$0xff] %vm177_vm0, %v366_v19  ;;  %v512_v25 = vrot.slane %v510_v30, 7  ;;  %v513_v27 = vshll.u32 %v403_v15, 16  ;;  %v405_v15 = vld [vmem:[#allocation2 + $0x230] sm:$0xff] }
  0x9f   : > { %v1155_v50 = vrot.slane %v1153_v33, 7  ;;  %v1151_v59 = vrot.slane %v1149_v28, 7  ;;  %v1539_v3 = vrot.slane %v1156_v51, 1  ;;  %v1829_v60 = vshrl.u32 %v10362_v63, 16 }
  0xa0   : > { %975 = vrot.lane.b32.xlu0 %v834_v20, %s9667_s19  ;;  %v1811_v20 = vsel %vm420_vm2, %v1803_v8, %v10324_v9  ;;  %v1532_v5 = vrot.slane %v1530_v2, 1  ;;  %v522_v18 = vshrl.u32 %v405_v15, 16 }
  0xa1   : > { %v1158_v62 = vor.u32 %v1156_v51, %v1155_v50  ;;  %v10406_v51 = vor.u32 %v2215_v41, %v1829_v60 }
  0xa2   : > { %977 = vrot.lane.b32.xlu1 %v846_v54, %s9667_s19  ;;  %v755_v54 = vld [vmem:[#allocation2 + $0x208] sm:$0x1]  ;;  %v524_v22 = vrot.slane %v522_v18, 7 }
  0xa3   : > { %v855_v17 = vshll.u32 %v755_v54, 16  ;;  %v1159_v4 = vsel %vm420_vm2, %v1151_v59, %v1158_v62 }
  0xa4   : > { %1264 = vrot.lane.b32.xlu0 %v1123_v34, %s9670_s22  ;;  %v515_v34 = vor.u32 %v513_v27, %v512_v25  ;;  %v2206_v25 = vshll.u32 %v2107_v16, 16  ;;  %v407_v27 = vld [vmem:[#allocation2 + $0x248] sm:$0xff] }
  0xa5   : > { %v857_v48 = vrot.slane %v855_v17, 1  ;;  %v534_v54 = vshrl.u32 %v407_v27, 16 }
  0xa6   : > { %1266 = vrot.lane.b32.xlu1 %v1135_v42, %s9670_s22  ;;  %v516_v37 = vsel %vm420_vm2, %v508_v32, %v515_v34  ;;  %v1044_v42 = vld [vmem:[#allocation2 + $0x210] sm:$0x80]  ;;  %v406_v32 = vld [vmem:[#allocation2 + $0x240] sm:$0x80]  ;;  %v968_v34 = vpop.permute.xlu1 %967 }
  0xa7   : > { %636 = vst.msk [vmem:[#allocation3 + $0x38] sm:$0xff] %vm177_vm0, %v516_v37  ;;  %v1137_v49 = vshrl.u32 %v1044_v42, 16  ;;  %v858_v36 = vsel %vm774_vm1, %v10307_v1, %v857_v48  ;;  %v1720_v1 = vld [vmem:[#allocation2 + $0x228] sm:$0x80]  ;;  %v530_v17 = vshrl.u32 %v406_v32, 16  ;;  %v536_v37 = vrot.slane %v534_v54, 7 }
  0xa8   : > { %1361 = vrot.lane.b32.xlu0 %v10176_v53, %s9668_s20  ;;  %v400_v53 = vld [vmem:[#allocation2 + $0x1f8] sm:$0x80]  ;;  %v1813_v6 = vshrl.u32 %v1720_v1, 16  ;;  %v2218_v42 = vshll.u32 %v2109_v29, 16 }
  0xa9   : > { %v494_v13 = vshrl.u32 %v400_v53, 16  ;;  %v1139_v52 = vrot.slane %v1137_v49, 7  ;;  %v1831_v53 = vrot.slane %v1829_v60, 7  ;;  %v532_v44 = vrot.slane %v530_v17, 7  ;;  %v761_v49 = vld [vmem:[#allocation2 + $0x250] sm:$0x1] }
  0xaa   : > { %1363 = vrot.lane.b32.xlu1 %v10231_v45, %s9668_s20  ;;  %v1815_v14 = vrot.slane %v1813_v6, 7  ;;  %v891_v59 = vshll.u32 %v761_v49, 16 }
  0xab   : > { %v496_v21 = vrot.slane %v494_v13, 7  ;;  %v1147_v0 = vsel %vm420_vm2, %v1139_v52, %v10324_v9  ;;  %v1825_v9 = vshrl.u32 %v1722_v61, 16  ;;  %v678_v13 = vpop.permute.xlu0 %677 }
  0xac   : > { %1650 = vrot.lane.b32.xlu0 %v1509_v58, %s9671_s23  ;;  %726 = vst.msk [vmem:[#allocation3] sm:$0xff] %vm725_vm4, %v678_v13  ;;  %v1823_v24 = vsel %vm420_vm2, %v1815_v14, %v1158_v62  ;;  %v1050_v62 = vld [vmem:[#allocation2 + $0x258] sm:$0x80]  ;;  %v893_v60 = vrot.slane %v891_v59, 1  ;;  %v1437_v14 = vld [vmem:[#allocation2 + $0x268] sm:$0x1] }
  0xad   : > { %v504_v55 = vsel %vm420_vm2, %v496_v21, %v503_v23  ;;  %v1827_v30 = vrot.slane %v1825_v9, 7  ;;  %v404_v21 = vld [vmem:[#allocation2 + $0x228] sm:$0x80]  ;;  %v525_v23 = vshll.u32 %v405_v15, 16  ;;  %1016 = vst.msk [vmem:[#allocation3] sm:$0xff] %vm1015_vm5, %v968_v34  ;;  %v172_v59 = vld [vmem:[%s9992_s14 + $0xd8] sm:$0xff] }
  0xae   : > { %1652 = vrot.lane.b32.xlu1 %v1521_v7, %s9671_s23  ;;  %635 = vst.msk [vmem:[#allocation3 + $0x30] sm:$0xff] %vm177_vm0, %v504_v55  ;;  %v10371_v7 = vor.u32 %v1539_v3, %v1153_v33  ;;  %v759_v33 = vld [vmem:[#allocation2 + $0x238] sm:$0x1]  ;;  %205 = vst.msk [vmem:[%s9997_s17 + $0xd8] sm:$0xff] %vm177_vm0, %v172_v59 }
  0xaf   : > { %v527_v39 = vor.u32 %v525_v23, %v524_v22  ;;  %v879_v52 = vshll.u32 %v759_v33, 16 }
  0xb0   : > { %1940 = vrot.lane.b32.xlu0 %v1799_v26, %s9672_s26  ;;  %v1533_v26 = vsel %vm774_vm1, %v2192_v40, %v1532_v5  ;;  %v2208_v40 = vrot.slane %v2206_v25, 1  ;;  %v1180_v5 = vshll.u32 %v10399_v43, 16 }
  0xb1   : > { %v881_v1 = vrot.slane %v879_v52, 1 }
  0xb2   : > { %1942 = vrot.lane.b32.xlu1 %v1811_v20, %s9672_s26  ;;  %v10384_v20 = vor.u32 %v1832_v11, %v1831_v53  ;;  %v2209_v50 = vsel %vm774_vm1, %v10371_v7, %v2208_v40  ;;  %v894_v11 = vsel %vm774_vm1, %v10406_v51, %v893_v60  ;;  %v1563_v22 = vrot.slane %v1180_v5, 1 }
  0xb4   : > { %2037 = vrot.lane.b32.xlu0 %v10231_v45, %s9669_s21  ;;  %v1835_v55 = vsel %vm420_vm2, %v1827_v30, %v10384_v20  ;;  %v1724_v30 = vld [vmem:[#allocation2 + $0x258] sm:$0x80] }
  0xb6   : > { %2039 = vrot.lane.b32.xlu1 %v10283_v10, %s9669_s21 }
  0xb8   : > { %2326 = vrot.lane.b32.xlu0 %v2185_v38, %s9673_s27  ;;  %v537_v38 = vshll.u32 %v407_v27, 16  ;;  %v1837_v27 = vshrl.u32 %v1724_v30, 16 }
  0xba   : > { %689 = vrot.lane.b32.xlu1 %v10231_v45, %s9666_s18  ;;  %v1433_v45 = vld [vmem:[#allocation2 + $0x238] sm:$0x1]  ;;  %v1839_v17 = vrot.slane %v1837_v27, 7  ;;  %v1439_v27 = vld [vmem:[#allocation2 + $0x280] sm:$0x1] }
  0xbb   : > { %v1542_v58 = vshll.u32 %v1433_v45, 16  ;;  %v1177_v45 = vshrl.u32 %v10399_v43, 16 }
  0xbc   : > { %2328 = vrot.lane.b32.xlu0 %v2197_v47, %s9673_s27  ;;  %v539_v47 = vor.u32 %v537_v38, %v536_v37  ;;  %v2111_v38 = vld [vmem:[#allocation2 + $0x268] sm:$0x1] }
  0xbd   : > { %v1544_v8 = vrot.slane %v1542_v58, 1  ;;  %v1173_v58 = vshrl.u32 %v1050_v62, 16  ;;  %v1179_v61 = vrot.slane %v1177_v45, 7  ;;  %v2230_v33 = vshll.u32 %v2111_v38, 16 }
  0xbe   : > { %691 = vrot.lane.b32.xlu1 %v10283_v10, %s9666_s18  ;;  %v540_v28 = vsel %vm420_vm2, %v532_v44, %v539_v47  ;;  %v2113_v44 = vld [vmem:[#allocation2 + $0x280] sm:$0x1] }
  0xbf   : > { %v1545_v19 = vsel %vm774_vm1, %v10371_v7, %v1544_v8  ;;  %638 = vst.msk [vmem:[#allocation3 + $0x48] sm:$0xff] %vm177_vm0, %v540_v28  ;;  %v882_v8 = vsel %vm774_vm1, %v10371_v7, %v881_v1  ;;  %v1182_v13 = vor.u32 %v1180_v5, %v1179_v61  ;;  %v10431_v7 = vld [vmem:[#allocation2 + $0x278] sm:$0xff]  ;;  %v2242_v28 = vshll.u32 %v2113_v44, 16  ;;  %v1052_v5 = vld [vmem:[#allocation2 + $0x270] sm:$0x80] }
  0xc0   : > { %979 = vrot.lane.b32.xlu0 %v858_v36, %s9667_s19  ;;  %v2220_v36 = vrot.slane %v2218_v42, 1  ;;  %v1853_v23 = vshrl.u32 %v10431_v7, 16  ;;  %v1856_v32 = vshll.u32 %v10431_v7, 16 }
  0xc2   : > { %981 = vrot.lane.b32.xlu1 %v870_v57, %s9667_s19  ;;  %v1048_v57 = vld [vmem:[#allocation2 + $0x240] sm:$0x80]  ;;  %v2221_v2 = vsel %vm774_vm1, %v10406_v51, %v2220_v36 }
  0xc3   : > { %v1161_v3 = vshrl.u32 %v1048_v57, 16  ;;  %v171_v57 = vld [vmem:[%s9992_s14 + $0xd0] sm:$0xff] }
  0xc4   : > { %1268 = vrot.lane.b32.xlu0 %v1147_v0, %s9670_s22  ;;  %v367_v1 = vpack.c.bf16 %v172_v59, %v171_v57  ;;  %204 = vst.msk [vmem:[%s9997_s17 + $0xd0] sm:$0xff] %vm177_vm0, %v171_v57 }
  0xc5   : > { %v1163_v9 = vrot.slane %v1161_v3, 7 }
  0xc6   : > { %1270 = vrot.lane.b32.xlu1 %v1159_v4, %s9670_s22  ;;  %384 = vst.msk [vmem:[#allocation2 + $0x2c0] sm:$0xff] %vm177_vm0, %v367_v1 }
  0xc7   : > { %v1171_v16 = vsel %vm420_vm2, %v1163_v9, %v10384_v20  ;;  %v1726_v20 = vld [vmem:[#allocation2 + $0x270] sm:$0x80] }
  0xc8   : > { %1365 = vrot.lane.b32.xlu0 %v10283_v10, %s9668_s20  ;;  %v518_v10 = vshrl.u32 %v404_v21, 16  ;;  %v1566_v21 = vshll.u32 %v1437_v14, 16  ;;  %v1849_v54 = vshrl.u32 %v1726_v20, 16 }
  0xca   : > { %1367 = vrot.lane.b32.xlu1 %v10339_v35, %s9668_s20  ;;  %v520_v31 = vrot.slane %v518_v10, 7  ;;  %v1851_v40 = vrot.slane %v1849_v54, 7 }
  0xcc   : > { %1654 = vrot.lane.b32.xlu0 %v1533_v26, %s9671_s23  ;;  %v528_v12 = vsel %vm420_vm2, %v520_v31, %v527_v39  ;;  %v1175_v26 = vrot.slane %v1173_v58, 7  ;;  %v1568_v31 = vrot.slane %v1566_v21, 1  ;;  %v10445_v39 = vor.u32 %v1563_v22, %v1177_v45  ;;  %v409_v21 = vld [vmem:[#allocation2 + $0x260] sm:$0xff]  ;;  %v174_v22 = vld [vmem:[%s9992_s14 + $0xe8] sm:$0xff] }
  0xcd   : > { %637 = vst.msk [vmem:[#allocation3 + $0x40] sm:$0xff] %vm177_vm0, %v528_v12  ;;  %v2244_v45 = vrot.slane %v2242_v28, 1  ;;  %207 = vst.msk [vmem:[%s9997_s17 + $0xe8] sm:$0xff] %vm177_vm0, %v174_v22 }
  0xce   : > { %1656 = vrot.lane.b32.xlu1 %v1545_v19, %s9671_s23  ;;  %v1183_v10 = vsel %vm420_vm2, %v1175_v26, %v1182_v13  ;;  %v1185_v26 = vshrl.u32 %v1052_v5, 16 }
  0xd0   : > { %1944 = vrot.lane.b32.xlu0 %v1823_v24, %s9672_s26 }
  0xd2   : > { %v680_v46 = vpop.permute.xlu0 %679  ;;  %1946 = vrot.lane.b32.xlu1 %v1835_v55, %s9672_s26  ;;  %v1855_v55 = vrot.slane %v1853_v23, 7 }
  0xd3   : > { %727 = vst.msk [vmem:[#allocation3 + $0x8] sm:$0xff] %vm725_vm4, %v680_v46  ;;  %v1847_v46 = vsel %vm420_vm2, %v1839_v17, %v1182_v13  ;;  %v10528_v17 = vld [vmem:[#allocation2 + $0x2a8] sm:$0xff] }
  0xd4   : > { %2041 = vrot.lane.b32.xlu0 %v10339_v35, %s9669_s21  ;;  %v1356_v48 = vpop.permute.xlu1 %1355  ;;  %v10463_v41 = vor.u32 %v1856_v32, %v1855_v55  ;;  %v1441_v55 = vld [vmem:[#allocation2 + $0x298] sm:$0x1] }
  0xd5   : > { %v1590_v44 = vshll.u32 %v1441_v55, 16  ;;  %v1056_v55 = vld [vmem:[#allocation2 + $0x2a0] sm:$0x80] }
  0xd6   : > { %v1354_v56 = vpop.permute.xlu0 %1353  ;;  %2043 = vrot.lane.b32.xlu1 %v10362_v63, %s9669_s21 }
  0xd8   : > { %2330 = vrot.lane.b32.xlu0 %v2209_v50, %s9673_s27  ;;  %v10413_v0 = vpop.permute.xlu1 %2031  ;;  %v2232_v50 = vrot.slane %v2230_v33, 1  ;;  %v1728_v33 = vld [vmem:[#allocation2 + $0x288] sm:$0x80] }
  0xd9   : > { %v1861_v57 = vshrl.u32 %v1728_v33, 16 }
  0xda   : > { %v2030_v4 = vpop.permute.xlu0 %2029  ;;  %693 = vrot.lane.b32.xlu1 %v10339_v35, %s9666_s18  ;;  %v1435_v35 = vld [vmem:[#allocation2 + $0x250] sm:$0x1]  ;;  %v2233_v3 = vsel %vm774_vm1, %v10445_v39, %v2232_v50  ;;  %v1877_v50 = vshrl.u32 %v10528_v17, 16 }
  0xdb   : > { %v1554_v18 = vshll.u32 %v1435_v35, 16 }
  0xdc   : > { %2332 = vrot.lane.b32.xlu0 %v2221_v2, %s9673_s27  ;;  %v970_v6 = vpop.permute.xlu1 %969  ;;  %v10481_v2 = vld [vmem:[#allocation2 + $0x290] sm:$0xff] }
  0xdd   : > { %1017 = vst.msk [vmem:[#allocation3 + $0x8] sm:$0xff] %vm1015_vm5, %v970_v6  ;;  %v1556_v25 = vrot.slane %v1554_v18, 1  ;;  %v1201_v9 = vshrl.u32 %v10481_v2, 16  ;;  %v1204_v18 = vshll.u32 %v10481_v2, 16 }
  0xde   : > { %v1257_v53 = vpop.permute.xlu0 %1256  ;;  %695 = vrot.lane.b32.xlu1 %v10362_v63, %s9666_s18 }
  0xdf   : > { %1305 = vst.msk [vmem:[#allocation3] sm:$0xff] %vm1304_vm6, %v1257_v53  ;;  %v1557_v12 = vsel %vm774_vm1, %v10406_v51, %v1556_v25  ;;  %v2239_v51 = vrot.slane %v1856_v32, 1  ;;  %v549_v32 = vshll.u32 %v409_v21, 16  ;;  %v1587_v28 = vrot.slane %v1204_v18, 1 }
  0xe0   : > { %983 = vrot.lane.b32.xlu0 %v882_v8, %s9667_s19  ;;  %v1259_v15 = vpop.permute.xlu1 %1258  ;;  %1402 = vst.msk [vmem:[#allocation3] sm:$0xff] %vm1401_vm7, %v1354_v56  ;;  %v763_v56 = vld [vmem:[#allocation2 + $0x268] sm:$0x1]  ;;  %v1054_v8 = vld [vmem:[#allocation2 + $0x288] sm:$0x80] }
  0xe1   : > { %1306 = vst.msk [vmem:[#allocation3 + $0x8] sm:$0xff] %vm1304_vm6, %v1259_v15  ;;  %v903_v58 = vshll.u32 %v763_v56, 16  ;;  %v1197_v14 = vshrl.u32 %v1054_v8, 16  ;;  %v1863_v8 = vrot.slane %v1861_v57, 7 }
  0xe2   : > { %v1643_v19 = vpop.permute.xlu0 %1642  ;;  %1403 = vst.msk [vmem:[#allocation3 + $0x8] sm:$0xff] %vm1401_vm7, %v1356_v48  ;;  %985 = vrot.lane.b32.xlu1 %v894_v11, %s9667_s19  ;;  %v1859_v48 = vsel %vm420_vm2, %v1851_v40, %v10463_v41 }
  0xe3   : > { %1691 = vst.msk [vmem:[#allocation3] sm:$0xff] %vm1690_vm8, %v1643_v19  ;;  %v905_v11 = vrot.slane %v903_v58, 1  ;;  %v408_v19 = vld [vmem:[#allocation2 + $0x258] sm:$0x80]  ;;  %v1199_v25 = vrot.slane %v1197_v14, 7  ;;  %v1880_v58 = vshll.u32 %v10528_v17, 16 }
  0xe4   : > { %1272 = vrot.lane.b32.xlu0 %v1171_v16, %s9670_s22  ;;  %v1645_v24 = vpop.permute.xlu1 %1644  ;;  %v1203_v16 = vrot.slane %v1201_v9, 7 }
  0xe5   : > { %1692 = vst.msk [vmem:[#allocation3 + $0x8] sm:$0xff] %vm1690_vm8, %v1645_v24  ;;  %v542_v24 = vshrl.u32 %v408_v19, 16 }
  0xe6   : > { %v1933_v29 = vpop.permute.xlu0 %1932  ;;  %1274 = vrot.lane.b32.xlu1 %v1183_v10, %s9670_s22  ;;  %v173_v10 = vld [vmem:[%s9992_s14 + $0xe0] sm:$0xff] }
  0xe7   : > { %1981 = vst.msk [vmem:[#allocation3] sm:$0xff] %vm1980_vm9, %v1933_v29  ;;  %v546_v29 = vshrl.u32 %v409_v21, 16 }
  0xe8   : > { %1369 = vrot.lane.b32.xlu0 %v10362_v63, %s9668_s20  ;;  %v1935_v34 = vpop.permute.xlu1 %1934  ;;  %2078 = vst.msk [vmem:[#allocation3] sm:$0xff] %vm2077_vm10, %v2030_v4  ;;  %v1569_v63 = vsel %vm774_vm1, %v10445_v39, %v1568_v31  ;;  %v10492_v4 = vor.u32 %v2239_v51, %v1853_v23  ;;  %v1187_v23 = vrot.slane %v1185_v26, 7  ;;  %v410_v31 = vld [vmem:[#allocation2 + $0x270] sm:$0x80] }
  0xe9   : > { %1982 = vst.msk [vmem:[#allocation3 + $0x8] sm:$0xff] %vm1980_vm9, %v1935_v34  ;;  %v368_v34 = vpack.c.bf16 %v174_v22, %v173_v10  ;;  %v548_v38 = vrot.slane %v546_v29, 7 }
  0xea   : > { %v2319_v37 = vpop.permute.xlu0 %2318  ;;  %2079 = vst.msk [vmem:[#allocation3 + $0x8] sm:$0xff] %vm2077_vm10, %v10413_v0  ;;  %1371 = vrot.lane.b32.xlu1 %v10399_v43, %s9668_s20  ;;  %v765_v0 = vld [vmem:[#allocation2 + $0x280] sm:$0x1]  ;;  %v2245_v35 = vsel %vm774_vm1, %v10492_v4, %v2244_v45  ;;  %v1195_v40 = vsel %vm420_vm2, %v1187_v23, %v10463_v41  ;;  %v1592_v45 = vrot.slane %v1590_v44, 1 }
  0xeb   : > { %2367 = vst.msk [vmem:[#allocation3] sm:$0xff] %vm2366_vm11, %v2319_v37  ;;  %v915_v6 = vshll.u32 %v765_v0, 16  ;;  %v544_v37 = vrot.slane %v542_v24, 7  ;;  %v10550_v0 = vor.u32 %v1587_v28, %v1201_v9  ;;  %v2115_v9 = vld [vmem:[#allocation2 + $0x298] sm:$0x1] }
  0xec   : > { %1658 = vrot.lane.b32.xlu0 %v1557_v12, %s9671_s23  ;;  %v682_v42 = vpop.permute.xlu1 %681  ;;  %206 = vst.msk [vmem:[%s9997_s17 + $0xe0] sm:$0xff] %vm177_vm0, %v173_v10  ;;  %385 = vst.msk [vmem:[#allocation2 + $0x2d8] sm:$0xff] %vm177_vm0, %v368_v34 }
  0xed   : > { %728 = vst.msk [vmem:[#allocation3 + $0x10] sm:$0xff] %vm725_vm4, %v682_v42  ;;  %v917_v15 = vrot.slane %v915_v6, 1  ;;  %v1578_v42 = vshll.u32 %v1439_v27, 16 }
  0xee   : > { %v2321_v47 = vpop.permute.xlu0 %2320  ;;  %1660 = vrot.lane.b32.xlu1 %v1569_v63, %s9671_s23  ;;  %v554_v63 = vshrl.u32 %v410_v31, 16 }
  0xef   : > { %2368 = vst.msk [vmem:[#allocation3 + $0x8] sm:$0xff] %vm2366_vm11, %v2321_v47  ;;  %v918_v54 = vsel %vm774_vm1, %v10492_v4, %v917_v15  ;;  %v551_v47 = vor.u32 %v549_v32, %v548_v38  ;;  %v1580_v56 = vrot.slane %v1578_v42, 1  ;;  %v2117_v15 = vld [vmem:[#allocation2 + $0x2b0] sm:$0x1] }
  0xf0   : > { %1948 = vrot.lane.b32.xlu0 %v1847_v46, %s9672_s26  ;;  %v684_v49 = vpop.permute.xlu1 %683  ;;  %v2266_v21 = vshll.u32 %v2117_v15, 16 }
  0xf1   : > { %729 = vst.msk [vmem:[#allocation3 + $0x18] sm:$0xff] %vm725_vm4, %v684_v49  ;;  %v1581_v6 = vsel %vm774_vm1, %v10492_v4, %v1580_v56  ;;  %v2254_v4 = vshll.u32 %v2115_v9, 16  ;;  %v1445_v56 = vld [vmem:[#allocation2 + $0x2c8] sm:$0x1] }
  0xf2   : > { %v972_v36 = vpop.permute.xlu0 %971  ;;  %v2383_v52 = vld [vmem:[#allocation3] sm:$0xff]  ;;  %1950 = vrot.lane.b32.xlu1 %v1859_v48, %s9672_s26  ;;  %v556_v48 = vrot.slane %v554_v63, 7  ;;  %v2268_v29 = vrot.slane %v2266_v21, 1 }
  0xf3   : > { %1018 = vst.msk [vmem:[#allocation3 + $0x10] sm:$0xff] %vm1015_vm5, %v972_v36  ;;  %9429 = vmatprep.mubr.msk.bf16.mxu0 %vm2419_vm12, %v2383_v52  ;;  %v1730_v36 = vld [vmem:[#allocation2 + $0x2a0] sm:$0x80]  ;;  %v552_v52 = vsel %vm420_vm2, %v544_v37, %v551_v47  ;;  %v2256_v19 = vrot.slane %v2254_v4, 1  ;;  %v1058_v37 = vld [vmem:[#allocation2 + $0x2b8] sm:$0x80] }
  0xf4   : > { %2045 = vrot.lane.b32.xlu0 %v10399_v43, %s9669_s21  ;;  %v974_v62 = vpop.permute.xlu1 %973  ;;  %639 = vst.msk [vmem:[#allocation3 + $0x50] sm:$0xff] %vm177_vm0, %v552_v52  ;;  %v564_v59 = vsel %vm420_vm2, %v556_v48, %v10463_v41  ;;  %v1873_v1 = vshrl.u32 %v1730_v36, 16  ;;  %v175_v41 = vld [vmem:[%s9992_s14 + $0xf0] sm:$0xff]  ;;  %v1221_v33 = vshrl.u32 %v1058_v37, 16 }
  0xf5   : > { %1019 = vst.msk [vmem:[#allocation3 + $0x18] sm:$0xff] %vm1015_vm5, %v974_v62  ;;  %v2257_v24 = vsel %vm774_vm1, %v10550_v0, %v2256_v19 }
  0xf6   : > { %v1261_v60 = vpop.permute.xlu0 %1260  ;;  %v2384_v61 = vld [vmem:[#allocation3 + $0x8] sm:$0xff]  ;;  %2047 = vrot.lane.b32.xlu1 %v10431_v7, %s9669_s21  ;;  %640 = vst.msk [vmem:[#allocation3 + $0x58] sm:$0xff] %vm177_vm0, %v564_v59  ;;  %208 = vst.msk [vmem:[%s9997_s17 + $0xf0] sm:$0xff] %vm177_vm0, %v175_v41  ;;  %v1223_v36 = vrot.slane %v1221_v33, 7  ;;  %v10623_v59 = vld [vmem:[#allocation2 + $0x2d8] sm:$0xff] }
  0xf7   : > { %1307 = vst.msk [vmem:[#allocation3 + $0x10] sm:$0xff] %vm1304_vm6, %v1261_v60  ;;  %9430 = vmatmul.mubr.msk.bf16.vlgmr.msra.gmra.mrb[0].mxu0 %vm2419_vm12, %v2384_v61  ;;  %v176_v60 = vld [vmem:[%s9992_s14 + $0xf8] sm:$0xff]  ;;  %v1060_v33 = vld [vmem:[#allocation2 + $0x2d0] sm:$0x80] }
  0xf8   : > { %2334 = vrot.lane.b32.xlu0 %v2233_v3, %s9673_s27  ;;  %v1263_v53 = vpop.permute.xlu1 %1262  ;;  %v1879_v3 = vrot.slane %v1877_v50, 7  ;;  %v369_v5 = vpack.c.bf16 %v176_v60, %v175_v41  ;;  %209 = vst.msk [vmem:[%s9997_s17 + $0xf8] sm:$0xff] %vm177_vm0, %v176_v60  ;;  %v1901_v60 = vshrl.u32 %v10623_v59, 16 }
  0xf9   : > { %1308 = vst.msk [vmem:[#allocation3 + $0x18] sm:$0xff] %vm1304_vm6, %v1263_v53 }
  0xfa   : > { %v1358_v13 = vpop.permute.xlu0 %1357  ;;  %697 = vrot.lane.b32.xlu1 %v10399_v43, %s9666_s18  ;;  %v906_v43 = vsel %vm774_vm1, %v10445_v39, %v905_v11  ;;  %v10525_v39 = vor.u32 %v1204_v18, %v1203_v16  ;;  %386 = vst.msk [vmem:[#allocation2 + $0x2f0] sm:$0xff] %vm177_vm0, %v369_v5  ;;  %v10572_v11 = vor.u32 %v1880_v58, %v1879_v3  ;;  %v1732_v3 = vld [vmem:[#allocation2 + $0x2b8] sm:$0x80]  ;;  %v1734_v5 = vld [vmem:[#allocation2 + $0x2d0] sm:$0x80] }
  0xfb   : > { %1404 = vst.msk [vmem:[#allocation3 + $0x10] sm:$0xff] %vm1401_vm7, %v1358_v13 }
  0xfc   : > { %2336 = vrot.lane.b32.xlu0 %v2245_v35, %s9673_s27  ;;  %v1360_v30 = vpop.permute.xlu1 %1359  ;;  %v1207_v49 = vsel %vm420_vm2, %v1199_v25, %v10525_v39  ;;  %v1875_v35 = vrot.slane %v1873_v1, 7  ;;  %v1871_v13 = vsel %vm420_vm2, %v1863_v8, %v10525_v39  ;;  %v10591_v25 = vld [vmem:[#allocation2 + $0x2c0] sm:$0xff]  ;;  %v1614_v1 = vshll.u32 %v1445_v56, 16 }
  0xfd   : > { %1405 = vst.msk [vmem:[#allocation3 + $0x18] sm:$0xff] %vm1401_vm7, %v1360_v30  ;;  %v2263_v30 = vrot.slane %v1880_v58, 1  ;;  %v1225_v34 = vshrl.u32 %v10591_v25, 16  ;;  %v1228_v47 = vshll.u32 %v10591_v25, 16  ;;  %v1885_v8 = vshrl.u32 %v1732_v3, 16 }
  0xfe   : > { %v1647_v20 = vpop.permute.xlu0 %1646  ;;  %699 = vrot.lane.b32.xlu1 %v10431_v7, %s9666_s18  ;;  %v1883_v16 = vsel %vm420_vm2, %v1875_v35, %v10572_v11  ;;  %v1897_v35 = vshrl.u32 %v1734_v5, 16  ;;  %v10697_v5 = vld [vmem:[#allocation2 + $0x308] sm:$0xff] }
  0xff   : > { %1693 = vst.msk [vmem:[#allocation3 + $0x10] sm:$0xff] %vm1690_vm8, %v1647_v20  ;;  %v769_v20 = vld [vmem:[#allocation2 + $0x2b0] sm:$0x1]  ;;  %v10596_v27 = vor.u32 %v2263_v30, %v1877_v50  ;;  %v1227_v44 = vrot.slane %v1225_v34, 7  ;;  %v1611_v41 = vrot.slane %v1228_v47, 1 }
 0x100   : > { %v1649_v12 = vpop.permute.xlu1 %1648  ;;  %987 = vrot.lane.b32.xlu0 %v906_v43, %s9667_s19  ;;  %v767_v43 = vld [vmem:[#allocation2 + $0x298] sm:$0x1]  ;;  %v939_v32 = vshll.u32 %v769_v20, 16  ;;  %v1899_v19 = vrot.slane %v1897_v35, 7 }
 0x101   : > { %1694 = vst.msk [vmem:[#allocation3 + $0x18] sm:$0xff] %vm1690_vm8, %v1649_v12  ;;  %v927_v31 = vshll.u32 %v767_v43, 16  ;;  %v2269_v38 = vsel %vm774_vm1, %v10596_v27, %v2268_v29  ;;  %v10620_v52 = vor.u32 %v1228_v47, %v1227_v44 }
 0x102   : > { %v1937_v46 = vpop.permute.xlu0 %1936  ;;  %989 = vrot.lane.b32.xlu1 %v918_v54, %s9667_s19 }
 0x103   : > { %1983 = vst.msk [vmem:[#allocation3 + $0x10] sm:$0xff] %vm1980_vm9, %v1937_v46  ;;  %v929_v63 = vrot.slane %v927_v31, 1  ;;  %v941_v46 = vrot.slane %v939_v32, 1  ;;  %v1231_v58 = vsel %vm420_vm2, %v1223_v36, %v10620_v52 }
 0x104   : > { %v1939_v51 = vpop.permute.xlu1 %1938  ;;  %1276 = vrot.lane.b32.xlu0 %v1195_v40, %s9670_s22  ;;  %v1209_v40 = vshrl.u32 %v1056_v55, 16  ;;  %v773_v55 = vld [vmem:[#allocation2 + $0x2e0] sm:$0x1] }
 0x105   : > { %1984 = vst.msk [vmem:[#allocation3 + $0x18] sm:$0xff] %vm1980_vm9, %v1939_v51  ;;  %v942_v51 = vsel %vm774_vm1, %v10596_v27, %v941_v46  ;;  %v963_v46 = vshll.u32 %v773_v55, 16 }
 0x106   : > { %v2034_v62 = vpop.permute.xlu0 %2033  ;;  %1278 = vrot.lane.b32.xlu1 %v1207_v49, %s9670_s22  ;;  %v930_v49 = vsel %vm774_vm1, %v10550_v0, %v929_v63  ;;  %v1211_v28 = vrot.slane %v1209_v40, 7 }
 0x107   : > { %2080 = vst.msk [vmem:[#allocation3 + $0x10] sm:$0xff] %vm2077_vm10, %v2034_v62 }
 0x108   : > { %v2036_v61 = vpop.permute.xlu1 %2035  ;;  %1373 = vrot.lane.b32.xlu0 %v10431_v7, %s9668_s20  ;;  %v1593_v7 = vsel %vm774_vm1, %v10550_v0, %v1592_v45  ;;  %v1219_v62 = vsel %vm420_vm2, %v1211_v28, %v10572_v11  ;;  %v1903_v11 = vrot.slane %v1901_v60, 7 }
 0x109   : > { %2081 = vst.msk [vmem:[#allocation3 + $0x18] sm:$0xff] %vm2077_vm10, %v2036_v61 }
 0x10a   : > { %v2323_v53 = vpop.permute.xlu0 %2322  ;;  %1375 = vrot.lane.b32.xlu1 %v10481_v2, %s9668_s20 }
 0x10b   : > { %2369 = vst.msk [vmem:[#allocation3 + $0x10] sm:$0xff] %vm2366_vm11, %v2323_v53  ;;  %v1616_v53 = vrot.slane %v1614_v1, 1 }
 0x10c   : > { %v686_v26 = vpop.permute.xlu1 %685  ;;  %1662 = vrot.lane.b32.xlu0 %v1581_v6, %s9671_s23 }
 0x10d   : > { %730 = vst.msk [vmem:[#allocation3 + $0x20] sm:$0xff] %vm725_vm4, %v686_v26  ;;  %v1904_v26 = vshll.u32 %v10623_v59, 16 }
 0x10e   : > { %v2325_v14 = vpop.permute.xlu0 %2324  ;;  %1664 = vrot.lane.b32.xlu1 %v1593_v7, %s9671_s23  ;;  %v10637_v7 = vor.u32 %v1611_v41, %v1225_v34 }
 0x10f   : > { %2370 = vst.msk [vmem:[#allocation3 + $0x18] sm:$0xff] %vm2366_vm11, %v2325_v14  ;;  %v1887_v14 = vrot.slane %v1885_v8, 7  ;;  %v10650_v30 = vor.u32 %v1904_v26, %v1903_v11  ;;  %v2287_v29 = vrot.slane %v1904_v26, 1  ;;  %v1738_v26 = vld [vmem:[#allocation2 + $0x300] sm:$0x80] }
 0x110   : > { %v688_v18 = vpop.permute.xlu1 %687  ;;  %1952 = vrot.lane.b32.xlu0 %v1871_v13, %s9672_s26 }
 0x111   : > { %731 = vst.msk [vmem:[#allocation3 + $0x28] sm:$0xff] %vm725_vm4, %v688_v18  ;;  %v1617_v18 = vsel %vm774_vm1, %v10637_v7, %v1616_v53  ;;  %v1895_v21 = vsel %vm420_vm2, %v1887_v14, %v10620_v52  ;;  %v1736_v53 = vld [vmem:[#allocation2 + $0x2e8] sm:$0x80] }
 0x112   : > { %v976_v10 = vpop.permute.xlu0 %975  ;;  %v2385_v22 = vld [vmem:[#allocation3 + $0x10] sm:$0xff]  ;;  %1954 = vrot.lane.b32.xlu1 %v1883_v16, %s9672_s26  ;;  %v2119_v16 = vld [vmem:[#allocation2 + $0x2c8] sm:$0x1] }
 0x113   : > { %1020 = vst.msk [vmem:[#allocation3 + $0x20] sm:$0xff] %vm1015_vm5, %v976_v10  ;;  %9433 = vmatprep.mubr.msk.bf16.mxu0 %vm2419_vm12, %v2385_v22  ;;  %v2278_v10 = vshll.u32 %v2119_v16, 16  ;;  %v2121_v22 = vld [vmem:[#allocation2 + $0x2e0] sm:$0x1] }
 0x114   : > { %v978_v23 = vpop.permute.xlu1 %977  ;;  %2049 = vrot.lane.b32.xlu0 %v10481_v2, %s9669_s21  ;;  %v2290_v20 = vshll.u32 %v2121_v22, 16 }
 0x115   : > { %1021 = vst.msk [vmem:[#allocation3 + $0x28] sm:$0xff] %vm1015_vm5, %v978_v23  ;;  %v1907_v23 = vsel %vm420_vm2, %v1899_v19, %v10650_v30 }
 0x116   : > { %v1265_v54 = vpop.permute.xlu0 %1264  ;;  %v2386_v39 = vld [vmem:[#allocation3 + $0x18] sm:$0xff]  ;;  %2051 = vrot.lane.b32.xlu1 %v10528_v17, %s9669_s21  ;;  %v2292_v34 = vrot.slane %v2290_v20, 1 }
 0x117   : > { %1309 = vst.msk [vmem:[#allocation3 + $0x20] sm:$0xff] %vm1304_vm6, %v1265_v54  ;;  %9434 = vmatmul.mubr.msk.bf16.gmra.mrb[4].mxu0 %vm2419_vm12, %v2386_v39  ;;  %v771_v39 = vld [vmem:[#allocation2 + $0x2c8] sm:$0x1]  ;;  %v2123_v20 = vld [vmem:[#allocation2 + $0x2f8] sm:$0x1] }
 0x118   : > { %v1267_v12 = vpop.permute.xlu1 %1266  ;;  %2338 = vrot.lane.b32.xlu0 %v2257_v24, %s9673_s27  ;;  %v951_v63 = vshll.u32 %v771_v39, 16  ;;  %v2302_v55 = vshll.u32 %v2123_v20, 16 }
 0x119   : > { %1310 = vst.msk [vmem:[#allocation3 + $0x28] sm:$0xff] %vm1304_vm6, %v1267_v12  ;;  %v10667_v12 = vld [vmem:[#allocation2 + $0x2f0] sm:$0xff] }
 0x11a   : > { %v1362_v42 = vpop.permute.xlu0 %1361  ;;  %701 = vrot.lane.b32.xlu1 %v10481_v2, %s9666_s18  ;;  %v1443_v2 = vld [vmem:[#allocation2 + $0x2b0] sm:$0x1]  ;;  %v1249_v44 = vshrl.u32 %v10667_v12, 16  ;;  %v953_v28 = vrot.slane %v951_v63, 1 }
 0x11b   : > { %1406 = vst.msk [vmem:[#allocation3 + $0x20] sm:$0xff] %vm1401_vm7, %v1362_v42  ;;  %v1602_v45 = vshll.u32 %v1443_v2, 16 }
 0x11c   : > { %v1364_v48 = vpop.permute.xlu1 %1363  ;;  %2340 = vrot.lane.b32.xlu0 %v2269_v38, %s9673_s27  ;;  %v10672_v38 = vor.u32 %v2287_v29, %v1901_v60  ;;  %v1251_v56 = vrot.slane %v1249_v44, 7 }
 0x11d   : > { %1407 = vst.msk [vmem:[#allocation3 + $0x28] sm:$0xff] %vm1401_vm7, %v1364_v48  ;;  %v1604_v6 = vrot.slane %v1602_v45, 1  ;;  %v1062_v48 = vld [vmem:[#allocation2 + $0x2e8] sm:$0x80]  ;;  %v954_v45 = vsel %vm774_vm1, %v10637_v7, %v953_v28 }
 0x11e   : > { %v1651_v50 = vpop.permute.xlu0 %1650  ;;  %703 = vrot.lane.b32.xlu1 %v10528_v17, %s9666_s18  ;;  %v1245_v36 = vshrl.u32 %v1062_v48, 16 }
 0x11f   : > { %1695 = vst.msk [vmem:[#allocation3 + $0x20] sm:$0xff] %vm1690_vm8, %v1651_v50  ;;  %v1605_v13 = vsel %vm774_vm1, %v10596_v27, %v1604_v6  ;;  %v2280_v27 = vrot.slane %v2278_v10, 1  ;;  %v1233_v50 = vshrl.u32 %v1060_v33, 16  ;;  %v1928_v10 = vshll.u32 %v10697_v5, 16 }
 0x120   : > { %v1653_v57 = vpop.permute.xlu1 %1652  ;;  %991 = vrot.lane.b32.xlu0 %v930_v49, %s9667_s19  ;;  %v2293_v49 = vsel %vm774_vm1, %v10672_v38, %v2292_v34 }
 0x121   : > { %1696 = vst.msk [vmem:[#allocation3 + $0x28] sm:$0xff] %vm1690_vm8, %v1653_v57  ;;  %v2281_v37 = vsel %vm774_vm1, %v10637_v7, %v2280_v27  ;;  %v1252_v57 = vshll.u32 %v10667_v12, 16 }
 0x122   : > { %v1941_v0 = vpop.permute.xlu0 %1940  ;;  %993 = vrot.lane.b32.xlu1 %v942_v51, %s9667_s19  ;;  %v965_v51 = vrot.slane %v963_v46, 1 }
 0x123   : > { %1985 = vst.msk [vmem:[#allocation3 + $0x20] sm:$0xff] %vm1980_vm9, %v1941_v0  ;;  %v1235_v0 = vrot.slane %v1233_v50, 7  ;;  %v1254_v41 = vor.u32 %v1252_v57, %v1251_v56  ;;  %v1635_v35 = vrot.slane %v1252_v57, 1  ;;  %v3035_v50 = vld [vmem:[#allocation2 + $0x158] sm:$0xfe] }
 0x124   : > { %v1943_v61 = vpop.permute.xlu1 %1942  ;;  %1280 = vrot.lane.b32.xlu0 %v1219_v62, %s9670_s22  ;;  %v966_v3 = vsel %vm774_vm1, %v10672_v38, %v965_v51  ;;  %v3038_v56 = vld [vmem:[#allocation2 + $0x178] sm:$0x1] }
 0x125   : > { %1986 = vst.msk [vmem:[#allocation3 + $0x28] sm:$0xff] %vm1980_vm9, %v1943_v61  ;;  %v1449_v61 = vld [vmem:[#allocation2 + $0x2f8] sm:$0x1]  ;;  %v1243_v6 = vsel %vm420_vm2, %v1235_v0, %v10650_v30  ;;  %v1636_v19 = vor.u32 %v1635_v35, %v1249_v44 }
 0x126   : > { %v2038_v9 = vpop.permute.xlu0 %2037  ;;  %1282 = vrot.lane.b32.xlu1 %v1231_v58, %s9670_s22  ;;  %v1247_v58 = vrot.slane %v1245_v36, 7  ;;  %v1638_v11 = vshll.u32 %v1449_v61, 16  ;;  %v2939_v57 = vld [vmem:[#allocation2 + $0x158] sm:$0xff] }
 0x127   : > { %2082 = vst.msk [vmem:[#allocation3 + $0x20] sm:$0xff] %vm2077_vm10, %v2038_v9 }
 0x128   : > { %v2040_v4 = vpop.permute.xlu1 %2039  ;;  %1377 = vrot.lane.b32.xlu0 %v10528_v17, %s9668_s20  ;;  %v1255_v7 = vsel %vm420_vm2, %v1247_v58, %v1254_v41 }
 0x129   : > { %2083 = vst.msk [vmem:[#allocation3 + $0x28] sm:$0xff] %vm2077_vm10, %v2040_v4  ;;  %v1925_v4 = vshrl.u32 %v10697_v5, 16 }
 0x12a   : > { %v2327_v15 = vpop.permute.xlu0 %2326  ;;  %1379 = vrot.lane.b32.xlu1 %v10591_v25, %s9668_s20 }
 0x12b   : > { %2371 = vst.msk [vmem:[#allocation3 + $0x20] sm:$0xff] %vm2366_vm11, %v2327_v15  ;;  %v1909_v15 = vshrl.u32 %v1736_v53, 16 }
 0x12c   : > { %v690_v17 = vpop.permute.xlu1 %689  ;;  %1666 = vrot.lane.b32.xlu0 %v1605_v13, %s9671_s23 }
 0x12d   : > { %732 = vst.msk [vmem:[#allocation3 + $0x30] sm:$0xff] %vm725_vm4, %v690_v17  ;;  %v1640_v17 = vrot.slane %v1638_v11, 1 }
 0x12e   : > { %v2329_v43 = vpop.permute.xlu0 %2328  ;;  %1668 = vrot.lane.b32.xlu1 %v1617_v18, %s9671_s23  ;;  %v1921_v18 = vshrl.u32 %v1738_v26, 16  ;;  %v412_v26 = vld [vmem:[#allocation2 + $0x288] sm:$0x80] }
 0x12f   : > { %2372 = vst.msk [vmem:[#allocation3 + $0x28] sm:$0xff] %vm2366_vm11, %v2329_v43  ;;  %v1641_v27 = vsel %vm774_vm1, %v1636_v19, %v1640_v17 }
 0x130   : > { %v692_v24 = vpop.permute.xlu1 %691  ;;  %1956 = vrot.lane.b32.xlu0 %v1895_v21, %s9672_s26  ;;  %v1927_v21 = vrot.slane %v1925_v4, 7  ;;  %v1923_v29 = vrot.slane %v1921_v18, 7 }
 0x131   : > { %733 = vst.msk [vmem:[#allocation3 + $0x38] sm:$0xff] %vm725_vm4, %v692_v24 }
 0x132   : > { %v980_v31 = vpop.permute.xlu0 %979  ;;  %v2387_v54 = vld [vmem:[#allocation3 + $0x20] sm:$0xff]  ;;  %1958 = vrot.lane.b32.xlu1 %v1907_v23, %s9672_s26  ;;  %v1911_v23 = vrot.slane %v1909_v15, 7 }
 0x133   : > { %1022 = vst.msk [vmem:[#allocation3 + $0x30] sm:$0xff] %vm1015_vm5, %v980_v31  ;;  %9437 = vmatprep.mubr.msk.bf16.mxu0 %vm2419_vm12, %v2387_v54  ;;  %v1930_v31 = vor.u32 %v1928_v10, %v1927_v21 }
 0x134   : > { %v982_v32 = vpop.permute.xlu1 %981  ;;  %2053 = vrot.lane.b32.xlu0 %v10591_v25, %s9669_s21  ;;  %v1919_v39 = vsel %vm420_vm2, %v1911_v23, %v1254_v41 }
 0x135   : > { %1023 = vst.msk [vmem:[#allocation3 + $0x38] sm:$0xff] %vm1015_vm5, %v982_v32  ;;  %v1931_v34 = vsel %vm420_vm2, %v1923_v29, %v1930_v31 }
 0x136   : > { %v1269_v40 = vpop.permute.xlu0 %1268  ;;  %v2388_v42 = vld [vmem:[#allocation3 + $0x28] sm:$0xff]  ;;  %2055 = vrot.lane.b32.xlu1 %v10623_v59, %s9669_s21 }
 0x137   : > { %1311 = vst.msk [vmem:[#allocation3 + $0x30] sm:$0xff] %vm1304_vm6, %v1269_v40  ;;  %9438 = vmatmul.mubr.msk.bf16.gmra.mrb[8].mxu0 %vm2419_vm12, %v2388_v42  ;;  %v2304_v40 = vrot.slane %v2302_v55, 1 }
 0x138   : > { %v1271_v47 = vpop.permute.xlu1 %1270  ;;  %2342 = vrot.lane.b32.xlu0 %v2281_v37, %s9673_s27  ;;  %v2311_v37 = vrot.slane %v1928_v10, 1  ;;  %v414_v10 = vld [vmem:[#allocation2 + $0x2a0] sm:$0x80] }
 0x139   : > { %1312 = vst.msk [vmem:[#allocation3 + $0x38] sm:$0xff] %vm1304_vm6, %v1271_v47  ;;  %v2305_v48 = vsel %vm774_vm1, %v1636_v19, %v2304_v40 }
 0x13a   : > { %v1366_v2 = vpop.permute.xlu0 %1365  ;;  %705 = vrot.lane.b32.xlu1 %v10591_v25, %s9666_s18  ;;  %v1447_v25 = vld [vmem:[#allocation2 + $0x2e0] sm:$0x1]  ;;  %v2312_v33 = vor.u32 %v2311_v37, %v1925_v4  ;;  %v413_v4 = vld [vmem:[#allocation2 + $0x290] sm:$0xff] }
 0x13b   : > { %1408 = vst.msk [vmem:[#allocation3 + $0x30] sm:$0xff] %vm1401_vm7, %v1366_v2  ;;  %v1626_v8 = vshll.u32 %v1447_v25, 16  ;;  %v3036_v2 = vld [vmem:[#allocation2 + $0x160] sm:$0x1]  ;;  %v570_v15 = vshrl.u32 %v413_v4, 16 }
 0x13c   : > { %v1368_v62 = vpop.permute.xlu1 %1367  ;;  %2344 = vrot.lane.b32.xlu0 %v2293_v49, %s9673_s27 }
 0x13d   : > { %1409 = vst.msk [vmem:[#allocation3 + $0x38] sm:$0xff] %vm1401_vm7, %v1368_v62  ;;  %v1628_v14 = vrot.slane %v1626_v8, 1  ;;  %v3100_v62 = vrot.slane %v3035_v50, 1  ;;  %v572_v21 = vrot.slane %v570_v15, 7 }
 0x13e   : > { %v1655_v1 = vpop.permute.xlu0 %1654  ;;  %707 = vrot.lane.b32.xlu1 %v10623_v59, %s9666_s18 }
 0x13f   : > { %1697 = vst.msk [vmem:[#allocation3 + $0x30] sm:$0xff] %vm1690_vm8, %v1655_v1  ;;  %v1629_v43 = vsel %vm774_vm1, %v10672_v38, %v1628_v14  ;;  %v2940_v1 = vld [vmem:[#allocation2 + $0x170] sm:$0xff]  ;;  %v566_v14 = vshrl.u32 %v412_v26, 16 }
 0x140   : > { %v1657_v60 = vpop.permute.xlu1 %1656  ;;  %995 = vrot.lane.b32.xlu0 %v954_v45, %s9667_s19  ;;  %v3101_v45 = vrot.slane %v3036_v2, 1 }
 0x141   : > { %1698 = vst.msk [vmem:[#allocation3 + $0x38] sm:$0xff] %vm1690_vm8, %v1657_v60  ;;  %v568_v17 = vrot.slane %v566_v14, 7 }
 0x142   : > { %v1945_v9 = vpop.permute.xlu0 %1944  ;;  %997 = vrot.lane.b32.xlu1 %v966_v3, %s9667_s19  ;;  %v3104_v3 = vrot.slane %v3038_v56, 1  ;;  %v3102_v41 = vsel %vm3099_vm13, %v3100_v62, %v3101_v45  ;;  %v418_v56 = vld [vmem:[#allocation2 + $0x2d0] sm:$0x80] }
 0x143   : > { %1987 = vst.msk [vmem:[#allocation3 + $0x30] sm:$0xff] %vm1980_vm9, %v1945_v9 }
 0x144   : > { %v1947_v13 = vpop.permute.xlu1 %1946  ;;  %1284 = vrot.lane.b32.xlu0 %v1243_v6, %s9670_s22 }
 0x145   : > { %1988 = vst.msk [vmem:[#allocation3 + $0x38] sm:$0xff] %vm1980_vm9, %v1947_v13 }
 0x146   : > { %v2042_v16 = vpop.permute.xlu0 %2041  ;;  %1286 = vrot.lane.b32.xlu1 %v1255_v7, %s9670_s22 }
 0x147   : > { %2084 = vst.msk [vmem:[#allocation3 + $0x30] sm:$0xff] %vm2077_vm10, %v2042_v16  ;;  %v573_v16 = vshll.u32 %v413_v4, 16  ;;  %v2796_v4 = vld [vmem:[#allocation2 + $0x168] sm:$0x80] }
 0x148   : > { %v2044_v22 = vpop.permute.xlu1 %2043  ;;  %1381 = vrot.lane.b32.xlu0 %v10623_v59, %s9668_s20  ;;  %v2125_v59 = vld [vmem:[#allocation2 + $0x310] sm:$0x1]  ;;  %v2862_v14 = vrot.slane %v2796_v4, 7  ;;  %v2669_v4 = vld [vmem:[%s9997_s17 + $0x20] sm:$0xff] }
 0x149   : > { %2085 = vst.msk [vmem:[#allocation3 + $0x38] sm:$0xff] %vm2077_vm10, %v2044_v22  ;;  %v2314_v38 = vshll.u32 %v2125_v59, 16  ;;  %v415_v22 = vld [vmem:[#allocation2 + $0x2a8] sm:$0xff] }
 0x14a   : > { %v2331_v24 = vpop.permute.xlu0 %2330  ;;  %1383 = vrot.lane.b32.xlu1 %v10667_v12, %s9668_s20  ;;  %v582_v23 = vshrl.u32 %v415_v22, 16 }
 0x14b   : > { %2373 = vst.msk [vmem:[#allocation3 + $0x30] sm:$0xff] %vm2366_vm11, %v2331_v24  ;;  %v2316_v44 = vrot.slane %v2314_v38, 1  ;;  %v585_v24 = vshll.u32 %v415_v22, 16 }
 0x14c   : > { %v694_v54 = vpop.permute.xlu1 %693  ;;  %1670 = vrot.lane.b32.xlu0 %v1629_v43, %s9671_s23  ;;  %v578_v43 = vshrl.u32 %v414_v10, 16  ;;  %v584_v31 = vrot.slane %v582_v23, 7 }
 0x14d   : > { %734 = vst.msk [vmem:[#allocation3 + $0x40] sm:$0xff] %vm725_vm4, %v694_v54  ;;  %v2317_v51 = vsel %vm774_vm1, %v2312_v33, %v2316_v44  ;;  %vm6308_vm1 = vcmask 1043456  }
 0x14e   : > { %v2333_v32 = vpop.permute.xlu0 %2332  ;;  %1672 = vrot.lane.b32.xlu1 %v1641_v27, %s9671_s23  ;;  %v575_v27 = vor.u32 %v573_v16, %v572_v21  ;;  %v580_v29 = vrot.slane %v578_v43, 7  ;;  %v587_v55 = vor.u32 %v585_v24, %v584_v31  ;;  %v2794_v16 = vld [vmem:[#allocation2 + $0x150] sm:$0x80] }
 0x14f   : > { %2374 = vst.msk [vmem:[#allocation3 + $0x38] sm:$0xff] %vm2366_vm11, %v2333_v32 }
 0x150   : > { %v696_v63 = vpop.permute.xlu1 %695  ;;  %1960 = vrot.lane.b32.xlu0 %v1919_v39, %s9672_s26  ;;  %v576_v39 = vsel %vm420_vm2, %v568_v17, %v575_v27  ;;  %v2859_v17 = vrot.slane %v2794_v16, 7 }
 0x151   : > { %735 = vst.msk [vmem:[#allocation3 + $0x48] sm:$0xff] %vm725_vm4, %v696_v63 }
 0x152   : > { %v984_v42 = vpop.permute.xlu0 %983  ;;  %v2389_v46 = vld [vmem:[#allocation3 + $0x30] sm:$0xff]  ;;  %1962 = vrot.lane.b32.xlu1 %v1931_v34, %s9672_s26  ;;  %641 = vst.msk [vmem:[#allocation3 + $0x60] sm:$0xff] %vm177_vm0, %v576_v39  ;;  %v588_v34 = vsel %vm420_vm2, %v580_v29, %v587_v55 }
 0x153   : > { %1024 = vst.msk [vmem:[#allocation3 + $0x40] sm:$0xff] %vm1015_vm5, %v984_v42  ;;  %9441 = vmatprep.mubr.msk.bf16.mxu0 %vm2419_vm12, %v2389_v46 }
 0x154   : > { %v986_v47 = vpop.permute.xlu1 %985  ;;  %2057 = vrot.lane.b32.xlu0 %v10667_v12, %s9669_s21  ;;  %v3037_v12 = vld [vmem:[#allocation2 + $0x170] sm:$0xfe]  ;;  %642 = vst.msk [vmem:[#allocation3 + $0x68] sm:$0xff] %vm177_vm0, %v588_v34 }
 0x155   : > { %1025 = vst.msk [vmem:[#allocation3 + $0x48] sm:$0xff] %vm1015_vm5, %v986_v47  ;;  %v3103_v25 = vrot.slane %v3037_v12, 1  ;;  %v2667_v34 = vld [vmem:[%s9997_s17 + $0x10] sm:$0xff] }
 0x156   : > { %v1273_v49 = vpop.permute.xlu0 %1272  ;;  %v2390_v28 = vld [vmem:[#allocation3 + $0x38] sm:$0xff]  ;;  %2059 = vrot.lane.b32.xlu1 %v10697_v5, %s9669_s21 }
 0x157   : > { %1313 = vst.msk [vmem:[#allocation3 + $0x40] sm:$0xff] %vm1304_vm6, %v1273_v49  ;;  %9442 = vmatmul.mubr.msk.bf16.gmra.mrb[12].mxu0 %vm2419_vm12, %v2390_v28  ;;  %v3105_v61 = vsel %vm3099_vm13, %v3103_v25, %v3104_v3  ;;  %v416_v28 = vld [vmem:[#allocation2 + $0x2b8] sm:$0x80] }
 0x158   : > { %v1275_v36 = vpop.permute.xlu1 %1274  ;;  %2346 = vrot.lane.b32.xlu0 %v2305_v48, %s9673_s27  ;;  %v590_v2 = vshrl.u32 %v416_v28, 16  ;;  %v2666_v28 = vld [vmem:[%s9997_s17 + $0x8] sm:$0xff] }
 0x159   : > { %1314 = vst.msk [vmem:[#allocation3 + $0x48] sm:$0xff] %vm1304_vm6, %v1275_v36 }
 0x15a   : > { %v1370_v0 = vpop.permute.xlu0 %1369  ;;  %2348 = vrot.lane.b32.xlu1 %v2317_v51, %s9673_s27  ;;  %v592_v12 = vrot.slane %v590_v2, 7 }
 0x15b   : > { %1410 = vst.msk [vmem:[#allocation3 + $0x40] sm:$0xff] %vm1401_vm7, %v1370_v0 }
 0x15c   : > { %v1372_v58 = vpop.permute.xlu1 %1371  ;;  %2971 = vrot.lane.b32.xlu0 %v2939_v57, %s9666_s18  ;;  %v602_v57 = vshrl.u32 %v418_v56, 16  ;;  %v600_v45 = vsel %vm420_vm2, %v592_v12, %v10620_v52 }
 0x15d   : > { %1411 = vst.msk [vmem:[#allocation3 + $0x48] sm:$0xff] %vm1401_vm7, %v1372_v58 }
 0x15e   : > { %v1659_v60 = vpop.permute.xlu0 %1658  ;;  %2973 = vrot.lane.b32.xlu1 %v2940_v1, %s9666_s18  ;;  %643 = vst.msk [vmem:[#allocation3 + $0x70] sm:$0xff] %vm177_vm0, %v600_v45  ;;  %v604_v0 = vrot.slane %v602_v57, 7 }
 0x15f   : > { %1699 = vst.msk [vmem:[#allocation3 + $0x40] sm:$0xff] %vm1690_vm8, %v1659_v60 }
 0x160   : > { %v1661_v5 = vpop.permute.xlu1 %1660  ;;  %3148 = vrot.lane.b32.xlu0 %v3102_v41, %s9667_s19  ;;  %v612_v3 = vsel %vm420_vm2, %v604_v0, %v10650_v30 }
 0x161   : > { %1700 = vst.msk [vmem:[#allocation3 + $0x48] sm:$0xff] %vm1690_vm8, %v1661_v5 }
 0x162   : > { %v1949_v6 = vpop.permute.xlu0 %1948  ;;  %3150 = vrot.lane.b32.xlu1 %v3105_v61, %s9667_s19  ;;  %644 = vst.msk [vmem:[#allocation3 + $0x78] sm:$0xff] %vm177_vm0, %v612_v3  ;;  %v2800_v3 = vld [vmem:[#allocation2 + $0x198] sm:$0x80] }
 0x163   : > { %1989 = vst.msk [vmem:[#allocation3 + $0x40] sm:$0xff] %vm1980_vm9, %v1949_v6 }
 0x164   : > { %v1951_v8 = vpop.permute.xlu1 %1950 }
 0x165   : > { %1990 = vst.msk [vmem:[#allocation3 + $0x48] sm:$0xff] %vm1980_vm9, %v1951_v8 }
 0x166   : > { %v2046_v9 = vpop.permute.xlu0 %2045 }
 0x167   : > { %2086 = vst.msk [vmem:[#allocation3 + $0x40] sm:$0xff] %vm2077_vm10, %v2046_v9 }
 0x168   : > { %v2048_v53 = vpop.permute.xlu1 %2047 }
 0x169   : > { %2087 = vst.msk [vmem:[#allocation3 + $0x48] sm:$0xff] %vm2077_vm10, %v2048_v53 }
 0x16a   : > { %v2335_v7 = vpop.permute.xlu0 %2334 }
 0x16b   : > { %2375 = vst.msk [vmem:[#allocation3 + $0x40] sm:$0xff] %vm2366_vm11, %v2335_v7 }
 0x16c   : > { %v698_v35 = vpop.permute.xlu1 %697 }
 0x16d   : > { %736 = vst.msk [vmem:[#allocation3 + $0x50] sm:$0xff] %vm725_vm4, %v698_v35 }
 0x16e   : > { %v2337_v11 = vpop.permute.xlu0 %2336 }
 0x16f   : > { %2376 = vst.msk [vmem:[#allocation3 + $0x48] sm:$0xff] %vm2366_vm11, %v2337_v11 }
 0x170   : > { %v700_v13 = vpop.permute.xlu1 %699 }
 0x171   : > { %737 = vst.msk [vmem:[#allocation3 + $0x58] sm:$0xff] %vm725_vm4, %v700_v13  ;;  %v2797_v13 = vld [vmem:[#allocation2 + $0x170] sm:$0x7f] }
 0x172   : > { %v2391_v18 = vld [vmem:[#allocation3 + $0x40] sm:$0xff]  ;;  %v988_v19 = vpop.permute.xlu0 %987  ;;  %v2863_v15 = vrot.slane %v2797_v13, 7 }
 0x173   : > { %9445 = vmatprep.mubr.msk.bf16.mxu1 %vm2419_vm12, %v2391_v18  ;;  %1026 = vst.msk [vmem:[#allocation3 + $0x50] sm:$0xff] %vm1015_vm5, %v988_v19  ;;  %v2795_v18 = vld [vmem:[#allocation2 + $0x158] sm:$0x7f] }
 0x174   : > { %v990_v20 = vpop.permute.xlu1 %989  ;;  %v2860_v21 = vrot.slane %v2795_v18, 7  ;;  %v2864_v10 = vsel %vm2858_vm14, %v2862_v14, %v2863_v15  ;;  %v2672_v15 = vld [vmem:[%s9997_s17 + $0x38] sm:$0xff] }
 0x175   : > { %1027 = vst.msk [vmem:[#allocation3 + $0x58] sm:$0xff] %vm1015_vm5, %v990_v20 }
 0x176   : > { %v2392_v54 = vld [vmem:[#allocation3 + $0x48] sm:$0xff]  ;;  %v1277_v59 = vpop.permute.xlu0 %1276  ;;  %2924 = vst.msk [vmem:[#allocation3 + $0x8] sm:$0xff] %vm177_vm0, %v2864_v10  ;;  %v2861_v23 = vsel %vm2858_vm14, %v2859_v17, %v2860_v21 }
 0x177   : > { %9446 = vmatmul.mubr.msk.bf16.vlgmr.msra.gmra.mrb[0].mxu1 %vm2419_vm12, %v2392_v54  ;;  %1315 = vst.msk [vmem:[#allocation3 + $0x50] sm:$0xff] %vm1304_vm6, %v1277_v59  ;;  %v2670_v17 = vld [vmem:[%s9997_s17 + $0x28] sm:$0xff] }
 0x178   : > { %v1279_v32 = vpop.permute.xlu1 %1278  ;;  %2923 = vst.msk [vmem:[#allocation3] sm:$0xff] %vm177_vm0, %v2861_v23 }
 0x179   : > { %1316 = vst.msk [vmem:[#allocation3 + $0x58] sm:$0xff] %vm1304_vm6, %v1279_v32 }
 0x17a   : > { %v1374_v37 = vpop.permute.xlu0 %1373 }
 0x17b   : > { %1412 = vst.msk [vmem:[#allocation3 + $0x50] sm:$0xff] %vm1401_vm7, %v1374_v37 }
 0x17c   : > { %v1376_v38 = vpop.permute.xlu1 %1375 }
 0x17d   : > { %1413 = vst.msk [vmem:[#allocation3 + $0x58] sm:$0xff] %vm1401_vm7, %v1376_v38 }
 0x17e   : > { %v1663_v63 = vpop.permute.xlu0 %1662 }
 0x17f   : > { %1701 = vst.msk [vmem:[#allocation3 + $0x50] sm:$0xff] %vm1690_vm8, %v1663_v63 }
 0x180   : > { %v1665_v40 = vpop.permute.xlu1 %1664 }
 0x181   : > { %1702 = vst.msk [vmem:[#allocation3 + $0x58] sm:$0xff] %vm1690_vm8, %v1665_v40  ;;  %v2665_v40 = vld [vmem:[%s9997_s17] sm:$0xff] }
 0x182   : > { %v1953_v42 = vpop.permute.xlu0 %1952 }
 0x183   : > { %1991 = vst.msk [vmem:[#allocation3 + $0x50] sm:$0xff] %vm1980_vm9, %v1953_v42 }
 0x184   : > { %v1955_v46 = vpop.permute.xlu1 %1954 }
 0x185   : > { %1992 = vst.msk [vmem:[#allocation3 + $0x58] sm:$0xff] %vm1980_vm9, %v1955_v46 }
 0x186   : > { %v2050_v33 = vpop.permute.xlu0 %2049 }
 0x187   : > { %2088 = vst.msk [vmem:[#allocation3 + $0x50] sm:$0xff] %vm2077_vm10, %v2050_v33  ;;  %v2668_v33 = vld [vmem:[%s9997_s17 + $0x18] sm:$0xff] }
 0x188   : > { %v2052_v44 = vpop.permute.xlu1 %2051 }
 0x189   : > { %2089 = vst.msk [vmem:[#allocation3 + $0x58] sm:$0xff] %vm2077_vm10, %v2052_v44 }
 0x18a   : > { %v2339_v47 = vpop.permute.xlu0 %2338 }
 0x18b   : > { %2377 = vst.msk [vmem:[#allocation3 + $0x50] sm:$0xff] %vm2366_vm11, %v2339_v47 }
 0x18c   : > { %v702_v48 = vpop.permute.xlu1 %701 }
 0x18d   : > { %738 = vst.msk [vmem:[#allocation3 + $0x60] sm:$0xff] %vm725_vm4, %v702_v48 }
 0x18e   : > { %v2341_v49 = vpop.permute.xlu0 %2340 }
 0x18f   : > { %2378 = vst.msk [vmem:[#allocation3 + $0x58] sm:$0xff] %vm2366_vm11, %v2341_v49 }
 0x190   : > { %v704_v50 = vpop.permute.xlu1 %703 }
 0x191   : > { %739 = vst.msk [vmem:[#allocation3 + $0x68] sm:$0xff] %vm725_vm4, %v704_v50 }
 0x192   : > { %v2393_v51 = vld [vmem:[#allocation3 + $0x50] sm:$0xff]  ;;  %v992_v36 = vpop.permute.xlu0 %991 }
 0x193   : > { %9449 = vmatprep.mubr.msk.bf16.mxu1 %vm2419_vm12, %v2393_v51  ;;  %1028 = vst.msk [vmem:[#allocation3 + $0x60] sm:$0xff] %vm1015_vm5, %v992_v36 }
 0x194   : > { %v994_v62 = vpop.permute.xlu1 %993 }
 0x195   : > { %1029 = vst.msk [vmem:[#allocation3 + $0x68] sm:$0xff] %vm1015_vm5, %v994_v62 }
 0x196   : > { %v2394_v1 = vld [vmem:[#allocation3 + $0x58] sm:$0xff]  ;;  %v1281_v25 = vpop.permute.xlu0 %1280 }
 0x197   : > { %9450 = vmatmul.mubr.msk.bf16.gmra.mrb[4].mxu1 %vm2419_vm12, %v2394_v1  ;;  %1317 = vst.msk [vmem:[#allocation3 + $0x60] sm:$0xff] %vm1304_vm6, %v1281_v25 }
 0x198   : > { %v1283_v58 = vpop.permute.xlu1 %1282 }
 0x199   : > { %1318 = vst.msk [vmem:[#allocation3 + $0x68] sm:$0xff] %vm1304_vm6, %v1283_v58  ;;  %v2798_v58 = vld [vmem:[#allocation2 + $0x180] sm:$0x80] }
 0x19a   : > { %v1378_v52 = vpop.permute.xlu0 %1377 }
 0x19b   : > { %1414 = vst.msk [vmem:[#allocation3 + $0x60] sm:$0xff] %vm1401_vm7, %v1378_v52  ;;  %v2868_v52 = vrot.slane %v2800_v3, 7 }
 0x19c   : > { %v1380_v41 = vpop.permute.xlu1 %1379 }
 0x19d   : > { %1415 = vst.msk [vmem:[#allocation3 + $0x68] sm:$0xff] %vm1401_vm7, %v1380_v41 }
 0x19e   : > { %v1667_v60 = vpop.permute.xlu0 %1666 }
 0x19f   : > { %1703 = vst.msk [vmem:[#allocation3 + $0x60] sm:$0xff] %vm1690_vm8, %v1667_v60 }
 0x1a0   : > { %v1669_v61 = vpop.permute.xlu1 %1668 }
 0x1a1   : > { %1704 = vst.msk [vmem:[#allocation3 + $0x68] sm:$0xff] %vm1690_vm8, %v1669_v61  ;;  %v2865_v61 = vrot.slane %v2798_v58, 7 }
 0x1a2   : > { %v1957_v5 = vpop.permute.xlu0 %1956 }
 0x1a3   : > { %1993 = vst.msk [vmem:[#allocation3 + $0x60] sm:$0xff] %vm1980_vm9, %v1957_v5 }
 0x1a4   : > { %v1959_v30 = vpop.permute.xlu1 %1958 }
 0x1a5   : > { %1994 = vst.msk [vmem:[#allocation3 + $0x68] sm:$0xff] %vm1980_vm9, %v1959_v30 }
 0x1a6   : > { %v2054_v6 = vpop.permute.xlu0 %2053 }
 0x1a7   : > { %2090 = vst.msk [vmem:[#allocation3 + $0x60] sm:$0xff] %vm2077_vm10, %v2054_v6 }
 0x1a8   : > { %v2056_v8 = vpop.permute.xlu1 %2055 }
 0x1a9   : > { %2091 = vst.msk [vmem:[#allocation3 + $0x68] sm:$0xff] %vm2077_vm10, %v2056_v8 }
 0x1aa   : > { %v2343_v9 = vpop.permute.xlu0 %2342 }
 0x1ab   : > { %2379 = vst.msk [vmem:[#allocation3 + $0x60] sm:$0xff] %vm2366_vm11, %v2343_v9 }
 0x1ac   : > { %v706_v53 = vpop.permute.xlu1 %705 }
 0x1ad   : > { %740 = vst.msk [vmem:[#allocation3 + $0x70] sm:$0xff] %vm725_vm4, %v706_v53 }
 0x1ae   : > { %v2345_v7 = vpop.permute.xlu0 %2344 }
 0x1af   : > { %2380 = vst.msk [vmem:[#allocation3 + $0x68] sm:$0xff] %vm2366_vm11, %v2345_v7 }
 0x1b0   : > { %v708_v35 = vpop.permute.xlu1 %707 }
 0x1b1   : > { %741 = vst.msk [vmem:[#allocation3 + $0x78] sm:$0xff] %vm725_vm4, %v708_v35  ;;  %v2671_v35 = vld [vmem:[%s9997_s17 + $0x30] sm:$0xff] }
 0x1b2   : > { %v996_v11 = vpop.permute.xlu0 %995  ;;  %v2395_v26 = vld [vmem:[#allocation3 + $0x60] sm:$0xff] }
 0x1b3   : > { %1030 = vst.msk [vmem:[#allocation3 + $0x70] sm:$0xff] %vm1015_vm5, %v996_v11  ;;  %9453 = vmatprep.mubr.msk.bf16.mxu1 %vm2419_vm12, %v2395_v26 }
 0x1b4   : > { %v998_v19 = vpop.permute.xlu1 %997 }
 0x1b5   : > { %1031 = vst.msk [vmem:[#allocation3 + $0x78] sm:$0xff] %vm1015_vm5, %v998_v19 }
 0x1b6   : > { %v2396_v22 = vld [vmem:[#allocation3 + $0x68] sm:$0xff]  ;;  %v1285_v43 = vpop.permute.xlu0 %1284 }
 0x1b7   : > { %9454 = vmatmul.mubr.msk.bf16.gmra.mrb[8].mxu1 %vm2419_vm12, %v2396_v22  ;;  %1319 = vst.msk [vmem:[#allocation3 + $0x70] sm:$0xff] %vm1304_vm6, %v1285_v43 }
 0x1b8   : > { %v1287_v24 = vpop.permute.xlu1 %1286 }
 0x1b9   : > { %1320 = vst.msk [vmem:[#allocation3 + $0x78] sm:$0xff] %vm1304_vm6, %v1287_v24 }
 0x1ba   : > { %v1382_v20 = vpop.permute.xlu0 %1381 }
 0x1bb   : > { %1416 = vst.msk [vmem:[#allocation3 + $0x70] sm:$0xff] %vm1401_vm7, %v1382_v20  ;;  %v2804_v20 = vld [vmem:[#allocation2 + $0x1c8] sm:$0x80] }
 0x1bc   : > { %v1384_v27 = vpop.permute.xlu1 %1383 }
 0x1bd   : > { %1417 = vst.msk [vmem:[#allocation3 + $0x78] sm:$0xff] %vm1401_vm7, %v1384_v27  ;;  %v2802_v27 = vld [vmem:[#allocation2 + $0x1b0] sm:$0x80] }
 0x1be   : > { %v1671_v29 = vpop.permute.xlu0 %1670 }
 0x1bf   : > { %1705 = vst.msk [vmem:[#allocation3 + $0x70] sm:$0xff] %vm1690_vm8, %v1671_v29  ;;  %v2874_v29 = vrot.slane %v2804_v20, 7 }
 0x1c0   : > { %v1673_v31 = vpop.permute.xlu1 %1672 }
 0x1c1   : > { %1706 = vst.msk [vmem:[#allocation3 + $0x78] sm:$0xff] %vm1690_vm8, %v1673_v31 }
 0x1c2   : > { %v1961_v54 = vpop.permute.xlu0 %1960 }
 0x1c3   : > { %1995 = vst.msk [vmem:[#allocation3 + $0x70] sm:$0xff] %vm1980_vm9, %v1961_v54  ;;  %v2871_v54 = vrot.slane %v2802_v27, 7 }
 0x1c4   : > { %v1963_v59 = vpop.permute.xlu1 %1962 }
 0x1c5   : > { %1996 = vst.msk [vmem:[#allocation3 + $0x78] sm:$0xff] %vm1980_vm9, %v1963_v59 }
 0x1c6   : > { %v2058_v39 = vpop.permute.xlu0 %2057 }
 0x1c7   : > { %2092 = vst.msk [vmem:[#allocation3 + $0x70] sm:$0xff] %vm2077_vm10, %v2058_v39 }
 0x1c8   : > { %v2060_v55 = vpop.permute.xlu1 %2059 }
 0x1c9   : > { %2093 = vst.msk [vmem:[#allocation3 + $0x78] sm:$0xff] %vm2077_vm10, %v2060_v55 }
 0x1ca   : > { %v9431_v32 = vpop.f32.mrb[0].mxu0  ;;  %v2347_v37 = vpop.permute.xlu0 %2346 }
 0x1cb   : > { %v2635_v38 = vmax.f32 %v9431_v32, 0.0  ;;  %v2506_v63 = vpop.f32.mrb[1].mxu0  ;;  %2381 = vst.msk [vmem:[#allocation3 + $0x70] sm:$0xff] %vm2366_vm11, %v2347_v37 }
 0x1cc   : > { %v2633_v42 = vmax.f32 %v2506_v63, 0.0  ;;  %v9432_v46 = vpop.f32.mrb[2].mxu0  ;;  %v2349_v44 = vpop.permute.xlu1 %2348 }
 0x1cd   : > { %v2699_v47 = vadd.f32 %v2667_v34, %v2635_v38  ;;  %v2636_v48 = vmax.f32 %v9432_v46, 0.0  ;;  %v2509_v49 = vpop.f32.mrb[3].mxu0  ;;  %2382 = vst.msk [vmem:[#allocation3 + $0x78] sm:$0xff] %vm2366_vm11, %v2349_v44  ;;  %v2676_v44 = vld [vmem:[%s9997_s17 + $0x58] sm:$0xff] }
 0x1ce   : > { %v2697_v50 = vadd.f32 %v2665_v40, %v2633_v42  ;;  %v2634_v2 = vmax.f32 %v2509_v49, 0.0  ;;  %v2972_v51 = vpop.permute.xlu0 %2971 }
 0x1cf   : > { %2731 = vst.msk [vmem:[%s9997_s17 + $0x10] sm:$0xff] %vm177_vm0, %v2699_v47  ;;  %v2700_v36 = vadd.f32 %v2668_v33, %v2636_v48  ;;  %v2762_v12 = vpack.c.bf16 %v2636_v48, %v2635_v38  ;;  %v2675_v38 = vld [vmem:[%s9997_s17 + $0x50] sm:$0xff] }
 0x1d0   : > { %3019 = vst.msk [vmem:[#allocation3] sm:$0xff] %vm725_vm4, %v2972_v51  ;;  %v2698_v56 = vadd.f32 %v2666_v28, %v2634_v2  ;;  %v2761_v57 = vpack.c.bf16 %v2634_v2, %v2633_v42  ;;  %v2974_v62 = vpop.permute.xlu1 %2973  ;;  %v2673_v42 = vld [vmem:[%s9997_s17 + $0x40] sm:$0xff]  ;;  %v2674_v28 = vld [vmem:[%s9997_s17 + $0x48] sm:$0xff] }
 0x1d1   : > { %2729 = vst.msk [vmem:[%s9997_s17] sm:$0xff] %vm177_vm0, %v2697_v50  ;;  %2732 = vst.msk [vmem:[%s9997_s17 + $0x18] sm:$0xff] %vm177_vm0, %v2700_v36 }
 0x1d2   : > { %2778 = vst.msk [vmem:[#allocation2 + $0x1a0] sm:$0xff] %vm177_vm0, %v2762_v12  ;;  %2730 = vst.msk [vmem:[%s9997_s17 + $0x8] sm:$0xff] %vm177_vm0, %v2698_v56  ;;  %v2397_v45 = vld [vmem:[#allocation3 + $0x70] sm:$0xff]  ;;  %v3149_v0 = vpop.permute.xlu0 %3148 }
 0x1d3   : > { %3020 = vst.msk [vmem:[#allocation3 + $0x8] sm:$0xff] %vm725_vm4, %v2974_v62  ;;  %9457 = vmatprep.mubr.msk.bf16.mxu1 %vm2419_vm12, %v2397_v45  ;;  %v2806_v62 = vld [vmem:[#allocation2 + $0x1e0] sm:$0x80] }
 0x1d4   : > { %2777 = vst.msk [vmem:[#allocation2 + $0x188] sm:$0xff] %vm177_vm0, %v2761_v57  ;;  %v2398_v1 = vld [vmem:[#allocation3 + $0x78] sm:$0xff]  ;;  %v3151_v25 = vpop.permute.xlu1 %3150  ;;  %v2877_v3 = vrot.slane %v2806_v62, 7 }
 0x1d5   : > { %3196 = vst.msk [vmem:[#allocation3] sm:$0xff] %vm1015_vm5, %v3149_v0  ;;  %9458 = vmatmul.mubr.msk.bf16.gmra.mrb[12].mxu1 %vm2419_vm12, %v2398_v1  ;;  %3197 = vst.msk [vmem:[#allocation3 + $0x8] sm:$0xff] %vm1015_vm5, %v3151_v25  ;;  %v2808_v57 = vld [vmem:[#allocation2 + $0x1f8] sm:$0x80] }
 0x1d6   : > { %v2880_v45 = vrot.slane %v2808_v57, 7  ;;  %v2814_v57 = vld [vmem:[#allocation2 + $0x240] sm:$0x80] }
 0x1d9   : > { %v3389_v41 = vld [vmem:[#allocation2 + $0x1a0] sm:$0xff] }
 0x1da   : > { %v2801_v60 = vld [vmem:[#allocation2 + $0x1a0] sm:$0x7f]  ;;  %3422 = vrot.lane.b32.xlu1 %v3389_v41, %s9668_s20 }
 0x1db   : > { %v3388_v5 = vld [vmem:[#allocation2 + $0x188] sm:$0xff]  ;;  %v2869_v30 = vrot.slane %v2801_v60, 7 }
 0x1dc   : > { %v2799_v6 = vld [vmem:[#allocation2 + $0x188] sm:$0x7f]  ;;  %3420 = vrot.lane.b32.xlu0 %v3388_v5, %s9668_s20 }
 0x1dd   : > { %v2866_v8 = vrot.slane %v2799_v6, 7  ;;  %v2870_v9 = vsel %vm2858_vm14, %v2868_v52, %v2869_v30  ;;  %v2677_v6 = vld [vmem:[%s9997_s17 + $0x60] sm:$0xff]  ;;  %v3213_v62 = vld [vmem:[#allocation2 + $0x188] sm:$0x7f] }
 0x1de   : > { %2926 = vst.msk [vmem:[#allocation3 + $0x18] sm:$0xff] %vm177_vm0, %v2870_v9  ;;  %2977 = vrot.lane.b32.xlu1 %v3389_v41, %s9666_s18 }
 0x1df   : > { %v2867_v53 = vsel %vm2858_vm14, %v2865_v61, %v2866_v8  ;;  %v2679_v61 = vld [vmem:[%s9997_s17 + $0x70] sm:$0xff] }
 0x1e0   : > { %2925 = vst.msk [vmem:[#allocation3 + $0x10] sm:$0xff] %vm177_vm0, %v2867_v53  ;;  %v2680_v53 = vld [vmem:[%s9997_s17 + $0x78] sm:$0xff] }
 0x1e2   : > { %2975 = vrot.lane.b32.xlu1 %v3388_v5, %s9666_s18 }
 0x1ea   : > { %v9435_v7 = vpop.f32.mrb[4].mxu0 }
 0x1eb   : > { %v2639_v11 = vmax.f32 %v9435_v7, 0.0  ;;  %v2522_v26 = vpop.f32.mrb[5].mxu0 }
 0x1ec   : > { %v2637_v13 = vmax.f32 %v2522_v26, 0.0  ;;  %v9436_v14 = vpop.f32.mrb[6].mxu0  ;;  %v2678_v26 = vld [vmem:[%s9997_s17 + $0x68] sm:$0xff] }
 0x1ed   : > { %v2703_v16 = vadd.f32 %v2671_v35, %v2639_v11  ;;  %v2640_v18 = vmax.f32 %v9436_v14, 0.0  ;;  %v2525_v19 = vpop.f32.mrb[7].mxu0 }
 0x1ee   : > { %v2701_v21 = vadd.f32 %v2669_v4, %v2637_v13  ;;  %v2638_v10 = vmax.f32 %v2525_v19, 0.0  ;;  %v2812_v19 = vld [vmem:[#allocation2 + $0x228] sm:$0x80] }
 0x1ef   : > { %2735 = vst.msk [vmem:[%s9997_s17 + $0x30] sm:$0xff] %vm177_vm0, %v2703_v16  ;;  %v2704_v22 = vadd.f32 %v2672_v15, %v2640_v18  ;;  %v2764_v43 = vpack.c.bf16 %v2640_v18, %v2639_v11 }
 0x1f0   : > { %2733 = vst.msk [vmem:[%s9997_s17 + $0x20] sm:$0xff] %vm177_vm0, %v2701_v21  ;;  %v2702_v23 = vadd.f32 %v2670_v17, %v2638_v10  ;;  %v2763_v24 = vpack.c.bf16 %v2638_v10, %v2637_v13  ;;  %v2810_v17 = vld [vmem:[#allocation2 + $0x210] sm:$0x80]  ;;  %v2886_v21 = vrot.slane %v2812_v19, 7  ;;  %v3040_v19 = vld [vmem:[#allocation2 + $0x190] sm:$0x1] }
 0x1f1   : > { %2736 = vst.msk [vmem:[%s9997_s17 + $0x38] sm:$0xff] %vm177_vm0, %v2704_v22  ;;  %2780 = vst.msk [vmem:[#allocation2 + $0x1d0] sm:$0xff] %vm177_vm0, %v2764_v43  ;;  %v2883_v22 = vrot.slane %v2810_v17, 7 }
 0x1f2   : > { %2734 = vst.msk [vmem:[%s9997_s17 + $0x28] sm:$0xff] %vm177_vm0, %v2702_v23  ;;  %2779 = vst.msk [vmem:[#allocation2 + $0x1b8] sm:$0xff] %vm177_vm0, %v2763_v24 }
 0x1f8   : > { %v2805_v31 = vld [vmem:[#allocation2 + $0x1d0] sm:$0x7f] }
 0x1f9   : > { %v2875_v59 = vrot.slane %v2805_v31, 7  ;;  %v2803_v39 = vld [vmem:[#allocation2 + $0x1b8] sm:$0x7f]  ;;  %v2683_v31 = vld [vmem:[%s9997_s17 + $0x90] sm:$0xff] }
 0x1fa   : > { %v2872_v55 = vrot.slane %v2803_v39, 7  ;;  %v2681_v39 = vld [vmem:[%s9997_s17 + $0x80] sm:$0xff] }
 0x1fb   : > { %v2876_v32 = vsel %vm2858_vm14, %v2874_v29, %v2875_v59 }
 0x1fc   : > { %2928 = vst.msk [vmem:[#allocation3 + $0x28] sm:$0xff] %vm177_vm0, %v2876_v32  ;;  %v2873_v34 = vsel %vm2858_vm14, %v2871_v54, %v2872_v55 }
 0x1fd   : > { %2927 = vst.msk [vmem:[#allocation3 + $0x20] sm:$0xff] %vm177_vm0, %v2873_v34 }
 0x20a   : > { %v9439_v37 = vpop.f32.mrb[8].mxu0 }
 0x20b   : > { %v2643_v63 = vmax.f32 %v9439_v37, 0.0  ;;  %v2538_v40 = vpop.f32.mrb[9].mxu0  ;;  %v2684_v37 = vld [vmem:[%s9997_s17 + $0x98] sm:$0xff] }
 0x20c   : > { %v2641_v46 = vmax.f32 %v2538_v40, 0.0  ;;  %v9440_v33 = vpop.f32.mrb[10].mxu0 }
 0x20d   : > { %v2707_v47 = vadd.f32 %v2675_v38, %v2643_v63  ;;  %v2644_v48 = vmax.f32 %v9440_v33, 0.0  ;;  %v2541_v49 = vpop.f32.mrb[11].mxu0 }
 0x20e   : > { %v2705_v50 = vadd.f32 %v2673_v42, %v2641_v46  ;;  %v2642_v2 = vmax.f32 %v2541_v49, 0.0  ;;  %v2682_v42 = vld [vmem:[%s9997_s17 + $0x88] sm:$0xff] }
 0x20f   : > { %2739 = vst.msk [vmem:[%s9997_s17 + $0x50] sm:$0xff] %vm177_vm0, %v2707_v47  ;;  %v2708_v51 = vadd.f32 %v2676_v44, %v2644_v48  ;;  %v2766_v36 = vpack.c.bf16 %v2644_v48, %v2643_v63 }
 0x210   : > { %2737 = vst.msk [vmem:[%s9997_s17 + $0x40] sm:$0xff] %vm177_vm0, %v2705_v50  ;;  %v2706_v12 = vadd.f32 %v2674_v28, %v2642_v2  ;;  %v2765_v56 = vpack.c.bf16 %v2642_v2, %v2641_v46 }
 0x211   : > { %2740 = vst.msk [vmem:[%s9997_s17 + $0x58] sm:$0xff] %vm177_vm0, %v2708_v51  ;;  %2782 = vst.msk [vmem:[#allocation2 + $0x200] sm:$0xff] %vm177_vm0, %v2766_v36  ;;  %v3214_v51 = vld [vmem:[#allocation2 + $0x198] sm:$0x80]  ;;  %v3212_v36 = vld [vmem:[#allocation2 + $0x180] sm:$0x80] }
 0x212   : > { %2738 = vst.msk [vmem:[%s9997_s17 + $0x48] sm:$0xff] %vm177_vm0, %v2706_v12  ;;  %2781 = vst.msk [vmem:[#allocation2 + $0x1e8] sm:$0xff] %vm177_vm0, %v2765_v56  ;;  %v3215_v56 = vld [vmem:[#allocation2 + $0x1a0] sm:$0x7f] }
 0x218   : > { %v2809_v0 = vld [vmem:[#allocation2 + $0x200] sm:$0x7f] }
 0x219   : > { %v2881_v1 = vrot.slane %v2809_v0, 7  ;;  %v2807_v25 = vld [vmem:[#allocation2 + $0x1e8] sm:$0x7f] }
 0x21a   : > { %v2878_v52 = vrot.slane %v2807_v25, 7  ;;  %v3487_v0 = vld [vmem:[#allocation2 + $0x1a8] sm:$0x1]  ;;  %v3280_v25 = vrot.slane %v3215_v56, 7 }
 0x21b   : > { %v2882_v58 = vsel %vm2858_vm14, %v2880_v45, %v2881_v1  ;;  %v2816_v45 = vld [vmem:[#allocation2 + $0x258] sm:$0x80]  ;;  %v3279_v1 = vrot.slane %v3214_v51, 7 }
 0x21c   : > { %2930 = vst.msk [vmem:[#allocation3 + $0x38] sm:$0xff] %vm177_vm0, %v2882_v58  ;;  %v2879_v41 = vsel %vm2858_vm14, %v2877_v3, %v2878_v52  ;;  %v3276_v3 = vrot.slane %v3212_v36, 7  ;;  %v3485_v58 = vld [vmem:[#allocation2 + $0x190] sm:$0x1]  ;;  %v2889_v52 = vrot.slane %v2814_v57, 7  ;;  %v2688_v57 = vld [vmem:[%s9997_s17 + $0xb8] sm:$0xff] }
 0x21d   : > { %2929 = vst.msk [vmem:[#allocation3 + $0x30] sm:$0xff] %vm177_vm0, %v2879_v41  ;;  %v3277_v41 = vrot.slane %v3213_v62, 7 }
 0x22a   : > { %v9443_v60 = vpop.f32.mrb[12].mxu0 }
 0x22b   : > { %v2647_v5 = vmax.f32 %v9443_v60, 0.0  ;;  %v2554_v30 = vpop.f32.mrb[13].mxu0  ;;  %v3486_v60 = vld [vmem:[#allocation2 + $0x1a0] sm:$0xfe] }
 0x22c   : > { %v2645_v8 = vmax.f32 %v2554_v30, 0.0  ;;  %v9444_v9 = vpop.f32.mrb[14].mxu0  ;;  %v3484_v30 = vld [vmem:[#allocation2 + $0x188] sm:$0xfe] }
 0x22d   : > { %v2711_v7 = vadd.f32 %v2679_v61, %v2647_v5  ;;  %v2648_v35 = vmax.f32 %v9444_v9, 0.0  ;;  %v2557_v11 = vpop.f32.mrb[15].mxu0 }
 0x22e   : > { %v2709_v4 = vadd.f32 %v2677_v6, %v2645_v8  ;;  %v2646_v13 = vmax.f32 %v2557_v11, 0.0 }
 0x22f   : > { %2743 = vst.msk [vmem:[%s9997_s17 + $0x70] sm:$0xff] %vm177_vm0, %v2711_v7  ;;  %v2712_v14 = vadd.f32 %v2680_v53, %v2648_v35  ;;  %v2768_v15 = vpack.c.bf16 %v2648_v35, %v2647_v5  ;;  %v2892_v5 = vrot.slane %v2816_v45, 7  ;;  %v3281_v53 = vsel %vm2858_vm14, %v3279_v1, %v3280_v25 }
 0x230   : > { %2741 = vst.msk [vmem:[%s9997_s17 + $0x60] sm:$0xff] %vm177_vm0, %v2709_v4  ;;  %v2710_v16 = vadd.f32 %v2678_v26, %v2646_v13  ;;  %v2767_v18 = vpack.c.bf16 %v2646_v13, %v2645_v8  ;;  %v3551_v7 = vrot.slane %v3486_v60, 1  ;;  %v3552_v35 = vrot.slane %v3487_v0, 1 }
 0x231   : > { %2744 = vst.msk [vmem:[%s9997_s17 + $0x78] sm:$0xff] %vm177_vm0, %v2712_v14  ;;  %2784 = vst.msk [vmem:[#allocation2 + $0x230] sm:$0xff] %vm177_vm0, %v2768_v15  ;;  %v3278_v26 = vsel %vm2858_vm14, %v3276_v3, %v3277_v41  ;;  %v3548_v4 = vrot.slane %v3484_v30, 1  ;;  %v3549_v13 = vrot.slane %v3485_v58, 1  ;;  %v3041_v14 = vld [vmem:[#allocation2 + $0x1a0] sm:$0xfe] }
 0x232   : > { %2742 = vst.msk [vmem:[%s9997_s17 + $0x68] sm:$0xff] %vm177_vm0, %v2710_v16  ;;  %2783 = vst.msk [vmem:[#allocation2 + $0x218] sm:$0xff] %vm177_vm0, %v2767_v18  ;;  %v3042_v15 = vld [vmem:[#allocation2 + $0x1a8] sm:$0x1]  ;;  %v3039_v18 = vld [vmem:[#allocation2 + $0x188] sm:$0xfe]  ;;  %v3553_v17 = vsel %vm3099_vm13, %v3551_v7, %v3552_v35 }
 0x233   : > { %v2686_v58 = vld [vmem:[%s9997_s17 + $0xa8] sm:$0xff]  ;;  %v3946_v41 = vld [vmem:[#allocation2 + $0x250] sm:$0x1] }
 0x238   : > { %v2813_v10 = vld [vmem:[#allocation2 + $0x230] sm:$0x7f] }
 0x239   : > { %v2887_v43 = vrot.slane %v2813_v10, 7  ;;  %v2811_v23 = vld [vmem:[#allocation2 + $0x218] sm:$0x7f]  ;;  %v3110_v10 = vrot.slane %v3042_v15, 1 }
 0x23a   : > { %v2884_v24 = vrot.slane %v2811_v23, 7  ;;  %v3107_v23 = vrot.slane %v3040_v19, 1 }
 0x23b   : > { %v2888_v20 = vsel %vm2858_vm14, %v2886_v21, %v2887_v43  ;;  %v3109_v21 = vrot.slane %v3041_v14, 1  ;;  %v3106_v43 = vrot.slane %v3039_v18, 1 }
 0x23c   : > { %2932 = vst.msk [vmem:[#allocation3 + $0x48] sm:$0xff] %vm177_vm0, %v2888_v20  ;;  %v2885_v27 = vsel %vm2858_vm14, %v2883_v22, %v2884_v24  ;;  %v3550_v22 = vsel %vm3099_vm13, %v3548_v4, %v3549_v13  ;;  %v3675_v24 = vld [vmem:[#allocation2 + $0x258] sm:$0x80]  ;;  %v3228_v4 = vld [vmem:[#allocation2 + $0x240] sm:$0x80] }
 0x23d   : > { %2931 = vst.msk [vmem:[#allocation3 + $0x40] sm:$0xff] %vm177_vm0, %v2885_v27 }
 0x24a   : > { %v9447_v29 = vpop.f32.mrb[0].mxu1 }
 0x24b   : > { %v2651_v54 = vmax.f32 %v9447_v29, 0.0  ;;  %v2570_v59 = vpop.f32.mrb[1].mxu1  ;;  %v3948_v29 = vld [vmem:[#allocation2 + $0x268] sm:$0x1] }
 0x24c   : > { %v10911_v55 = vpop.permute.xlu1 %3422  ;;  %v2649_v32 = vmax.f32 %v2570_v59, 0.0  ;;  %v9448_v34 = vpop.f32.mrb[2].mxu1 }
 0x24d   : > { %v2715_v38 = vadd.f32 %v2683_v31, %v2651_v54  ;;  %v2652_v63 = vmax.f32 %v9448_v34, 0.0  ;;  %v2573_v40 = vpop.f32.mrb[3].mxu1  ;;  %v3111_v31 = vsel %vm3099_vm13, %v3109_v21, %v3110_v10  ;;  %v3838_v21 = vld [vmem:[#allocation2 + $0x1d0] sm:$0xff] }
 0x24e   : > { %v2713_v46 = vadd.f32 %v2681_v39, %v2649_v32  ;;  %v2650_v33 = vmax.f32 %v2573_v40, 0.0  ;;  %v3230_v39 = vld [vmem:[#allocation2 + $0x258] sm:$0x80] }
 0x24f   : > { %2747 = vst.msk [vmem:[%s9997_s17 + $0x90] sm:$0xff] %vm177_vm0, %v2715_v38  ;;  %v2716_v44 = vadd.f32 %v2684_v37, %v2652_v63  ;;  %v2770_v47 = vpack.c.bf16 %v2652_v63, %v2651_v54  ;;  %v3746_v54 = vrot.slane %v3675_v24, 7  ;;  %v4019_v37 = vrot.slane %v3948_v29, 1  ;;  %v3673_v63 = vld [vmem:[#allocation2 + $0x240] sm:$0x80] }
 0x250   : > { %v2978_v48 = vpop.permute.xlu1 %2977  ;;  %2745 = vst.msk [vmem:[%s9997_s17 + $0x80] sm:$0xff] %vm177_vm0, %v2713_v46  ;;  %v2714_v49 = vadd.f32 %v2682_v42, %v2650_v33  ;;  %v2769_v28 = vpack.c.bf16 %v2650_v33, %v2649_v32  ;;  %v3108_v32 = vsel %vm3099_vm13, %v3106_v43, %v3107_v23  ;;  %v2687_v46 = vld [vmem:[%s9997_s17 + $0xb0] sm:$0xff]  ;;  %v3303_v33 = vrot.slane %v3230_v39, 7  ;;  %v2820_v24 = vld [vmem:[#allocation2 + $0x288] sm:$0x80] }
 0x251   : > { %3022 = vst.msk [vmem:[#allocation3 + $0x18] sm:$0xff] %vm725_vm4, %v2978_v48  ;;  %v3743_v51 = vrot.slane %v3673_v63, 7  ;;  %v2818_v23 = vld [vmem:[#allocation2 + $0x270] sm:$0x80] }
 0x252   : > { %2748 = vst.msk [vmem:[%s9997_s17 + $0x98] sm:$0xff] %vm177_vm0, %v2716_v44  ;;  %2786 = vst.msk [vmem:[#allocation2 + $0x260] sm:$0xff] %vm177_vm0, %v2770_v47  ;;  %v3503_v44 = vld [vmem:[#allocation2 + $0x268] sm:$0x1]  ;;  %v3935_v63 = vld [vmem:[#allocation2 + $0x1d0] sm:$0xfe] }
 0x253   : > { %2746 = vst.msk [vmem:[%s9997_s17 + $0x88] sm:$0xff] %vm177_vm0, %v2714_v49  ;;  %2785 = vst.msk [vmem:[#allocation2 + $0x248] sm:$0xff] %vm177_vm0, %v2769_v28  ;;  %v2685_v49 = vld [vmem:[%s9997_s17 + $0xa0] sm:$0xff] }
 0x254   : > { %v2976_v50 = vpop.permute.xlu1 %2975 }
 0x255   : > { %3021 = vst.msk [vmem:[#allocation3 + $0x10] sm:$0xff] %vm725_vm4, %v2976_v50 }
 0x259   : > { %v10927_v2 = vld [vmem:[#allocation2 + $0x260] sm:$0xff] }
 0x25a   : > { %3883 = vrot.lane.b32.xlu1 %v10927_v2, %s9669_s21  ;;  %v10931_v12 = vld [vmem:[#allocation2 + $0x248] sm:$0xff]  ;;  %v2817_v8 = vld [vmem:[#allocation2 + $0x260] sm:$0x7f] }
 0x25b   : > { %3881 = vrot.lane.b32.xlu0 %v10931_v12, %s9669_s21  ;;  %v2815_v61 = vld [vmem:[#allocation2 + $0x248] sm:$0x7f]  ;;  %v2893_v9 = vrot.slane %v2817_v8, 7  ;;  %v3676_v20 = vld [vmem:[#allocation2 + $0x260] sm:$0x7f] }
 0x25c   : > { %v2890_v6 = vrot.slane %v2815_v61, 7  ;;  %v3947_v27 = vld [vmem:[#allocation2 + $0x260] sm:$0xfe]  ;;  %v3747_v59 = vrot.slane %v3676_v20, 7  ;;  %v3674_v40 = vld [vmem:[#allocation2 + $0x248] sm:$0x7f] }
 0x25d   : > { %v2894_v16 = vsel %vm2858_vm14, %v2892_v5, %v2893_v9  ;;  %v4018_v34 = vrot.slane %v3947_v27, 1  ;;  %v3231_v38 = vld [vmem:[#allocation2 + $0x260] sm:$0x7f]  ;;  %v3744_v45 = vrot.slane %v3674_v40, 7  ;;  %v3576_v5 = vrot.slane %v3503_v44, 1 }
 0x25e   : > { %3438 = vrot.lane.b32.xlu1 %v10927_v2, %s9668_s20  ;;  %v2891_v11 = vsel %vm2858_vm14, %v2889_v52, %v2890_v6  ;;  %2934 = vst.msk [vmem:[#allocation3 + $0x58] sm:$0xff] %vm177_vm0, %v2894_v16  ;;  %v3748_v28 = vsel %vm2858_vm14, %v3746_v54, %v3747_v59  ;;  %v3304_v50 = vrot.slane %v3231_v38, 7  ;;  %v3502_v0 = vld [vmem:[#allocation2 + $0x260] sm:$0xfe]  ;;  %v3945_v52 = vld [vmem:[#allocation2 + $0x248] sm:$0xfe] }
 0x25f   : > { %3436 = vrot.lane.b32.xlu0 %v10931_v12, %s9668_s20  ;;  %2933 = vst.msk [vmem:[#allocation3 + $0x50] sm:$0xff] %vm177_vm0, %v2891_v11  ;;  %v4020_v62 = vsel %vm3099_vm13, %v4018_v34, %v4019_v37  ;;  %v3575_v9 = vrot.slane %v3502_v0, 1  ;;  %v3745_v35 = vsel %vm2858_vm14, %v3743_v51, %v3744_v45  ;;  %v4015_v11 = vrot.slane %v3945_v52, 1  ;;  %v3229_v13 = vld [vmem:[#allocation2 + $0x248] sm:$0x7f] }
 0x260   : > { %v3305_v8 = vsel %vm2858_vm14, %v3303_v33, %v3304_v50  ;;  %v3300_v16 = vrot.slane %v3228_v4, 7  ;;  %v3301_v18 = vrot.slane %v3229_v13, 7  ;;  %v3500_v19 = vld [vmem:[#allocation2 + $0x248] sm:$0xfe]  ;;  %v2895_v27 = vrot.slane %v2818_v23, 7  ;;  %v9646_v50 = vld [vmem:[%s13225_s1 + $0x1c] sm:$0xff]  }
 0x261   : > { %v3577_v14 = vsel %vm3099_vm13, %v3575_v9, %v3576_v5  ;;  %v3663_v34 = vld [vmem:[#allocation2 + $0x1c8] sm:$0x80]  ;;  %v3664_v37 = vld [vmem:[#allocation2 + $0x1d0] sm:$0x7f]  ;;  %v3936_v40 = vld [vmem:[#allocation2 + $0x1d8] sm:$0x1] }
 0x262   : > { %3326 = vrot.lane.b32.xlu1 %v3281_v53, %s9670_s22  ;;  %v3302_v10 = vsel %vm2858_vm14, %v3300_v16, %v3301_v18  ;;  %v3728_v33 = vrot.slane %v3663_v34, 7  ;;  %v3729_v44 = vrot.slane %v3664_v37, 7  ;;  %v3661_v51 = vld [vmem:[#allocation2 + $0x1b0] sm:$0x80]  ;;  %v3934_v0 = vld [vmem:[#allocation2 + $0x1c0] sm:$0x1] }
 0x263   : > { %3324 = vrot.lane.b32.xlu0 %v3278_v26, %s9670_s22  ;;  %v4016_v26 = vrot.slane %v3946_v41, 1  ;;  %v3933_v52 = vld [vmem:[#allocation2 + $0x1b8] sm:$0xfe]  ;;  %v9647_v5 = vld [vmem:[%s13225_s1 + $0x24] ss:$0 sps:$4 sm:$0x33]  }
 0x264   : > { %v2692_v4 = vld [vmem:[%s9997_s17 + $0xd8] sm:$0xff]  ;;  %v4195_v13 = vsel %vm2468_vm3, %v9647_v5, 0  ;;  %v3045_v16 = vld [vmem:[#allocation2 + $0x1d0] sm:$0xfe] }
 0x265   : > { %v4017_v15 = vsel %vm3099_vm13, %v4015_v11, %v4016_v26 }
 0x266   : > { %3598 = vrot.lane.b32.xlu1 %v3553_v17, %s9671_s23  ;;  %v3501_v17 = vld [vmem:[#allocation2 + $0x250] sm:$0x1] }
 0x267   : > { %3596 = vrot.lane.b32.xlu0 %v3550_v22, %s9671_s23  ;;  %v3572_v22 = vrot.slane %v3500_v19, 1  ;;  %v3573_v43 = vrot.slane %v3501_v17, 1 }
 0x269   : > { %v3574_v20 = vsel %vm3099_vm13, %v3572_v22, %v3573_v43  ;;  %v3217_v22 = vld [vmem:[#allocation2 + $0x1b8] sm:$0x7f] }
 0x26a   : > { %3154 = vrot.lane.b32.xlu1 %v3111_v31, %s9667_s19  ;;  %v9451_v42 = vpop.f32.mrb[4].mxu1  ;;  %v2898_v31 = vrot.slane %v2820_v24, 7 }
 0x26b   : > { %3152 = vrot.lane.b32.xlu0 %v3108_v32, %s9667_s19  ;;  %v2655_v47 = vmax.f32 %v9451_v42, 0.0  ;;  %v2586_v48 = vpop.f32.mrb[5].mxu1  ;;  %v3837_v32 = vld [vmem:[#allocation2 + $0x1b8] sm:$0xff] }
 0x26c   : > { %v2653_v36 = vmax.f32 %v2586_v48, 0.0  ;;  %v9452_v56 = vpop.f32.mrb[6].mxu1  ;;  %v9645_v42 = vld [vmem:[%s13225_s1 + $0x14] sm:$0xff]   ;;  %v4000_v48 = vrot.slane %v3935_v63, 1 }
 0x26d   : > { %v2719_v1 = vadd.f32 %v2687_v46, %v2655_v47  ;;  %v2656_v25 = vmax.f32 %v9452_v56, 0.0  ;;  %v2589_v3 = vpop.f32.mrb[7].mxu1  ;;  %9461 = vmatprep.subr.bf16.mxu1 %v9645_v42  ;;  %v3491_v56 = vld [vmem:[#allocation2 + $0x1d8] sm:$0x1] }
 0x26e   : > { %3787 = vrot.lane.b32.xlu1 %v3748_v28, %s9672_s26  ;;  %v2717_v60 = vadd.f32 %v2685_v49, %v2653_v36  ;;  %v2654_v61 = vmax.f32 %v2589_v3, 0.0  ;;  %v4001_v49 = vrot.slane %v3936_v40, 1  ;;  %v3219_v28 = vld [vmem:[#allocation2 + $0x1d0] sm:$0x7f]  ;;  %9462 = vmatpush3.bf16.msra.mxu1 %v9645_v42  ;;  %v3558_v41 = vrot.slane %v3491_v56, 1 }
 0x26f   : > { %4059 = vrot.lane.b32.xlu0 %v4020_v62, %s9673_s27  ;;  %2751 = vst.msk [vmem:[%s9997_s17 + $0xb0] sm:$0xff] %vm177_vm0, %v2719_v1  ;;  %v2720_v30 = vadd.f32 %v2688_v57, %v2656_v25  ;;  %v2772_v6 = vpack.c.bf16 %v2656_v25, %v2655_v47  ;;  %v3218_v47 = vld [vmem:[#allocation2 + $0x1c8] sm:$0x80]  ;;  %9463 = vmatprep.subr.bf16.mxu1 %v9646_v50  ;;  %v3286_v45 = vrot.slane %v3219_v28, 7  ;;  %v3725_v25 = vrot.slane %v3661_v51, 7 }
 0x270   : > { %2749 = vst.msk [vmem:[%s9997_s17 + $0xa0] sm:$0xff] %vm177_vm0, %v2717_v60  ;;  %v2718_v53 = vadd.f32 %v2686_v58, %v2654_v61  ;;  %v2771_v7 = vpack.c.bf16 %v2654_v61, %v2653_v36  ;;  %v3662_v36 = vld [vmem:[#allocation2 + $0x1b8] sm:$0x7f]  ;;  %v3730_v57 = vsel %vm2858_vm14, %v3728_v33, %v3729_v44  ;;  %v3285_v62 = vrot.slane %v3218_v47, 7  ;;  %v3490_v58 = vld [vmem:[#allocation2 + $0x1d0] sm:$0xfe] }
 0x271   : > { %2752 = vst.msk [vmem:[%s9997_s17 + $0xb8] sm:$0xff] %vm177_vm0, %v2720_v30  ;;  %2788 = vst.msk [vmem:[#allocation2 + $0x290] sm:$0xff] %vm177_vm0, %v2772_v6  ;;  %v4002_v1 = vsel %vm3099_vm13, %v4000_v48, %v4001_v49  ;;  %v3726_v3 = vrot.slane %v3662_v36, 7  ;;  %v2691_v61 = vld [vmem:[%s9997_s17 + $0xd0] sm:$0xff]  ;;  %v3998_v30 = vrot.slane %v3934_v0, 1 }
 0x272   : > { %3342 = vrot.lane.b32.xlu1 %v3305_v8, %s9670_s22  ;;  %2750 = vst.msk [vmem:[%s9997_s17 + $0xa8] sm:$0xff] %vm177_vm0, %v2718_v53  ;;  %2787 = vst.msk [vmem:[#allocation2 + $0x278] sm:$0xff] %vm177_vm0, %v2771_v7  ;;  %9464 = vmatpush3.bf16.msra.mxu1 %v9646_v50  ;;  %v3046_v6 = vld [vmem:[#allocation2 + $0x1d8] sm:$0x1]  ;;  %v2689_v53 = vld [vmem:[%s9997_s17 + $0xc0] sm:$0xff]  ;;  %v3287_v7 = vsel %vm2858_vm14, %v3285_v62, %v3286_v45 }
 0x273   : > { %3785 = vrot.lane.b32.xlu0 %v3745_v35, %s9672_s26  ;;  %v3557_v35 = vrot.slane %v3490_v58, 1  ;;  %9621 = vmatprep.subr.msk.bf16.mxu1 %vm2468_vm3, %v9647_v5  ;;  %v3116_v24 = vrot.slane %v3046_v6, 1  ;;  %v3488_v42 = vld [vmem:[#allocation2 + $0x1b8] sm:$0xfe]  ;;  %v3044_v50 = vld [vmem:[#allocation2 + $0x1c0] sm:$0x1] }
 0x274   : > { %v3554_v47 = vrot.slane %v3488_v42, 1  ;;  %v3043_v28 = vld [vmem:[#allocation2 + $0x1b8] sm:$0xfe]  ;;  %v3113_v56 = vrot.slane %v3044_v50, 1  ;;  %v3840_v45 = vld [vmem:[#allocation2 + $0x200] sm:$0xff] }
 0x275   : > { %v3112_v36 = vrot.slane %v3043_v28, 1  ;;  %v3667_v58 = vld [vmem:[#allocation2 + $0x1f8] sm:$0x80]  ;;  %v3937_v42 = vld [vmem:[#allocation2 + $0x1e8] sm:$0xfe] }
 0x276   : > { %3614 = vrot.lane.b32.xlu1 %v3577_v14, %s9671_s23  ;;  %v3727_v14 = vsel %vm2858_vm14, %v3725_v25, %v3726_v3  ;;  %9466 = vmatpush3.bf16.msra.mxu1 %v4195_v13  ;;  %v3222_v5 = vld [vmem:[#allocation2 + $0x1f8] sm:$0x80] }
 0x277   : > { %4057 = vrot.lane.b32.xlu0 %v4017_v15, %s9673_s27  ;;  %v3997_v15 = vrot.slane %v3933_v52, 1  ;;  %v3114_v0 = vsel %vm3099_vm13, %v3112_v36, %v3113_v56  ;;  %v3940_v52 = vld [vmem:[#allocation2 + $0x208] sm:$0x1] }
 0x278   : > { %v2821_v59 = vld [vmem:[#allocation2 + $0x290] sm:$0x7f]  ;;  %v4007_v6 = vrot.slane %v3940_v52, 1 }
 0x279   : > { %v2819_v29 = vld [vmem:[#allocation2 + $0x278] sm:$0x7f]  ;;  %v2899_v39 = vrot.slane %v2821_v59, 7  ;;  %v3115_v59 = vrot.slane %v3045_v16, 1  ;;  %v3999_v34 = vsel %vm3099_vm13, %v3997_v15, %v3998_v30  ;;  %v3734_v30 = vrot.slane %v3667_v58, 7 }
 0x27a   : > { %3871 = vrot.lane.b32.xlu1 %v3838_v21, %s9669_s21  ;;  %v2896_v54 = vrot.slane %v2819_v29, 7  ;;  %v3678_v62 = vld [vmem:[#allocation2 + $0x278] sm:$0x7f]  ;;  %v3666_v15 = vld [vmem:[#allocation2 + $0x1e8] sm:$0x7f] }
 0x27b   : > { %3340 = vrot.lane.b32.xlu0 %v3302_v10, %s9670_s22  ;;  %v2900_v46 = vsel %vm2858_vm14, %v2898_v31, %v2899_v39  ;;  %v3216_v10 = vld [vmem:[#allocation2 + $0x1b0] sm:$0x80]  ;;  %v3117_v33 = vsel %vm3099_vm13, %v3115_v59, %v3116_v24  ;;  %v3750_v25 = vrot.slane %v3678_v62, 7  ;;  %v2694_v24 = vld [vmem:[%s9997_s17 + $0xe8] sm:$0xff] }
 0x27c   : > { %v2897_v38 = vsel %vm2858_vm14, %v2895_v27, %v2896_v54  ;;  %2936 = vst.msk [vmem:[#allocation3 + $0x68] sm:$0xff] %vm177_vm0, %v2900_v46  ;;  %v3680_v27 = vld [vmem:[#allocation2 + $0x290] sm:$0x7f]  ;;  %v3559_v54 = vsel %vm3099_vm13, %v3557_v35, %v3558_v41  ;;  %v3282_v37 = vrot.slane %v3216_v10, 7  ;;  %v3489_v46 = vld [vmem:[#allocation2 + $0x1c0] sm:$0x1] }
 0x27d   : > { %2935 = vst.msk [vmem:[#allocation3 + $0x60] sm:$0xff] %vm177_vm0, %v2897_v38  ;;  %v3283_v38 = vrot.slane %v3217_v22, 7  ;;  %v3753_v40 = vrot.slane %v3680_v27, 7  ;;  %v3555_v48 = vrot.slane %v3489_v46, 1  ;;  %v3839_v41 = vld [vmem:[#allocation2 + $0x1e8] sm:$0xff] }
 0x27e   : > { %3426 = vrot.lane.b32.xlu1 %v3838_v21, %s9668_s20  ;;  %v3495_v10 = vld [vmem:[#allocation2 + $0x208] sm:$0x1] }
 0x27f   : > { %3612 = vrot.lane.b32.xlu0 %v3574_v20, %s9671_s23  ;;  %v3679_v20 = vld [vmem:[#allocation2 + $0x288] sm:$0x80]  ;;  %v3284_v44 = vsel %vm2858_vm14, %v3282_v37, %v3283_v38  ;;  %v3556_v51 = vsel %vm3099_vm13, %v3554_v47, %v3555_v48 }
 0x280   : > { %v3752_v63 = vrot.slane %v3679_v20, 7 }
 0x282   : > { %2981 = vrot.lane.b32.xlu1 %v3838_v21, %s9666_s18  ;;  %v2690_v21 = vld [vmem:[%s9997_s17 + $0xc8] sm:$0xff]  ;;  %v3754_v49 = vsel %vm2858_vm14, %v3752_v63, %v3753_v40  ;;  %v2824_v40 = vld [vmem:[#allocation2 + $0x2b8] sm:$0x80] }
 0x283   : > { %3869 = vrot.lane.b32.xlu0 %v3837_v32, %s9669_s21  ;;  %v2904_v48 = vrot.slane %v2824_v40, 7  ;;  %v3498_v40 = vld [vmem:[#allocation2 + $0x230] sm:$0xfe] }
 0x286   : > { %2979 = vrot.lane.b32.xlu1 %v3837_v32, %s9666_s18 }
 0x287   : > { %3424 = vrot.lane.b32.xlu0 %v3837_v32, %s9668_s20 }
 0x28a   : > { %3775 = vrot.lane.b32.xlu1 %v3730_v57, %s9672_s26  ;;  %v9455_v60 = vpop.f32.mrb[8].mxu1  ;;  %v3677_v57 = vld [vmem:[#allocation2 + $0x270] sm:$0x80] }
 0x28b   : > { %4047 = vrot.lane.b32.xlu0 %v4002_v1, %s9673_s27  ;;  %v2659_v8 = vmax.f32 %v9455_v60, 0.0  ;;  %v2602_v9 = vpop.f32.mrb[9].mxu1  ;;  %v3749_v1 = vrot.slane %v3677_v57, 7  ;;  %v3668_v60 = vld [vmem:[#allocation2 + $0x200] sm:$0x7f]  ;;  %v4003_v57 = vrot.slane %v3937_v42, 1 }
 0x28c   : > { %v2657_v11 = vmax.f32 %v2602_v9, 0.0  ;;  %v9456_v26 = vpop.f32.mrb[10].mxu1  ;;  %v3735_v9 = vrot.slane %v3668_v60, 7  ;;  %v3499_v42 = vld [vmem:[#allocation2 + $0x238] sm:$0x1] }
 0x28d   : > { %v2723_v18 = vadd.f32 %v2691_v61, %v2659_v8  ;;  %v2660_v19 = vmax.f32 %v9456_v26, 0.0  ;;  %v2605_v17 = vpop.f32.mrb[11].mxu1  ;;  %v3751_v3 = vsel %vm2858_vm14, %v3749_v1, %v3750_v25  ;;  %v3939_v61 = vld [vmem:[#allocation2 + $0x200] sm:$0xfe]  ;;  %v3291_v26 = vrot.slane %v3222_v5, 7 }
 0x28e   : > { %3330 = vrot.lane.b32.xlu1 %v3287_v7, %s9670_s22  ;;  %v2721_v43 = vadd.f32 %v2689_v53, %v2657_v11  ;;  %v2658_v23 = vmax.f32 %v2605_v17, 0.0  ;;  %v4006_v53 = vrot.slane %v3939_v61, 1  ;;  %v3223_v7 = vld [vmem:[#allocation2 + $0x200] sm:$0x7f]  ;;  %v2696_v17 = vld [vmem:[%s9997_s17 + $0xf8] sm:$0xff]  ;;  %v3736_v20 = vsel %vm2858_vm14, %v3734_v30, %v3735_v9 }
 0x28f   : > { %3773 = vrot.lane.b32.xlu0 %v3727_v14, %s9672_s26  ;;  %2755 = vst.msk [vmem:[%s9997_s17 + $0xd0] sm:$0xff] %vm177_vm0, %v2723_v18  ;;  %v2724_v29 = vadd.f32 %v2692_v4, %v2660_v19  ;;  %v2774_v31 = vpack.c.bf16 %v2660_v19, %v2659_v8  ;;  %v3665_v8 = vld [vmem:[#allocation2 + $0x1e0] sm:$0x80]  ;;  %v3492_v30 = vld [vmem:[#allocation2 + $0x1e8] sm:$0xfe] }
 0x290   : > { %2753 = vst.msk [vmem:[%s9997_s17 + $0xc0] sm:$0xff] %vm177_vm0, %v2721_v43  ;;  %v2722_v39 = vadd.f32 %v2690_v21, %v2658_v23  ;;  %v2773_v32 = vpack.c.bf16 %v2658_v23, %v2657_v11  ;;  %v2695_v11 = vld [vmem:[%s9997_s17 + $0xf0] sm:$0xff]  ;;  %v2693_v14 = vld [vmem:[%s9997_s17 + $0xe0] sm:$0xff]  ;;  %v3731_v16 = vrot.slane %v3665_v8, 7  ;;  %v3292_v21 = vrot.slane %v3223_v7, 7 }
 0x291   : > { %2756 = vst.msk [vmem:[%s9997_s17 + $0xd8] sm:$0xff] %vm177_vm0, %v2724_v29  ;;  %2790 = vst.msk [vmem:[#allocation2 + $0x2c0] sm:$0xff] %vm177_vm0, %v2774_v31  ;;  %v4008_v27 = vsel %vm3099_vm13, %v4006_v53, %v4007_v6  ;;  %v3494_v29 = vld [vmem:[#allocation2 + $0x200] sm:$0xfe]  ;;  %v3938_v31 = vld [vmem:[#allocation2 + $0x1f0] sm:$0x1] }
 0x292   : > { %3602 = vrot.lane.b32.xlu1 %v3559_v54, %s9671_s23  ;;  %2754 = vst.msk [vmem:[%s9997_s17 + $0xc8] sm:$0xff] %vm177_vm0, %v2722_v39  ;;  %2789 = vst.msk [vmem:[#allocation2 + $0x2a8] sm:$0xff] %vm177_vm0, %v2773_v32  ;;  %v2822_v39 = vld [vmem:[#allocation2 + $0x2a0] sm:$0x80]  ;;  %v3732_v32 = vrot.slane %v3666_v15, 7  ;;  %v3293_v28 = vsel %vm2858_vm14, %v3291_v26, %v3292_v21  ;;  %v3563_v50 = vrot.slane %v3494_v29, 1 }
 0x293   : > { %4045 = vrot.lane.b32.xlu0 %v3999_v34, %s9673_s27  ;;  %v2901_v63 = vrot.slane %v2822_v39, 7  ;;  %v4004_v62 = vrot.slane %v3938_v31, 1  ;;  %v3220_v25 = vld [vmem:[#allocation2 + $0x1e0] sm:$0x80]  ;;  %v3493_v6 = vld [vmem:[#allocation2 + $0x1f0] sm:$0x1] }
 0x294   : > { %v3733_v56 = vsel %vm2858_vm14, %v3731_v16, %v3732_v32  ;;  %v3288_v61 = vrot.slane %v3220_v25, 7  ;;  %v3560_v53 = vrot.slane %v3492_v30, 1  ;;  %v3561_v7 = vrot.slane %v3493_v6, 1  ;;  %v3842_v26 = vld [vmem:[#allocation2 + $0x230] sm:$0xff]  ;;  %v3841_v16 = vld [vmem:[#allocation2 + $0x218] sm:$0xff] }
 0x295   : > { %v4005_v60 = vsel %vm3099_vm13, %v4003_v57, %v4004_v62  ;;  %v3944_v21 = vld [vmem:[#allocation2 + $0x238] sm:$0x1]  ;;  %v3669_v29 = vld [vmem:[#allocation2 + $0x210] sm:$0x80] }
 0x296   : > { %3158 = vrot.lane.b32.xlu1 %v3117_v33, %s9667_s19  ;;  %v3670_v31 = vld [vmem:[#allocation2 + $0x218] sm:$0x7f]  ;;  %v3224_v62 = vld [vmem:[#allocation2 + $0x210] sm:$0x80] }
 0x297   : > { %3328 = vrot.lane.b32.xlu0 %v3284_v44, %s9670_s22  ;;  %v3054_v57 = vld [vmem:[#allocation2 + $0x238] sm:$0x1] }
 0x298   : > { %v2825_v47 = vld [vmem:[#allocation2 + $0x2c0] sm:$0x7f] }
 0x299   : > { %v2823_v38 = vld [vmem:[#allocation2 + $0x2a8] sm:$0x7f] }
 0x29a   : > { %3791 = vrot.lane.b32.xlu1 %v3754_v49, %s9672_s26  ;;  %v2902_v44 = vrot.slane %v2823_v38, 7  ;;  %v2905_v49 = vrot.slane %v2825_v47, 7  ;;  %v3737_v38 = vrot.slane %v3669_v29, 7  ;;  %v11147_v29 = vld [vmem:[#allocation2 + $0x278] sm:$0xff] }
 0x29b   : > { %3600 = vrot.lane.b32.xlu0 %v3556_v51, %s9671_s23  ;;  %v3564_v51 = vrot.slane %v3495_v10, 1  ;;  %v3421_v10 = vpop.permute.xlu0 %3420 }
 0x29c   : > { %v2903_v36 = vsel %vm2858_vm14, %v2901_v63, %v2902_v44  ;;  %v2906_v1 = vsel %vm2858_vm14, %v2904_v48, %v2905_v49  ;;  %v3738_v63 = vrot.slane %v3670_v31, 7  ;;  %v3569_v49 = vrot.slane %v3498_v40, 1 }
 0x29d   : > { %2937 = vst.msk [vmem:[#allocation3 + $0x70] sm:$0xff] %vm177_vm0, %v2903_v36  ;;  %2938 = vst.msk [vmem:[#allocation3 + $0x78] sm:$0xff] %vm177_vm0, %v2906_v1  ;;  %v3565_v58 = vsel %vm3099_vm13, %v3563_v50, %v3564_v51 }
 0x29e   : > { %3875 = vrot.lane.b32.xlu1 %v3840_v45, %s9669_s21  ;;  %v3739_v50 = vsel %vm2858_vm14, %v3737_v38, %v3738_v63 }
 0x29f   : > { %3156 = vrot.lane.b32.xlu0 %v3114_v0, %s9667_s19  ;;  %v3050_v0 = vld [vmem:[#allocation2 + $0x208] sm:$0x1] }
 0x2a2   : > { %3430 = vrot.lane.b32.xlu1 %v3840_v45, %s9668_s20 }
 0x2a3   : > { %3789 = vrot.lane.b32.xlu0 %v3751_v3, %s9672_s26  ;;  %v3221_v3 = vld [vmem:[#allocation2 + $0x1e8] sm:$0x7f] }
 0x2a4   : > { %v3289_v5 = vrot.slane %v3221_v3, 7 }
 0x2a6   : > { %2985 = vrot.lane.b32.xlu1 %v3840_v45, %s9666_s18  ;;  %v3049_v45 = vld [vmem:[#allocation2 + $0x200] sm:$0xfe]  ;;  %v3290_v9 = vsel %vm2858_vm14, %v3288_v61, %v3289_v5  ;;  %v3496_v61 = vld [vmem:[#allocation2 + $0x218] sm:$0xfe]  ;;  %v3497_v5 = vld [vmem:[#allocation2 + $0x220] sm:$0x1] }
 0x2a7   : > { %3873 = vrot.lane.b32.xlu0 %v3839_v41, %s9669_s21  ;;  %v3121_v52 = vrot.slane %v3049_v45, 1  ;;  %v3225_v45 = vld [vmem:[#allocation2 + $0x218] sm:$0x7f] }
 0x2a8   : > { %v9459_v35 = vpop.f32.mrb[12].mxu1 }
 0x2a9   : > { %v2663_v4 = vmax.f32 %v9459_v35, 0.0  ;;  %v2618_v13 = vpop.f32.mrb[13].mxu1  ;;  %v3047_v35 = vld [vmem:[#allocation2 + $0x1e8] sm:$0xfe] }
 0x2aa   : > { %2983 = vrot.lane.b32.xlu1 %v3839_v41, %s9666_s18  ;;  %v2661_v18 = vmax.f32 %v2618_v13, 0.0  ;;  %v9460_v19 = vpop.f32.mrb[14].mxu1  ;;  %v3118_v13 = vrot.slane %v3047_v35, 1  ;;  %v3052_v35 = vld [vmem:[#allocation2 + $0x220] sm:$0x1] }
 0x2ab   : > { %3428 = vrot.lane.b32.xlu0 %v3839_v41, %s9668_s20  ;;  %v2727_v22 = vadd.f32 %v2695_v11, %v2663_v4  ;;  %v2664_v43 = vmax.f32 %v9460_v19, 0.0  ;;  %v2621_v23 = vpop.f32.mrb[15].mxu1  ;;  %v3122_v41 = vrot.slane %v3050_v0, 1  ;;  %v3048_v11 = vld [vmem:[#allocation2 + $0x1f0] sm:$0x1] }
 0x2ac   : > { %v2725_v54 = vadd.f32 %v2693_v14, %v2661_v18  ;;  %v2662_v59 = vmax.f32 %v2621_v23, 0.0  ;;  %v3119_v14 = vrot.slane %v3048_v11, 1  ;;  %v3672_v19 = vld [vmem:[#allocation2 + $0x230] sm:$0x7f] }
 0x2ad   : > { %2759 = vst.msk [vmem:[%s9997_s17 + $0xf0] sm:$0xff] %vm177_vm0, %v2727_v22  ;;  %v2728_v34 = vadd.f32 %v2696_v17, %v2664_v43  ;;  %v2776_v37 = vpack.c.bf16 %v2664_v43, %v2663_v4  ;;  %v3123_v8 = vsel %vm3099_vm13, %v3121_v52, %v3122_v41  ;;  %v3562_v4 = vsel %vm3099_vm13, %v3560_v53, %v3561_v7  ;;  %v3943_v17 = vld [vmem:[#allocation2 + $0x230] sm:$0xfe]  ;;  %v3051_v7 = vld [vmem:[#allocation2 + $0x218] sm:$0xfe] }
 0x2ae   : > { %3779 = vrot.lane.b32.xlu1 %v3736_v20, %s9672_s26  ;;  %2757 = vst.msk [vmem:[%s9997_s17 + $0xe0] sm:$0xff] %vm177_vm0, %v2725_v54  ;;  %v2726_v46 = vadd.f32 %v2694_v24, %v2662_v59  ;;  %v2775_v33 = vpack.c.bf16 %v2662_v59, %v2661_v18  ;;  %v3120_v15 = vsel %vm3099_vm13, %v3118_v13, %v3119_v14  ;;  %v3671_v18 = vld [vmem:[#allocation2 + $0x228] sm:$0x80]  ;;  %v3741_v43 = vrot.slane %v3672_v19, 7 }
 0x2af   : > { %4051 = vrot.lane.b32.xlu0 %v4008_v27, %s9673_s27  ;;  %2760 = vst.msk [vmem:[%s9997_s17 + $0xf8] sm:$0xff] %vm177_vm0, %v2728_v34  ;;  %2792 = vst.msk [vmem:[#allocation2 + $0x2f0] sm:$0xff] %vm177_vm0, %v2776_v37  ;;  %v3740_v22 = vrot.slane %v3671_v18, 7  ;;  %v4012_v23 = vrot.slane %v3943_v17, 1  ;;  %v4013_v24 = vrot.slane %v3944_v21, 1  ;;  %v3294_v41 = vrot.slane %v3224_v62, 7 }
 0x2b0   : > { %2758 = vst.msk [vmem:[%s9997_s17 + $0xe8] sm:$0xff] %vm177_vm0, %v2726_v46  ;;  %2791 = vst.msk [vmem:[#allocation2 + $0x2d8] sm:$0xff] %vm177_vm0, %v2775_v33  ;;  %v3226_v20 = vld [vmem:[#allocation2 + $0x228] sm:$0x80]  ;;  %v3227_v27 = vld [vmem:[#allocation2 + $0x230] sm:$0x7f] }
 0x2b1   : > { %v3742_v39 = vsel %vm2858_vm14, %v3740_v22, %v3741_v43  ;;  %v3297_v32 = vrot.slane %v3226_v20, 7  ;;  %v3298_v34 = vrot.slane %v3227_v27, 7  ;;  %v4014_v37 = vsel %vm3099_vm13, %v4012_v23, %v4013_v24  ;;  %v3941_v46 = vld [vmem:[#allocation2 + $0x218] sm:$0xfe]  ;;  %v3942_v33 = vld [vmem:[#allocation2 + $0x220] sm:$0x1] }
 0x2b2   : > { %3334 = vrot.lane.b32.xlu1 %v3293_v28, %s9670_s22  ;;  %v3570_v28 = vrot.slane %v3499_v42, 1  ;;  %v4009_v51 = vrot.slane %v3941_v46, 1  ;;  %v4010_v36 = vrot.slane %v3942_v33, 1  ;;  %v3567_v53 = vrot.slane %v3497_v5, 1  ;;  %v3057_v17 = vld [vmem:[#allocation2 + $0x260] sm:$0xfe] }
 0x2b3   : > { %3777 = vrot.lane.b32.xlu0 %v3733_v56, %s9672_s26  ;;  %v3299_v48 = vsel %vm2858_vm14, %v3297_v32, %v3298_v34  ;;  %v3053_v56 = vld [vmem:[#allocation2 + $0x230] sm:$0xfe]  ;;  %v3124_v14 = vrot.slane %v3051_v7, 1  ;;  %v3058_v21 = vld [vmem:[#allocation2 + $0x268] sm:$0x1]  ;;  %v3133_v24 = vrot.slane %v3057_v17, 1 }
 0x2b4   : > { %v3571_v25 = vsel %vm3099_vm13, %v3569_v49, %v3570_v28  ;;  %v3127_v3 = vrot.slane %v3053_v56, 1  ;;  %v4011_v52 = vsel %vm3099_vm13, %v4009_v51, %v4010_v36  ;;  %v3950_v22 = vld [vmem:[#allocation2 + $0x280] sm:$0x1]  ;;  %v3134_v20 = vrot.slane %v3058_v21, 1  ;;  %v3234_v27 = vld [vmem:[#allocation2 + $0x288] sm:$0x80] }
 0x2b5   : > { %v4022_v31 = vrot.slane %v3950_v22, 1  ;;  %v3951_v32 = vld [vmem:[#allocation2 + $0x290] sm:$0xfe]  ;;  %v3952_v34 = vld [vmem:[#allocation2 + $0x298] sm:$0x1]  ;;  %v3309_v40 = vrot.slane %v3234_v27, 7 }
 0x2b6   : > { %3606 = vrot.lane.b32.xlu1 %v3565_v58, %s9671_s23  ;;  %v3128_v58 = vrot.slane %v3054_v57, 1  ;;  %v3135_v63 = vsel %vm3099_vm13, %v3133_v24, %v3134_v20  ;;  %v4024_v46 = vrot.slane %v3951_v32, 1  ;;  %v4025_v33 = vrot.slane %v3952_v34, 1  ;;  %v3056_v49 = vld [vmem:[#allocation2 + $0x250] sm:$0x1] }
 0x2b7   : > { %4049 = vrot.lane.b32.xlu0 %v4005_v60, %s9673_s27  ;;  %v3295_v60 = vrot.slane %v3225_v45, 7  ;;  %v3131_v57 = vrot.slane %v3056_v49, 1  ;;  %v3506_v62 = vld [vmem:[#allocation2 + $0x290] sm:$0xfe]  ;;  %v3507_v45 = vld [vmem:[#allocation2 + $0x298] sm:$0x1] }
 0x2b8   : > { %v4026_v36 = vsel %vm3099_vm13, %v4024_v46, %v4025_v33  ;;  %v3954_v32 = vld [vmem:[#allocation2 + $0x2b0] sm:$0x1]  ;;  %v11198_v33 = vld [vmem:[#allocation2 + $0x2a8] sm:$0xff]  ;;  %v3238_v49 = vld [vmem:[#allocation2 + $0x2b8] sm:$0x80] }
 0x2ba   : > { %3162 = vrot.lane.b32.xlu1 %v3123_v8, %s9667_s19  ;;  %v3296_v8 = vsel %vm2858_vm14, %v3294_v41, %v3295_v60  ;;  %v3581_v41 = vrot.slane %v3506_v62, 1  ;;  %v3582_v60 = vrot.slane %v3507_v45, 1  ;;  %v3315_v62 = vrot.slane %v3238_v49, 7 }
 0x2bb   : > { %3332 = vrot.lane.b32.xlu0 %v3290_v9, %s9670_s22  ;;  %v3566_v9 = vrot.slane %v3496_v61, 1 }
 0x2bd   : > { %v3568_v13 = vsel %vm3099_vm13, %v3566_v9, %v3567_v53  ;;  %v3583_v53 = vsel %vm3099_vm13, %v3581_v41, %v3582_v60  ;;  %v3059_v60 = vld [vmem:[#allocation2 + $0x278] sm:$0xfe] }
 0x2be   : > { %3879 = vrot.lane.b32.xlu1 %v3842_v26, %s9669_s21 }
 0x2bf   : > { %3604 = vrot.lane.b32.xlu0 %v3562_v4, %s9671_s23  ;;  %v11126_v4 = vld [vmem:[#allocation2 + $0x290] sm:$0xff] }
 0x2c2   : > { %3434 = vrot.lane.b32.xlu1 %v3842_v26, %s9668_s20 }
 0x2c3   : > { %3160 = vrot.lane.b32.xlu0 %v3120_v15, %s9667_s19  ;;  %v3125_v15 = vrot.slane %v3052_v35, 1 }
 0x2c5   : > { %v3126_v19 = vsel %vm3099_vm13, %v3124_v14, %v3125_v15  ;;  %v3681_v15 = vld [vmem:[#allocation2 + $0x2a0] sm:$0x80] }
 0x2c6   : > { %2989 = vrot.lane.b32.xlu1 %v3842_v26, %s9666_s18  ;;  %v3755_v24 = vrot.slane %v3681_v15, 7 }
 0x2c7   : > { %3877 = vrot.lane.b32.xlu0 %v3841_v16, %s9669_s21 }
 0x2ca   : > { %2987 = vrot.lane.b32.xlu1 %v3841_v16, %s9666_s18 }
 0x2cb   : > { %3432 = vrot.lane.b32.xlu0 %v3841_v16, %s9668_s20 }
 0x2cc   : > { %v11094_v54 = vpop.permute.xlu1 %3883 }
 0x2cd   : > { %v11096_v59 = vpop.permute.xlu0 %3881 }
 0x2ce   : > { %3783 = vrot.lane.b32.xlu1 %v3742_v39, %s9672_s26  ;;  %v3235_v39 = vld [vmem:[#allocation2 + $0x290] sm:$0x7f] }
 0x2cf   : > { %4055 = vrot.lane.b32.xlu0 %v4014_v37, %s9673_s27  ;;  %v3310_v42 = vrot.slane %v3235_v39, 7 }
 0x2d0   : > { %v11102_v44 = vpop.permute.xlu1 %3438 }
 0x2d1   : > { %v11104_v47 = vpop.permute.xlu0 %3436  ;;  %v3311_v51 = vsel %vm2858_vm14, %v3309_v40, %v3310_v42  ;;  %v3061_v40 = vld [vmem:[#allocation2 + $0x290] sm:$0xfe]  ;;  %v3062_v42 = vld [vmem:[#allocation2 + $0x298] sm:$0x1] }
 0x2d2   : > { %3338 = vrot.lane.b32.xlu1 %v3299_v48, %s9670_s22  ;;  %v3055_v48 = vld [vmem:[#allocation2 + $0x248] sm:$0xfe] }
 0x2d3   : > { %3781 = vrot.lane.b32.xlu0 %v3739_v50, %s9672_s26  ;;  %v3130_v56 = vrot.slane %v3055_v48, 1 }
 0x2d4   : > { %v3327_v0 = vpop.permute.xlu1 %3326 }
 0x2d5   : > { %3373 = vst.msk [vmem:[#allocation3 + $0x8] sm:$0xff] %vm1304_vm6, %v3327_v0  ;;  %v3325_v1 = vpop.permute.xlu0 %3324  ;;  %v3232_v0 = vld [vmem:[#allocation2 + $0x270] sm:$0x80]  ;;  %v3132_v61 = vsel %vm3099_vm13, %v3130_v56, %v3131_v57  ;;  %v3140_v56 = vrot.slane %v3062_v42, 1  ;;  %v3955_v57 = vld [vmem:[#allocation2 + $0x2c0] sm:$0xfe] }
 0x2d6   : > { %3469 = vst.msk [vmem:[#allocation3 + $0x8] sm:$0xff] %vm1401_vm7, %v10911_v55  ;;  %3610 = vrot.lane.b32.xlu1 %v3571_v25, %s9671_s23  ;;  %v3129_v55 = vsel %vm3099_vm13, %v3127_v3, %v3128_v58  ;;  %v3683_v3 = vld [vmem:[#allocation2 + $0x2b8] sm:$0x80]  ;;  %v3684_v58 = vld [vmem:[#allocation2 + $0x2c0] sm:$0x7f]  ;;  %v3306_v5 = vrot.slane %v3232_v0, 7 }
 0x2d7   : > { %3372 = vst.msk [vmem:[#allocation3] sm:$0xff] %vm1304_vm6, %v3325_v1  ;;  %4053 = vrot.lane.b32.xlu0 %v4011_v52, %s9673_s27  ;;  %v3233_v1 = vld [vmem:[#allocation2 + $0x278] sm:$0x7f] }
 0x2d8   : > { %3468 = vst.msk [vmem:[#allocation3] sm:$0xff] %vm1401_vm7, %v3421_v10  ;;  %v3599_v30 = vpop.permute.xlu1 %3598  ;;  %v3949_v10 = vld [vmem:[#allocation2 + $0x278] sm:$0xfe] }
 0x2d9   : > { %3645 = vst.msk [vmem:[#allocation3 + $0x8] sm:$0xff] %vm1690_vm8, %v3599_v30  ;;  %v3597_v6 = vpop.permute.xlu0 %3596  ;;  %v3307_v30 = vrot.slane %v3233_v1, 7 }
 0x2da   : > { %3644 = vst.msk [vmem:[#allocation3] sm:$0xff] %vm1690_vm8, %v3597_v6  ;;  %3166 = vrot.lane.b32.xlu1 %v3129_v55, %s9667_s19  ;;  %v3758_v6 = vrot.slane %v3683_v3, 7  ;;  %v3759_v55 = vrot.slane %v3684_v58, 7 }
 0x2db   : > { %3336 = vrot.lane.b32.xlu0 %v3296_v8, %s9670_s22  ;;  %v3308_v7 = vsel %vm2858_vm14, %v3306_v5, %v3307_v30 }
 0x2dc   : > { %v3155_v11 = vpop.permute.xlu1 %3154  ;;  %v3760_v35 = vsel %vm2858_vm14, %v3758_v6, %v3759_v55  ;;  %v3510_v6 = vld [vmem:[#allocation2 + $0x2c0] sm:$0xfe]  ;;  %v3511_v55 = vld [vmem:[#allocation2 + $0x2c8] sm:$0x1] }
 0x2dd   : > { %3199 = vst.msk [vmem:[#allocation3 + $0x18] sm:$0xff] %vm1015_vm5, %v3155_v11  ;;  %v3153_v26 = vpop.permute.xlu0 %3152  ;;  %v3504_v11 = vld [vmem:[#allocation2 + $0x278] sm:$0xfe] }
 0x2de   : > { %3198 = vst.msk [vmem:[#allocation3 + $0x10] sm:$0xff] %vm1015_vm5, %v3153_v26  ;;  %3887 = vrot.lane.b32.xlu1 %v11126_v4, %s9669_s21  ;;  %v3505_v26 = vld [vmem:[#allocation2 + $0x280] sm:$0x1]  ;;  %v3578_v17 = vrot.slane %v3504_v11, 1  ;;  %v3136_v11 = vrot.slane %v3059_v60, 1 }
 0x2df   : > { %3608 = vrot.lane.b32.xlu0 %v3568_v13, %s9671_s23  ;;  %v3579_v21 = vrot.slane %v3505_v26, 1 }
 0x2e0   : > { %v11133_v16 = vpop.permute.xlu1 %3787 }
 0x2e1   : > { %v11135_v18 = vpop.permute.xlu0 %4059 }
 0x2e2   : > { %2991 = vrot.lane.b32.xlu1 %v10931_v12, %s9666_s18  ;;  %v4021_v12 = vrot.slane %v3949_v10, 1  ;;  %v11181_v10 = vld [vmem:[#allocation2 + $0x2c0] sm:$0xff] }
 0x2e3   : > { %3164 = vrot.lane.b32.xlu0 %v3126_v19, %s9667_s19  ;;  %v3682_v19 = vld [vmem:[#allocation2 + $0x2a8] sm:$0x7f] }
 0x2e4   : > { %v11141_v43 = vpop.permute.xlu1 %3342  ;;  %v3756_v20 = vrot.slane %v3682_v19, 7 }
 0x2e5   : > { %v11143_v23 = vpop.permute.xlu0 %3785 }
 0x2e6   : > { %2993 = vrot.lane.b32.xlu1 %v10927_v2, %s9666_s18  ;;  %v4023_v2 = vsel %vm3099_vm13, %v4021_v12, %v4022_v31  ;;  %v3580_v12 = vsel %vm3099_vm13, %v3578_v17, %v3579_v21  ;;  %v3757_v39 = vsel %vm2858_vm14, %v3755_v24, %v3756_v20  ;;  %v3687_v21 = vld [vmem:[#allocation2 + $0x2e8] sm:$0x80] }
 0x2e7   : > { %3885 = vrot.lane.b32.xlu0 %v11147_v29, %s9669_s21 }
 0x2e8   : > { %v11151_v37 = vpop.permute.xlu1 %3614 }
 0x2e9   : > { %v11153_v38 = vpop.permute.xlu0 %4057 }
 0x2ea   : > { %3170 = vrot.lane.b32.xlu1 %v3135_v63, %s9667_s19  ;;  %v3953_v63 = vld [vmem:[#allocation2 + $0x2a8] sm:$0xfe] }
 0x2eb   : > { %4061 = vrot.lane.b32.xlu0 %v4023_v2, %s9673_s27  ;;  %v4028_v2 = vrot.slane %v3954_v32, 1  ;;  %v4027_v48 = vrot.slane %v3953_v63, 1  ;;  %v3508_v63 = vld [vmem:[#allocation2 + $0x2a8] sm:$0xfe] }
 0x2ec   : > { %v3872_v28 = vpop.permute.xlu1 %3871 }
 0x2ed   : > { %v11159_v50 = vpop.permute.xlu0 %3340  ;;  %v4029_v1 = vsel %vm3099_vm13, %v4027_v48, %v4028_v2 }
 0x2ee   : > { %3346 = vrot.lane.b32.xlu1 %v3311_v51, %s9670_s22 }
 0x2ef   : > { %4063 = vrot.lane.b32.xlu0 %v4026_v36, %s9673_s27  ;;  %v3139_v36 = vrot.slane %v3061_v40, 1  ;;  %v3509_v40 = vld [vmem:[#allocation2 + $0x2b0] sm:$0x1] }
 0x2f0   : > { %v3427_v25 = vpop.permute.xlu1 %3426  ;;  %v3585_v48 = vrot.slane %v3509_v40, 1 }
 0x2f1   : > { %v11165_v52 = vpop.permute.xlu0 %3612  ;;  %v3141_v41 = vsel %vm3099_vm13, %v3139_v36, %v3140_v56  ;;  %v11238_v36 = vld [vmem:[#allocation2 + $0x2f0] sm:$0xff] }
 0x2f2   : > { %3442 = vrot.lane.b32.xlu1 %v11126_v4, %s9668_s20 }
 0x2f3   : > { %3168 = vrot.lane.b32.xlu0 %v3132_v61, %s9667_s19  ;;  %v3060_v61 = vld [vmem:[#allocation2 + $0x280] sm:$0x1] }
 0x2f4   : > { %v2982_v8 = vpop.permute.xlu1 %2981  ;;  %v3137_v26 = vrot.slane %v3060_v61, 1 }
 0x2f5   : > { %3024 = vst.msk [vmem:[#allocation3 + $0x28] sm:$0xff] %vm725_vm4, %v2982_v8  ;;  %v3870_v9 = vpop.permute.xlu0 %3869 }
 0x2f6   : > { %3618 = vrot.lane.b32.xlu1 %v3583_v53, %s9671_s23  ;;  %v3236_v53 = vld [vmem:[#allocation2 + $0x2a0] sm:$0x80]  ;;  %v3138_v20 = vsel %vm3099_vm13, %v3136_v11, %v3137_v26 }
 0x2f7   : > { %3344 = vrot.lane.b32.xlu0 %v3308_v7, %s9670_s22  ;;  %v3237_v7 = vld [vmem:[#allocation2 + $0x2a8] sm:$0x7f]  ;;  %v3312_v19 = vrot.slane %v3236_v53, 7 }
 0x2f8   : > { %v2980_v13 = vpop.permute.xlu1 %2979  ;;  %v3313_v17 = vrot.slane %v3237_v7, 7 }
 0x2f9   : > { %3023 = vst.msk [vmem:[#allocation3 + $0x20] sm:$0xff] %vm725_vm4, %v2980_v13  ;;  %v3425_v14 = vpop.permute.xlu0 %3424  ;;  %v3587_v13 = vrot.slane %v3510_v6, 1 }
 0x2fa   : > { %3795 = vrot.lane.b32.xlu1 %v3760_v35, %s9672_s26  ;;  %v3314_v32 = vsel %vm2858_vm14, %v3312_v19, %v3313_v17 }
 0x2fb   : > { %3440 = vrot.lane.b32.xlu0 %v11147_v29, %s9668_s20 }
 0x2fc   : > { %v3776_v22 = vpop.permute.xlu1 %3775 }
 0x2fd   : > { %3822 = vst.msk [vmem:[#allocation3 + $0x8] sm:$0xff] %vm1980_vm9, %v3776_v22  ;;  %v4048_v27 = vpop.permute.xlu0 %4047  ;;  %v3688_v22 = vld [vmem:[#allocation2 + $0x2f0] sm:$0x7f] }
 0x2fe   : > { %3918 = vst.msk [vmem:[#allocation3 + $0x8] sm:$0xff] %vm2077_vm10, %v3872_v28  ;;  %3891 = vrot.lane.b32.xlu1 %v11181_v10, %s9669_s21  ;;  %v3239_v28 = vld [vmem:[#allocation2 + $0x2c0] sm:$0x7f] }
 0x2ff   : > { %4094 = vst.msk [vmem:[#allocation3 + $0x8] sm:$0xff] %vm2366_vm11, %v4048_v27  ;;  %3616 = vrot.lane.b32.xlu0 %v3580_v12, %s9671_s23  ;;  %v3316_v45 = vrot.slane %v3239_v28, 7  ;;  %v3764_v12 = vrot.slane %v3687_v21, 7  ;;  %v3685_v28 = vld [vmem:[#allocation2 + $0x2d0] sm:$0x80] }
 0x300   : > { %v3331_v31 = vpop.permute.xlu1 %3330 }
 0x301   : > { %3375 = vst.msk [vmem:[#allocation3 + $0x18] sm:$0xff] %vm1304_vm6, %v3331_v31  ;;  %v3774_v34 = vpop.permute.xlu0 %3773  ;;  %v3765_v31 = vrot.slane %v3688_v22, 7  ;;  %v3064_v22 = vld [vmem:[#allocation2 + $0x2b0] sm:$0x1] }
 0x302   : > { %3471 = vst.msk [vmem:[#allocation3 + $0x18] sm:$0xff] %vm1401_vm7, %v3427_v25  ;;  %2995 = vrot.lane.b32.xlu1 %v11147_v29, %s9666_s18  ;;  %v3956_v29 = vld [vmem:[#allocation2 + $0x2c8] sm:$0x1]  ;;  %v4030_v25 = vrot.slane %v3955_v57, 1 }
 0x303   : > { %3821 = vst.msk [vmem:[#allocation3] sm:$0xff] %vm1980_vm9, %v3774_v34  ;;  %3793 = vrot.lane.b32.xlu0 %v3757_v39, %s9672_s26  ;;  %v4031_v3 = vrot.slane %v3956_v29, 1  ;;  %v3766_v42 = vsel %vm2858_vm14, %v3764_v12, %v3765_v31  ;;  %v3761_v29 = vrot.slane %v3685_v28, 7  ;;  %v3514_v12 = vld [vmem:[#allocation2 + $0x2f0] sm:$0xfe] }
 0x304   : > { %3917 = vst.msk [vmem:[#allocation3] sm:$0xff] %vm2077_vm10, %v3870_v9  ;;  %v3603_v46 = vpop.permute.xlu1 %3602  ;;  %v3515_v31 = vld [vmem:[#allocation2 + $0x2f8] sm:$0x1] }
 0x305   : > { %3647 = vst.msk [vmem:[#allocation3 + $0x18] sm:$0xff] %vm1690_vm8, %v3603_v46  ;;  %v4046_v51 = vpop.permute.xlu0 %4045  ;;  %v4032_v30 = vsel %vm3099_vm13, %v4030_v25, %v4031_v3  ;;  %v3584_v46 = vrot.slane %v3508_v63, 1  ;;  %v3958_v25 = vld [vmem:[#allocation2 + $0x2e0] sm:$0x1]  ;;  %v3241_v63 = vld [vmem:[#allocation2 + $0x2d8] sm:$0x7f] }
 0x306   : > { %4093 = vst.msk [vmem:[#allocation3] sm:$0xff] %vm2366_vm11, %v4046_v51  ;;  %2997 = vrot.lane.b32.xlu1 %v11126_v4, %s9666_s18  ;;  %v3317_v4 = vsel %vm2858_vm14, %v3315_v62, %v3316_v45  ;;  %v4110_v35 = vld [vmem:[#allocation3 + $0x8] sm:$0xff]  ;;  %v3686_v51 = vld [vmem:[#allocation2 + $0x2d8] sm:$0x7f]  ;;  %v4034_v60 = vrot.slane %v3958_v25, 1  ;;  %v3319_v28 = vrot.slane %v3241_v63, 7 }
 0x307   : > { %3889 = vrot.lane.b32.xlu0 %v11198_v33, %s9669_s21  ;;  %v3586_v57 = vsel %vm3099_vm13, %v3584_v46, %v3585_v48  ;;  %v3762_v62 = vrot.slane %v3686_v51, 7  ;;  %v3594_v46 = vrot.slane %v3515_v31, 1  ;;  %v3691_v51 = vld [vmem:[#allocation2 + $0x318] sm:$0x80]  ;;  %v4665_v63 = vld [vmem:[#allocation2 + $0x140] sm:$0xff] }
 0x308   : > { %v3159_v0 = vpop.permute.xlu1 %3158 }
 0x309   : > { %3201 = vst.msk [vmem:[#allocation3 + $0x28] sm:$0xff] %vm1015_vm5, %v3159_v0  ;;  %v3329_v58 = vpop.permute.xlu0 %3328 }
 0x30a   : > { %3374 = vst.msk [vmem:[#allocation3 + $0x10] sm:$0xff] %vm1304_vm6, %v3329_v58  ;;  %3174 = vrot.lane.b32.xlu1 %v3141_v41, %s9667_s19  ;;  %v3957_v58 = vld [vmem:[#allocation2 + $0x2d8] sm:$0xfe]  ;;  %v3065_v41 = vld [vmem:[#allocation2 + $0x2c0] sm:$0xfe] }
 0x30b   : > { %3470 = vst.msk [vmem:[#allocation3 + $0x10] sm:$0xff] %vm1401_vm7, %v3425_v14  ;;  %4065 = vrot.lane.b32.xlu0 %v4029_v1, %s9673_s27  ;;  %v3588_v14 = vrot.slane %v3511_v55, 1  ;;  %v3763_v1 = vsel %vm2858_vm14, %v3761_v29, %v3762_v62  ;;  %v4033_v6 = vrot.slane %v3957_v58, 1  ;;  %v3242_v55 = vld [vmem:[#allocation2 + $0x2e8] sm:$0x80]  ;;  %v3145_v53 = vrot.slane %v3065_v41, 1 }
 0x30c   : > { %v11214_v5 = vpop.permute.xlu1 %3791  ;;  %v3321_v11 = vrot.slane %v3242_v55, 7 }
 0x30d   : > { %v3601_v8 = vpop.permute.xlu0 %3600  ;;  %v4109_v9 = vld [vmem:[#allocation3] sm:$0xff]  ;;  %v3589_v27 = vsel %vm3099_vm13, %v3587_v13, %v3588_v14  ;;  %v4035_v14 = vsel %vm3099_vm13, %v4033_v6, %v4034_v60 }
 0x30e   : > { %3646 = vst.msk [vmem:[#allocation3 + $0x10] sm:$0xff] %vm1690_vm8, %v3601_v8  ;;  %9467 = vmatprep.mubr.msk.bf16.mxu1 %vm2419_vm12, %v4109_v9  ;;  %3350 = vrot.lane.b32.xlu1 %v3317_v4, %s9670_s22  ;;  %v3066_v4 = vld [vmem:[#allocation2 + $0x2c8] sm:$0x1]  ;;  %v3243_v8 = vld [vmem:[#allocation2 + $0x2f0] sm:$0x7f] }
 0x30f   : > { %9468 = vmatmul.mubr.msk.bf16.vlgmr.msra.gmra.mrb[16].mxu1 %vm2419_vm12, %v4110_v35  ;;  %4067 = vrot.lane.b32.xlu0 %v4032_v30, %s9673_s27  ;;  %v11252_v30 = vld [vmem:[#allocation2 + $0x2d8] sm:$0xff]  ;;  %v3146_v7 = vrot.slane %v3066_v4, 1  ;;  %v3959_v35 = vld [vmem:[#allocation2 + $0x2f0] sm:$0xfe]  ;;  %v3322_v26 = vrot.slane %v3243_v8, 7 }
 0x310   : > { %v3876_v15 = vpop.permute.xlu1 %3875  ;;  %v3512_v4 = vld [vmem:[#allocation2 + $0x2d8] sm:$0xfe]  ;;  %v3513_v60 = vld [vmem:[#allocation2 + $0x2e0] sm:$0x1]  ;;  %v3963_v8 = vld [vmem:[#allocation2 + $0x320] sm:$0xfe] }
 0x311   : > { %v3157_v24 = vpop.permute.xlu0 %3156  ;;  %v3147_v21 = vsel %vm3099_vm13, %v3145_v53, %v3146_v7  ;;  %v3590_v6 = vrot.slane %v3512_v4, 1  ;;  %v3591_v55 = vrot.slane %v3513_v60, 1  ;;  %v3689_v7 = vld [vmem:[#allocation2 + $0x300] sm:$0x80]  ;;  %v5411_v60 = vld [vmem:[#allocation2 + $0x308] sm:$0x3f] }
 0x312   : > { %3200 = vst.msk [vmem:[#allocation3 + $0x20] sm:$0xff] %vm1015_vm5, %v3157_v24  ;;  %3446 = vrot.lane.b32.xlu1 %v11181_v10, %s9668_s20  ;;  %v3323_v24 = vsel %vm2858_vm14, %v3321_v11, %v3322_v26  ;;  %v4042_v11 = vrot.slane %v3963_v8, 1 }
 0x313   : > { %3172 = vrot.lane.b32.xlu0 %v3138_v20, %s9667_s19 }
 0x314   : > { %v3431_v39 = vpop.permute.xlu1 %3430 }
 0x315   : > { %v11229_v34 = vpop.permute.xlu0 %3789 }
 0x316   : > { %3622 = vrot.lane.b32.xlu1 %v3589_v27, %s9671_s23 }
 0x317   : > { %3348 = vrot.lane.b32.xlu0 %v3314_v32, %s9670_s22  ;;  %v3240_v32 = vld [vmem:[#allocation2 + $0x2d0] sm:$0x80] }
 0x318   : > { %v2986_v2 = vpop.permute.xlu1 %2985 }
 0x319   : > { %3026 = vst.msk [vmem:[#allocation3 + $0x38] sm:$0xff] %vm725_vm4, %v2986_v2  ;;  %v3874_v49 = vpop.permute.xlu0 %3873  ;;  %v3593_v2 = vrot.slane %v3514_v12, 1  ;;  %v11306_v12 = vld [vmem:[#allocation2 + $0x308] sm:$0xff] }
 0x31a   : > { %3799 = vrot.lane.b32.xlu1 %v3766_v42, %s9672_s26  ;;  %v3143_v42 = vrot.slane %v3064_v22, 1 }
 0x31b   : > { %3444 = vrot.lane.b32.xlu0 %v11198_v33, %s9668_s20 }
 0x31c   : > { %v2984_v56 = vpop.permute.xlu1 %2983 }
 0x31d   : > { %3025 = vst.msk [vmem:[#allocation3 + $0x30] sm:$0xff] %vm725_vm4, %v2984_v56  ;;  %v3429_v45 = vpop.permute.xlu0 %3428  ;;  %v3692_v56 = vld [vmem:[#allocation2 + $0x320] sm:$0x7f] }
 0x31e   : > { %3895 = vrot.lane.b32.xlu1 %v11238_v36, %s9669_s21  ;;  %v3771_v25 = vrot.slane %v3692_v56, 7 }
 0x31f   : > { %3620 = vrot.lane.b32.xlu0 %v3586_v57, %s9671_s23 }
 0x320   : > { %v3780_v0 = vpop.permute.xlu1 %3779 }
 0x321   : > { %3824 = vst.msk [vmem:[#allocation3 + $0x18] sm:$0xff] %vm1980_vm9, %v3780_v0  ;;  %v4052_v3 = vpop.permute.xlu0 %4051 }
 0x322   : > { %3920 = vst.msk [vmem:[#allocation3 + $0x18] sm:$0xff] %vm2077_vm10, %v3876_v15  ;;  %2999 = vrot.lane.b32.xlu1 %v11198_v33, %s9666_s18  ;;  %v3960_v33 = vld [vmem:[#allocation2 + $0x2f8] sm:$0x1]  ;;  %v4036_v15 = vrot.slane %v3959_v35, 1  ;;  %v3690_v35 = vld [vmem:[#allocation2 + $0x308] sm:$0x7f] }
 0x323   : > { %4096 = vst.msk [vmem:[#allocation3 + $0x18] sm:$0xff] %vm2366_vm11, %v4052_v3  ;;  %3797 = vrot.lane.b32.xlu0 %v3763_v1, %s9672_s26  ;;  %v4037_v19 = vrot.slane %v3960_v33, 1  ;;  %v3770_v1 = vrot.slane %v3691_v51, 7  ;;  %v11292_v33 = vld [vmem:[#allocation2 + $0x320] sm:$0xff] }
 0x324   : > { %v3335_v61 = vpop.permute.xlu1 %3334 }
 0x325   : > { %3377 = vst.msk [vmem:[#allocation3 + $0x28] sm:$0xff] %vm1304_vm6, %v3335_v61  ;;  %v3778_v9 = vpop.permute.xlu0 %3777  ;;  %v4038_v27 = vsel %vm3099_vm13, %v4036_v15, %v4037_v19  ;;  %v3767_v15 = vrot.slane %v3689_v7, 7  ;;  %v3768_v19 = vrot.slane %v3690_v35, 7 }
 0x326   : > { %3473 = vst.msk [vmem:[#allocation3 + $0x28] sm:$0xff] %vm1401_vm7, %v3431_v39  ;;  %3001 = vrot.lane.b32.xlu1 %v11181_v10, %s9666_s18  ;;  %v3063_v10 = vld [vmem:[#allocation2 + $0x2a8] sm:$0xfe] }
 0x327   : > { %3823 = vst.msk [vmem:[#allocation3 + $0x10] sm:$0xff] %vm1980_vm9, %v3778_v9  ;;  %3893 = vrot.lane.b32.xlu0 %v11252_v30, %s9669_s21  ;;  %v3142_v40 = vrot.slane %v3063_v10, 1  ;;  %v3964_v9 = vld [vmem:[#allocation2 + $0x328] sm:$0x1]  ;;  %v3769_v10 = vsel %vm2858_vm14, %v3767_v15, %v3768_v19 }
 0x328   : > { %3919 = vst.msk [vmem:[#allocation3 + $0x10] sm:$0xff] %vm2077_vm10, %v3874_v49  ;;  %v3607_v13 = vpop.permute.xlu1 %3606  ;;  %v3318_v49 = vrot.slane %v3240_v32, 7  ;;  %v4043_v26 = vrot.slane %v3964_v9, 1 }
 0x329   : > { %3649 = vst.msk [vmem:[#allocation3 + $0x28] sm:$0xff] %vm1690_vm8, %v3607_v13  ;;  %v4050_v17 = vpop.permute.xlu0 %4049  ;;  %v3144_v0 = vsel %vm3099_vm13, %v3142_v40, %v3143_v42 }
 0x32a   : > { %4095 = vst.msk [vmem:[#allocation3 + $0x10] sm:$0xff] %vm2366_vm11, %v4050_v17  ;;  %3178 = vrot.lane.b32.xlu1 %v3147_v21, %s9667_s19  ;;  %v4112_v62 = vld [vmem:[#allocation3 + $0x18] sm:$0xff]  ;;  %v3320_v58 = vsel %vm2858_vm14, %v3318_v49, %v3319_v28  ;;  %v4044_v21 = vsel %vm3099_vm13, %v4042_v11, %v4043_v26  ;;  %v4761_v49 = vld [vmem:[#allocation2 + $0x130] sm:$0x3]  ;;  %v4763_v28 = vld [vmem:[#allocation2 + $0x148] sm:$0x3] }
 0x32b   : > { %4069 = vrot.lane.b32.xlu0 %v4035_v14, %s9673_s27  ;;  %v3592_v14 = vsel %vm3099_vm13, %v3590_v6, %v3591_v55  ;;  %v4829_v56 = vrot.slane %v4763_v28, 2  ;;  %v5487_v55 = vrot.slane %v5411_v60, 6  ;;  %v5415_v28 = vld [vmem:[#allocation2 + $0x338] sm:$0x3f] }
 0x32c   : > { %v3163_v20 = vpop.permute.xlu1 %3162 }
 0x32d   : > { %3203 = vst.msk [vmem:[#allocation3 + $0x38] sm:$0xff] %vm1015_vm5, %v3163_v20  ;;  %v3333_v39 = vpop.permute.xlu0 %3332  ;;  %v3962_v20 = vld [vmem:[#allocation2 + $0x310] sm:$0x1] }
 0x32e   : > { %3376 = vst.msk [vmem:[#allocation3 + $0x20] sm:$0xff] %vm1304_vm6, %v3333_v39  ;;  %3354 = vrot.lane.b32.xlu1 %v3323_v24, %s9670_s22  ;;  %v3961_v24 = vld [vmem:[#allocation2 + $0x308] sm:$0xfe]  ;;  %v4040_v39 = vrot.slane %v3962_v20, 1 }
 0x32f   : > { %3472 = vst.msk [vmem:[#allocation3 + $0x20] sm:$0xff] %vm1401_vm7, %v3429_v45  ;;  %4071 = vrot.lane.b32.xlu0 %v4038_v27, %s9673_s27  ;;  %v3595_v45 = vsel %vm3099_vm13, %v3593_v2, %v3594_v46  ;;  %v4039_v31 = vrot.slane %v3961_v24, 1  ;;  %v4760_v2 = vld [vmem:[#allocation2 + $0x128] sm:$0xfc]  ;;  %v4762_v46 = vld [vmem:[#allocation2 + $0x140] sm:$0xfc] }
 0x330   : > { %v3880_v48 = vpop.permute.xlu1 %3879  ;;  %v4828_v51 = vrot.slane %v4762_v46, 2  ;;  %v5412_v24 = vld [vmem:[#allocation2 + $0x318] sm:$0xc0] }
 0x331   : > { %v3605_v57 = vpop.permute.xlu0 %3604  ;;  %v4111_v29 = vld [vmem:[#allocation3 + $0x10] sm:$0xff]  ;;  %v4041_v42 = vsel %vm3099_vm13, %v4039_v31, %v4040_v39  ;;  %v5489_v31 = vrot.slane %v5412_v24, 6  ;;  %v5684_v39 = vld [vmem:[#allocation2 + $0x320] sm:$0xfc] }
 0x332   : > { %3648 = vst.msk [vmem:[#allocation3 + $0x20] sm:$0xff] %vm1690_vm8, %v3605_v57  ;;  %9471 = vmatprep.mubr.msk.bf16.mxu1 %vm2419_vm12, %v4111_v29  ;;  %3450 = vrot.lane.b32.xlu1 %v11238_v36, %s9668_s20  ;;  %v3772_v36 = vsel %vm2858_vm14, %v3770_v1, %v3771_v25  ;;  %v4664_v29 = vld [vmem:[#allocation2 + $0x128] sm:$0xff]  ;;  %v4764_v1 = vld [vmem:[#allocation2 + $0x158] sm:$0xfc]  ;;  %v4765_v25 = vld [vmem:[#allocation2 + $0x160] sm:$0x3] }
 0x333   : > { %9472 = vmatmul.mubr.msk.bf16.gmra.mrb[20].mxu1 %vm2419_vm12, %v4112_v62  ;;  %3176 = vrot.lane.b32.xlu0 %v3144_v0, %s9667_s19  ;;  %v4825_v62 = vrot.slane %v4760_v2, 2  ;;  %v4826_v0 = vrot.slane %v4761_v49, 2  ;;  %v5414_v2 = vld [vmem:[#allocation2 + $0x330] sm:$0xc0]  ;;  %v4519_v24 = vld [vmem:[#allocation2 + $0x120] sm:$0xc0] }
 0x334   : > { %v3435_v3 = vpop.permute.xlu1 %3434 }
 0x335   : > { %v3161_v41 = vpop.permute.xlu0 %3160 }
 0x336   : > { %3202 = vst.msk [vmem:[#allocation3 + $0x30] sm:$0xff] %vm1015_vm5, %v3161_v41  ;;  %3626 = vrot.lane.b32.xlu1 %v3595_v45, %s9671_s23  ;;  %v4830_v45 = vsel %vm4824_vm15, %v4828_v51, %v4829_v56  ;;  %v4832_v41 = vrot.slane %v4765_v25, 2 }
 0x337   : > { %3352 = vrot.lane.b32.xlu0 %v3320_v58, %s9670_s22  ;;  %v4831_v58 = vrot.slane %v4764_v1, 2 }
 0x338   : > { %v2990_v61 = vpop.permute.xlu1 %2989 }
 0x339   : > { %3028 = vst.msk [vmem:[#allocation3 + $0x48] sm:$0xff] %vm725_vm4, %v2990_v61  ;;  %v3878_v53 = vpop.permute.xlu0 %3877  ;;  %v4833_v61 = vsel %vm4824_vm15, %v4831_v58, %v4832_v41 }
 0x33a   : > { %3803 = vrot.lane.b32.xlu1 %v3772_v36, %s9672_s26  ;;  %v4667_v36 = vld [vmem:[#allocation2 + $0x170] sm:$0xff] }
 0x33b   : > { %3448 = vrot.lane.b32.xlu0 %v11252_v30, %s9668_s20 }
 0x33c   : > { %v2988_v13 = vpop.permute.xlu1 %2987 }
 0x33d   : > { %3027 = vst.msk [vmem:[#allocation3 + $0x40] sm:$0xff] %vm725_vm4, %v2988_v13  ;;  %v3433_v17 = vpop.permute.xlu0 %3432  ;;  %v4766_v13 = vld [vmem:[#allocation2 + $0x170] sm:$0xfc] }
 0x33e   : > { %3899 = vrot.lane.b32.xlu1 %v11292_v33, %s9669_s21 }
 0x33f   : > { %3624 = vrot.lane.b32.xlu0 %v3592_v14, %s9671_s23  ;;  %v4767_v14 = vld [vmem:[#allocation2 + $0x178] sm:$0x3] }
 0x340   : > { %v3784_v30 = vpop.permute.xlu1 %3783 }
 0x341   : > { %3826 = vst.msk [vmem:[#allocation3 + $0x28] sm:$0xff] %vm1980_vm9, %v3784_v30  ;;  %v4056_v22 = vpop.permute.xlu0 %4055  ;;  %v5682_v30 = vld [vmem:[#allocation2 + $0x308] sm:$0xfc] }
 0x342   : > { %3922 = vst.msk [vmem:[#allocation3 + $0x28] sm:$0xff] %vm2077_vm10, %v3880_v48  ;;  %4075 = vrot.lane.b32.xlu1 %v4044_v21, %s9673_s27  ;;  %v4835_v21 = vrot.slane %v4767_v14, 2 }
 0x343   : > { %4098 = vst.msk [vmem:[#allocation3 + $0x28] sm:$0xff] %vm2366_vm11, %v4056_v22  ;;  %3801 = vrot.lane.b32.xlu0 %v3769_v10, %s9672_s26  ;;  %v5683_v10 = vld [vmem:[#allocation2 + $0x310] sm:$0x3]  ;;  %v5758_v22 = vrot.slane %v5682_v30, 2 }
 0x344   : > { %v3339_v27 = vpop.permute.xlu1 %3338 }
 0x345   : > { %3379 = vst.msk [vmem:[#allocation3 + $0x38] sm:$0xff] %vm1304_vm6, %v3339_v27  ;;  %v3782_v32 = vpop.permute.xlu0 %3781  ;;  %v5759_v27 = vrot.slane %v5683_v10, 2 }
 0x346   : > { %3475 = vst.msk [vmem:[#allocation3 + $0x38] sm:$0xff] %vm1401_vm7, %v3435_v3  ;;  %4698 = vrot.lane.b32.xlu1 %v4665_v63, %s9666_s18  ;;  %v4827_v3 = vsel %vm4824_vm15, %v4825_v62, %v4826_v0 }
 0x347   : > { %3825 = vst.msk [vmem:[#allocation3 + $0x20] sm:$0xff] %vm1980_vm9, %v3782_v32  ;;  %3897 = vrot.lane.b32.xlu0 %v11306_v12, %s9669_s21 }
 0x348   : > { %3921 = vst.msk [vmem:[#allocation3 + $0x20] sm:$0xff] %vm2077_vm10, %v3878_v53  ;;  %v3611_v40 = vpop.permute.xlu1 %3610 }
 0x349   : > { %3651 = vst.msk [vmem:[#allocation3 + $0x38] sm:$0xff] %vm1690_vm8, %v3611_v40  ;;  %v4054_v48 = vpop.permute.xlu0 %4053  ;;  %v5685_v40 = vld [vmem:[#allocation2 + $0x328] sm:$0x3] }
 0x34a   : > { %3828 = vst.msk [vmem:[#allocation3 + $0x38] sm:$0xff] %vm1980_vm9, %v11133_v16  ;;  %4875 = vrot.lane.b32.xlu1 %v4830_v45, %s9667_s19  ;;  %v5762_v49 = vrot.slane %v5685_v40, 2 }
 0x34b   : > { %4097 = vst.msk [vmem:[#allocation3 + $0x20] sm:$0xff] %vm2366_vm11, %v4054_v48  ;;  %4073 = vrot.lane.b32.xlu0 %v4041_v42, %s9673_s27  ;;  %v5761_v42 = vrot.slane %v5684_v39, 2  ;;  %v5760_v48 = vsel %vm4824_vm15, %v5758_v22, %v5759_v27  ;;  %v4521_v39 = vld [vmem:[#allocation2 + $0x138] sm:$0xc0] }
 0x34c   : > { %3924 = vst.msk [vmem:[#allocation3 + $0x38] sm:$0xff] %vm2077_vm10, %v11094_v54  ;;  %v3167_v57 = vpop.permute.xlu1 %3166  ;;  %v4666_v54 = vld [vmem:[#allocation2 + $0x158] sm:$0xff]  ;;  %v4587_v40 = vrot.slane %v4521_v39, 6 }
 0x34d   : > { %4100 = vst.msk [vmem:[#allocation3 + $0x38] sm:$0xff] %vm2366_vm11, %v11135_v18  ;;  %v3337_v16 = vpop.permute.xlu0 %3336  ;;  %v5763_v56 = vsel %vm4824_vm15, %v5761_v42, %v5762_v49 }
 0x34e   : > { %3205 = vst.msk [vmem:[#allocation3 + $0x48] sm:$0xff] %vm1015_vm5, %v3167_v57  ;;  %4700 = vrot.lane.b32.xlu1 %v4666_v54, %s9666_s18  ;;  %v5492_v57 = vrot.slane %v5414_v2, 6 }
 0x34f   : > { %3381 = vst.msk [vmem:[#allocation3 + $0x48] sm:$0xff] %vm1304_vm6, %v11141_v43  ;;  %3378 = vst.msk [vmem:[#allocation3 + $0x30] sm:$0xff] %vm1304_vm6, %v3337_v16  ;;  %4696 = vrot.lane.b32.xlu0 %v4664_v29, %s9666_s18  ;;  %v5493_v29 = vrot.slane %v5415_v28, 6  ;;  %v4523_v28 = vld [vmem:[#allocation2 + $0x150] sm:$0xc0] }
 0x350   : > { %3477 = vst.msk [vmem:[#allocation3 + $0x48] sm:$0xff] %vm1401_vm7, %v11102_v44  ;;  %3474 = vst.msk [vmem:[#allocation3 + $0x30] sm:$0xff] %vm1401_vm7, %v3433_v17  ;;  %v3888_v18 = vpop.permute.xlu1 %3887  ;;  %v5410_v44 = vld [vmem:[#allocation2 + $0x300] sm:$0xc0]  ;;  %v4834_v17 = vrot.slane %v4766_v13, 2 }
 0x351   : > { %3653 = vst.msk [vmem:[#allocation3 + $0x48] sm:$0xff] %vm1690_vm8, %v11151_v37  ;;  %v3609_v43 = vpop.permute.xlu0 %3608  ;;  %v4114_v37 = vld [vmem:[#allocation3 + $0x28] sm:$0xff]  ;;  %v5486_v6 = vrot.slane %v5410_v44, 6  ;;  %v5494_v45 = vsel %vm2468_vm3, %v5492_v57, %v5493_v29 }
 0x352   : > { %3830 = vst.msk [vmem:[#allocation3 + $0x48] sm:$0xff] %vm1980_vm9, %v11214_v5  ;;  %v4113_v4 = vld [vmem:[#allocation3 + $0x20] sm:$0xff]  ;;  %4702 = vrot.lane.b32.xlu1 %v4667_v36, %s9666_s18  ;;  %v4836_v20 = vsel %vm4824_vm15, %v4834_v17, %v4835_v21 }
 0x353   : > { %3926 = vst.msk [vmem:[#allocation3 + $0x48] sm:$0xff] %vm2077_vm10, %v3888_v18  ;;  %9475 = vmatprep.mubr.msk.bf16.mxu1 %vm2419_vm12, %v4113_v4  ;;  %4873 = vrot.lane.b32.xlu0 %v4827_v3, %s9667_s19 }
 0x354   : > { %3650 = vst.msk [vmem:[#allocation3 + $0x30] sm:$0xff] %vm1690_vm8, %v3609_v43  ;;  %9476 = vmatmul.mubr.msk.bf16.gmra.mrb[24].mxu1 %vm2419_vm12, %v4114_v37  ;;  %v2992_v5 = vpop.permute.xlu1 %2991  ;;  %v4116_v53 = vld [vmem:[#allocation3 + $0x38] sm:$0xff] }
 0x355   : > { %3827 = vst.msk [vmem:[#allocation3 + $0x30] sm:$0xff] %vm1980_vm9, %v11143_v23  ;;  %v3165_v8 = vpop.permute.xlu0 %3164  ;;  %v5488_v23 = vsel %vm2468_vm3, %v5486_v6, %v5487_v55 }
 0x356   : > { %3923 = vst.msk [vmem:[#allocation3 + $0x30] sm:$0xff] %vm2077_vm10, %v11096_v59  ;;  %4879 = vrot.lane.b32.xlu1 %v4836_v20, %s9667_s19  ;;  %v4520_v20 = vld [vmem:[#allocation2 + $0x128] sm:$0x3f] }
 0x357   : > { %4099 = vst.msk [vmem:[#allocation3 + $0x30] sm:$0xff] %vm2366_vm11, %v11153_v38  ;;  %4877 = vrot.lane.b32.xlu0 %v4833_v61, %s9667_s19 }
 0x358   : > { %3029 = vst.msk [vmem:[#allocation3 + $0x50] sm:$0xff] %vm725_vm4, %v2992_v5  ;;  %v2994_v59 = vpop.permute.xlu1 %2993 }
 0x359   : > { %3204 = vst.msk [vmem:[#allocation3 + $0x40] sm:$0xff] %vm1015_vm5, %v3165_v8  ;;  %v3886_v38 = vpop.permute.xlu0 %3885 }
 0x35a   : > { %3380 = vst.msk [vmem:[#allocation3 + $0x40] sm:$0xff] %vm1304_vm6, %v11159_v50 }
 0x35b   : > { %3476 = vst.msk [vmem:[#allocation3 + $0x40] sm:$0xff] %vm1401_vm7, %v11104_v47  ;;  %5522 = vrot.lane.b32.xlu0 %v5488_v23, %s9672_s26 }
 0x35c   : > { %3652 = vst.msk [vmem:[#allocation3 + $0x40] sm:$0xff] %vm1690_vm8, %v11165_v52  ;;  %v3171_v50 = vpop.permute.xlu1 %3170 }
 0x35d   : > { %3030 = vst.msk [vmem:[#allocation3 + $0x58] sm:$0xff] %vm725_vm4, %v2994_v59  ;;  %v4062_v47 = vpop.permute.xlu0 %4061 }
 0x35e   : > { %3829 = vst.msk [vmem:[#allocation3 + $0x40] sm:$0xff] %vm1980_vm9, %v11229_v34  ;;  %v4115_v9 = vld [vmem:[#allocation3 + $0x30] sm:$0xff] }
 0x35f   : > { %3925 = vst.msk [vmem:[#allocation3 + $0x40] sm:$0xff] %vm2077_vm10, %v3886_v38  ;;  %9479 = vmatprep.mubr.msk.bf16.mxu1 %vm2419_vm12, %v4115_v9  ;;  %5618 = vrot.lane.b32.xlu0 %v11306_v12, %s9669_s21  ;;  %v5413_v12 = vld [vmem:[#allocation2 + $0x320] sm:$0x3f] }
 0x360   : > { %3207 = vst.msk [vmem:[#allocation3 + $0x58] sm:$0xff] %vm1015_vm5, %v3171_v50  ;;  %9480 = vmatmul.mubr.msk.bf16.gmra.mrb[28].mxu1 %vm2419_vm12, %v4116_v53  ;;  %v3347_v52 = vpop.permute.xlu1 %3346  ;;  %v5490_v63 = vrot.slane %v5413_v12, 6  ;;  %v4584_v12 = vrot.slane %v4519_v24, 6 }
 0x361   : > { %4101 = vst.msk [vmem:[#allocation3 + $0x40] sm:$0xff] %vm2366_vm11, %v4062_v47  ;;  %v4064_v34 = vpop.permute.xlu0 %4063 }
 0x362   : > { %3383 = vst.msk [vmem:[#allocation3 + $0x58] sm:$0xff] %vm1304_vm6, %v3347_v52  ;;  %v5491_v51 = vsel %vm2468_vm3, %v5489_v31, %v5490_v63  ;;  %v4585_v31 = vrot.slane %v4520_v20, 6 }
 0x363   : > { %4102 = vst.msk [vmem:[#allocation3 + $0x48] sm:$0xff] %vm2366_vm11, %v4064_v34  ;;  %5794 = vrot.lane.b32.xlu0 %v5760_v48, %s9673_s27  ;;  %5524 = vrot.lane.b32.xlu1 %v5491_v51, %s9672_s26  ;;  %v4524_v51 = vld [vmem:[#allocation2 + $0x158] sm:$0x3f] }
 0x364   : > { %v3443_v7 = vpop.permute.xlu1 %3442  ;;  %v4586_v2 = vsel %vm2468_vm3, %v4584_v12, %v4585_v31  ;;  %v4591_v57 = vrot.slane %v4524_v51, 6  ;;  %v4769_v31 = vld [vmem:[#allocation2 + $0x190] sm:$0x3] }
 0x365   : > { %3479 = vst.msk [vmem:[#allocation3 + $0x58] sm:$0xff] %vm1401_vm7, %v3443_v7  ;;  %v3169_v35 = vpop.permute.xlu0 %3168 }
 0x366   : > { %3206 = vst.msk [vmem:[#allocation3 + $0x50] sm:$0xff] %vm1015_vm5, %v3169_v35 }
 0x367   : > { %5796 = vrot.lane.b32.xlu0 %v5763_v56, %s9673_s27  ;;  %5620 = vrot.lane.b32.xlu1 %v11292_v33, %s9669_s21  ;;  %4648 = vst.msk [vmem:[#allocation3] sm:$0xff] %vm177_vm0, %v4586_v2  ;;  %v4590_v56 = vrot.slane %v4523_v28, 6 }
 0x368   : > { %v4117_v11 = vld [vmem:[#allocation3 + $0x40] sm:$0xff]  ;;  %v3619_v26 = vpop.permute.xlu1 %3618 }
 0x369   : > { %9483 = vmatprep.mubr.msk.bf16.mxu1 %vm2419_vm12, %v4117_v11  ;;  %3655 = vst.msk [vmem:[#allocation3 + $0x58] sm:$0xff] %vm1690_vm8, %v3619_v26  ;;  %v3345_v15 = vpop.permute.xlu0 %3344 }
 0x36a   : > { %v4118_v19 = vld [vmem:[#allocation3 + $0x48] sm:$0xff]  ;;  %3382 = vst.msk [vmem:[#allocation3 + $0x50] sm:$0xff] %vm1304_vm6, %v3345_v15 }
 0x36b   : > { %9484 = vmatmul.mubr.msk.bf16.gmra.mrb[32].mxu1 %vm2419_vm12, %v4118_v19  ;;  %5526 = vrot.lane.b32.xlu0 %v5494_v45, %s9672_s26  ;;  %v4526_v45 = vld [vmem:[#allocation2 + $0x170] sm:$0x3f] }
 0x36c   : > { %v3796_v32 = vpop.permute.xlu1 %3795 }
 0x36d   : > { %3832 = vst.msk [vmem:[#allocation3 + $0x58] sm:$0xff] %vm1980_vm9, %v3796_v32  ;;  %v3441_v46 = vpop.permute.xlu0 %3440  ;;  %v4522_v32 = vld [vmem:[#allocation2 + $0x140] sm:$0x3f] }
 0x36e   : > { %3478 = vst.msk [vmem:[#allocation3 + $0x50] sm:$0xff] %vm1401_vm7, %v3441_v46  ;;  %v4588_v42 = vrot.slane %v4522_v32, 6 }
 0x370   : > { %v3892_v62 = vpop.permute.xlu1 %3891  ;;  %v4589_v46 = vsel %vm2468_vm3, %v4587_v40, %v4588_v42 }
 0x371   : > { %3928 = vst.msk [vmem:[#allocation3 + $0x58] sm:$0xff] %vm2077_vm10, %v3892_v62  ;;  %v3617_v0 = vpop.permute.xlu0 %3616  ;;  %v4592_v62 = vsel %vm2468_vm3, %v4590_v56, %v4591_v57 }
 0x372   : > { %3654 = vst.msk [vmem:[#allocation3 + $0x50] sm:$0xff] %vm1690_vm8, %v3617_v0  ;;  %v4525_v0 = vld [vmem:[#allocation2 + $0x168] sm:$0xc0] }
 0x373   : > { %4649 = vst.msk [vmem:[#allocation3 + $0x8] sm:$0xff] %vm177_vm0, %v4589_v46  ;;  %4650 = vst.msk [vmem:[#allocation3 + $0x10] sm:$0xff] %vm177_vm0, %v4592_v62  ;;  %v4838_v46 = vrot.slane %v4769_v31, 2  ;;  %v4771_v62 = vld [vmem:[#allocation2 + $0x1a8] sm:$0x3] }
 0x374   : > { %v2996_v16 = vpop.permute.xlu1 %2995 }
 0x375   : > { %3031 = vst.msk [vmem:[#allocation3 + $0x60] sm:$0xff] %vm725_vm4, %v2996_v16  ;;  %v3794_v1 = vpop.permute.xlu0 %3793 }
 0x376   : > { %3831 = vst.msk [vmem:[#allocation3 + $0x50] sm:$0xff] %vm1980_vm9, %v3794_v1  ;;  %v4593_v1 = vrot.slane %v4525_v0, 6 }
 0x378   : > { %v2998_v25 = vpop.permute.xlu1 %2997 }
 0x379   : > { %3032 = vst.msk [vmem:[#allocation3 + $0x68] sm:$0xff] %vm725_vm4, %v2998_v25  ;;  %v3890_v54 = vpop.permute.xlu0 %3889  ;;  %v4594_v25 = vrot.slane %v4526_v45, 6 }
 0x37a   : > { %3927 = vst.msk [vmem:[#allocation3 + $0x50] sm:$0xff] %vm2077_vm10, %v3890_v54 }
 0x37b   : > { %v4595_v54 = vsel %vm2468_vm3, %v4593_v1, %v4594_v25 }
 0x37c   : > { %v3175_v18 = vpop.permute.xlu1 %3174  ;;  %4651 = vst.msk [vmem:[#allocation3 + $0x18] sm:$0xff] %vm177_vm0, %v4595_v54 }
 0x37d   : > { %3209 = vst.msk [vmem:[#allocation3 + $0x68] sm:$0xff] %vm1015_vm5, %v3175_v18  ;;  %v4066_v3 = vpop.permute.xlu0 %4065 }
 0x37e   : > { %4103 = vst.msk [vmem:[#allocation3 + $0x50] sm:$0xff] %vm2366_vm11, %v4066_v3 }
 0x380   : > { %v3351_v33 = vpop.permute.xlu1 %3350 }
 0x381   : > { %3385 = vst.msk [vmem:[#allocation3 + $0x68] sm:$0xff] %vm1304_vm6, %v3351_v33  ;;  %v4068_v58 = vpop.permute.xlu0 %4067 }
 0x382   : > { %4104 = vst.msk [vmem:[#allocation3 + $0x58] sm:$0xff] %vm2366_vm11, %v4068_v58 }
 0x384   : > { %v3447_v41 = vpop.permute.xlu1 %3446 }
 0x385   : > { %3481 = vst.msk [vmem:[#allocation3 + $0x68] sm:$0xff] %vm1401_vm7, %v3447_v41  ;;  %v3173_v43 = vpop.permute.xlu0 %3172  ;;  %v4119_v4 = vld [vmem:[#allocation3 + $0x50] sm:$0xff] }
 0x386   : > { %3208 = vst.msk [vmem:[#allocation3 + $0x60] sm:$0xff] %vm1015_vm5, %v3173_v43  ;;  %9487 = vmatprep.mubr.msk.bf16.mxu1 %vm2419_vm12, %v4119_v4  ;;  %v4392_v43 = vld [vmem:[%s9997_s17 + $0x10] sm:$0xff] }
 0x388   : > { %v3623_v44 = vpop.permute.xlu1 %3622 }
 0x389   : > { %3657 = vst.msk [vmem:[#allocation3 + $0x68] sm:$0xff] %vm1690_vm8, %v3623_v44  ;;  %v3349_v60 = vpop.permute.xlu0 %3348  ;;  %v4120_v37 = vld [vmem:[#allocation3 + $0x58] sm:$0xff] }
 0x38a   : > { %3384 = vst.msk [vmem:[#allocation3 + $0x60] sm:$0xff] %vm1304_vm6, %v3349_v60  ;;  %9488 = vmatmul.mubr.msk.bf16.gmra.mrb[36].mxu1 %vm2419_vm12, %v4120_v37  ;;  %v4390_v37 = vld [vmem:[%s9997_s17] sm:$0xff] }
 0x38c   : > { %v3800_v36 = vpop.permute.xlu1 %3799 }
 0x38d   : > { %3834 = vst.msk [vmem:[#allocation3 + $0x68] sm:$0xff] %vm1980_vm9, %v3800_v36  ;;  %v3445_v5 = vpop.permute.xlu0 %3444 }
 0x38e   : > { %3480 = vst.msk [vmem:[#allocation3 + $0x60] sm:$0xff] %vm1401_vm7, %v3445_v5 }
 0x390   : > { %v3896_v61 = vpop.permute.xlu1 %3895 }
 0x391   : > { %3930 = vst.msk [vmem:[#allocation3 + $0x68] sm:$0xff] %vm2077_vm10, %v3896_v61  ;;  %v3621_v6 = vpop.permute.xlu0 %3620 }
 0x392   : > { %3656 = vst.msk [vmem:[#allocation3 + $0x60] sm:$0xff] %vm1690_vm8, %v3621_v6  ;;  %v4393_v6 = vld [vmem:[%s9997_s17 + $0x18] sm:$0xff] }
 0x394   : > { %v3000_v55 = vpop.permute.xlu1 %2999 }
 0x395   : > { %3033 = vst.msk [vmem:[#allocation3 + $0x70] sm:$0xff] %vm725_vm4, %v3000_v55  ;;  %v3798_v8 = vpop.permute.xlu0 %3797 }
 0x396   : > { %3833 = vst.msk [vmem:[#allocation3 + $0x60] sm:$0xff] %vm1980_vm9, %v3798_v8 }
 0x398   : > { %v3002_v59 = vpop.permute.xlu1 %3001 }
 0x399   : > { %3034 = vst.msk [vmem:[#allocation3 + $0x78] sm:$0xff] %vm725_vm4, %v3002_v59  ;;  %v3894_v23 = vpop.permute.xlu0 %3893 }
 0x39a   : > { %3929 = vst.msk [vmem:[#allocation3 + $0x60] sm:$0xff] %vm2077_vm10, %v3894_v23  ;;  %v4391_v23 = vld [vmem:[%s9997_s17 + $0x8] sm:$0xff] }
 0x39c   : > { %v3179_v38 = vpop.permute.xlu1 %3178 }
 0x39d   : > { %3211 = vst.msk [vmem:[#allocation3 + $0x78] sm:$0xff] %vm1015_vm5, %v3179_v38  ;;  %v4070_v50 = vpop.permute.xlu0 %4069 }
 0x39e   : > { %4105 = vst.msk [vmem:[#allocation3 + $0x60] sm:$0xff] %vm2366_vm11, %v4070_v50 }
 0x3a0   : > { %v3355_v9 = vpop.permute.xlu1 %3354 }
 0x3a1   : > { %v4072_v47 = vpop.permute.xlu0 %4071  ;;  %3387 = vst.msk [vmem:[#allocation3 + $0x78] sm:$0xff] %vm1304_vm6, %v3355_v9  ;;  %v4937_v9 = vld [vmem:[#allocation2 + $0x180] sm:$0xc0] }
 0x3a2   : > { %4106 = vst.msk [vmem:[#allocation3 + $0x68] sm:$0xff] %vm2366_vm11, %v4072_v47 }
 0x3a4   : > { %v3451_v53 = vpop.permute.xlu1 %3450 }
 0x3a5   : > { %v3177_v52 = vpop.permute.xlu0 %3176  ;;  %v4121_v34 = vld [vmem:[#allocation3 + $0x60] sm:$0xff]  ;;  %3483 = vst.msk [vmem:[#allocation3 + $0x78] sm:$0xff] %vm1401_vm7, %v3451_v53  ;;  %v5001_v53 = vrot.slane %v4937_v9, 6  ;;  %v4531_v9 = vld [vmem:[#allocation2 + $0x1b0] sm:$0xc0] }
 0x3a6   : > { %3210 = vst.msk [vmem:[#allocation3 + $0x70] sm:$0xff] %vm1015_vm5, %v3177_v52  ;;  %9491 = vmatprep.mubr.msk.bf16.mxu1 %vm2419_vm12, %v4121_v34  ;;  %v4529_v52 = vld [vmem:[#allocation2 + $0x198] sm:$0xc0]  ;;  %v4527_v34 = vld [vmem:[#allocation2 + $0x180] sm:$0xc0] }
 0x3a8   : > { %v3627_v7 = vpop.permute.xlu1 %3626 }
 0x3a9   : > { %v3353_v35 = vpop.permute.xlu0 %3352  ;;  %v4122_v11 = vld [vmem:[#allocation3 + $0x68] sm:$0xff]  ;;  %3659 = vst.msk [vmem:[#allocation3 + $0x78] sm:$0xff] %vm1690_vm8, %v3627_v7 }
 0x3aa   : > { %3386 = vst.msk [vmem:[#allocation3 + $0x70] sm:$0xff] %vm1304_vm6, %v3353_v35  ;;  %9492 = vmatmul.mubr.msk.bf16.gmra.mrb[40].mxu1 %vm2419_vm12, %v4122_v11 }
 0x3ac   : > { %v3804_v26 = vpop.permute.xlu1 %3803 }
 0x3ad   : > { %v3449_v13 = vpop.permute.xlu0 %3448  ;;  %3836 = vst.msk [vmem:[#allocation3 + $0x78] sm:$0xff] %vm1980_vm9, %v3804_v26 }
 0x3ae   : > { %3482 = vst.msk [vmem:[#allocation3 + $0x70] sm:$0xff] %vm1401_vm7, %v3449_v13  ;;  %v5210_v13 = vld [vmem:[#allocation2 + $0x190] sm:$0x3] }
 0x3b0   : > { %v3900_v14 = vpop.permute.xlu1 %3899 }
 0x3b1   : > { %v3625_v15 = vpop.permute.xlu0 %3624  ;;  %3932 = vst.msk [vmem:[#allocation3 + $0x78] sm:$0xff] %vm2077_vm10, %v3900_v14 }
 0x3b2   : > { %3658 = vst.msk [vmem:[#allocation3 + $0x70] sm:$0xff] %vm1690_vm8, %v3625_v15  ;;  %v4599_v15 = vrot.slane %v4529_v52, 6 }
 0x3b4   : > { %v4076_v19 = vpop.permute.xlu1 %4075 }
 0x3b5   : > { %v3802_v17 = vpop.permute.xlu0 %3801  ;;  %4108 = vst.msk [vmem:[#allocation3 + $0x78] sm:$0xff] %vm2366_vm11, %v4076_v19  ;;  %v4596_v19 = vrot.slane %v4527_v34, 6 }
 0x3b6   : > { %3835 = vst.msk [vmem:[#allocation3 + $0x70] sm:$0xff] %vm1980_vm9, %v3802_v17 }
 0x3b8   : > { %v4699_v63 = vpop.permute.xlu1 %4698 }
 0x3b9   : > { %v3898_v21 = vpop.permute.xlu0 %3897  ;;  %4745 = vst.msk [vmem:[#allocation3 + $0x8] sm:$0xff] %vm725_vm4, %v4699_v63 }
 0x3ba   : > { %3931 = vst.msk [vmem:[#allocation3 + $0x70] sm:$0xff] %vm2077_vm10, %v3898_v21  ;;  %v4939_v21 = vld [vmem:[#allocation2 + $0x198] sm:$0xc0] }
 0x3bb   : > { %v5004_v63 = vrot.slane %v4939_v21, 6 }
 0x3bc   : > { %v4124_v10 = vld [vmem:[#allocation3 + $0x78] sm:$0xff]  ;;  %v4876_v49 = vpop.permute.xlu1 %4875 }
 0x3bd   : > { %v4074_v30 = vpop.permute.xlu0 %4073  ;;  %4922 = vst.msk [vmem:[#allocation3 + $0x8] sm:$0xff] %vm1015_vm5, %v4876_v49  ;;  %v5212_v49 = vld [vmem:[#allocation2 + $0x1a8] sm:$0x3] }
 0x3be   : > { %4107 = vst.msk [vmem:[#allocation3 + $0x70] sm:$0xff] %vm2366_vm11, %v4074_v30  ;;  %v5277_v56 = vrot.slane %v5212_v49, 2 }
 0x3c0   : > { %v4701_v29 = vpop.permute.xlu1 %4700 }
 0x3c1   : > { %v4697_v27 = vpop.permute.xlu0 %4696  ;;  %4746 = vst.msk [vmem:[#allocation3 + $0x10] sm:$0xff] %vm725_vm4, %v4701_v29 }
 0x3c2   : > { %4744 = vst.msk [vmem:[#allocation3] sm:$0xff] %vm725_vm4, %v4697_v27 }
 0x3c4   : > { %v4703_v18 = vpop.permute.xlu1 %4702 }
 0x3c5   : > { %v4123_v22 = vld [vmem:[#allocation3 + $0x70] sm:$0xff]  ;;  %v4874_v48 = vpop.permute.xlu0 %4873  ;;  %4747 = vst.msk [vmem:[#allocation3 + $0x18] sm:$0xff] %vm725_vm4, %v4703_v18 }
 0x3c6   : > { %9495 = vmatprep.mubr.msk.bf16.mxu1 %vm2419_vm12, %v4123_v22  ;;  %4921 = vst.msk [vmem:[#allocation3] sm:$0xff] %vm1015_vm5, %v4874_v48  ;;  %v5274_v22 = vrot.slane %v5210_v13, 2 }
 0x3c7   : > { %9496 = vmatmul.mubr.msk.bf16.gmra.mrb[44].mxu1 %vm2419_vm12, %v4124_v10 }
 0x3c8   : > { %v4880_v3 = vpop.permute.xlu1 %4879 }
 0x3c9   : > { %v4878_v16 = vpop.permute.xlu0 %4877  ;;  %4924 = vst.msk [vmem:[#allocation3 + $0x18] sm:$0xff] %vm1015_vm5, %v4880_v3  ;;  %v4396_v3 = vld [vmem:[%s9997_s17 + $0x30] sm:$0xff] }
 0x3ca   : > { %4923 = vst.msk [vmem:[#allocation3 + $0x10] sm:$0xff] %vm1015_vm5, %v4878_v16  ;;  %v4841_v16 = vrot.slane %v4771_v62, 2 }
 0x3e2   : > { %v9469_v33 = vpop.f32.mrb[16].mxu1 }
 0x3e3   : > { %v4360_v58 = vmax.f32 %v9469_v33, 0.0  ;;  %v4231_v41 = vpop.f32.mrb[17].mxu1 }
 0x3e4   : > { %v4358_v4 = vmax.f32 %v4231_v41, 0.0  ;;  %v9470_v44 = vpop.f32.mrb[18].mxu1 }
 0x3e5   : > { %v4424_v60 = vadd.f32 %v4392_v43, %v4360_v58  ;;  %v4361_v36 = vmax.f32 %v9470_v44, 0.0  ;;  %v4234_v5 = vpop.f32.mrb[19].mxu1  ;;  %v4394_v43 = vld [vmem:[%s9997_s17 + $0x20] sm:$0xff] }
 0x3e6   : > { %v4422_v61 = vadd.f32 %v4390_v37, %v4358_v4  ;;  %v4359_v55 = vmax.f32 %v4234_v5, 0.0  ;;  %v4397_v37 = vld [vmem:[%s9997_s17 + $0x38] sm:$0xff] }
 0x3e7   : > { %4456 = vst.msk [vmem:[%s9997_s17 + $0x10] sm:$0xff] %vm177_vm0, %v4424_v60  ;;  %v4425_v8 = vadd.f32 %v4393_v6, %v4361_v36  ;;  %v4487_v59 = vpack.c.bf16 %v4361_v36, %v4360_v58  ;;  %v4395_v6 = vld [vmem:[%s9997_s17 + $0x28] sm:$0xff] }
 0x3e8   : > { %4454 = vst.msk [vmem:[%s9997_s17] sm:$0xff] %vm177_vm0, %v4422_v61  ;;  %v4423_v38 = vadd.f32 %v4391_v23, %v4359_v55  ;;  %v4486_v50 = vpack.c.bf16 %v4359_v55, %v4358_v4 }
 0x3e9   : > { %4457 = vst.msk [vmem:[%s9997_s17 + $0x18] sm:$0xff] %vm177_vm0, %v4425_v8  ;;  %4503 = vst.msk [vmem:[#allocation2 + $0x1a0] sm:$0xff] %vm177_vm0, %v4487_v59  ;;  %v4941_v59 = vld [vmem:[#allocation2 + $0x1b0] sm:$0xc0] }
 0x3ea   : > { %4455 = vst.msk [vmem:[%s9997_s17 + $0x8] sm:$0xff] %vm177_vm0, %v4423_v38  ;;  %4502 = vst.msk [vmem:[#allocation2 + $0x188] sm:$0xff] %vm177_vm0, %v4486_v50  ;;  %v5007_v38 = vrot.slane %v4941_v59, 6  ;;  %v4533_v50 = vld [vmem:[#allocation2 + $0x1c8] sm:$0xc0] }
 0x3f0   : > { %v5114_v47 = vld [vmem:[#allocation2 + $0x1a0] sm:$0xff] }
 0x3f1   : > { %5147 = vrot.lane.b32.xlu1 %v5114_v47, %s9668_s20  ;;  %v5113_v7 = vld [vmem:[#allocation2 + $0x188] sm:$0xff]  ;;  %v4530_v14 = vld [vmem:[#allocation2 + $0x1a0] sm:$0x3f] }
 0x3f2   : > { %v4938_v35 = vld [vmem:[#allocation2 + $0x188] sm:$0x3f]  ;;  %5145 = vrot.lane.b32.xlu0 %v5113_v7, %s9668_s20  ;;  %v4940_v24 = vld [vmem:[#allocation2 + $0x1a0] sm:$0x3f]  ;;  %v4600_v20 = vrot.slane %v4530_v14, 6 }
 0x3f3   : > { %v5002_v11 = vrot.slane %v4938_v35, 6  ;;  %v5209_v26 = vld [vmem:[#allocation2 + $0x188] sm:$0xfc]  ;;  %v5005_v40 = vrot.slane %v4940_v24, 6  ;;  %v5211_v48 = vld [vmem:[#allocation2 + $0x1a0] sm:$0xfc] }
 0x3f4   : > { %v4528_v30 = vld [vmem:[#allocation2 + $0x188] sm:$0x3f]  ;;  %v5273_v10 = vrot.slane %v5209_v26, 2  ;;  %v4601_v39 = vsel %vm2468_vm3, %v4599_v15, %v4600_v20  ;;  %v5276_v51 = vrot.slane %v5211_v48, 2  ;;  %v4770_v29 = vld [vmem:[#allocation2 + $0x1a0] sm:$0xfc] }
 0x3f5   : > { %v5003_v17 = vsel %vm2468_vm3, %v5001_v53, %v5002_v11  ;;  %4706 = vrot.lane.b32.xlu1 %v5114_v47, %s9666_s18  ;;  %v4597_v27 = vrot.slane %v4528_v30, 6  ;;  %v4768_v12 = vld [vmem:[#allocation2 + $0x188] sm:$0xfc]  ;;  %4653 = vst.msk [vmem:[#allocation3 + $0x28] sm:$0xff] %vm177_vm0, %v4601_v39  ;;  %v5006_v28 = vsel %vm2468_vm3, %v5004_v63, %v5005_v40  ;;  %v4840_v45 = vrot.slane %v4770_v29, 2 }
 0x3f6   : > { %5049 = vrot.lane.b32.xlu0 %v5003_v17, %s9670_s22  ;;  %v5275_v42 = vsel %vm4824_vm15, %v5273_v10, %v5274_v22  ;;  %v4837_v2 = vrot.slane %v4768_v12, 2  ;;  %v5278_v0 = vsel %vm4824_vm15, %v5276_v51, %v5277_v56  ;;  %v4605_v11 = vrot.slane %v4533_v50, 6  ;;  %v4943_v14 = vld [vmem:[#allocation2 + $0x1c8] sm:$0xc0]  ;;  %v4773_v24 = vld [vmem:[#allocation2 + $0x1c0] sm:$0x3] }
 0x3f7   : > { %v4598_v32 = vsel %vm2468_vm3, %v4596_v19, %v4597_v27  ;;  %v4842_v1 = vsel %vm4824_vm15, %v4840_v45, %v4841_v16  ;;  %v4602_v26 = vrot.slane %v4531_v9, 6  ;;  %v5010_v12 = vrot.slane %v4943_v14, 6  ;;  %v4775_v51 = vld [vmem:[#allocation2 + $0x1d8] sm:$0x3]  ;;  %v4400_v16 = vld [vmem:[%s9997_s17 + $0x50] sm:$0xff]  ;;  %v4402_v50 = vld [vmem:[%s9997_s17 + $0x60] sm:$0xff] }
 0x3f8   : > { %4652 = vst.msk [vmem:[#allocation3 + $0x20] sm:$0xff] %vm177_vm0, %v4598_v32  ;;  %v4839_v57 = vsel %vm4824_vm15, %v4837_v2, %v4838_v46  ;;  %v4844_v63 = vrot.slane %v4773_v24, 2  ;;  %v4847_v29 = vrot.slane %v4775_v51, 2 }
 0x3f9   : > { %4704 = vrot.lane.b32.xlu1 %v5113_v7, %s9666_s18  ;;  %v5214_v7 = vld [vmem:[#allocation2 + $0x1c0] sm:$0x3] }
 0x3fa   : > { %5321 = vrot.lane.b32.xlu0 %v5275_v42, %s9671_s23  ;;  %v5280_v17 = vrot.slane %v5214_v7, 2  ;;  %v5216_v42 = vld [vmem:[#allocation2 + $0x1d8] sm:$0x3] }
 0x3fb   : > { %v5283_v48 = vrot.slane %v5216_v42, 2 }
 0x3fd   : > { %5051 = vrot.lane.b32.xlu1 %v5006_v28, %s9670_s22 }
 0x3fe   : > { %4881 = vrot.lane.b32.xlu0 %v4839_v57, %s9667_s19 }
 0x401   : > { %5323 = vrot.lane.b32.xlu1 %v5278_v0, %s9671_s23 }
 0x405   : > { %4883 = vrot.lane.b32.xlu1 %v4842_v1, %s9667_s19 }
 0x406   : > { %v9473_v25 = vpop.f32.mrb[20].mxu1 }
 0x407   : > { %v4364_v54 = vmax.f32 %v9473_v25, 0.0  ;;  %v4247_v18 = vpop.f32.mrb[21].mxu1 }
 0x408   : > { %v4362_v33 = vmax.f32 %v4247_v18, 0.0  ;;  %v9474_v58 = vpop.f32.mrb[22].mxu1 }
 0x409   : > { %v4428_v41 = vadd.f32 %v4396_v3, %v4364_v54  ;;  %v4365_v4 = vmax.f32 %v9474_v58, 0.0  ;;  %v4250_v44 = vpop.f32.mrb[23].mxu1  ;;  %v4398_v3 = vld [vmem:[%s9997_s17 + $0x40] sm:$0xff] }
 0x40a   : > { %v4426_v60 = vadd.f32 %v4394_v43, %v4362_v33  ;;  %v4363_v36 = vmax.f32 %v4250_v44, 0.0  ;;  %v4401_v43 = vld [vmem:[%s9997_s17 + $0x58] sm:$0xff] }
 0x40b   : > { %4460 = vst.msk [vmem:[%s9997_s17 + $0x30] sm:$0xff] %vm177_vm0, %v4428_v41  ;;  %v4429_v5 = vadd.f32 %v4397_v37, %v4365_v4  ;;  %v4489_v61 = vpack.c.bf16 %v4365_v4, %v4364_v54  ;;  %v4399_v37 = vld [vmem:[%s9997_s17 + $0x48] sm:$0xff] }
 0x40c   : > { %4458 = vst.msk [vmem:[%s9997_s17 + $0x20] sm:$0xff] %vm177_vm0, %v4426_v60  ;;  %v4427_v55 = vadd.f32 %v4395_v6, %v4363_v36  ;;  %v4488_v8 = vpack.c.bf16 %v4363_v36, %v4362_v33 }
 0x40d   : > { %4461 = vst.msk [vmem:[%s9997_s17 + $0x38] sm:$0xff] %vm177_vm0, %v4429_v5  ;;  %4505 = vst.msk [vmem:[#allocation2 + $0x1d0] sm:$0xff] %vm177_vm0, %v4489_v61 }
 0x40e   : > { %4459 = vst.msk [vmem:[%s9997_s17 + $0x28] sm:$0xff] %vm177_vm0, %v4427_v55  ;;  %4504 = vst.msk [vmem:[#allocation2 + $0x1b8] sm:$0xff] %vm177_vm0, %v4488_v8  ;;  %v4404_v8 = vld [vmem:[%s9997_s17 + $0x70] sm:$0xff] }
 0x414   : > { %v5116_v23 = vld [vmem:[#allocation2 + $0x1d0] sm:$0xff] }
 0x415   : > { %5151 = vrot.lane.b32.xlu1 %v5116_v23, %s9668_s20  ;;  %v5115_v47 = vld [vmem:[#allocation2 + $0x1b8] sm:$0xff]  ;;  %v4534_v35 = vld [vmem:[#allocation2 + $0x1d0] sm:$0x3f] }
 0x416   : > { %v4942_v53 = vld [vmem:[#allocation2 + $0x1b8] sm:$0x3f]  ;;  %5149 = vrot.lane.b32.xlu0 %v5115_v47, %s9668_s20  ;;  %v4944_v21 = vld [vmem:[#allocation2 + $0x1d0] sm:$0x3f]  ;;  %v4606_v30 = vrot.slane %v4534_v35, 6  ;;  %v4403_v35 = vld [vmem:[%s9997_s17 + $0x68] sm:$0xff] }
 0x417   : > { %v5008_v52 = vrot.slane %v4942_v53, 6  ;;  %v5213_v34 = vld [vmem:[#allocation2 + $0x1b8] sm:$0xfc]  ;;  %v5011_v31 = vrot.slane %v4944_v21, 6  ;;  %v5215_v40 = vld [vmem:[#allocation2 + $0x1d0] sm:$0xfc] }
 0x418   : > { %v4532_v15 = vld [vmem:[#allocation2 + $0x1b8] sm:$0x3f]  ;;  %v5279_v19 = vrot.slane %v5213_v34, 2  ;;  %v4607_v20 = vsel %vm2468_vm3, %v4605_v11, %v4606_v30  ;;  %v5282_v46 = vrot.slane %v5215_v40, 2  ;;  %v4774_v28 = vld [vmem:[#allocation2 + $0x1d0] sm:$0xfc] }
 0x419   : > { %v5009_v13 = vsel %vm2468_vm3, %v5007_v38, %v5008_v52  ;;  %4710 = vrot.lane.b32.xlu1 %v5116_v23, %s9666_s18  ;;  %v4603_v10 = vrot.slane %v4532_v15, 6  ;;  %v4772_v22 = vld [vmem:[#allocation2 + $0x1b8] sm:$0xfc]  ;;  %4655 = vst.msk [vmem:[#allocation3 + $0x38] sm:$0xff] %vm177_vm0, %v4607_v20  ;;  %v5012_v2 = vsel %vm2468_vm3, %v5010_v12, %v5011_v31  ;;  %v4846_v57 = vrot.slane %v4774_v28, 2  ;;  %v4408_v28 = vld [vmem:[%s9997_s17 + $0x90] sm:$0xff] }
 0x41a   : > { %5053 = vrot.lane.b32.xlu0 %v5009_v13, %s9670_s22  ;;  %v5281_v39 = vsel %vm4824_vm15, %v5279_v19, %v5280_v17  ;;  %v4843_v32 = vrot.slane %v4772_v22, 2  ;;  %v5284_v56 = vsel %vm4824_vm15, %v5282_v46, %v5283_v48  ;;  %v4537_v19 = vld [vmem:[#allocation2 + $0x1f8] sm:$0xc0]  ;;  %v9648_v17 = vld [vmem:[%s13225_s1 + $0x28] sm:$0xff]   ;;  %v5386_v20 = vld [vmem:[#allocation2 + $0x1e0] sm:$0xc0] }
 0x41b   : > { %v4604_v27 = vsel %vm2468_vm3, %v4602_v26, %v4603_v10  ;;  %v4848_v54 = vsel %vm4824_vm15, %v4846_v57, %v4847_v29  ;;  %v5661_v26 = vld [vmem:[#allocation2 + $0x208] sm:$0x3]  ;;  %v4535_v10 = vld [vmem:[#allocation2 + $0x1e0] sm:$0xc0]  ;;  %9499 = vmatprep.subr.bf16.mxu0 %v9648_v17  ;;  %v5450_v42 = vrot.slane %v5386_v20, 6 }
 0x41c   : > { %4654 = vst.msk [vmem:[#allocation3 + $0x30] sm:$0xff] %vm177_vm0, %v4604_v27  ;;  %v4845_v49 = vsel %vm4824_vm15, %v4843_v32, %v4844_v63  ;;  %v5726_v24 = vrot.slane %v5661_v26, 2  ;;  %v4611_v27 = vrot.slane %v4537_v19, 6  ;;  %9500 = vmatpush3.bf16.msra.mxu0 %v9648_v17  ;;  %v9649_v32 = vld [vmem:[%s13225_s1 + $0x30] sm:$0xff]  }
 0x41d   : > { %4708 = vrot.lane.b32.xlu1 %v5115_v47, %s9666_s18  ;;  %v4405_v47 = vld [vmem:[%s9997_s17 + $0x78] sm:$0xff]  ;;  %v11567_v46 = vld [vmem:[#allocation2 + $0x1f0] sm:$0x3]  ;;  %9501 = vmatprep.subr.bf16.mxu0 %v9649_v32 }
 0x41e   : > { %5325 = vrot.lane.b32.xlu0 %v5281_v39, %s9671_s23  ;;  %v4608_v39 = vrot.slane %v4535_v10, 6  ;;  %v5218_v26 = vld [vmem:[#allocation2 + $0x1f0] sm:$0x3]  ;;  %v11604_v10 = vpop.permute.xlu0 %5522 }
 0x420   : > { %9502 = vmatpush3.bf16.msra.mxu0 %v9649_v32  ;;  %v5286_v32 = vrot.slane %v5218_v26, 2 }
 0x421   : > { %5055 = vrot.lane.b32.xlu1 %v5012_v2, %s9670_s22  ;;  %v5388_v2 = vld [vmem:[#allocation2 + $0x1f8] sm:$0xc0] }
 0x422   : > { %4885 = vrot.lane.b32.xlu0 %v4845_v49, %s9667_s19 }
 0x425   : > { %5327 = vrot.lane.b32.xlu1 %v5284_v56, %s9671_s23 }
 0x427   : > { %v9477_v62 = vpop.f32.mrb[24].mxu1 }
 0x428   : > { %v4368_v0 = vmax.f32 %v9477_v62, 0.0  ;;  %v4263_v45 = vpop.f32.mrb[25].mxu1 }
 0x429   : > { %v4366_v1 = vmax.f32 %v4263_v45, 0.0  ;;  %v9478_v25 = vpop.f32.mrb[26].mxu1  ;;  %4887 = vrot.lane.b32.xlu1 %v4848_v54, %s9667_s19 }
 0x42a   : > { %v4432_v18 = vadd.f32 %v4400_v16, %v4368_v0  ;;  %v4369_v33 = vmax.f32 %v9478_v25, 0.0  ;;  %v4266_v58 = vpop.f32.mrb[27].mxu1  ;;  %v4406_v16 = vld [vmem:[%s9997_s17 + $0x80] sm:$0xff]  ;;  %v9650_v25 = vld [vmem:[%s13225_s1 + $0x38] ss:$0 sps:$4 sm:$0x33]  }
 0x42b   : > { %v4430_v41 = vadd.f32 %v4398_v3, %v4366_v1  ;;  %v4367_v4 = vmax.f32 %v4266_v58, 0.0  ;;  %v4409_v3 = vld [vmem:[%s9997_s17 + $0x98] sm:$0xff]  ;;  %9622 = vmatprep.subr.msk.bf16.mxu0 %vm2468_vm3, %v9650_v25  ;;  %v5920_v17 = vsel %vm2468_vm3, %v9650_v25, 0 }
 0x42c   : > { %4464 = vst.msk [vmem:[%s9997_s17 + $0x50] sm:$0xff] %vm177_vm0, %v4432_v18  ;;  %v4433_v44 = vadd.f32 %v4401_v43, %v4369_v33  ;;  %v4491_v60 = vpack.c.bf16 %v4369_v33, %v4368_v0  ;;  %v5453_v33 = vrot.slane %v5388_v2, 6  ;;  %v4947_v58 = vld [vmem:[#allocation2 + $0x1f8] sm:$0xc0]  ;;  %9504 = vmatpush3.bf16.msra.mxu0 %v5920_v17  ;;  %v4779_v2 = vld [vmem:[#allocation2 + $0x208] sm:$0x3] }
 0x42d   : > { %4462 = vst.msk [vmem:[%s9997_s17 + $0x40] sm:$0xff] %vm177_vm0, %v4430_v41  ;;  %v4431_v36 = vadd.f32 %v4399_v37, %v4367_v4  ;;  %v4490_v5 = vpack.c.bf16 %v4367_v4, %v4366_v1  ;;  %v4945_v37 = vld [vmem:[#allocation2 + $0x1e0] sm:$0xc0] }
 0x42e   : > { %4465 = vst.msk [vmem:[%s9997_s17 + $0x58] sm:$0xff] %vm177_vm0, %v4433_v44  ;;  %4507 = vst.msk [vmem:[#allocation2 + $0x200] sm:$0xff] %vm177_vm0, %v4491_v60  ;;  %v5723_v60 = vrot.slane %v11567_v46, 2 }
 0x42f   : > { %4463 = vst.msk [vmem:[%s9997_s17 + $0x48] sm:$0xff] %vm177_vm0, %v4431_v36  ;;  %4506 = vst.msk [vmem:[#allocation2 + $0x1e8] sm:$0xff] %vm177_vm0, %v4490_v5 }
 0x433   : > { %v9481_v61 = vpop.f32.mrb[28].mxu1 }
 0x434   : > { %v4372_v6 = vmax.f32 %v9481_v61, 0.0  ;;  %v4279_v55 = vpop.f32.mrb[29].mxu1 }
 0x435   : > { %v4370_v59 = vmax.f32 %v4279_v55, 0.0  ;;  %v9482_v23 = vpop.f32.mrb[30].mxu1  ;;  %v5563_v52 = vld [vmem:[#allocation2 + $0x200] sm:$0xff] }
 0x436   : > { %v4436_v38 = vadd.f32 %v4404_v8, %v4372_v6  ;;  %v4373_v9 = vmax.f32 %v9482_v23, 0.0  ;;  %v4282_v53 = vpop.f32.mrb[31].mxu1  ;;  %5596 = vrot.lane.b32.xlu1 %v5563_v52, %s9669_s21  ;;  %v11544_v11 = vld [vmem:[#allocation2 + $0x1e8] sm:$0xff]  ;;  %v5660_v15 = vld [vmem:[#allocation2 + $0x200] sm:$0xfc] }
 0x437   : > { %v4434_v34 = vadd.f32 %v4402_v50, %v4370_v59  ;;  %v4371_v7 = vmax.f32 %v4282_v53, 0.0  ;;  %5594 = vrot.lane.b32.xlu0 %v11544_v11, %s9669_s21  ;;  %v5725_v22 = vrot.slane %v5660_v15, 2  ;;  %v5387_v12 = vld [vmem:[#allocation2 + $0x1e8] sm:$0x3f]  ;;  %v4538_v31 = vld [vmem:[#allocation2 + $0x200] sm:$0x3f] }
 0x438   : > { %4468 = vst.msk [vmem:[%s9997_s17 + $0x70] sm:$0xff] %vm177_vm0, %v4436_v38  ;;  %v4437_v13 = vadd.f32 %v4405_v47, %v4373_v9  ;;  %v4493_v14 = vpack.c.bf16 %v4373_v9, %v4372_v6  ;;  %v4612_v63 = vrot.slane %v4538_v31, 6  ;;  %v4536_v40 = vld [vmem:[#allocation2 + $0x1e8] sm:$0x3f]  ;;  %v5451_v56 = vrot.slane %v5387_v12, 6 }
 0x439   : > { %4466 = vst.msk [vmem:[%s9997_s17 + $0x60] sm:$0xff] %vm177_vm0, %v4434_v34  ;;  %v4435_v21 = vadd.f32 %v4403_v35, %v4371_v7  ;;  %v4492_v30 = vpack.c.bf16 %v4371_v7, %v4370_v59  ;;  %v4609_v48 = vrot.slane %v4536_v40, 6  ;;  %v5727_v51 = vsel %vm4824_vm15, %v5725_v22, %v5726_v24  ;;  %v5389_v57 = vld [vmem:[#allocation2 + $0x200] sm:$0x3f]  ;;  %v5658_v29 = vld [vmem:[#allocation2 + $0x1e8] sm:$0xfc] }
 0x43a   : > { %4469 = vst.msk [vmem:[%s9997_s17 + $0x78] sm:$0xff] %vm177_vm0, %v4437_v13  ;;  %4509 = vst.msk [vmem:[#allocation2 + $0x230] sm:$0xff] %vm177_vm0, %v4493_v14  ;;  %5155 = vrot.lane.b32.xlu1 %v5563_v52, %s9668_s20  ;;  %v4613_v62 = vsel %vm2468_vm3, %v4611_v27, %v4612_v63  ;;  %v5454_v44 = vrot.slane %v5389_v57, 6  ;;  %v5452_v61 = vsel %vm2468_vm3, %v5450_v42, %v5451_v56  ;;  %v5722_v6 = vrot.slane %v5658_v29, 2  ;;  %v4948_v55 = vld [vmem:[#allocation2 + $0x200] sm:$0x3f]  ;;  %v11615_v29 = vpop.permute.xlu0 %5618 }
 0x43b   : > { %4467 = vst.msk [vmem:[%s9997_s17 + $0x68] sm:$0xff] %vm177_vm0, %v4435_v21  ;;  %4508 = vst.msk [vmem:[#allocation2 + $0x218] sm:$0xff] %vm177_vm0, %v4492_v30  ;;  %5153 = vrot.lane.b32.xlu0 %v11544_v11, %s9668_s20  ;;  %v4610_v1 = vsel %vm2468_vm3, %v4608_v39, %v4609_v48  ;;  %v4541_v8 = vld [vmem:[#allocation2 + $0x228] sm:$0xc0]  ;;  %v4946_v50 = vld [vmem:[#allocation2 + $0x1e8] sm:$0x3f] }
 0x43c   : > { %4657 = vst.msk [vmem:[#allocation3 + $0x48] sm:$0xff] %vm177_vm0, %v4613_v62  ;;  %4656 = vst.msk [vmem:[#allocation3 + $0x40] sm:$0xff] %vm177_vm0, %v4610_v1  ;;  %v4407_v38 = vld [vmem:[%s9997_s17 + $0x88] sm:$0xff]  ;;  %v4539_v9 = vld [vmem:[#allocation2 + $0x210] sm:$0xc0]  ;;  %v5013_v34 = vrot.slane %v4945_v37, 6  ;;  %v5455_v7 = vsel %vm2468_vm3, %v5453_v33, %v5454_v44  ;;  %v5724_v14 = vsel %vm4824_vm15, %v5722_v6, %v5723_v60  ;;  %v11632_v6 = vpop.permute.xlu1 %5524 }
 0x43d   : > { %v5017_v35 = vrot.slane %v4948_v55, 6  ;;  %v4617_v13 = vrot.slane %v4541_v8, 6  ;;  %v5014_v15 = vrot.slane %v4946_v50, 6  ;;  %v5219_v19 = vld [vmem:[#allocation2 + $0x200] sm:$0xfc]  ;;  %v4614_v21 = vrot.slane %v4539_v9, 6 }
 0x43e   : > { %4714 = vrot.lane.b32.xlu1 %v5563_v52, %s9666_s18  ;;  %v9485_v49 = vpop.f32.mrb[32].mxu1  ;;  %v5016_v52 = vrot.slane %v4947_v58, 6  ;;  %v5217_v30 = vld [vmem:[#allocation2 + $0x1e8] sm:$0xfc]  ;;  %v5288_v31 = vrot.slane %v5219_v19, 2  ;;  %v4853_v57 = vrot.slane %v4779_v2, 2 }
 0x43f   : > { %v4376_v0 = vmax.f32 %v9485_v49, 0.0  ;;  %5772 = vrot.lane.b32.xlu0 %v5727_v51, %s9673_s27  ;;  %v4295_v45 = vpop.f32.mrb[33].mxu1  ;;  %v5015_v63 = vsel %vm2468_vm3, %v5013_v34, %v5014_v15  ;;  %v5285_v40 = vrot.slane %v5217_v30, 2  ;;  %v4778_v42 = vld [vmem:[#allocation2 + $0x200] sm:$0xfc]  ;;  %v4412_v15 = vld [vmem:[%s9997_s17 + $0xb0] sm:$0xff] }
 0x440   : > { %v4374_v54 = vmax.f32 %v4295_v45, 0.0  ;;  %v9486_v18 = vpop.f32.mrb[34].mxu1  ;;  %v5018_v12 = vsel %vm2468_vm3, %v5016_v52, %v5017_v35  ;;  %v4776_v49 = vld [vmem:[#allocation2 + $0x1e8] sm:$0xfc]  ;;  %v4852_v56 = vrot.slane %v4778_v42, 2  ;;  %v11640_v52 = vpop.permute.xlu1 %5620 }
 0x441   : > { %v4440_v41 = vadd.f32 %v4408_v28, %v4376_v0  ;;  %v4377_v43 = vmax.f32 %v9486_v18, 0.0  ;;  %v4298_v4 = vpop.f32.mrb[35].mxu1  ;;  %v4542_v22 = vld [vmem:[#allocation2 + $0x230] sm:$0x3f]  ;;  %v5287_v62 = vsel %vm4824_vm15, %v5285_v40, %v5286_v32  ;;  %v4543_v1 = vld [vmem:[#allocation2 + $0x240] sm:$0xc0] }
 0x442   : > { %v4438_v36 = vadd.f32 %v4406_v16, %v4374_v54  ;;  %v4375_v5 = vmax.f32 %v4298_v4, 0.0  ;;  %4712 = vrot.lane.b32.xlu1 %v11544_v11, %s9666_s18  ;;  %v5220_v11 = vld [vmem:[#allocation2 + $0x208] sm:$0x3]  ;;  %v4540_v24 = vld [vmem:[#allocation2 + $0x218] sm:$0x3f]  ;;  %v4618_v20 = vrot.slane %v4542_v22, 6  ;;  %v4854_v25 = vsel %vm4824_vm15, %v4852_v56, %v4853_v57 }
 0x443   : > { %4472 = vst.msk [vmem:[%s9997_s17 + $0x90] sm:$0xff] %vm177_vm0, %v4440_v41  ;;  %v4441_v59 = vadd.f32 %v4409_v3, %v4377_v43  ;;  %v4495_v23 = vpack.c.bf16 %v4377_v43, %v4376_v0  ;;  %5498 = vrot.lane.b32.xlu0 %v5452_v61, %s9672_s26  ;;  %v4615_v27 = vrot.slane %v4540_v24, 6  ;;  %v5289_v39 = vrot.slane %v5220_v11, 2  ;;  %v4777_v28 = vld [vmem:[#allocation2 + $0x1f0] sm:$0x3]  ;;  %v11624_v41 = vpop.permute.xlu0 %5794  ;;  %v4410_v22 = vld [vmem:[%s9997_s17 + $0xa0] sm:$0xff] }
 0x444   : > { %4470 = vst.msk [vmem:[%s9997_s17 + $0x80] sm:$0xff] %vm177_vm0, %v4438_v36  ;;  %v4439_v47 = vadd.f32 %v4407_v38, %v4375_v5  ;;  %v4494_v53 = vpack.c.bf16 %v4375_v5, %v4374_v54  ;;  %v4619_v46 = vsel %vm2468_vm3, %v4617_v13, %v4618_v20  ;;  %v4849_v0 = vrot.slane %v4776_v49, 2  ;;  %v4545_v16 = vld [vmem:[#allocation2 + $0x258] sm:$0xc0]  ;;  %v5565_v44 = vld [vmem:[#allocation2 + $0x230] sm:$0xff]  ;;  %v4411_v49 = vld [vmem:[%s9997_s17 + $0xa8] sm:$0xff] }
 0x445   : > { %4473 = vst.msk [vmem:[%s9997_s17 + $0x98] sm:$0xff] %vm177_vm0, %v4441_v59  ;;  %4511 = vst.msk [vmem:[#allocation2 + $0x260] sm:$0xff] %vm177_vm0, %v4495_v23  ;;  %v4616_v48 = vsel %vm2468_vm3, %v4614_v21, %v4615_v27  ;;  %v5290_v51 = vsel %vm4824_vm15, %v5288_v31, %v5289_v39  ;;  %v4850_v45 = vrot.slane %v4777_v28, 2  ;;  %v4623_v54 = vrot.slane %v4545_v16, 6  ;;  %v5564_v36 = vld [vmem:[#allocation2 + $0x218] sm:$0xff] }
 0x446   : > { %4471 = vst.msk [vmem:[%s9997_s17 + $0x88] sm:$0xff] %vm177_vm0, %v4439_v47  ;;  %4510 = vst.msk [vmem:[#allocation2 + $0x248] sm:$0xff] %vm177_vm0, %v4494_v53  ;;  %5500 = vrot.lane.b32.xlu1 %v5455_v7, %s9672_s26  ;;  %v4620_v18 = vrot.slane %v4543_v1, 6  ;;  %v5664_v5 = vld [vmem:[#allocation2 + $0x230] sm:$0xfc]  ;;  %v4413_v20 = vld [vmem:[%s9997_s17 + $0xb8] sm:$0xff] }
 0x447   : > { %5770 = vrot.lane.b32.xlu0 %v5724_v14, %s9673_s27  ;;  %4659 = vst.msk [vmem:[#allocation3 + $0x58] sm:$0xff] %vm177_vm0, %v4619_v46  ;;  %4658 = vst.msk [vmem:[#allocation3 + $0x50] sm:$0xff] %vm177_vm0, %v4616_v48  ;;  %v4851_v3 = vsel %vm4824_vm15, %v4849_v0, %v4850_v45  ;;  %v5665_v61 = vld [vmem:[#allocation2 + $0x238] sm:$0x3]  ;;  %v11634_v55 = vpop.permute.xlu0 %5796  ;;  %v5731_v8 = vrot.slane %v5664_v5, 2 }
 0x448   : > { %v5732_v59 = vrot.slane %v5665_v61, 2  ;;  %v5390_v23 = vld [vmem:[#allocation2 + $0x210] sm:$0xc0]  ;;  %v5391_v38 = vld [vmem:[#allocation2 + $0x218] sm:$0x3f] }
 0x449   : > { %v5456_v50 = vrot.slane %v5390_v23, 6  ;;  %v5392_v9 = vld [vmem:[#allocation2 + $0x228] sm:$0xc0]  ;;  %v5457_v34 = vrot.slane %v5391_v38, 6  ;;  %v5393_v7 = vld [vmem:[#allocation2 + $0x230] sm:$0x3f] }
 0x44a   : > { %5059 = vrot.lane.b32.xlu1 %v5018_v12, %s9670_s22  ;;  %v5733_v53 = vsel %vm4824_vm15, %v5731_v8, %v5732_v59  ;;  %v5663_v35 = vld [vmem:[#allocation2 + $0x220] sm:$0x3]  ;;  %v5662_v14 = vld [vmem:[#allocation2 + $0x218] sm:$0xfc]  ;;  %v5459_v21 = vrot.slane %v5392_v9, 6  ;;  %v5460_v12 = vrot.slane %v5393_v7, 6 }
 0x44b   : > { %5057 = vrot.lane.b32.xlu0 %v5015_v63, %s9670_s22  ;;  %v11643_v13 = vpop.permute.xlu0 %5526  ;;  %v5729_v31 = vrot.slane %v5663_v35, 2  ;;  %v5458_v63 = vsel %vm2468_vm3, %v5456_v50, %v5457_v34  ;;  %v5728_v40 = vrot.slane %v5662_v14, 2  ;;  %v4951_v42 = vld [vmem:[#allocation2 + $0x228] sm:$0xc0]  ;;  %v4952_v2 = vld [vmem:[#allocation2 + $0x230] sm:$0x3f] }
 0x44c   : > { %v4546_v33 = vld [vmem:[#allocation2 + $0x260] sm:$0x3f]  ;;  %v4949_v28 = vld [vmem:[#allocation2 + $0x210] sm:$0xc0]  ;;  %v5461_v45 = vsel %vm2468_vm3, %v5459_v21, %v5460_v12  ;;  %v5022_v16 = vrot.slane %v4951_v42, 6  ;;  %v5023_v1 = vrot.slane %v4952_v2, 6 }
 0x44d   : > { %v4544_v58 = vld [vmem:[#allocation2 + $0x248] sm:$0x3f]  ;;  %v4624_v43 = vrot.slane %v4546_v33, 6  ;;  %v5224_v33 = vld [vmem:[#allocation2 + $0x238] sm:$0x3] }
 0x44e   : > { %5331 = vrot.lane.b32.xlu1 %v5290_v51, %s9671_s23  ;;  %v4621_v4 = vrot.slane %v4544_v58, 6  ;;  %v4950_v51 = vld [vmem:[#allocation2 + $0x218] sm:$0x3f]  ;;  %v4782_v59 = vld [vmem:[#allocation2 + $0x230] sm:$0xfc] }
 0x44f   : > { %5329 = vrot.lane.b32.xlu0 %v5287_v62, %s9671_s23  ;;  %v4625_v60 = vsel %vm2468_vm3, %v4623_v54, %v4624_v43  ;;  %v5019_v54 = vrot.slane %v4949_v28, 6  ;;  %v5221_v58 = vld [vmem:[#allocation2 + $0x218] sm:$0xfc]  ;;  %v5222_v43 = vld [vmem:[#allocation2 + $0x220] sm:$0x3]  ;;  %v4858_v34 = vrot.slane %v4782_v59, 2 }
 0x450   : > { %v4622_v37 = vsel %vm2468_vm3, %v4620_v18, %v4621_v4  ;;  %4661 = vst.msk [vmem:[#allocation3 + $0x68] sm:$0xff] %vm177_vm0, %v4625_v60  ;;  %v5020_v18 = vrot.slane %v4950_v51, 6  ;;  %v5024_v60 = vsel %vm2468_vm3, %v5022_v16, %v5023_v1  ;;  %v5291_v61 = vrot.slane %v5221_v58, 2  ;;  %v4783_v23 = vld [vmem:[#allocation2 + $0x238] sm:$0x3] }
 0x451   : > { %4660 = vst.msk [vmem:[#allocation3 + $0x60] sm:$0xff] %vm177_vm0, %v4622_v37  ;;  %v5292_v8 = vrot.slane %v5222_v43, 2  ;;  %v4780_v38 = vld [vmem:[#allocation2 + $0x218] sm:$0xfc]  ;;  %v4781_v50 = vld [vmem:[#allocation2 + $0x220] sm:$0x3] }
 0x452   : > { %4891 = vrot.lane.b32.xlu1 %v4854_v25, %s9667_s19  ;;  %v5730_v25 = vsel %vm4824_vm15, %v5728_v40, %v5729_v31  ;;  %v5021_v5 = vsel %vm2468_vm3, %v5019_v54, %v5020_v18  ;;  %v4859_v7 = vrot.slane %v4783_v23, 2  ;;  %v4549_v14 = vld [vmem:[#allocation2 + $0x288] sm:$0xc0]  ;;  %v5668_v2 = vld [vmem:[#allocation2 + $0x260] sm:$0xfc] }
 0x453   : > { %4889 = vrot.lane.b32.xlu0 %v4851_v3, %s9667_s19  ;;  %v5223_v3 = vld [vmem:[#allocation2 + $0x230] sm:$0xfc]  ;;  %v5293_v35 = vsel %vm4824_vm15, %v5291_v61, %v5292_v8  ;;  %v5394_v51 = vld [vmem:[#allocation2 + $0x240] sm:$0xc0]  ;;  %v5397_v1 = vld [vmem:[#allocation2 + $0x260] sm:$0x3f] }
 0x454   : > { %v5294_v37 = vrot.slane %v5223_v3, 2  ;;  %v4860_v21 = vsel %vm4824_vm15, %v4858_v34, %v4859_v7  ;;  %v5666_v3 = vld [vmem:[#allocation2 + $0x248] sm:$0xfc]  ;;  %v5466_v61 = vrot.slane %v5397_v1, 6 }
 0x455   : > { %v4415_v7 = vld [vmem:[%s9997_s17 + $0xc8] sm:$0xff] }
 0x456   : > { %5600 = vrot.lane.b32.xlu1 %v5565_v44, %s9669_s21 }
 0x457   : > { %5598 = vrot.lane.b32.xlu0 %v5564_v36, %s9669_s21 }
 0x45a   : > { %5159 = vrot.lane.b32.xlu1 %v5565_v44, %s9668_s20 }
 0x45b   : > { %5157 = vrot.lane.b32.xlu0 %v5564_v36, %s9668_s20 }
 0x45d   : > { %v9489_v47 = vpop.f32.mrb[36].mxu1 }
 0x45e   : > { %4718 = vrot.lane.b32.xlu1 %v5565_v44, %s9666_s18  ;;  %v4380_v11 = vmax.f32 %v9489_v47, 0.0  ;;  %v4311_v26 = vpop.f32.mrb[37].mxu1 }
 0x45f   : > { %5776 = vrot.lane.b32.xlu0 %v5733_v53, %s9673_s27  ;;  %v4378_v19 = vmax.f32 %v4311_v26, 0.0  ;;  %v9490_v17 = vpop.f32.mrb[38].mxu1  ;;  %v4856_v26 = vrot.slane %v4781_v50, 2  ;;  %v5734_v50 = vrot.slane %v5666_v3, 2 }
 0x460   : > { %v4444_v30 = vadd.f32 %v4412_v15, %v4380_v11  ;;  %v4381_v24 = vmax.f32 %v9490_v17, 0.0  ;;  %v4314_v27 = vpop.f32.mrb[39].mxu1  ;;  %v4547_v15 = vld [vmem:[#allocation2 + $0x270] sm:$0xc0] }
 0x461   : > { %v4442_v39 = vadd.f32 %v4410_v22, %v4378_v19  ;;  %v4379_v32 = vmax.f32 %v4314_v27, 0.0  ;;  %v4629_v22 = vrot.slane %v4549_v14, 6 }
 0x462   : > { %4716 = vrot.lane.b32.xlu1 %v5564_v36, %s9666_s18  ;;  %4476 = vst.msk [vmem:[%s9997_s17 + $0xb0] sm:$0xff] %vm177_vm0, %v4444_v30  ;;  %v4445_v46 = vadd.f32 %v4413_v20, %v4381_v24  ;;  %v4497_v48 = vpack.c.bf16 %v4381_v24, %v4380_v11  ;;  %v5295_v36 = vrot.slane %v5224_v33, 2  ;;  %v4855_v11 = vrot.slane %v4780_v38, 2  ;;  %v4416_v33 = vld [vmem:[%s9997_s17 + $0xd0] sm:$0xff] }
 0x463   : > { %5502 = vrot.lane.b32.xlu0 %v5458_v63, %s9672_s26  ;;  %4474 = vst.msk [vmem:[%s9997_s17 + $0xa0] sm:$0xff] %vm177_vm0, %v4442_v39  ;;  %v4443_v56 = vadd.f32 %v4411_v49, %v4379_v32  ;;  %v4496_v57 = vpack.c.bf16 %v4379_v32, %v4378_v19  ;;  %v5148_v62 = vpop.permute.xlu1 %5147  ;;  %v4626_v24 = vrot.slane %v4547_v15, 6  ;;  %v5567_v32 = vld [vmem:[#allocation2 + $0x260] sm:$0xff]  ;;  %v5566_v63 = vld [vmem:[#allocation2 + $0x248] sm:$0xff]  ;;  %v5737_v49 = vrot.slane %v5668_v2, 2 }
 0x464   : > { %4477 = vst.msk [vmem:[%s9997_s17 + $0xb8] sm:$0xff] %vm177_vm0, %v4445_v46  ;;  %4513 = vst.msk [vmem:[#allocation2 + $0x290] sm:$0xff] %vm177_vm0, %v4497_v48  ;;  %v5146_v0 = vpop.permute.xlu0 %5145  ;;  %v5296_v53 = vsel %vm4824_vm15, %v5294_v37, %v5295_v36  ;;  %v4857_v30 = vsel %vm4824_vm15, %v4855_v11, %v4856_v26  ;;  %v5669_v46 = vld [vmem:[#allocation2 + $0x268] sm:$0x3]  ;;  %v4417_v36 = vld [vmem:[%s9997_s17 + $0xd8] sm:$0xff] }
 0x465   : > { %4475 = vst.msk [vmem:[%s9997_s17 + $0xa8] sm:$0xff] %vm177_vm0, %v4443_v56  ;;  %4512 = vst.msk [vmem:[#allocation2 + $0x278] sm:$0xff] %vm177_vm0, %v4496_v57  ;;  %v5738_v28 = vrot.slane %v5669_v46, 2  ;;  %v5395_v56 = vld [vmem:[#allocation2 + $0x248] sm:$0x3f]  ;;  %v5462_v57 = vrot.slane %v5394_v51, 6 }
 0x466   : > { %5504 = vrot.lane.b32.xlu1 %v5461_v45, %s9672_s26  ;;  %v5463_v16 = vrot.slane %v5395_v56, 6  ;;  %v4954_v11 = vld [vmem:[#allocation2 + $0x248] sm:$0x3f]  ;;  %v4785_v51 = vld [vmem:[#allocation2 + $0x250] sm:$0x3] }
 0x467   : > { %5774 = vrot.lane.b32.xlu0 %v5730_v25, %s9673_s27  ;;  %v4707_v4 = vpop.permute.xlu1 %4706  ;;  %v5739_v45 = vsel %vm4824_vm15, %v5737_v49, %v5738_v28  ;;  %v5667_v25 = vld [vmem:[#allocation2 + $0x250] sm:$0x3]  ;;  %v4787_v49 = vld [vmem:[#allocation2 + $0x268] sm:$0x3]  ;;  %v4784_v28 = vld [vmem:[#allocation2 + $0x248] sm:$0xfc] }
 0x468   : > { %4749 = vst.msk [vmem:[#allocation3 + $0x28] sm:$0xff] %vm725_vm4, %v4707_v4  ;;  %v5050_v44 = vpop.permute.xlu0 %5049  ;;  %v5735_v8 = vrot.slane %v5667_v25, 2  ;;  %v5464_v38 = vsel %vm2468_vm3, %v5462_v57, %v5463_v16  ;;  %v4861_v1 = vrot.slane %v4784_v28, 2  ;;  %v4862_v25 = vrot.slane %v4785_v51, 2  ;;  %v4957_v51 = vld [vmem:[#allocation2 + $0x270] sm:$0xc0] }
 0x469   : > { %5097 = vst.msk [vmem:[#allocation3] sm:$0xff] %vm1304_vm6, %v5050_v44 }
 0x46a   : > { %5063 = vrot.lane.b32.xlu1 %v5024_v60, %s9670_s22  ;;  %5193 = vst.msk [vmem:[#allocation3] sm:$0xff] %vm1401_vm7, %v5146_v0  ;;  %v4414_v60 = vld [vmem:[%s9997_s17 + $0xc0] sm:$0xff] }
 0x46b   : > { %5061 = vrot.lane.b32.xlu0 %v5021_v5, %s9670_s22  ;;  %v4705_v9 = vpop.permute.xlu1 %4704  ;;  %v4550_v20 = vld [vmem:[#allocation2 + $0x290] sm:$0x3f] }
 0x46c   : > { %4748 = vst.msk [vmem:[#allocation3 + $0x20] sm:$0xff] %vm725_vm4, %v4705_v9  ;;  %v5322_v47 = vpop.permute.xlu0 %5321  ;;  %v4548_v27 = vld [vmem:[#allocation2 + $0x278] sm:$0x3f]  ;;  %v4630_v31 = vrot.slane %v4550_v20, 6  ;;  %v4955_v9 = vld [vmem:[#allocation2 + $0x258] sm:$0xc0] }
 0x46d   : > { %5369 = vst.msk [vmem:[#allocation3] sm:$0xff] %vm1690_vm8, %v5322_v47  ;;  %v4627_v39 = vrot.slane %v4548_v27, 6  ;;  %v4956_v47 = vld [vmem:[#allocation2 + $0x260] sm:$0x3f]  ;;  %v5228_v20 = vld [vmem:[#allocation2 + $0x268] sm:$0x3] }
 0x46e   : > { %5335 = vrot.lane.b32.xlu1 %v5296_v53, %s9671_s23  ;;  %v4631_v40 = vsel %vm2468_vm3, %v4629_v22, %v4630_v31  ;;  %v5026_v22 = vrot.slane %v4954_v11, 6  ;;  %v5225_v27 = vld [vmem:[#allocation2 + $0x248] sm:$0xfc]  ;;  %v4960_v28 = vld [vmem:[#allocation2 + $0x290] sm:$0x3f] }
 0x46f   : > { %5333 = vrot.lane.b32.xlu0 %v5293_v35, %s9671_s23  ;;  %v5052_v19 = vpop.permute.xlu1 %5051  ;;  %v4628_v42 = vsel %vm2468_vm3, %v4626_v24, %v4627_v39  ;;  %4663 = vst.msk [vmem:[#allocation3 + $0x78] sm:$0xff] %vm177_vm0, %v4631_v40  ;;  %v4953_v35 = vld [vmem:[#allocation2 + $0x240] sm:$0xc0]  ;;  %v5301_v40 = vrot.slane %v5228_v20, 2  ;;  %v5297_v2 = vrot.slane %v5225_v27, 2 }
 0x470   : > { %5098 = vst.msk [vmem:[#allocation3 + $0x8] sm:$0xff] %vm1304_vm6, %v5052_v19  ;;  %v4882_v17 = vpop.permute.xlu0 %4881  ;;  %v5028_v19 = vrot.slane %v4955_v9, 6  ;;  %v5227_v24 = vld [vmem:[#allocation2 + $0x260] sm:$0xfc]  ;;  %v5670_v20 = vld [vmem:[#allocation2 + $0x278] sm:$0xfc] }
 0x471   : > { %5194 = vst.msk [vmem:[#allocation3 + $0x8] sm:$0xff] %vm1401_vm7, %v5148_v62  ;;  %v5396_v62 = vld [vmem:[#allocation2 + $0x258] sm:$0xc0]  ;;  %v5671_v27 = vld [vmem:[#allocation2 + $0x280] sm:$0x3] }
 0x472   : > { %4925 = vst.msk [vmem:[#allocation3 + $0x20] sm:$0xff] %vm1015_vm5, %v4882_v17  ;;  %4895 = vrot.lane.b32.xlu1 %v4860_v21, %s9667_s19  ;;  %v5465_v4 = vrot.slane %v5396_v62, 6  ;;  %v5029_v17 = vrot.slane %v4956_v47, 6  ;;  %v5736_v21 = vsel %vm4824_vm15, %v5734_v50, %v5735_v8  ;;  %v5398_v8 = vld [vmem:[#allocation2 + $0x270] sm:$0xc0] }
 0x473   : > { %4893 = vrot.lane.b32.xlu0 %v4857_v30, %s9667_s19  ;;  %v5324_v12 = vpop.permute.xlu1 %5323  ;;  %4662 = vst.msk [vmem:[#allocation3 + $0x70] sm:$0xff] %vm177_vm0, %v4628_v42  ;;  %v5025_v30 = vrot.slane %v4953_v35, 6  ;;  %v4420_v47 = vld [vmem:[%s9997_s17 + $0xf0] sm:$0xff]  ;;  %v5400_v35 = vld [vmem:[#allocation2 + $0x288] sm:$0xc0] }
 0x474   : > { %5370 = vst.msk [vmem:[#allocation3 + $0x8] sm:$0xff] %vm1690_vm8, %v5324_v12  ;;  %v5467_v15 = vsel %vm2468_vm3, %v5465_v4, %v5466_v61  ;;  %v5226_v12 = vld [vmem:[#allocation2 + $0x250] sm:$0x3] }
 0x475   : > { %v5027_v42 = vsel %vm2468_vm3, %v5025_v30, %v5026_v22  ;;  %v5298_v46 = vrot.slane %v5226_v12, 2  ;;  %v5569_v4 = vld [vmem:[#allocation2 + $0x290] sm:$0xff]  ;;  %v4421_v22 = vld [vmem:[%s9997_s17 + $0xf8] sm:$0xff] }
 0x476   : > { %5604 = vrot.lane.b32.xlu1 %v5567_v32, %s9669_s21 }
 0x477   : > { %5602 = vrot.lane.b32.xlu0 %v5566_v63, %s9669_s21  ;;  %v4884_v48 = vpop.permute.xlu1 %4883  ;;  %v5299_v16 = vsel %vm4824_vm15, %v5297_v2, %v5298_v46  ;;  %v5740_v46 = vrot.slane %v5670_v20, 2  ;;  %v5677_v20 = vld [vmem:[#allocation2 + $0x2c8] sm:$0x3] }
 0x478   : > { %4926 = vst.msk [vmem:[#allocation3 + $0x28] sm:$0xff] %vm1015_vm5, %v4884_v48  ;;  %v4786_v48 = vld [vmem:[#allocation2 + $0x260] sm:$0xfc] }
 0x47a   : > { %5163 = vrot.lane.b32.xlu1 %v5567_v32, %s9668_s20 }
 0x47b   : > { %5161 = vrot.lane.b32.xlu0 %v5566_v63, %s9668_s20 }
 0x47d   : > { %v9493_v0 = vpop.f32.mrb[40].mxu1 }
 0x47e   : > { %4722 = vrot.lane.b32.xlu1 %v5567_v32, %s9666_s18  ;;  %v4384_v54 = vmax.f32 %v9493_v0, 0.0  ;;  %v4327_v18 = vpop.f32.mrb[41].mxu1  ;;  %v5030_v32 = vsel %vm2468_vm3, %v5028_v19, %v5029_v17  ;;  %v4864_v0 = vrot.slane %v4786_v48, 2  ;;  %v5741_v48 = vrot.slane %v5671_v27, 2 }
 0x47f   : > { %5780 = vrot.lane.b32.xlu0 %v5739_v45, %s9673_s27  ;;  %v4382_v58 = vmax.f32 %v4327_v18, 0.0  ;;  %v9494_v43 = vpop.f32.mrb[42].mxu1  ;;  %v4865_v45 = vrot.slane %v4787_v49, 2  ;;  %v4959_v49 = vld [vmem:[#allocation2 + $0x288] sm:$0xc0] }
 0x480   : > { %v4448_v44 = vadd.f32 %v4416_v33, %v4384_v54  ;;  %v4385_v37 = vmax.f32 %v9494_v43, 0.0  ;;  %v4330_v5 = vpop.f32.mrb[43].mxu1  ;;  %v4863_v33 = vsel %vm4824_vm15, %v4861_v1, %v4862_v25  ;;  %v5231_v25 = vld [vmem:[#allocation2 + $0x290] sm:$0xfc] }
 0x481   : > { %v4446_v59 = vadd.f32 %v4414_v60, %v4382_v58  ;;  %v4383_v23 = vmax.f32 %v4330_v5, 0.0  ;;  %v4866_v3 = vsel %vm4824_vm15, %v4864_v0, %v4865_v45  ;;  %v5672_v60 = vld [vmem:[#allocation2 + $0x290] sm:$0xfc]  ;;  %v5035_v0 = vrot.slane %v4960_v28, 6 }
 0x482   : > { %4720 = vrot.lane.b32.xlu1 %v5566_v63, %s9666_s18  ;;  %4480 = vst.msk [vmem:[%s9997_s17 + $0xd0] sm:$0xff] %vm177_vm0, %v4448_v44  ;;  %v4449_v53 = vadd.f32 %v4417_v36, %v4385_v37  ;;  %v4499_v34 = vpack.c.bf16 %v4385_v37, %v4384_v54  ;;  %v5300_v63 = vrot.slane %v5227_v24, 2  ;;  %v5568_v44 = vld [vmem:[#allocation2 + $0x278] sm:$0xff]  ;;  %v5743_v5 = vrot.slane %v5672_v60, 2 }
 0x483   : > { %5506 = vrot.lane.b32.xlu0 %v5464_v38, %s9672_s26  ;;  %4478 = vst.msk [vmem:[%s9997_s17 + $0xc0] sm:$0xff] %vm177_vm0, %v4446_v59  ;;  %v4447_v26 = vadd.f32 %v4415_v7, %v4383_v23  ;;  %v4498_v14 = vpack.c.bf16 %v4383_v23, %v4382_v58  ;;  %v5673_v37 = vld [vmem:[#allocation2 + $0x298] sm:$0x3]  ;;  %v5468_v7 = vrot.slane %v5398_v8, 6  ;;  %v5742_v45 = vsel %vm4824_vm15, %v5740_v46, %v5741_v48  ;;  %v4788_v8 = vld [vmem:[#allocation2 + $0x278] sm:$0xfc] }
 0x484   : > { %4481 = vst.msk [vmem:[%s9997_s17 + $0xd8] sm:$0xff] %vm177_vm0, %v4449_v53  ;;  %4515 = vst.msk [vmem:[#allocation2 + $0x2c0] sm:$0xff] %vm177_vm0, %v4499_v34  ;;  %v5302_v62 = vsel %vm4824_vm15, %v5300_v63, %v5301_v40  ;;  %v5744_v61 = vrot.slane %v5673_v37, 2  ;;  %v5399_v23 = vld [vmem:[#allocation2 + $0x278] sm:$0x3f]  ;;  %v5471_v40 = vrot.slane %v5400_v35, 6 }
 0x485   : > { %4479 = vst.msk [vmem:[%s9997_s17 + $0xc8] sm:$0xff] %vm177_vm0, %v4447_v26  ;;  %4514 = vst.msk [vmem:[#allocation2 + $0x2a8] sm:$0xff] %vm177_vm0, %v4498_v14  ;;  %v4418_v26 = vld [vmem:[%s9997_s17 + $0xe0] sm:$0xff]  ;;  %v5469_v17 = vrot.slane %v5399_v23, 6 }
 0x486   : > { %5508 = vrot.lane.b32.xlu1 %v5467_v15, %s9672_s26  ;;  %v5745_v19 = vsel %vm4824_vm15, %v5743_v5, %v5744_v61  ;;  %v4790_v5 = vld [vmem:[#allocation2 + $0x290] sm:$0xfc]  ;;  %v4791_v61 = vld [vmem:[#allocation2 + $0x298] sm:$0x3] }
 0x487   : > { %5778 = vrot.lane.b32.xlu0 %v5736_v21, %s9673_s27  ;;  %v5152_v31 = vpop.permute.xlu1 %5151  ;;  %v5401_v21 = vld [vmem:[#allocation2 + $0x290] sm:$0x3f]  ;;  %v5470_v2 = vsel %vm2468_vm3, %v5468_v7, %v5469_v17 }
 0x488   : > { %v5150_v39 = vpop.permute.xlu0 %5149 }
 0x48a   : > { %5067 = vrot.lane.b32.xlu1 %v5030_v32, %s9670_s22 }
 0x48b   : > { %5065 = vrot.lane.b32.xlu0 %v5027_v42, %s9670_s22  ;;  %v4711_v56 = vpop.permute.xlu1 %4710  ;;  %v5472_v42 = vrot.slane %v5401_v21, 6  ;;  %v5571_v17 = vld [vmem:[#allocation2 + $0x2c0] sm:$0xff] }
 0x48c   : > { %4751 = vst.msk [vmem:[#allocation3 + $0x38] sm:$0xff] %vm725_vm4, %v4711_v56  ;;  %v5054_v57 = vpop.permute.xlu0 %5053  ;;  %v4958_v56 = vld [vmem:[#allocation2 + $0x278] sm:$0x3f]  ;;  %v5570_v21 = vld [vmem:[#allocation2 + $0x2a8] sm:$0xff] }
 0x48d   : > { %5099 = vst.msk [vmem:[#allocation3 + $0x10] sm:$0xff] %vm1304_vm6, %v5054_v57  ;;  %v5473_v57 = vsel %vm2468_vm3, %v5471_v40, %v5472_v42  ;;  %v5032_v1 = vrot.slane %v4958_v56, 6  ;;  %v4963_v40 = vld [vmem:[#allocation2 + $0x2b8] sm:$0xc0]  ;;  %v4964_v42 = vld [vmem:[#allocation2 + $0x2c0] sm:$0x3f] }
 0x48e   : > { %5339 = vrot.lane.b32.xlu1 %v5302_v62, %s9671_s23  ;;  %5195 = vst.msk [vmem:[#allocation3 + $0x10] sm:$0xff] %vm1401_vm7, %v5150_v39  ;;  %v4419_v39 = vld [vmem:[%s9997_s17 + $0xe8] sm:$0xff]  ;;  %v5034_v62 = vrot.slane %v4959_v49, 6  ;;  %v5041_v56 = vrot.slane %v4964_v42, 6 }
 0x48f   : > { %5337 = vrot.lane.b32.xlu0 %v5299_v16, %s9671_s23  ;;  %v4709_v54 = vpop.permute.xlu1 %4708  ;;  %v5031_v16 = vrot.slane %v4957_v51, 6  ;;  %v5403_v46 = vld [vmem:[#allocation2 + $0x2a8] sm:$0x3f]  ;;  %v5040_v51 = vrot.slane %v4963_v40, 6  ;;  %v4967_v40 = vld [vmem:[#allocation2 + $0x2e8] sm:$0xc0] }
 0x490   : > { %4750 = vst.msk [vmem:[#allocation3 + $0x30] sm:$0xff] %vm725_vm4, %v4709_v54  ;;  %v5326_v18 = vpop.permute.xlu0 %5325  ;;  %v5232_v54 = vld [vmem:[#allocation2 + $0x298] sm:$0x3] }
 0x491   : > { %5371 = vst.msk [vmem:[#allocation3 + $0x10] sm:$0xff] %vm1690_vm8, %v5326_v18  ;;  %v5229_v18 = vld [vmem:[#allocation2 + $0x278] sm:$0xfc]  ;;  %v5033_v60 = vsel %vm2468_vm3, %v5031_v16, %v5032_v1  ;;  %v5236_v16 = vld [vmem:[#allocation2 + $0x2c8] sm:$0x3] }
 0x492   : > { %4899 = vrot.lane.b32.xlu1 %v4866_v3, %s9667_s19  ;;  %v5230_v3 = vld [vmem:[#allocation2 + $0x280] sm:$0x3]  ;;  %v5303_v37 = vrot.slane %v5229_v18, 2  ;;  %v5674_v1 = vld [vmem:[#allocation2 + $0x2a8] sm:$0xfc] }
 0x493   : > { %4897 = vrot.lane.b32.xlu0 %v4863_v33, %s9667_s19  ;;  %v5056_v58 = vpop.permute.xlu1 %5055 }
 0x494   : > { %5100 = vst.msk [vmem:[#allocation3 + $0x18] sm:$0xff] %vm1304_vm6, %v5056_v58  ;;  %v4886_v43 = vpop.permute.xlu0 %4885 }
 0x495   : > { %5196 = vst.msk [vmem:[#allocation3 + $0x18] sm:$0xff] %vm1401_vm7, %v5152_v31 }
 0x496   : > { %4927 = vst.msk [vmem:[#allocation3 + $0x30] sm:$0xff] %vm1015_vm5, %v4886_v43  ;;  %5608 = vrot.lane.b32.xlu1 %v5569_v4, %s9669_s21  ;;  %v5036_v43 = vsel %vm2468_vm3, %v5034_v62, %v5035_v0  ;;  %v5475_v0 = vrot.slane %v5403_v46, 6 }
 0x497   : > { %5606 = vrot.lane.b32.xlu0 %v5568_v44, %s9669_s21  ;;  %v5328_v36 = vpop.permute.xlu1 %5327 }
 0x498   : > { %5372 = vst.msk [vmem:[#allocation3 + $0x18] sm:$0xff] %vm1690_vm8, %v5328_v36  ;;  %v5304_v36 = vrot.slane %v5230_v3, 2 }
 0x49a   : > { %5167 = vrot.lane.b32.xlu1 %v5569_v4, %s9668_s20  ;;  %v9497_v59 = vpop.f32.mrb[44].mxu1 }
 0x49b   : > { %5165 = vrot.lane.b32.xlu0 %v5568_v44, %s9668_s20  ;;  %v4388_v38 = vmax.f32 %v9497_v59, 0.0  ;;  %v4888_v50 = vpop.permute.xlu1 %4887  ;;  %v4343_v9 = vpop.f32.mrb[45].mxu1  ;;  %v4789_v59 = vld [vmem:[#allocation2 + $0x280] sm:$0x3] }
 0x49c   : > { %4928 = vst.msk [vmem:[#allocation3 + $0x38] sm:$0xff] %vm1015_vm5, %v4888_v50  ;;  %v4386_v53 = vmax.f32 %v4343_v9, 0.0  ;;  %v9498_v34 = vpop.f32.mrb[46].mxu1  ;;  %v4870_v9 = vrot.slane %v4790_v5, 2  ;;  %v4868_v7 = vrot.slane %v4789_v59, 2 }
 0x49d   : > { %v4452_v11 = vadd.f32 %v4420_v47, %v4388_v38  ;;  %v4389_v14 = vmax.f32 %v9498_v34, 0.0  ;;  %v4346_v15 = vpop.f32.mrb[47].mxu1  ;;  %v4871_v47 = vrot.slane %v4791_v61, 2  ;;  %v4867_v34 = vrot.slane %v4788_v8, 2  ;;  %v4962_v5 = vld [vmem:[#allocation2 + $0x2a8] sm:$0x3f] }
 0x49e   : > { %4726 = vrot.lane.b32.xlu1 %v5569_v4, %s9666_s18  ;;  %v4450_v30 = vadd.f32 %v4418_v26, %v4386_v53  ;;  %v4387_v24 = vmax.f32 %v4346_v15, 0.0  ;;  %v5306_v4 = vrot.slane %v5231_v25, 2  ;;  %v5675_v25 = vld [vmem:[#allocation2 + $0x2b0] sm:$0x3] }
 0x49f   : > { %5784 = vrot.lane.b32.xlu0 %v5745_v19, %s9673_s27  ;;  %4484 = vst.msk [vmem:[%s9997_s17 + $0xf0] sm:$0xff] %vm177_vm0, %v4452_v11  ;;  %v4453_v12 = vadd.f32 %v4421_v22, %v4389_v14  ;;  %v4501_v31 = vpack.c.bf16 %v4389_v14, %v4388_v38  ;;  %v4872_v26 = vsel %vm4824_vm15, %v4870_v9, %v4871_v47  ;;  %v5405_v22 = vld [vmem:[#allocation2 + $0x2c0] sm:$0x3f]  ;;  %v5233_v47 = vld [vmem:[#allocation2 + $0x2a8] sm:$0xfc] }
 0x4a0   : > { %4482 = vst.msk [vmem:[%s9997_s17 + $0xe0] sm:$0xff] %vm177_vm0, %v4450_v30  ;;  %v4451_v32 = vadd.f32 %v4419_v39, %v4387_v24  ;;  %v4500_v63 = vpack.c.bf16 %v4387_v24, %v4386_v53  ;;  %v5305_v53 = vsel %vm4824_vm15, %v5303_v37, %v5304_v36  ;;  %v4869_v14 = vsel %vm4824_vm15, %v4867_v34, %v4868_v7  ;;  %v5404_v30 = vld [vmem:[#allocation2 + $0x2b8] sm:$0xc0]  ;;  %v5676_v24 = vld [vmem:[#allocation2 + $0x2c0] sm:$0xfc] }
 0x4a1   : > { %4485 = vst.msk [vmem:[%s9997_s17 + $0xf8] sm:$0xff] %vm177_vm0, %v4453_v12  ;;  %4517 = vst.msk [vmem:[#allocation2 + $0x2f0] sm:$0xff] %vm177_vm0, %v4501_v31  ;;  %v5477_v31 = vrot.slane %v5404_v30, 6  ;;  %v5478_v39 = vrot.slane %v5405_v22, 6  ;;  %v5747_v37 = vrot.slane %v5675_v25, 2 }
 0x4a2   : > { %4724 = vrot.lane.b32.xlu1 %v5568_v44, %s9666_s18  ;;  %4483 = vst.msk [vmem:[%s9997_s17 + $0xe8] sm:$0xff] %vm177_vm0, %v4451_v32  ;;  %4516 = vst.msk [vmem:[#allocation2 + $0x2d8] sm:$0xff] %vm177_vm0, %v4500_v63  ;;  %v5307_v44 = vrot.slane %v5232_v54, 2  ;;  %v5749_v32 = vrot.slane %v5676_v24, 2  ;;  %v5750_v63 = vrot.slane %v5677_v20, 2 }
 0x4a3   : > { %5510 = vrot.lane.b32.xlu0 %v5470_v2, %s9672_s26  ;;  %v5402_v2 = vld [vmem:[#allocation2 + $0x2a0] sm:$0xc0]  ;;  %v5479_v28 = vsel %vm2468_vm3, %v5477_v31, %v5478_v39  ;;  %v5408_v7 = vld [vmem:[#allocation2 + $0x2e8] sm:$0xc0]  ;;  %v5417_v22 = vld [vmem:[#allocation2 + $0x350] sm:$0x3f] }
 0x4a4   : > { %v5308_v50 = vsel %vm4824_vm15, %v5306_v4, %v5307_v44  ;;  %v5474_v62 = vrot.slane %v5402_v2, 6  ;;  %v4961_v36 = vld [vmem:[#allocation2 + $0x2a0] sm:$0xc0]  ;;  %v5416_v30 = vld [vmem:[#allocation2 + $0x348] sm:$0xc0]  ;;  %v5496_v31 = vrot.slane %v5417_v22, 6 }
 0x4a6   : > { %5512 = vrot.lane.b32.xlu1 %v5473_v57, %s9672_s26  ;;  %v5751_v57 = vsel %vm4824_vm15, %v5749_v32, %v5750_v63  ;;  %v5476_v44 = vsel %vm2468_vm3, %v5474_v62, %v5475_v0 }
 0x4a7   : > { %5782 = vrot.lane.b32.xlu0 %v5742_v45, %s9673_s27  ;;  %v5235_v45 = vld [vmem:[#allocation2 + $0x2c0] sm:$0xfc] }
 0x4a8   : > { %v5597_v33 = vpop.permute.xlu1 %5596  ;;  %v5573_v9 = vld [vmem:[#allocation2 + $0x2f0] sm:$0xff] }
 0x4a9   : > { %v5595_v58 = vpop.permute.xlu0 %5594  ;;  %v5572_v63 = vld [vmem:[#allocation2 + $0x2d8] sm:$0xff]  ;;  %v4968_v42 = vld [vmem:[#allocation2 + $0x2f0] sm:$0x3f] }
 0x4aa   : > { %5071 = vrot.lane.b32.xlu1 %v5036_v43, %s9670_s22  ;;  %v5313_v43 = vrot.slane %v5236_v16, 2  ;;  %v5680_v46 = vld [vmem:[#allocation2 + $0x2f0] sm:$0xfc] }
 0x4ab   : > { %5069 = vrot.lane.b32.xlu0 %v5033_v60, %s9670_s22  ;;  %v5746_v60 = vrot.slane %v5674_v1, 2  ;;  %v5239_v0 = vld [vmem:[#allocation2 + $0x2f0] sm:$0xfc]  ;;  %v5407_v1 = vld [vmem:[#allocation2 + $0x2d8] sm:$0x3f] }
 0x4ac   : > { %v5156_v23 = vpop.permute.xlu1 %5155  ;;  %v5406_v16 = vld [vmem:[#allocation2 + $0x2d0] sm:$0xc0] }
 0x4ad   : > { %v5154_v38 = vpop.permute.xlu0 %5153 }
 0x4ae   : > { %5343 = vrot.lane.b32.xlu1 %v5308_v50, %s9671_s23  ;;  %v5038_v50 = vrot.slane %v4962_v5, 6  ;;  %v5689_v5 = vld [vmem:[#allocation2 + $0x358] sm:$0x3] }
 0x4af   : > { %5341 = vrot.lane.b32.xlu0 %v5305_v53, %s9671_s23  ;;  %v5234_v53 = vld [vmem:[#allocation2 + $0x2b0] sm:$0x3] }
 0x4b0   : > { %v4715_v35 = vpop.permute.xlu1 %4714 }
 0x4b1   : > { %4753 = vst.msk [vmem:[#allocation3 + $0x48] sm:$0xff] %vm725_vm4, %v4715_v35  ;;  %v5773_v11 = vpop.permute.xlu0 %5772  ;;  %v5409_v35 = vld [vmem:[#allocation2 + $0x2f0] sm:$0x3f] }
 0x4b2   : > { %4903 = vrot.lane.b32.xlu1 %v4872_v26, %s9667_s19 }
 0x4b3   : > { %4901 = vrot.lane.b32.xlu0 %v4869_v14, %s9667_s19  ;;  %v5309_v14 = vrot.slane %v5233_v47, 2  ;;  %v5768_v47 = vrot.slane %v5689_v5, 2 }
 0x4b4   : > { %v4713_v15 = vpop.permute.xlu1 %4712 }
 0x4b5   : > { %4752 = vst.msk [vmem:[#allocation3 + $0x40] sm:$0xff] %vm725_vm4, %v4713_v15  ;;  %v5499_v19 = vpop.permute.xlu0 %5498  ;;  %v5310_v15 = vrot.slane %v5234_v53, 2 }
 0x4b6   : > { %5546 = vst.msk [vmem:[#allocation3] sm:$0xff] %vm1980_vm9, %v5499_v19  ;;  %5612 = vrot.lane.b32.xlu1 %v5571_v17, %s9669_s21  ;;  %v5483_v19 = vrot.slane %v5408_v7, 6 }
 0x4b7   : > { %5642 = vst.msk [vmem:[#allocation3] sm:$0xff] %vm2077_vm10, %v5595_v58  ;;  %5610 = vrot.lane.b32.xlu0 %v5570_v21, %s9669_s21  ;;  %v5312_v58 = vrot.slane %v5235_v45, 2  ;;  %v5311_v20 = vsel %vm4824_vm15, %v5309_v14, %v5310_v15  ;;  %v5240_v45 = vld [vmem:[#allocation2 + $0x2f8] sm:$0x3] }
 0x4b8   : > { %v5501_v27 = vpop.permute.xlu1 %5500  ;;  %v4966_v14 = vld [vmem:[#allocation2 + $0x2d8] sm:$0x3f] }
 0x4b9   : > { %5547 = vst.msk [vmem:[#allocation3 + $0x8] sm:$0xff] %vm1980_vm9, %v5501_v27  ;;  %v5771_v12 = vpop.permute.xlu0 %5770  ;;  %v5314_v59 = vsel %vm4824_vm15, %v5312_v58, %v5313_v43  ;;  %v5480_v43 = vrot.slane %v5406_v16, 6 }
 0x4ba   : > { %5643 = vst.msk [vmem:[#allocation3 + $0x8] sm:$0xff] %vm2077_vm10, %v5597_v33  ;;  %5171 = vrot.lane.b32.xlu1 %v5571_v17, %s9668_s20  ;;  %v5042_v33 = vsel %vm2468_vm3, %v5040_v51, %v5041_v56  ;;  %v5484_v17 = vrot.slane %v5409_v35, 6  ;;  %v5046_v51 = vrot.slane %v4967_v40, 6  ;;  %v5047_v56 = vrot.slane %v4968_v42, 6  ;;  %v5686_v42 = vld [vmem:[#allocation2 + $0x338] sm:$0xfc] }
 0x4bb   : > { %5818 = vst.msk [vmem:[#allocation3] sm:$0xff] %vm2366_vm11, %v5771_v12  ;;  %5819 = vst.msk [vmem:[#allocation3 + $0x8] sm:$0xff] %vm2366_vm11, %v5773_v11  ;;  %5169 = vrot.lane.b32.xlu0 %v5570_v21, %s9668_s20  ;;  %v5495_v12 = vrot.slane %v5416_v30, 6  ;;  %v6488_v30 = vld [vmem:[#allocation2 + $0xe8] sm:$0xf] }
 0x4bc   : > { %v5060_v48 = vpop.permute.xlu1 %5059  ;;  %v5485_v27 = vsel %vm2468_vm3, %v5483_v19, %v5484_v17  ;;  %v11859_v17 = vld [vmem:[#allocation2 + $0x338] sm:$0xff] }
 0x4bd   : > { %5102 = vst.msk [vmem:[#allocation3 + $0x28] sm:$0xff] %vm1304_vm6, %v5060_v48  ;;  %v5058_v49 = vpop.permute.xlu0 %5057  ;;  %v5497_v2 = vsel %vm2468_vm3, %v5495_v12, %v5496_v31  ;;  %v5681_v48 = vld [vmem:[#allocation2 + $0x2f8] sm:$0x3]  ;;  %v5237_v12 = vld [vmem:[#allocation2 + $0x2d8] sm:$0xfc]  ;;  %v6390_v31 = vld [vmem:[#allocation2 + $0xe0] sm:$0xff] }
 0x4be   : > { %5198 = vst.msk [vmem:[#allocation3 + $0x28] sm:$0xff] %vm1401_vm7, %v5156_v23  ;;  %5516 = vrot.lane.b32.xlu1 %v5479_v28, %s9672_s26  ;;  %v5748_v23 = vsel %vm4824_vm15, %v5746_v60, %v5747_v37  ;;  %v5756_v62 = vrot.slane %v5681_v48, 2  ;;  %v5679_v60 = vld [vmem:[#allocation2 + $0x2e0] sm:$0x3]  ;;  %v5315_v48 = vrot.slane %v5237_v12, 2 }
 0x4bf   : > { %5101 = vst.msk [vmem:[#allocation3 + $0x20] sm:$0xff] %vm1304_vm6, %v5058_v49  ;;  %5788 = vrot.lane.b32.xlu0 %v5751_v57, %s9673_s27  ;;  %v5755_v57 = vrot.slane %v5680_v46, 2 }
 0x4c0   : > { %5197 = vst.msk [vmem:[#allocation3 + $0x20] sm:$0xff] %vm1401_vm7, %v5154_v38  ;;  %v5332_v54 = vpop.permute.xlu1 %5331  ;;  %v5037_v38 = vrot.slane %v4961_v36, 6  ;;  %v5688_v36 = vld [vmem:[#allocation2 + $0x350] sm:$0xfc] }
 0x4c1   : > { %5374 = vst.msk [vmem:[#allocation3 + $0x28] sm:$0xff] %vm1690_vm8, %v5332_v54  ;;  %v5330_v18 = vpop.permute.xlu0 %5329  ;;  %v5757_v58 = vsel %vm4824_vm15, %v5755_v57, %v5756_v62 }
 0x4c2   : > { %v5834_v3 = vld [vmem:[#allocation3] sm:$0xff]  ;;  %5373 = vst.msk [vmem:[#allocation3 + $0x20] sm:$0xff] %vm1690_vm8, %v5330_v18  ;;  %5075 = vrot.lane.b32.xlu1 %v5042_v33, %s9670_s22  ;;  %v5835_v4 = vld [vmem:[#allocation3 + $0x8] sm:$0xff]  ;;  %v5039_v26 = vsel %vm2468_vm3, %v5037_v38, %v5038_v50  ;;  %v5048_v18 = vsel %vm2468_vm3, %v5046_v51, %v5047_v56  ;;  %v5319_v33 = vrot.slane %v5240_v45, 2  ;;  %v5753_v38 = vrot.slane %v5679_v60, 2  ;;  %v11848_v50 = vld [vmem:[#allocation2 + $0x350] sm:$0xff] }
 0x4c3   : > { %9505 = vmatprep.mubr.msk.bf16.mxu0 %vm2419_vm12, %v5834_v3  ;;  %5514 = vrot.lane.b32.xlu0 %v5476_v44, %s9672_s26  ;;  %v5318_v3 = vrot.slane %v5239_v0, 2  ;;  %v5678_v44 = vld [vmem:[#allocation2 + $0x2d8] sm:$0xfc]  ;;  %v5764_v56 = vrot.slane %v5686_v42, 2  ;;  %v6389_v60 = vld [vmem:[#allocation2 + $0xc8] sm:$0xff] }
 0x4c4   : > { %9506 = vmatmul.mubr.msk.bf16.vlgmr.msra.gmra.mrb[16].mxu0 %vm2419_vm12, %v5835_v4  ;;  %v4892_v61 = vpop.permute.xlu1 %4891  ;;  %v5481_v4 = vrot.slane %v5407_v1, 6  ;;  %v6391_v45 = vld [vmem:[#allocation2 + $0xf8] sm:$0xff] }
 0x4c5   : > { %4930 = vst.msk [vmem:[#allocation3 + $0x48] sm:$0xff] %vm1015_vm5, %v4892_v61  ;;  %v4890_v8 = vpop.permute.xlu0 %4889 }
 0x4c6   : > { %4929 = vst.msk [vmem:[#allocation3 + $0x40] sm:$0xff] %vm1015_vm5, %v4890_v8  ;;  %5347 = vrot.lane.b32.xlu1 %v5314_v59, %s9671_s23  ;;  %v5320_v8 = vsel %vm4824_vm15, %v5318_v3, %v5319_v33  ;;  %v5482_v59 = vsel %vm2468_vm3, %v5480_v43, %v5481_v4  ;;  %v6485_v3 = vld [vmem:[#allocation2 + $0xc8] sm:$0xf0]  ;;  %v6486_v33 = vld [vmem:[#allocation2 + $0xd0] sm:$0xf] }
 0x4c7   : > { %5786 = vrot.lane.b32.xlu0 %v5748_v23, %s9673_s27  ;;  %v5752_v23 = vrot.slane %v5678_v44, 2 }
 0x4c8   : > { %v5601_v34 = vpop.permute.xlu1 %5600 }
 0x4c9   : > { %v5599_v11 = vpop.permute.xlu0 %5598 }
 0x4ca   : > { %5616 = vrot.lane.b32.xlu1 %v5573_v9, %s9669_s21 }
 0x4cb   : > { %5073 = vrot.lane.b32.xlu0 %v5039_v26, %s9670_s22  ;;  %v4965_v26 = vld [vmem:[#allocation2 + $0x2d0] sm:$0xc0] }
 0x4cc   : > { %v5160_v21 = vpop.permute.xlu1 %5159 }
 0x4cd   : > { %v5158_v24 = vpop.permute.xlu0 %5157 }
 0x4ce   : > { %5175 = vrot.lane.b32.xlu1 %v5573_v9, %s9668_s20  ;;  %v5767_v9 = vrot.slane %v5688_v36, 2  ;;  %v6550_v36 = vrot.slane %v6486_v33, 4  ;;  %v7294_v33 = vld [vmem:[#allocation2 + $0x308] sm:$0xff] }
 0x4cf   : > { %5345 = vrot.lane.b32.xlu0 %v5311_v20, %s9671_s23  ;;  %v5044_v20 = vrot.slane %v4966_v14, 6 }
 0x4d0   : > { %v4719_v39 = vpop.permute.xlu1 %4718  ;;  %v5769_v15 = vsel %vm4824_vm15, %v5767_v9, %v5768_v47 }
 0x4d1   : > { %4755 = vst.msk [vmem:[#allocation3 + $0x58] sm:$0xff] %vm725_vm4, %v4719_v39  ;;  %v5777_v32 = vpop.permute.xlu0 %5776 }
 0x4d2   : > { %5520 = vrot.lane.b32.xlu1 %v5485_v27, %s9672_s26  ;;  %v5238_v27 = vld [vmem:[#allocation2 + $0x2e0] sm:$0x3] }
 0x4d3   : > { %5614 = vrot.lane.b32.xlu0 %v5572_v63, %s9669_s21 }
 0x4d4   : > { %v4717_v49 = vpop.permute.xlu1 %4716 }
 0x4d5   : > { %4754 = vst.msk [vmem:[#allocation3 + $0x50] sm:$0xff] %vm725_vm4, %v4717_v49  ;;  %v5503_v28 = vpop.permute.xlu0 %5502  ;;  %v5316_v49 = vrot.slane %v5238_v27, 2 }
 0x4d6   : > { %5548 = vst.msk [vmem:[#allocation3 + $0x10] sm:$0xff] %vm1980_vm9, %v5503_v28  ;;  %5528 = vrot.lane.b32.xlu1 %v5497_v2, %s9672_s26  ;;  %v5687_v2 = vld [vmem:[#allocation2 + $0x340] sm:$0x3] }
 0x4d7   : > { %5644 = vst.msk [vmem:[#allocation3 + $0x10] sm:$0xff] %vm2077_vm10, %v5599_v11  ;;  %5173 = vrot.lane.b32.xlu0 %v5572_v63, %s9668_s20  ;;  %v5754_v11 = vsel %vm4824_vm15, %v5752_v23, %v5753_v38  ;;  %v5765_v57 = vrot.slane %v5687_v2, 2  ;;  %v5317_v0 = vsel %vm4824_vm15, %v5315_v48, %v5316_v49  ;;  %v7126_v2 = vld [vmem:[#allocation2 + $0x300] sm:$0xf0] }
 0x4d8   : > { %v5505_v25 = vpop.permute.xlu1 %5504 }
 0x4d9   : > { %5549 = vst.msk [vmem:[#allocation3 + $0x18] sm:$0xff] %vm1980_vm9, %v5505_v25  ;;  %v5775_v54 = vpop.permute.xlu0 %5774  ;;  %v5766_v1 = vsel %vm4824_vm15, %v5764_v56, %v5765_v57  ;;  %v6491_v25 = vld [vmem:[#allocation2 + $0x110] sm:$0xf0]  ;;  %v7198_v56 = vrot.slane %v7126_v2, 4 }
 0x4da   : > { %5645 = vst.msk [vmem:[#allocation3 + $0x18] sm:$0xff] %vm2077_vm10, %v5601_v34  ;;  %5079 = vrot.lane.b32.xlu1 %v5048_v18, %s9670_s22  ;;  %v6558_v43 = vrot.slane %v6491_v25, 4  ;;  %v6500_v25 = vld [vmem:[#allocation2 + $0x178] sm:$0xf] }
 0x4db   : > { %5820 = vst.msk [vmem:[#allocation3 + $0x10] sm:$0xff] %vm2366_vm11, %v5775_v54  ;;  %5821 = vst.msk [vmem:[#allocation3 + $0x18] sm:$0xff] %vm2366_vm11, %v5777_v32  ;;  %5792 = vrot.lane.b32.xlu0 %v5757_v58, %s9673_s27  ;;  %v6553_v32 = vrot.slane %v6488_v30, 4  ;;  %v6492_v54 = vld [vmem:[#allocation2 + $0x118] sm:$0xf]  ;;  %v6392_v58 = vld [vmem:[#allocation2 + $0x110] sm:$0xff] }
 0x4dc   : > { %v5064_v37 = vpop.permute.xlu1 %5063  ;;  %v6559_v4 = vrot.slane %v6492_v54, 4 }
 0x4dd   : > { %5104 = vst.msk [vmem:[#allocation3 + $0x38] sm:$0xff] %vm1304_vm6, %v5064_v37  ;;  %v5062_v61 = vpop.permute.xlu0 %5061  ;;  %v6549_v37 = vrot.slane %v6485_v3, 4  ;;  %v7399_v3 = vld [vmem:[#allocation2 + $0x310] sm:$0xf] }
 0x4de   : > { %5200 = vst.msk [vmem:[#allocation3 + $0x38] sm:$0xff] %vm1401_vm7, %v5160_v21  ;;  %5351 = vrot.lane.b32.xlu1 %v5320_v8, %s9671_s23  ;;  %v6487_v21 = vld [vmem:[#allocation2 + $0xe0] sm:$0xf0]  ;;  %v6490_v8 = vld [vmem:[#allocation2 + $0x100] sm:$0xf] }
 0x4df   : > { %5103 = vst.msk [vmem:[#allocation3 + $0x30] sm:$0xff] %vm1304_vm6, %v5062_v61  ;;  %5518 = vrot.lane.b32.xlu0 %v5482_v59, %s9672_s26  ;;  %v6552_v39 = vrot.slane %v6487_v21, 4  ;;  %v6489_v61 = vld [vmem:[#allocation2 + $0xf8] sm:$0xf0]  ;;  %v6560_v59 = vsel %vm6308_vm1, %v6558_v43, %v6559_v4  ;;  %v6551_v38 = vsel %vm6308_vm1, %v6549_v37, %v6550_v36  ;;  %v6556_v47 = vrot.slane %v6490_v8, 4 }
 0x4e0   : > { %5199 = vst.msk [vmem:[#allocation3 + $0x30] sm:$0xff] %vm1401_vm7, %v5158_v24  ;;  %v5336_v53 = vpop.permute.xlu1 %5335  ;;  %v5043_v24 = vrot.slane %v4965_v26, 6  ;;  %v6555_v9 = vrot.slane %v6489_v61, 4  ;;  %v6496_v21 = vld [vmem:[#allocation2 + $0x148] sm:$0xf]  ;;  %v6571_v4 = vrot.slane %v6500_v25, 4 }
 0x4e1   : > { %5376 = vst.msk [vmem:[#allocation3 + $0x38] sm:$0xff] %vm1690_vm8, %v5336_v53  ;;  %v5334_v34 = vpop.permute.xlu0 %5333  ;;  %v6554_v28 = vsel %vm6308_vm1, %v6552_v39, %v6553_v32  ;;  %v6565_v12 = vrot.slane %v6496_v21, 4  ;;  %v7471_v37 = vrot.slane %v7399_v3, 4  ;;  %v7128_v36 = vld [vmem:[#allocation2 + $0x318] sm:$0xf0] }
 0x4e2   : > { %v5836_v7 = vld [vmem:[#allocation3 + $0x10] sm:$0xff]  ;;  %5375 = vst.msk [vmem:[#allocation3 + $0x30] sm:$0xff] %vm1690_vm8, %v5334_v34  ;;  %v5837_v35 = vld [vmem:[#allocation3 + $0x18] sm:$0xff]  ;;  %5624 = vrot.lane.b32.xlu1 %v11848_v50, %s9669_s21  ;;  %v5045_v46 = vsel %vm2468_vm3, %v5043_v24, %v5044_v20  ;;  %v6493_v34 = vld [vmem:[#allocation2 + $0x128] sm:$0xf0]  ;;  %v6557_v26 = vsel %vm6308_vm1, %v6555_v9, %v6556_v47 }
 0x4e3   : > { %9509 = vmatprep.mubr.msk.bf16.mxu0 %vm2419_vm12, %v5836_v7  ;;  %5790 = vrot.lane.b32.xlu0 %v5754_v11, %s9673_s27  ;;  %v6494_v7 = vld [vmem:[#allocation2 + $0x130] sm:$0xf]  ;;  %v6561_v14 = vrot.slane %v6493_v34, 4  ;;  %v6498_v24 = vld [vmem:[#allocation2 + $0x160] sm:$0xf] }
 0x4e4   : > { %9510 = vmatmul.mubr.msk.bf16.gmra.mrb[20].mxu0 %vm2419_vm12, %v5837_v35  ;;  %v4896_v19 = vpop.permute.xlu1 %4895  ;;  %v6393_v35 = vld [vmem:[#allocation2 + $0x128] sm:$0xff]  ;;  %v6394_v20 = vld [vmem:[#allocation2 + $0x140] sm:$0xff] }
 0x4e5   : > { %4932 = vst.msk [vmem:[#allocation3 + $0x58] sm:$0xff] %vm1015_vm5, %v4896_v19  ;;  %v4894_v22 = vpop.permute.xlu0 %4893  ;;  %v6495_v19 = vld [vmem:[#allocation2 + $0x140] sm:$0xf0] }
 0x4e6   : > { %4931 = vst.msk [vmem:[#allocation3 + $0x50] sm:$0xff] %vm1015_vm5, %v4894_v22  ;;  %5800 = vrot.lane.b32.xlu1 %v5769_v15, %s9673_s27  ;;  %v6562_v15 = vrot.slane %v6494_v7, 4  ;;  %v6497_v22 = vld [vmem:[#allocation2 + $0x158] sm:$0xf0]  ;;  %v6564_v27 = vrot.slane %v6495_v19, 4 }
 0x4e7   : > { %5622 = vrot.lane.b32.xlu0 %v11859_v17, %s9669_s21  ;;  %v6567_v32 = vrot.slane %v6497_v22, 4  ;;  %v7400_v8 = vld [vmem:[#allocation2 + $0x320] sm:$0xf0]  ;;  %v7132_v22 = vld [vmem:[#allocation2 + $0x348] sm:$0xf0] }
 0x4e8   : > { %v5605_v63 = vpop.permute.xlu1 %5604  ;;  %v6563_v39 = vsel %vm6308_vm1, %v6561_v14, %v6562_v15  ;;  %v6566_v49 = vsel %vm6308_vm1, %v6564_v27, %v6565_v12  ;;  %v7473_v34 = vrot.slane %v7400_v8, 4  ;;  %v7295_v27 = vld [vmem:[#allocation2 + $0x320] sm:$0xff]  ;;  %v7207_v12 = vrot.slane %v7132_v22, 4 }
 0x4e9   : > { %v5603_v40 = vpop.permute.xlu0 %5602 }
 0x4ea   : > { %6423 = vrot.lane.b32.xlu1 %v6390_v31, %s9666_s18 }
 0x4eb   : > { %5077 = vrot.lane.b32.xlu0 %v5045_v46, %s9670_s22  ;;  %v7127_v46 = vld [vmem:[#allocation2 + $0x308] sm:$0xf] }
 0x4ec   : > { %v5164_v51 = vpop.permute.xlu1 %5163  ;;  %v7199_v57 = vrot.slane %v7127_v46, 4 }
 0x4ed   : > { %v5162_v62 = vpop.permute.xlu0 %5161 }
 0x4ee   : > { %6599 = vrot.lane.b32.xlu1 %v6554_v28, %s9667_s19 }
 0x4ef   : > { %5349 = vrot.lane.b32.xlu0 %v5317_v0, %s9671_s23  ;;  %v6395_v0 = vld [vmem:[#allocation2 + $0x158] sm:$0xff] }
 0x4f0   : > { %v4723_v16 = vpop.permute.xlu1 %4722 }
 0x4f1   : > { %4757 = vst.msk [vmem:[#allocation3 + $0x68] sm:$0xff] %vm725_vm4, %v4723_v16  ;;  %v5781_v18 = vpop.permute.xlu0 %5780  ;;  %v7200_v16 = vsel %vm6308_vm1, %v7198_v56, %v7199_v57  ;;  %v7405_v56 = vld [vmem:[#allocation2 + $0x358] sm:$0xf]  ;;  %v7136_v57 = vld [vmem:[#allocation2 + $0x378] sm:$0xf0] }
 0x4f2   : > { %6425 = vrot.lane.b32.xlu1 %v6391_v45, %s9666_s18 }
 0x4f3   : > { %5798 = vrot.lane.b32.xlu0 %v5766_v1, %s9673_s27  ;;  %v6499_v1 = vld [vmem:[#allocation2 + $0x170] sm:$0xf0] }
 0x4f4   : > { %v4721_v44 = vpop.permute.xlu1 %4720  ;;  %v6570_v43 = vrot.slane %v6499_v1, 4 }
 0x4f5   : > { %4756 = vst.msk [vmem:[#allocation3 + $0x60] sm:$0xff] %vm725_vm4, %v4721_v44  ;;  %v5507_v5 = vpop.permute.xlu0 %5506 }
 0x4f6   : > { %5550 = vst.msk [vmem:[#allocation3 + $0x20] sm:$0xff] %vm1980_vm9, %v5507_v5  ;;  %6427 = vrot.lane.b32.xlu1 %v6392_v58, %s9666_s18  ;;  %v6396_v58 = vld [vmem:[#allocation2 + $0x170] sm:$0xff]  ;;  %v7129_v5 = vld [vmem:[#allocation2 + $0x320] sm:$0xf] }
 0x4f7   : > { %5646 = vst.msk [vmem:[#allocation3 + $0x20] sm:$0xff] %vm2077_vm10, %v5603_v40  ;;  %6421 = vrot.lane.b32.xlu0 %v6389_v60, %s9666_s18  ;;  %v7202_v9 = vrot.slane %v7129_v5, 4 }
 0x4f8   : > { %v5509_v23 = vpop.permute.xlu1 %5508 }
 0x4f9   : > { %5551 = vst.msk [vmem:[#allocation3 + $0x28] sm:$0xff] %vm1980_vm9, %v5509_v23  ;;  %v5779_v53 = vpop.permute.xlu0 %5778  ;;  %v6572_v23 = vsel %vm6308_vm1, %v6570_v43, %v6571_v4 }
 0x4fa   : > { %5647 = vst.msk [vmem:[#allocation3 + $0x28] sm:$0xff] %vm2077_vm10, %v5605_v63  ;;  %6603 = vrot.lane.b32.xlu1 %v6560_v59, %s9667_s19  ;;  %v6568_v63 = vrot.slane %v6498_v24, 4  ;;  %v7401_v59 = vld [vmem:[#allocation2 + $0x328] sm:$0xf]  ;;  %v7133_v24 = vld [vmem:[#allocation2 + $0x350] sm:$0xf] }
 0x4fb   : > { %5822 = vst.msk [vmem:[#allocation3 + $0x20] sm:$0xff] %vm2366_vm11, %v5779_v53  ;;  %5823 = vst.msk [vmem:[#allocation3 + $0x28] sm:$0xff] %vm2366_vm11, %v5781_v18  ;;  %6597 = vrot.lane.b32.xlu0 %v6551_v38, %s9667_s19  ;;  %v7398_v18 = vld [vmem:[#allocation2 + $0x308] sm:$0xf0]  ;;  %v7201_v38 = vrot.slane %v7128_v36, 4  ;;  %v7474_v7 = vrot.slane %v7401_v59, 4 }
 0x4fc   : > { %v5068_v11 = vpop.permute.xlu1 %5067  ;;  %v7470_v60 = vrot.slane %v7398_v18, 4  ;;  %v7406_v59 = vld [vmem:[#allocation2 + $0x368] sm:$0xf0] }
 0x4fd   : > { %5106 = vst.msk [vmem:[#allocation3 + $0x48] sm:$0xff] %vm1304_vm6, %v5068_v11  ;;  %v5066_v30 = vpop.permute.xlu0 %5065  ;;  %v7130_v11 = vld [vmem:[#allocation2 + $0x330] sm:$0xf0]  ;;  %v7203_v14 = vsel %vm6308_vm1, %v7201_v38, %v7202_v9  ;;  %v7475_v19 = vsel %vm6308_vm1, %v7473_v34, %v7474_v7  ;;  %v7298_v9 = vld [vmem:[#allocation2 + $0x368] sm:$0xff] }
 0x4fe   : > { %5202 = vst.msk [vmem:[#allocation3 + $0x48] sm:$0xff] %vm1401_vm7, %v5164_v51  ;;  %6429 = vrot.lane.b32.xlu1 %v6393_v35, %s9666_s18  ;;  %v6569_v51 = vsel %vm6308_vm1, %v6567_v32, %v6568_v63  ;;  %v7472_v53 = vsel %vm6308_vm1, %v7470_v60, %v7471_v37  ;;  %v7204_v21 = vrot.slane %v7130_v11, 4 }
 0x4ff   : > { %5105 = vst.msk [vmem:[#allocation3 + $0x40] sm:$0xff] %vm1304_vm6, %v5066_v30  ;;  %6601 = vrot.lane.b32.xlu0 %v6557_v26, %s9667_s19  ;;  %v7131_v26 = vld [vmem:[#allocation2 + $0x338] sm:$0xf] }
 0x500   : > { %5201 = vst.msk [vmem:[#allocation3 + $0x40] sm:$0xff] %vm1401_vm7, %v5162_v62  ;;  %v5340_v31 = vpop.permute.xlu1 %5339  ;;  %v7205_v30 = vrot.slane %v7131_v26, 4 }
 0x501   : > { %5378 = vst.msk [vmem:[#allocation3 + $0x48] sm:$0xff] %vm1690_vm8, %v5340_v31  ;;  %v5338_v40 = vpop.permute.xlu0 %5337  ;;  %v7208_v31 = vrot.slane %v7133_v24, 4 }
 0x502   : > { %v5838_v42 = vld [vmem:[#allocation3 + $0x20] sm:$0xff]  ;;  %5377 = vst.msk [vmem:[#allocation3 + $0x40] sm:$0xff] %vm1690_vm8, %v5338_v40  ;;  %v5839_v48 = vld [vmem:[#allocation3 + $0x28] sm:$0xff]  ;;  %6431 = vrot.lane.b32.xlu1 %v6394_v20, %s9666_s18  ;;  %v7206_v32 = vsel %vm6308_vm1, %v7204_v21, %v7205_v30  ;;  %v7402_v40 = vld [vmem:[#allocation2 + $0x338] sm:$0xf0] }
 0x503   : > { %9513 = vmatprep.mubr.msk.bf16.mxu0 %vm2419_vm12, %v5838_v42  ;;  %6605 = vrot.lane.b32.xlu0 %v6563_v39, %s9667_s19  ;;  %v7403_v42 = vld [vmem:[#allocation2 + $0x340] sm:$0xf]  ;;  %v7209_v2 = vsel %vm6308_vm1, %v7207_v12, %v7208_v31 }
 0x504   : > { %9514 = vmatmul.mubr.msk.bf16.gmra.mrb[24].mxu0 %vm2419_vm12, %v5839_v48  ;;  %v4900_v28 = vpop.permute.xlu1 %4899  ;;  %v7476_v48 = vrot.slane %v7402_v40, 4 }
 0x505   : > { %4934 = vst.msk [vmem:[#allocation3 + $0x68] sm:$0xff] %vm1015_vm5, %v4900_v28  ;;  %v4898_v62 = vpop.permute.xlu0 %4897 }
 0x506   : > { %4933 = vst.msk [vmem:[#allocation3 + $0x60] sm:$0xff] %vm1015_vm5, %v4898_v62  ;;  %6607 = vrot.lane.b32.xlu1 %v6566_v49, %s9667_s19  ;;  %v7477_v49 = vrot.slane %v7403_v42, 4  ;;  %v7137_v62 = vld [vmem:[#allocation2 + $0x380] sm:$0xf] }
 0x507   : > { %6609 = vrot.lane.b32.xlu0 %v6569_v51, %s9667_s19  ;;  %v7404_v51 = vld [vmem:[#allocation2 + $0x350] sm:$0xf0] }
 0x508   : > { %v5609_v45 = vpop.permute.xlu1 %5608  ;;  %v7478_v1 = vsel %vm6308_vm1, %v7476_v48, %v7477_v49  ;;  %v7479_v25 = vrot.slane %v7404_v51, 4 }
 0x509   : > { %v5607_v54 = vpop.permute.xlu0 %5606 }
 0x50a   : > { %6433 = vrot.lane.b32.xlu1 %v6395_v0, %s9666_s18  ;;  %v7213_v0 = vrot.slane %v7136_v57, 4 }
 0x50b   : > { %7238 = vrot.lane.b32.xlu0 %v7200_v16, %s9672_s26 }
 0x50c   : > { %v5168_v44 = vpop.permute.xlu1 %5167 }
 0x50d   : > { %v5166_v61 = vpop.permute.xlu0 %5165 }
 0x50e   : > { %6435 = vrot.lane.b32.xlu1 %v6396_v58, %s9666_s18  ;;  %v7135_v58 = vld [vmem:[#allocation2 + $0x368] sm:$0xf] }
 0x50f   : > { %7334 = vrot.lane.b32.xlu0 %v7294_v33, %s9669_s21  ;;  %v7134_v33 = vld [vmem:[#allocation2 + $0x360] sm:$0xf0]  ;;  %v7211_v37 = vrot.slane %v7135_v58, 4  ;;  %v6251_v58 = vld [vmem:[#allocation2 + $0x110] sm:$0xf] }
 0x510   : > { %v4727_v47 = vpop.permute.xlu1 %4726  ;;  %v7210_v60 = vrot.slane %v7134_v33, 4  ;;  %v6250_v33 = vld [vmem:[#allocation2 + $0x108] sm:$0xf0] }
 0x511   : > { %4759 = vst.msk [vmem:[#allocation3 + $0x78] sm:$0xff] %vm725_vm4, %v4727_v47  ;;  %v5785_v35 = vpop.permute.xlu0 %5784  ;;  %v7482_v47 = vrot.slane %v7406_v59, 4  ;;  %v6253_v59 = vld [vmem:[#allocation2 + $0x128] sm:$0xf] }
 0x512   : > { %6611 = vrot.lane.b32.xlu1 %v6572_v23, %s9667_s19  ;;  %v7407_v23 = vld [vmem:[#allocation2 + $0x370] sm:$0xf] }
 0x513   : > { %7510 = vrot.lane.b32.xlu0 %v7472_v53, %s9673_s27  ;;  %v7483_v53 = vrot.slane %v7407_v23, 4 }
 0x514   : > { %v4725_v15 = vpop.permute.xlu1 %4724 }
 0x515   : > { %4758 = vst.msk [vmem:[#allocation3 + $0x70] sm:$0xff] %vm725_vm4, %v4725_v15  ;;  %v5511_v20 = vpop.permute.xlu0 %5510 }
 0x516   : > { %5552 = vst.msk [vmem:[#allocation3 + $0x30] sm:$0xff] %vm1980_vm9, %v5511_v20  ;;  %7240 = vrot.lane.b32.xlu1 %v7203_v14, %s9672_s26 }
 0x517   : > { %5648 = vst.msk [vmem:[#allocation3 + $0x30] sm:$0xff] %vm2077_vm10, %v5607_v54  ;;  %7512 = vrot.lane.b32.xlu0 %v7475_v19, %s9673_s27  ;;  %v7480_v54 = vrot.slane %v7405_v56, 4 }
 0x518   : > { %v5513_v39 = vpop.permute.xlu1 %5512 }
 0x519   : > { %5553 = vst.msk [vmem:[#allocation3 + $0x38] sm:$0xff] %vm1980_vm9, %v5513_v39  ;;  %v5783_v63 = vpop.permute.xlu0 %5782 }
 0x51a   : > { %5649 = vst.msk [vmem:[#allocation3 + $0x38] sm:$0xff] %vm2077_vm10, %v5609_v45  ;;  %7336 = vrot.lane.b32.xlu1 %v7295_v27, %s9669_s21  ;;  %v7214_v45 = vrot.slane %v7137_v62, 4 }
 0x51b   : > { %5824 = vst.msk [vmem:[#allocation3 + $0x30] sm:$0xff] %vm2366_vm11, %v5783_v63  ;;  %5825 = vst.msk [vmem:[#allocation3 + $0x38] sm:$0xff] %vm2366_vm11, %v5785_v35  ;;  %7242 = vrot.lane.b32.xlu0 %v7206_v32, %s9672_s26  ;;  %v7484_v35 = vsel %vm6308_vm1, %v7482_v47, %v7483_v53  ;;  %v6247_v32 = vld [vmem:[#allocation2 + $0xe0] sm:$0xf]  ;;  %v6254_v53 = vld [vmem:[#allocation2 + $0x138] sm:$0xf0] }
 0x51c   : > { %v5072_v46 = vpop.permute.xlu1 %5071  ;;  %v6313_v40 = vrot.slane %v6247_v32, 4 }
 0x51d   : > { %5108 = vst.msk [vmem:[#allocation3 + $0x58] sm:$0xff] %vm1304_vm6, %v5072_v46  ;;  %v5070_v28 = vpop.permute.xlu0 %5069 }
 0x51e   : > { %5204 = vst.msk [vmem:[#allocation3 + $0x58] sm:$0xff] %vm1401_vm7, %v5168_v44  ;;  %7244 = vrot.lane.b32.xlu1 %v7209_v2, %s9672_s26  ;;  %v7481_v44 = vsel %vm6308_vm1, %v7479_v25, %v7480_v54  ;;  %v6248_v25 = vld [vmem:[#allocation2 + $0xf0] sm:$0xf0]  ;;  %v6249_v54 = vld [vmem:[#allocation2 + $0xf8] sm:$0xf] }
 0x51f   : > { %5107 = vst.msk [vmem:[#allocation3 + $0x50] sm:$0xff] %vm1304_vm6, %v5070_v28  ;;  %7338 = vrot.lane.b32.xlu0 %v11859_v17, %s9669_s21  ;;  %v7215_v17 = vsel %vm6308_vm1, %v7213_v0, %v7214_v45  ;;  %v6244_v0 = vld [vmem:[#allocation2 + $0xc0] sm:$0xf0]  ;;  %v6245_v45 = vld [vmem:[#allocation2 + $0xc8] sm:$0xf] }
 0x520   : > { %5203 = vst.msk [vmem:[#allocation3 + $0x50] sm:$0xff] %vm1401_vm7, %v5166_v61  ;;  %v5344_v16 = vpop.permute.xlu1 %5343  ;;  %v7212_v61 = vsel %vm6308_vm1, %v7210_v60, %v7211_v37 }
 0x521   : > { %5380 = vst.msk [vmem:[#allocation3 + $0x58] sm:$0xff] %vm1690_vm8, %v5344_v16  ;;  %v5342_v18 = vpop.permute.xlu0 %5341  ;;  %v6309_v16 = vrot.slane %v6244_v0, 4 }
 0x522   : > { %v5840_v3 = vld [vmem:[#allocation3 + $0x30] sm:$0xff]  ;;  %5379 = vst.msk [vmem:[#allocation3 + $0x50] sm:$0xff] %vm1690_vm8, %v5342_v18  ;;  %v5841_v43 = vld [vmem:[#allocation3 + $0x38] sm:$0xff]  ;;  %7340 = vrot.lane.b32.xlu1 %v11848_v50, %s9669_s21  ;;  %v7299_v50 = vld [vmem:[#allocation2 + $0x380] sm:$0xff]  ;;  %v6315_v18 = vrot.slane %v6248_v25, 4 }
 0x523   : > { %9517 = vmatprep.mubr.msk.bf16.mxu0 %vm2419_vm12, %v5840_v3  ;;  %7514 = vrot.lane.b32.xlu0 %v7478_v1, %s9673_s27  ;;  %v6310_v1 = vrot.slane %v6245_v45, 4  ;;  %v6316_v3 = vrot.slane %v6249_v54, 4 }
 0x524   : > { %9518 = vmatmul.mubr.msk.bf16.gmra.mrb[28].mxu0 %vm2419_vm12, %v5841_v43  ;;  %v4904_v4 = vpop.permute.xlu1 %4903 }
 0x525   : > { %4936 = vst.msk [vmem:[#allocation3 + $0x78] sm:$0xff] %vm1015_vm5, %v4904_v4  ;;  %v4902_v36 = vpop.permute.xlu0 %4901  ;;  %v6318_v4 = vrot.slane %v6250_v33, 4  ;;  %v6317_v37 = vsel %vm6308_vm1, %v6315_v18, %v6316_v3  ;;  %v6116_v18 = vld [vmem:[%s9997_s17 + $0x8] sm:$0xff] }
 0x526   : > { %4935 = vst.msk [vmem:[#allocation3 + $0x70] sm:$0xff] %vm1015_vm5, %v4902_v36  ;;  %7248 = vrot.lane.b32.xlu1 %v7215_v17, %s9672_s26  ;;  %v6311_v17 = vsel %vm6308_vm1, %v6309_v16, %v6310_v1  ;;  %v6118_v16 = vld [vmem:[%s9997_s17 + $0x18] sm:$0xff] }
 0x527   : > { %7516 = vrot.lane.b32.xlu0 %v7481_v44, %s9673_s27  ;;  %v6319_v44 = vrot.slane %v6251_v58, 4  ;;  %6373 = vst.msk [vmem:[#allocation3] sm:$0xff] %vm177_vm0, %v6311_v17  ;;  %6375 = vst.msk [vmem:[#allocation3 + $0x10] sm:$0xff] %vm177_vm0, %v6317_v37  ;;  %v6661_v58 = vld [vmem:[#allocation2 + $0x180] sm:$0xf0] }
 0x528   : > { %v5613_v5 = vpop.permute.xlu1 %5612  ;;  %v6725_v17 = vrot.slane %v6661_v58, 4  ;;  %v6264_v58 = vld [vmem:[#allocation2 + $0x1b0] sm:$0xf0] }
 0x529   : > { %v5611_v8 = vpop.permute.xlu0 %5610  ;;  %v6320_v36 = vsel %vm6308_vm1, %v6318_v4, %v6319_v44  ;;  %v6262_v4 = vld [vmem:[#allocation2 + $0x198] sm:$0xf0]  ;;  %v6260_v44 = vld [vmem:[#allocation2 + $0x180] sm:$0xf0] }
 0x52a   : > { %7344 = vrot.lane.b32.xlu1 %v7299_v50, %s9669_s21  ;;  %6376 = vst.msk [vmem:[#allocation3 + $0x18] sm:$0xff] %vm177_vm0, %v6320_v36 }
 0x52b   : > { %7246 = vrot.lane.b32.xlu0 %v7212_v61, %s9672_s26 }
 0x52c   : > { %v5172_v38 = vpop.permute.xlu1 %5171 }
 0x52d   : > { %v5170_v34 = vpop.permute.xlu0 %5169 }
 0x52f   : > { %7342 = vrot.lane.b32.xlu0 %v7298_v9, %s9669_s21 }
 0x530   : > { %v5517_v7 = vpop.permute.xlu1 %5516 }
 0x531   : > { %5555 = vst.msk [vmem:[#allocation3 + $0x48] sm:$0xff] %vm1980_vm9, %v5517_v7  ;;  %v5789_v11 = vpop.permute.xlu0 %5788  ;;  %v6324_v7 = vrot.slane %v6254_v53, 4 }
 0x532   : > { %5651 = vst.msk [vmem:[#allocation3 + $0x48] sm:$0xff] %vm2077_vm10, %v5613_v5 }
 0x533   : > { %5827 = vst.msk [vmem:[#allocation3 + $0x48] sm:$0xff] %vm2366_vm11, %v5789_v11  ;;  %7518 = vrot.lane.b32.xlu0 %v7484_v35, %s9673_s27 }
 0x534   : > { %v5076_v26 = vpop.permute.xlu1 %5075 }
 0x535   : > { %5110 = vst.msk [vmem:[#allocation3 + $0x68] sm:$0xff] %vm1304_vm6, %v5076_v26  ;;  %v5515_v14 = vpop.permute.xlu0 %5514 }
 0x536   : > { %5206 = vst.msk [vmem:[#allocation3 + $0x68] sm:$0xff] %vm1401_vm7, %v5172_v38  ;;  %v6322_v38 = vrot.slane %v6253_v59, 4  ;;  %v6333_v59 = vrot.slane %v6260_v44, 4 }
 0x537   : > { %5554 = vst.msk [vmem:[#allocation3 + $0x40] sm:$0xff] %vm1980_vm9, %v5515_v14 }
 0x538   : > { %5650 = vst.msk [vmem:[#allocation3 + $0x40] sm:$0xff] %vm2077_vm10, %v5611_v8  ;;  %v5348_v15 = vpop.permute.xlu1 %5347  ;;  %v6252_v8 = vld [vmem:[#allocation2 + $0x120] sm:$0xf0] }
 0x539   : > { %5382 = vst.msk [vmem:[#allocation3 + $0x68] sm:$0xff] %vm1690_vm8, %v5348_v15  ;;  %v5787_v19 = vpop.permute.xlu0 %5786  ;;  %v6321_v23 = vrot.slane %v6252_v8, 4  ;;  %v6336_v8 = vrot.slane %v6262_v4, 4 }
 0x53a   : > { %5559 = vst.msk [vmem:[#allocation3 + $0x68] sm:$0xff] %vm1980_vm9, %v11632_v6  ;;  %v5843_v6 = vld [vmem:[#allocation3 + $0x48] sm:$0xff] }
 0x53b   : > { %5826 = vst.msk [vmem:[#allocation3 + $0x40] sm:$0xff] %vm2366_vm11, %v5787_v19 }
 0x53c   : > { %5655 = vst.msk [vmem:[#allocation3 + $0x68] sm:$0xff] %vm2077_vm10, %v11640_v52  ;;  %v5617_v21 = vpop.permute.xlu1 %5616 }
 0x53d   : > { %5831 = vst.msk [vmem:[#allocation3 + $0x68] sm:$0xff] %vm2366_vm11, %v11634_v55  ;;  %v5074_v30 = vpop.permute.xlu0 %5073 }
 0x53e   : > { %5109 = vst.msk [vmem:[#allocation3 + $0x60] sm:$0xff] %vm1304_vm6, %v5074_v30 }
 0x53f   : > { %5205 = vst.msk [vmem:[#allocation3 + $0x60] sm:$0xff] %vm1401_vm7, %v5170_v34  ;;  %v6255_v34 = vld [vmem:[#allocation2 + $0x140] sm:$0xf] }
 0x540   : > { %v5176_v22 = vpop.permute.xlu1 %5175  ;;  %v6325_v35 = vrot.slane %v6255_v34, 4 }
 0x541   : > { %v5346_v24 = vpop.permute.xlu0 %5345 }
 0x542   : > { %v5842_v20 = vld [vmem:[#allocation3 + $0x40] sm:$0xff]  ;;  %5381 = vst.msk [vmem:[#allocation3 + $0x60] sm:$0xff] %vm1690_vm8, %v5346_v24  ;;  %v6326_v19 = vsel %vm6308_vm1, %v6324_v7, %v6325_v35  ;;  %v6257_v24 = vld [vmem:[#allocation2 + $0x158] sm:$0xf] }
 0x543   : > { %9521 = vmatprep.mubr.msk.bf16.mxu0 %vm2419_vm12, %v5842_v20  ;;  %5558 = vst.msk [vmem:[#allocation3 + $0x60] sm:$0xff] %vm1980_vm9, %v11604_v10 }
 0x544   : > { %9522 = vmatmul.mubr.msk.bf16.gmra.mrb[32].mxu0 %vm2419_vm12, %v5843_v6  ;;  %5654 = vst.msk [vmem:[#allocation3 + $0x60] sm:$0xff] %vm2077_vm10, %v11615_v29  ;;  %v5521_v55 = vpop.permute.xlu1 %5520  ;;  %v5847_v61 = vld [vmem:[#allocation3 + $0x68] sm:$0xff]  ;;  %v6328_v6 = vrot.slane %v6257_v24, 4 }
 0x545   : > { %5830 = vst.msk [vmem:[#allocation3 + $0x60] sm:$0xff] %vm2366_vm11, %v11624_v41  ;;  %v5615_v52 = vpop.permute.xlu0 %5614  ;;  %v6246_v41 = vld [vmem:[#allocation2 + $0xd8] sm:$0xf0] }
 0x546   : > { %5557 = vst.msk [vmem:[#allocation3 + $0x58] sm:$0xff] %vm1980_vm9, %v5521_v55  ;;  %v6312_v63 = vrot.slane %v6246_v41, 4 }
 0x547   : > { %5653 = vst.msk [vmem:[#allocation3 + $0x58] sm:$0xff] %vm2077_vm10, %v5617_v21 }
 0x548   : > { %v5529_v27 = vpop.permute.xlu1 %5528  ;;  %v6314_v46 = vsel %vm6308_vm1, %v6312_v63, %v6313_v40  ;;  %6378 = vst.msk [vmem:[#allocation3 + $0x28] sm:$0xff] %vm177_vm0, %v6326_v19 }
 0x549   : > { %v5174_v12 = vpop.permute.xlu0 %5173  ;;  %6374 = vst.msk [vmem:[#allocation3 + $0x8] sm:$0xff] %vm177_vm0, %v6314_v46 }
 0x54c   : > { %v5080_v31 = vpop.permute.xlu1 %5079  ;;  %v5846_v62 = vld [vmem:[#allocation3 + $0x60] sm:$0xff] }
 0x54d   : > { %5112 = vst.msk [vmem:[#allocation3 + $0x78] sm:$0xff] %vm1304_vm6, %v5080_v31  ;;  %v5793_v10 = vpop.permute.xlu0 %5792 }
 0x54e   : > { %5208 = vst.msk [vmem:[#allocation3 + $0x78] sm:$0xff] %vm1401_vm7, %v5176_v22  ;;  %v6256_v22 = vld [vmem:[#allocation2 + $0x150] sm:$0xf0] }
 0x54f   : > { %5829 = vst.msk [vmem:[#allocation3 + $0x58] sm:$0xff] %vm2366_vm11, %v5793_v10  ;;  %v6327_v20 = vrot.slane %v6256_v22, 4  ;;  %v6258_v10 = vld [vmem:[#allocation2 + $0x168] sm:$0xf0] }
 0x550   : > { %v5352_v29 = vpop.permute.xlu1 %5351  ;;  %v6330_v41 = vrot.slane %v6258_v10, 4 }
 0x551   : > { %5384 = vst.msk [vmem:[#allocation3 + $0x78] sm:$0xff] %vm1690_vm8, %v5352_v29  ;;  %v5519_v39 = vpop.permute.xlu0 %5518  ;;  %v6259_v29 = vld [vmem:[#allocation2 + $0x170] sm:$0xf] }
 0x552   : > { %5561 = vst.msk [vmem:[#allocation3 + $0x78] sm:$0xff] %vm1980_vm9, %v5529_v27  ;;  %5556 = vst.msk [vmem:[#allocation3 + $0x50] sm:$0xff] %vm1980_vm9, %v5519_v39  ;;  %v6329_v27 = vsel %vm6308_vm1, %v6327_v20, %v6328_v6  ;;  %v6331_v32 = vrot.slane %v6259_v29, 4  ;;  %v6936_v20 = vld [vmem:[#allocation2 + $0x1a8] sm:$0xf] }
 0x553   : > { %5652 = vst.msk [vmem:[#allocation3 + $0x50] sm:$0xff] %vm2077_vm10, %v5615_v52 }
 0x554   : > { %v5625_v42 = vpop.permute.xlu1 %5624  ;;  %6379 = vst.msk [vmem:[#allocation3 + $0x30] sm:$0xff] %vm177_vm0, %v6329_v27  ;;  %v6332_v63 = vsel %vm6308_vm1, %v6330_v41, %v6331_v32 }
 0x555   : > { %v5791_v2 = vpop.permute.xlu0 %5790  ;;  %5657 = vst.msk [vmem:[#allocation3 + $0x78] sm:$0xff] %vm2077_vm10, %v5625_v42 }
 0x556   : > { %5828 = vst.msk [vmem:[#allocation3 + $0x50] sm:$0xff] %vm2366_vm11, %v5791_v2  ;;  %v5845_v28 = vld [vmem:[#allocation3 + $0x58] sm:$0xff] }
 0x557   : > { %6380 = vst.msk [vmem:[#allocation3 + $0x38] sm:$0xff] %vm177_vm0, %v6332_v63 }
 0x558   : > { %v5801_v48 = vpop.permute.xlu1 %5800 }
 0x559   : > { %v5623_v49 = vpop.permute.xlu0 %5622  ;;  %5833 = vst.msk [vmem:[#allocation3 + $0x78] sm:$0xff] %vm2366_vm11, %v5801_v48 }
 0x55c   : > { %v6424_v51 = vpop.permute.xlu1 %6423 }
 0x55d   : > { %v5078_v56 = vpop.permute.xlu0 %5077  ;;  %v5844_v57 = vld [vmem:[#allocation3 + $0x50] sm:$0xff]  ;;  %6470 = vst.msk [vmem:[#allocation3 + $0x8] sm:$0xff] %vm725_vm4, %v6424_v51 }
 0x55e   : > { %5111 = vst.msk [vmem:[#allocation3 + $0x70] sm:$0xff] %vm1304_vm6, %v5078_v56  ;;  %9525 = vmatprep.mubr.msk.bf16.mxu0 %vm2419_vm12, %v5844_v57  ;;  %v6115_v57 = vld [vmem:[%s9997_s17] sm:$0xff] }
 0x55f   : > { %5207 = vst.msk [vmem:[#allocation3 + $0x70] sm:$0xff] %vm1401_vm7, %v5174_v12  ;;  %9526 = vmatmul.mubr.msk.bf16.gmra.mrb[36].mxu0 %vm2419_vm12, %v5845_v28 }
 0x560   : > { %9529 = vmatprep.mubr.msk.bf16.mxu0 %vm2419_vm12, %v5846_v62  ;;  %v6600_v43 = vpop.permute.xlu1 %6599  ;;  %v5849_v11 = vld [vmem:[#allocation3 + $0x78] sm:$0xff] }
 0x561   : > { %v5350_v60 = vpop.permute.xlu0 %5349  ;;  %6646 = vst.msk [vmem:[#allocation3 + $0x8] sm:$0xff] %vm1015_vm5, %v6600_v43 }
 0x562   : > { %5383 = vst.msk [vmem:[#allocation3 + $0x70] sm:$0xff] %vm1690_vm8, %v5350_v60 }
 0x563   : > { %5560 = vst.msk [vmem:[#allocation3 + $0x70] sm:$0xff] %vm1980_vm9, %v11643_v13  ;;  %v6323_v13 = vsel %vm6308_vm1, %v6321_v23, %v6322_v38  ;;  %v6663_v38 = vld [vmem:[#allocation2 + $0x198] sm:$0xf0] }
 0x564   : > { %5656 = vst.msk [vmem:[#allocation3 + $0x70] sm:$0xff] %vm2077_vm10, %v5623_v49  ;;  %v6426_v50 = vpop.permute.xlu1 %6425  ;;  %v6117_v49 = vld [vmem:[%s9997_s17 + $0x10] sm:$0xff] }
 0x565   : > { %v5799_v5 = vpop.permute.xlu0 %5798  ;;  %6471 = vst.msk [vmem:[#allocation3 + $0x10] sm:$0xff] %vm725_vm4, %v6426_v50 }
 0x566   : > { %5832 = vst.msk [vmem:[#allocation3 + $0x70] sm:$0xff] %vm2366_vm11, %v5799_v5  ;;  %v6934_v5 = vld [vmem:[#allocation2 + $0x190] sm:$0xf] }
 0x567   : > { %9530 = vmatmul.mubr.msk.bf16.gmra.mrb[40].mxu0 %vm2419_vm12, %v5847_v61  ;;  %6377 = vst.msk [vmem:[#allocation3 + $0x20] sm:$0xff] %vm177_vm0, %v6323_v13  ;;  %v6998_v13 = vrot.slane %v6934_v5, 4 }
 0x568   : > { %v6428_v9 = vpop.permute.xlu1 %6427 }
 0x569   : > { %v6422_v47 = vpop.permute.xlu0 %6421  ;;  %6472 = vst.msk [vmem:[#allocation3 + $0x18] sm:$0xff] %vm725_vm4, %v6428_v9 }
 0x56a   : > { %6469 = vst.msk [vmem:[#allocation3] sm:$0xff] %vm725_vm4, %v6422_v47 }
 0x56c   : > { %v6604_v26 = vpop.permute.xlu1 %6603 }
 0x56d   : > { %v5848_v14 = vld [vmem:[#allocation3 + $0x70] sm:$0xff]  ;;  %v6598_v15 = vpop.permute.xlu0 %6597  ;;  %6648 = vst.msk [vmem:[#allocation3 + $0x18] sm:$0xff] %vm1015_vm5, %v6604_v26 }
 0x56e   : > { %9533 = vmatprep.mubr.msk.bf16.mxu0 %vm2419_vm12, %v5848_v14  ;;  %6645 = vst.msk [vmem:[#allocation3] sm:$0xff] %vm1015_vm5, %v6598_v15  ;;  %v6728_v15 = vrot.slane %v6663_v38, 4 }
 0x56f   : > { %9534 = vmatmul.mubr.msk.bf16.gmra.mrb[44].mxu0 %vm2419_vm12, %v5849_v11  ;;  %v6502_v11 = vld [vmem:[#allocation2 + $0x190] sm:$0xf] }
 0x570   : > { %v6430_v21 = vpop.permute.xlu1 %6429  ;;  %v6574_v22 = vrot.slane %v6502_v11, 4 }
 0x571   : > { %v6602_v30 = vpop.permute.xlu0 %6601  ;;  %6473 = vst.msk [vmem:[#allocation3 + $0x20] sm:$0xff] %vm725_vm4, %v6430_v21 }
 0x572   : > { %6647 = vst.msk [vmem:[#allocation3 + $0x10] sm:$0xff] %vm1015_vm5, %v6602_v30 }
 0x574   : > { %v6432_v55 = vpop.permute.xlu1 %6431 }
 0x575   : > { %v6606_v52 = vpop.permute.xlu0 %6605  ;;  %6474 = vst.msk [vmem:[#allocation3 + $0x28] sm:$0xff] %vm725_vm4, %v6432_v55 }
 0x576   : > { %6649 = vst.msk [vmem:[#allocation3 + $0x20] sm:$0xff] %vm1015_vm5, %v6606_v52  ;;  %v7001_v52 = vrot.slane %v6936_v20, 4 }
 0x578   : > { %v6608_v12 = vpop.permute.xlu1 %6607 }
 0x579   : > { %6650 = vst.msk [vmem:[#allocation3 + $0x28] sm:$0xff] %vm1015_vm5, %v6608_v12  ;;  %v6610_v39 = vpop.permute.xlu0 %6609 }
 0x57c   : > { %v6434_v31 = vpop.permute.xlu1 %6433 }
 0x57d   : > { %6475 = vst.msk [vmem:[#allocation3 + $0x30] sm:$0xff] %vm725_vm4, %v6434_v31  ;;  %v6504_v31 = vld [vmem:[#allocation2 + $0x1a8] sm:$0xf] }
 0x57e   : > { %6651 = vst.msk [vmem:[#allocation3 + $0x30] sm:$0xff] %vm1015_vm5, %v6610_v39  ;;  %v6577_v39 = vrot.slane %v6504_v31, 4 }
 0x580   : > { %v6436_v40 = vpop.permute.xlu1 %6435 }
 0x581   : > { %6476 = vst.msk [vmem:[#allocation3 + $0x38] sm:$0xff] %vm725_vm4, %v6436_v40  ;;  %v6121_v40 = vld [vmem:[%s9997_s17 + $0x30] sm:$0xff] }
 0x584   : > { %v6612_v42 = vpop.permute.xlu1 %6611 }
 0x585   : > { %6652 = vst.msk [vmem:[#allocation3 + $0x38] sm:$0xff] %vm1015_vm5, %v6612_v42 }
 0x597   : > { %v9507_v2 = vpop.f32.mrb[16].mxu0 }
 0x598   : > { %v6085_v46 = vmax.f32 %v9507_v2, 0.0  ;;  %v5956_v48 = vpop.f32.mrb[17].mxu0 }
 0x599   : > { %v6083_v28 = vmax.f32 %v5956_v48, 0.0  ;;  %v9508_v51 = vpop.f32.mrb[18].mxu0 }
 0x59a   : > { %v6149_v56 = vadd.f32 %v6117_v49, %v6085_v46  ;;  %v6086_v62 = vmax.f32 %v9508_v51, 0.0  ;;  %v5959_v0 = vpop.f32.mrb[19].mxu0  ;;  %v6119_v49 = vld [vmem:[%s9997_s17 + $0x20] sm:$0xff] }
 0x59b   : > { %v6147_v45 = vadd.f32 %v6115_v57, %v6083_v28  ;;  %v6084_v1 = vmax.f32 %v5959_v0, 0.0  ;;  %v6122_v57 = vld [vmem:[%s9997_s17 + $0x38] sm:$0xff] }
 0x59c   : > { %6181 = vst.msk [vmem:[%s9997_s17 + $0x10] sm:$0xff] %vm177_vm0, %v6149_v56  ;;  %v6150_v25 = vadd.f32 %v6118_v16, %v6086_v62  ;;  %v6212_v54 = vpack.c.bf16 %v6086_v62, %v6085_v46  ;;  %v6120_v16 = vld [vmem:[%s9997_s17 + $0x28] sm:$0xff] }
 0x59d   : > { %6179 = vst.msk [vmem:[%s9997_s17] sm:$0xff] %vm177_vm0, %v6147_v45  ;;  %v6148_v3 = vadd.f32 %v6116_v18, %v6084_v1  ;;  %v6211_v33 = vpack.c.bf16 %v6084_v1, %v6083_v28 }
 0x59e   : > { %6182 = vst.msk [vmem:[%s9997_s17 + $0x18] sm:$0xff] %vm177_vm0, %v6150_v25  ;;  %6228 = vst.msk [vmem:[#allocation2 + $0x1a0] sm:$0xff] %vm177_vm0, %v6212_v54  ;;  %v6665_v54 = vld [vmem:[#allocation2 + $0x1b0] sm:$0xf0] }
 0x59f   : > { %6180 = vst.msk [vmem:[%s9997_s17 + $0x8] sm:$0xff] %vm177_vm0, %v6148_v3  ;;  %6227 = vst.msk [vmem:[#allocation2 + $0x188] sm:$0xff] %vm177_vm0, %v6211_v33  ;;  %v6731_v3 = vrot.slane %v6665_v54, 4  ;;  %v6266_v33 = vld [vmem:[#allocation2 + $0x1c8] sm:$0xf0] }
 0x5a5   : > { %v6838_v43 = vld [vmem:[#allocation2 + $0x1a0] sm:$0xff] }
 0x5a6   : > { %6871 = vrot.lane.b32.xlu1 %v6838_v43, %s9668_s20  ;;  %v6837_v60 = vld [vmem:[#allocation2 + $0x188] sm:$0xff]  ;;  %v6263_v61 = vld [vmem:[#allocation2 + $0x1a0] sm:$0xf]  ;;  %v6935_v24 = vld [vmem:[#allocation2 + $0x1a0] sm:$0xf0] }
 0x5a7   : > { %v6662_v37 = vld [vmem:[#allocation2 + $0x188] sm:$0xf]  ;;  %6869 = vrot.lane.b32.xlu0 %v6837_v60, %s9668_s20  ;;  %v6933_v50 = vld [vmem:[#allocation2 + $0x188] sm:$0xf0]  ;;  %v6664_v53 = vld [vmem:[#allocation2 + $0x1a0] sm:$0xf] }
 0x5a8   : > { %v6726_v36 = vrot.slane %v6662_v37, 4  ;;  %v6261_v9 = vld [vmem:[#allocation2 + $0x188] sm:$0xf]  ;;  %v6997_v47 = vrot.slane %v6933_v50, 4  ;;  %v6337_v34 = vrot.slane %v6263_v61, 4  ;;  %v6729_v19 = vrot.slane %v6664_v53, 4 }
 0x5a9   : > { %v6334_v7 = vrot.slane %v6261_v9, 4  ;;  %v6501_v35 = vld [vmem:[#allocation2 + $0x188] sm:$0xf0]  ;;  %v7000_v55 = vrot.slane %v6935_v24, 4  ;;  %v6503_v12 = vld [vmem:[#allocation2 + $0x1a0] sm:$0xf0] }
 0x5aa   : > { %v6727_v23 = vsel %vm6308_vm1, %v6725_v17, %v6726_v36  ;;  %6439 = vrot.lane.b32.xlu1 %v6838_v43, %s9666_s18  ;;  %v6338_v26 = vsel %vm6308_vm1, %v6336_v8, %v6337_v34  ;;  %v6999_v21 = vsel %vm6308_vm1, %v6997_v47, %v6998_v13  ;;  %v6573_v30 = vrot.slane %v6501_v35, 4  ;;  %v6667_v61 = vld [vmem:[#allocation2 + $0x1c8] sm:$0xf0]  ;;  %v6506_v53 = vld [vmem:[#allocation2 + $0x1c0] sm:$0xf] }
 0x5ab   : > { %6773 = vrot.lane.b32.xlu0 %v6727_v23, %s9670_s22  ;;  %v6335_v14 = vsel %vm6308_vm1, %v6333_v59, %v6334_v7  ;;  %6382 = vst.msk [vmem:[#allocation3 + $0x48] sm:$0xff] %vm177_vm0, %v6338_v26  ;;  %v6730_v6 = vsel %vm6308_vm1, %v6728_v15, %v6729_v19  ;;  %v7002_v10 = vsel %vm6308_vm1, %v7000_v55, %v7001_v52  ;;  %v6576_v29 = vrot.slane %v6503_v12, 4  ;;  %v6508_v55 = vld [vmem:[#allocation2 + $0x1d8] sm:$0xf] }
 0x5ac   : > { %6381 = vst.msk [vmem:[#allocation3 + $0x40] sm:$0xff] %vm177_vm0, %v6335_v14  ;;  %v6575_v27 = vsel %vm6308_vm1, %v6573_v30, %v6574_v22  ;;  %v6342_v36 = vrot.slane %v6266_v33, 4  ;;  %v6339_v50 = vrot.slane %v6264_v58, 4  ;;  %v6734_v35 = vrot.slane %v6667_v61, 4  ;;  %v6268_v33 = vld [vmem:[#allocation2 + $0x1e0] sm:$0xf0] }
 0x5ad   : > { %v6578_v46 = vsel %vm6308_vm1, %v6576_v29, %v6577_v39  ;;  %v6580_v15 = vrot.slane %v6506_v53, 4  ;;  %v6583_v12 = vrot.slane %v6508_v55, 4  ;;  %v6510_v53 = vld [vmem:[#allocation2 + $0x1f0] sm:$0xf] }
 0x5ae   : > { %6437 = vrot.lane.b32.xlu1 %v6837_v60, %s9666_s18  ;;  %v6938_v60 = vld [vmem:[#allocation2 + $0x1c0] sm:$0xf] }
 0x5af   : > { %7045 = vrot.lane.b32.xlu0 %v6999_v21, %s9671_s23  ;;  %v7004_v23 = vrot.slane %v6938_v60, 4  ;;  %v6940_v21 = vld [vmem:[#allocation2 + $0x1d8] sm:$0xf] }
 0x5b0   : > { %v7007_v24 = vrot.slane %v6940_v21, 4  ;;  %v6944_v21 = vld [vmem:[#allocation2 + $0x208] sm:$0xf] }
 0x5b2   : > { %6775 = vrot.lane.b32.xlu1 %v6730_v6, %s9670_s22 }
 0x5b3   : > { %6613 = vrot.lane.b32.xlu0 %v6575_v27, %s9667_s19 }
 0x5b6   : > { %7047 = vrot.lane.b32.xlu1 %v7002_v10, %s9671_s23  ;;  %v12111_v10 = vpop.permute.xlu0 %7238 }
 0x5b7   : > { %v9511_v41 = vpop.f32.mrb[20].mxu0 }
 0x5b8   : > { %v6089_v32 = vmax.f32 %v9511_v41, 0.0  ;;  %v5972_v63 = vpop.f32.mrb[21].mxu0  ;;  %v6125_v41 = vld [vmem:[%s9997_s17 + $0x50] sm:$0xff] }
 0x5b9   : > { %v6087_v42 = vmax.f32 %v5972_v63, 0.0  ;;  %v9512_v2 = vpop.f32.mrb[22].mxu0 }
 0x5ba   : > { %v6153_v48 = vadd.f32 %v6121_v40, %v6089_v32  ;;  %v6090_v28 = vmax.f32 %v9512_v2, 0.0  ;;  %v5975_v51 = vpop.f32.mrb[23].mxu0  ;;  %6615 = vrot.lane.b32.xlu1 %v6578_v46, %s9667_s19  ;;  %v6123_v2 = vld [vmem:[%s9997_s17 + $0x40] sm:$0xff] }
 0x5bb   : > { %v6151_v56 = vadd.f32 %v6119_v49, %v6087_v42  ;;  %v6088_v62 = vmax.f32 %v5975_v51, 0.0 }
 0x5bc   : > { %6185 = vst.msk [vmem:[%s9997_s17 + $0x30] sm:$0xff] %vm177_vm0, %v6153_v48  ;;  %v6154_v0 = vadd.f32 %v6122_v57, %v6090_v28  ;;  %v6214_v45 = vpack.c.bf16 %v6090_v28, %v6089_v32  ;;  %v6126_v28 = vld [vmem:[%s9997_s17 + $0x58] sm:$0xff] }
 0x5bd   : > { %6183 = vst.msk [vmem:[%s9997_s17 + $0x20] sm:$0xff] %vm177_vm0, %v6151_v56  ;;  %v6152_v1 = vadd.f32 %v6120_v16, %v6088_v62  ;;  %v6213_v25 = vpack.c.bf16 %v6088_v62, %v6087_v42  ;;  %v6124_v62 = vld [vmem:[%s9997_s17 + $0x48] sm:$0xff]  ;;  %v12123_v16 = vpop.permute.xlu0 %7334 }
 0x5be   : > { %6186 = vst.msk [vmem:[%s9997_s17 + $0x38] sm:$0xff] %vm177_vm0, %v6154_v0  ;;  %6230 = vst.msk [vmem:[#allocation2 + $0x1d0] sm:$0xff] %vm177_vm0, %v6214_v45 }
 0x5bf   : > { %6184 = vst.msk [vmem:[%s9997_s17 + $0x28] sm:$0xff] %vm177_vm0, %v6152_v1  ;;  %6229 = vst.msk [vmem:[#allocation2 + $0x1b8] sm:$0xff] %vm177_vm0, %v6213_v25  ;;  %v6669_v1 = vld [vmem:[#allocation2 + $0x1e0] sm:$0xf0] }
 0x5c1   : > { %v12131_v25 = vpop.permute.xlu0 %7510 }
 0x5c5   : > { %v6840_v18 = vld [vmem:[#allocation2 + $0x1d0] sm:$0xff]  ;;  %v12136_v61 = vpop.permute.xlu0 %7512 }
 0x5c6   : > { %6875 = vrot.lane.b32.xlu1 %v6840_v18, %s9668_s20  ;;  %v6839_v43 = vld [vmem:[#allocation2 + $0x1b8] sm:$0xff]  ;;  %v6267_v37 = vld [vmem:[#allocation2 + $0x1d0] sm:$0xf]  ;;  %v6939_v19 = vld [vmem:[#allocation2 + $0x1d0] sm:$0xf0] }
 0x5c7   : > { %v6666_v17 = vld [vmem:[#allocation2 + $0x1b8] sm:$0xf]  ;;  %6873 = vrot.lane.b32.xlu0 %v6839_v43, %s9668_s20  ;;  %v6937_v44 = vld [vmem:[#allocation2 + $0x1b8] sm:$0xf0]  ;;  %v6668_v38 = vld [vmem:[#allocation2 + $0x1d0] sm:$0xf] }
 0x5c8   : > { %v6732_v4 = vrot.slane %v6666_v17, 4  ;;  %v6265_v8 = vld [vmem:[#allocation2 + $0x1b8] sm:$0xf]  ;;  %v7003_v59 = vrot.slane %v6937_v44, 4  ;;  %v6343_v9 = vrot.slane %v6267_v37, 4  ;;  %v6735_v11 = vrot.slane %v6668_v38, 4 }
 0x5c9   : > { %v6340_v47 = vrot.slane %v6265_v8, 4  ;;  %v6505_v13 = vld [vmem:[#allocation2 + $0x1b8] sm:$0xf0]  ;;  %v7006_v22 = vrot.slane %v6939_v19, 4  ;;  %v6507_v6 = vld [vmem:[#allocation2 + $0x1d0] sm:$0xf0] }
 0x5ca   : > { %v6733_v5 = vsel %vm6308_vm1, %v6731_v3, %v6732_v4  ;;  %6443 = vrot.lane.b32.xlu1 %v6840_v18, %s9666_s18  ;;  %v6344_v34 = vsel %vm6308_vm1, %v6342_v36, %v6343_v9  ;;  %v7005_v26 = vsel %vm6308_vm1, %v7003_v59, %v7004_v23  ;;  %v6579_v14 = vrot.slane %v6505_v13, 4  ;;  %v6270_v3 = vld [vmem:[#allocation2 + $0x1f8] sm:$0xf0]  ;;  %v6942_v44 = vld [vmem:[#allocation2 + $0x1f0] sm:$0xf] }
 0x5cb   : > { %6777 = vrot.lane.b32.xlu0 %v6733_v5, %s9670_s22  ;;  %v6341_v7 = vsel %vm6308_vm1, %v6339_v50, %v6340_v47  ;;  %6384 = vst.msk [vmem:[#allocation3 + $0x58] sm:$0xff] %vm177_vm0, %v6344_v34  ;;  %v6736_v30 = vsel %vm6308_vm1, %v6734_v35, %v6735_v11  ;;  %v7008_v52 = vsel %vm6308_vm1, %v7006_v22, %v7007_v24  ;;  %v6582_v27 = vrot.slane %v6507_v6, 4  ;;  %v6671_v5 = vld [vmem:[#allocation2 + $0x1f8] sm:$0xf0] }
 0x5cc   : > { %6383 = vst.msk [vmem:[#allocation3 + $0x50] sm:$0xff] %vm177_vm0, %v6341_v7  ;;  %v6581_v20 = vsel %vm6308_vm1, %v6579_v14, %v6580_v15  ;;  %v6737_v18 = vrot.slane %v6669_v1, 4  ;;  %v6348_v37 = vrot.slane %v6270_v3, 4  ;;  %v6345_v36 = vrot.slane %v6268_v33, 4 }
 0x5cd   : > { %v6584_v40 = vsel %vm6308_vm1, %v6582_v27, %v6583_v12  ;;  %v7010_v23 = vrot.slane %v6942_v44, 4  ;;  %v6740_v35 = vrot.slane %v6671_v5, 4  ;;  %v6586_v15 = vrot.slane %v6510_v53, 4  ;;  %v12153_v27 = vpop.permute.xlu1 %7240 }
 0x5ce   : > { %6441 = vrot.lane.b32.xlu1 %v6839_v43, %s9666_s18 }
 0x5cf   : > { %7049 = vrot.lane.b32.xlu0 %v7005_v26, %s9671_s23 }
 0x5d2   : > { %6779 = vrot.lane.b32.xlu1 %v6736_v30, %s9670_s22  ;;  %v12147_v30 = vpop.permute.xlu0 %7242 }
 0x5d3   : > { %6617 = vrot.lane.b32.xlu0 %v6581_v20, %s9667_s19  ;;  %v7013_v20 = vrot.slane %v6944_v21, 4 }
 0x5d6   : > { %7051 = vrot.lane.b32.xlu1 %v7008_v52, %s9671_s23  ;;  %v6512_v52 = vld [vmem:[#allocation2 + $0x208] sm:$0xf] }
 0x5d7   : > { %v9515_v31 = vpop.f32.mrb[24].mxu0 }
 0x5d8   : > { %v6093_v29 = vmax.f32 %v9515_v31, 0.0  ;;  %v5988_v39 = vpop.f32.mrb[25].mxu0 }
 0x5d9   : > { %v6091_v32 = vmax.f32 %v5988_v39, 0.0  ;;  %v9516_v63 = vpop.f32.mrb[26].mxu0  ;;  %v12156_v39 = vpop.permute.xlu0 %7338 }
 0x5da   : > { %v6157_v42 = vadd.f32 %v6125_v41, %v6093_v29  ;;  %v6094_v46 = vmax.f32 %v9516_v63, 0.0  ;;  %v5991_v48 = vpop.f32.mrb[27].mxu0  ;;  %6619 = vrot.lane.b32.xlu1 %v6584_v40, %s9667_s19  ;;  %v6129_v40 = vld [vmem:[%s9997_s17 + $0x70] sm:$0xff] }
 0x5db   : > { %v6155_v49 = vadd.f32 %v6123_v2, %v6091_v32  ;;  %v6092_v51 = vmax.f32 %v5991_v48, 0.0 }
 0x5dc   : > { %6189 = vst.msk [vmem:[%s9997_s17 + $0x50] sm:$0xff] %vm177_vm0, %v6157_v42  ;;  %v6158_v56 = vadd.f32 %v6126_v28, %v6094_v46  ;;  %v6216_v57 = vpack.c.bf16 %v6094_v46, %v6093_v29  ;;  %v6589_v29 = vrot.slane %v6512_v52, 4 }
 0x5dd   : > { %6187 = vst.msk [vmem:[%s9997_s17 + $0x40] sm:$0xff] %vm177_vm0, %v6155_v49  ;;  %v6156_v0 = vadd.f32 %v6124_v62, %v6092_v51  ;;  %v6215_v45 = vpack.c.bf16 %v6092_v51, %v6091_v32  ;;  %v6127_v49 = vld [vmem:[%s9997_s17 + $0x60] sm:$0xff]  ;;  %v6130_v62 = vld [vmem:[%s9997_s17 + $0x78] sm:$0xff] }
 0x5de   : > { %6190 = vst.msk [vmem:[%s9997_s17 + $0x58] sm:$0xff] %vm177_vm0, %v6158_v56  ;;  %6232 = vst.msk [vmem:[#allocation2 + $0x200] sm:$0xff] %vm177_vm0, %v6216_v57  ;;  %v12163_v56 = vpop.permute.xlu1 %7336 }
 0x5df   : > { %6188 = vst.msk [vmem:[%s9997_s17 + $0x48] sm:$0xff] %vm177_vm0, %v6156_v0  ;;  %6231 = vst.msk [vmem:[#allocation2 + $0x1e8] sm:$0xff] %vm177_vm0, %v6215_v45  ;;  %v12166_v45 = vpop.permute.xlu0 %7514 }
 0x5e5   : > { %v6842_v54 = vld [vmem:[#allocation2 + $0x200] sm:$0xff] }
 0x5e6   : > { %6879 = vrot.lane.b32.xlu1 %v6842_v54, %s9668_s20  ;;  %v6841_v58 = vld [vmem:[#allocation2 + $0x1e8] sm:$0xff]  ;;  %v6271_v60 = vld [vmem:[#allocation2 + $0x200] sm:$0xf]  ;;  %v6943_v19 = vld [vmem:[#allocation2 + $0x200] sm:$0xf0] }
 0x5e7   : > { %v6670_v43 = vld [vmem:[#allocation2 + $0x1e8] sm:$0xf]  ;;  %6877 = vrot.lane.b32.xlu0 %v6841_v58, %s9668_s20  ;;  %v6941_v4 = vld [vmem:[#allocation2 + $0x1e8] sm:$0xf0]  ;;  %v6672_v38 = vld [vmem:[#allocation2 + $0x200] sm:$0xf] }
 0x5e8   : > { %v6738_v17 = vrot.slane %v6670_v43, 4  ;;  %v6269_v8 = vld [vmem:[#allocation2 + $0x1e8] sm:$0xf]  ;;  %v7009_v59 = vrot.slane %v6941_v4, 4  ;;  %v6349_v9 = vrot.slane %v6271_v60, 4  ;;  %v6741_v11 = vrot.slane %v6672_v38, 4  ;;  %v12181_v43 = vpop.permute.xlu0 %7516 }
 0x5e9   : > { %v6346_v47 = vrot.slane %v6269_v8, 4  ;;  %v6509_v13 = vld [vmem:[#allocation2 + $0x1e8] sm:$0xf0]  ;;  %v7012_v24 = vrot.slane %v6943_v19, 4  ;;  %v6511_v55 = vld [vmem:[#allocation2 + $0x200] sm:$0xf0] }
 0x5ea   : > { %v6739_v50 = vsel %vm6308_vm1, %v6737_v18, %v6738_v17  ;;  %6447 = vrot.lane.b32.xlu1 %v6842_v54, %s9666_s18  ;;  %v6350_v34 = vsel %vm6308_vm1, %v6348_v37, %v6349_v9  ;;  %v7011_v26 = vsel %vm6308_vm1, %v7009_v59, %v7010_v23  ;;  %v6585_v14 = vrot.slane %v6509_v13, 4  ;;  %v6128_v18 = vld [vmem:[%s9997_s17 + $0x68] sm:$0xff]  ;;  %v6673_v4 = vld [vmem:[#allocation2 + $0x210] sm:$0xf0]  ;;  %v6948_v60 = vld [vmem:[#allocation2 + $0x238] sm:$0xf] }
 0x5eb   : > { %6781 = vrot.lane.b32.xlu0 %v6739_v50, %s9670_s22  ;;  %v6347_v7 = vsel %vm6308_vm1, %v6345_v36, %v6346_v47  ;;  %6386 = vst.msk [vmem:[#allocation3 + $0x68] sm:$0xff] %vm177_vm0, %v6350_v34  ;;  %v6742_v22 = vsel %vm6308_vm1, %v6740_v35, %v6741_v11  ;;  %v7014_v12 = vsel %vm6308_vm1, %v7012_v24, %v7013_v20  ;;  %v6588_v31 = vrot.slane %v6511_v55, 4  ;;  %v6675_v17 = vld [vmem:[#allocation2 + $0x228] sm:$0xf0]  ;;  %v6272_v8 = vld [vmem:[#allocation2 + $0x210] sm:$0xf0] }
 0x5ec   : > { %6385 = vst.msk [vmem:[#allocation3 + $0x60] sm:$0xff] %vm177_vm0, %v6347_v7  ;;  %v6587_v6 = vsel %vm6308_vm1, %v6585_v14, %v6586_v15  ;;  %v6746_v44 = vrot.slane %v6675_v17, 4  ;;  %v6274_v37 = vld [vmem:[#allocation2 + $0x228] sm:$0xf0]  ;;  %v6743_v5 = vrot.slane %v6673_v4, 4  ;;  %v12193_v53 = vpop.permute.xlu0 %7246  ;;  %v6351_v11 = vrot.slane %v6272_v8, 4 }
 0x5ed   : > { %v6590_v46 = vsel %vm6308_vm1, %v6588_v31, %v6589_v29  ;;  %v6946_v7 = vld [vmem:[#allocation2 + $0x220] sm:$0xf]  ;;  %v7019_v15 = vrot.slane %v6948_v60, 4  ;;  %v6354_v21 = vrot.slane %v6274_v37, 4 }
 0x5ee   : > { %6445 = vrot.lane.b32.xlu1 %v6841_v58, %s9666_s18  ;;  %v12179_v58 = vpop.permute.xlu1 %7244  ;;  %v7016_v24 = vrot.slane %v6946_v7, 4  ;;  %v7112_v7 = vld [vmem:[#allocation2 + $0x258] sm:$0xf0] }
 0x5ef   : > { %7053 = vrot.lane.b32.xlu0 %v7011_v26, %s9671_s23 }
 0x5f0   : > { %v12203_v29 = vpop.permute.xlu0 %7342 }
 0x5f2   : > { %6783 = vrot.lane.b32.xlu1 %v6742_v22, %s9670_s22  ;;  %v12189_v9 = vpop.permute.xlu1 %7340 }
 0x5f3   : > { %6621 = vrot.lane.b32.xlu0 %v6587_v6, %s9667_s19 }
 0x5f6   : > { %7055 = vrot.lane.b32.xlu1 %v7014_v12, %s9671_s23  ;;  %v12199_v52 = vpop.permute.xlu1 %7248 }
 0x5f7   : > { %v9519_v41 = vpop.f32.mrb[28].mxu0 }
 0x5f8   : > { %v6097_v32 = vmax.f32 %v9519_v41, 0.0  ;;  %v6004_v63 = vpop.f32.mrb[29].mxu0 }
 0x5f9   : > { %v6095_v42 = vmax.f32 %v6004_v63, 0.0  ;;  %v9520_v2 = vpop.f32.mrb[30].mxu0 }
 0x5fa   : > { %v6161_v48 = vadd.f32 %v6129_v40, %v6097_v32  ;;  %v6098_v28 = vmax.f32 %v9520_v2, 0.0  ;;  %v6007_v51 = vpop.f32.mrb[31].mxu0  ;;  %6623 = vrot.lane.b32.xlu1 %v6590_v46, %s9667_s19  ;;  %v12211_v63 = vpop.permute.xlu1 %7344 }
 0x5fb   : > { %v6159_v57 = vadd.f32 %v6127_v49, %v6095_v42  ;;  %v6096_v0 = vmax.f32 %v6007_v51, 0.0  ;;  %v12213_v40 = vpop.permute.xlu0 %7518  ;;  %v6133_v49 = vld [vmem:[%s9997_s17 + $0x90] sm:$0xff] }
 0x5fc   : > { %6193 = vst.msk [vmem:[%s9997_s17 + $0x70] sm:$0xff] %vm177_vm0, %v6161_v48  ;;  %v6162_v1 = vadd.f32 %v6130_v62, %v6098_v28  ;;  %v6218_v54 = vpack.c.bf16 %v6098_v28, %v6097_v32 }
 0x5fd   : > { %6191 = vst.msk [vmem:[%s9997_s17 + $0x60] sm:$0xff] %vm177_vm0, %v6159_v57  ;;  %v6160_v3 = vadd.f32 %v6128_v18, %v6096_v0  ;;  %v6217_v33 = vpack.c.bf16 %v6096_v0, %v6095_v42  ;;  %v6131_v0 = vld [vmem:[%s9997_s17 + $0x80] sm:$0xff] }
 0x5fe   : > { %6194 = vst.msk [vmem:[%s9997_s17 + $0x78] sm:$0xff] %vm177_vm0, %v6162_v1  ;;  %6234 = vst.msk [vmem:[#allocation2 + $0x230] sm:$0xff] %vm177_vm0, %v6218_v54 }
 0x5ff   : > { %6192 = vst.msk [vmem:[%s9997_s17 + $0x68] sm:$0xff] %vm177_vm0, %v6160_v3  ;;  %6233 = vst.msk [vmem:[#allocation2 + $0x218] sm:$0xff] %vm177_vm0, %v6217_v33  ;;  %v6134_v3 = vld [vmem:[%s9997_s17 + $0x98] sm:$0xff] }
 0x605   : > { %v12183_v36 = vld [vmem:[#allocation2 + $0x230] sm:$0xff] }
 0x606   : > { %v6676_v50 = vld [vmem:[#allocation2 + $0x230] sm:$0xf]  ;;  %6883 = vrot.lane.b32.xlu1 %v12183_v36, %s9668_s20  ;;  %v12187_v59 = vld [vmem:[#allocation2 + $0x218] sm:$0xff]  ;;  %v6947_v47 = vld [vmem:[#allocation2 + $0x230] sm:$0xf0] }
 0x607   : > { %v6747_v23 = vrot.slane %v6676_v50, 4  ;;  %v6674_v38 = vld [vmem:[#allocation2 + $0x218] sm:$0xf]  ;;  %6881 = vrot.lane.b32.xlu0 %v12187_v59, %s9668_s20  ;;  %v6945_v34 = vld [vmem:[#allocation2 + $0x218] sm:$0xf0]  ;;  %v7018_v14 = vrot.slane %v6947_v47, 4 }
 0x608   : > { %v6744_v13 = vrot.slane %v6674_v38, 4  ;;  %v6273_v19 = vld [vmem:[#allocation2 + $0x218] sm:$0xf]  ;;  %v7015_v22 = vrot.slane %v6945_v34, 4  ;;  %v6275_v6 = vld [vmem:[#allocation2 + $0x230] sm:$0xf] }
 0x609   : > { %v6748_v35 = vsel %vm6308_vm1, %v6746_v44, %v6747_v23  ;;  %v6352_v20 = vrot.slane %v6273_v19, 4  ;;  %v6355_v55 = vrot.slane %v6275_v6, 4  ;;  %v7020_v31 = vsel %vm6308_vm1, %v7018_v14, %v7019_v15  ;;  %v6132_v44 = vld [vmem:[%s9997_s17 + $0x88] sm:$0xff]  ;;  %v9651_v14 = vld [vmem:[%s13225_s1 + $0x3c] sm:$0xff]  }
 0x60a   : > { %v6745_v26 = vsel %vm6308_vm1, %v6743_v5, %v6744_v13  ;;  %6787 = vrot.lane.b32.xlu1 %v6748_v35, %s9670_s22  ;;  %v7017_v32 = vsel %vm6308_vm1, %v7015_v22, %v7016_v24  ;;  %v7177_v19 = vrot.slane %v7112_v7, 4  ;;  %9537 = vmatprep.subr.bf16.mxu1 %v9651_v14  ;;  %v6135_v7 = vld [vmem:[%s9997_s17 + $0xa0] sm:$0xff] }
 0x60b   : > { %6785 = vrot.lane.b32.xlu0 %v6745_v26, %s9670_s22  ;;  %v6353_v12 = vsel %vm6308_vm1, %v6351_v11, %v6352_v20  ;;  %v6356_v41 = vsel %vm6308_vm1, %v6354_v21, %v6355_v55  ;;  %v7385_v26 = vld [vmem:[#allocation2 + $0x268] sm:$0xf]  ;;  %v6679_v20 = vld [vmem:[#allocation2 + $0x258] sm:$0xf0]  ;;  %9538 = vmatpush3.bf16.msra.mxu1 %v9651_v14  ;;  %v7110_v55 = vld [vmem:[#allocation2 + $0x240] sm:$0xf0] }
 0x60c   : > { %6387 = vst.msk [vmem:[#allocation3 + $0x70] sm:$0xff] %vm177_vm0, %v6353_v12  ;;  %6388 = vst.msk [vmem:[#allocation3 + $0x78] sm:$0xff] %vm177_vm0, %v6356_v41  ;;  %v7450_v24 = vrot.slane %v7385_v26, 4  ;;  %v9652_v41 = vld [vmem:[%s13225_s1 + $0x44] sm:$0xff]  }
 0x60d   : > { %9539 = vmatprep.subr.bf16.mxu1 %v9652_v41 }
 0x60e   : > { %7059 = vrot.lane.b32.xlu1 %v7020_v31, %s9671_s23 }
 0x60f   : > { %7057 = vrot.lane.b32.xlu0 %v7017_v32, %s9671_s23  ;;  %9540 = vmatpush3.bf16.msra.mxu1 %v9652_v41 }
 0x617   : > { %v9523_v42 = vpop.f32.mrb[32].mxu0 }
 0x618   : > { %v6101_v2 = vmax.f32 %v9523_v42, 0.0  ;;  %v6020_v46 = vpop.f32.mrb[33].mxu0  ;;  %v6872_v48 = vpop.permute.xlu1 %6871  ;;  %v6752_v42 = vrot.slane %v6679_v20, 4 }
 0x619   : > { %v6099_v28 = vmax.f32 %v6020_v46, 0.0  ;;  %v9524_v51 = vpop.f32.mrb[34].mxu0  ;;  %v6870_v57 = vpop.permute.xlu0 %6869  ;;  %v6952_v46 = vld [vmem:[#allocation2 + $0x268] sm:$0xf] }
 0x61a   : > { %v6165_v62 = vadd.f32 %v6133_v49, %v6101_v2  ;;  %v6102_v1 = vmax.f32 %v9524_v51, 0.0  ;;  %v6023_v54 = vpop.f32.mrb[35].mxu0  ;;  %v7174_v49 = vrot.slane %v7110_v55, 4  ;;  %v6136_v55 = vld [vmem:[%s9997_s17 + $0xa8] sm:$0xff] }
 0x61b   : > { %v6163_v18 = vadd.f32 %v6131_v0, %v6099_v28  ;;  %v6100_v33 = vmax.f32 %v6023_v54, 0.0  ;;  %v9653_v0 = vld [vmem:[%s13225_s1 + $0x4c] ss:$0 sps:$4 sm:$0x33]  }
 0x61c   : > { %6197 = vst.msk [vmem:[%s9997_s17 + $0x90] sm:$0xff] %vm177_vm0, %v6165_v62  ;;  %v6166_v17 = vadd.f32 %v6134_v3, %v6102_v1  ;;  %v6220_v4 = vpack.c.bf16 %v6102_v1, %v6101_v2  ;;  %v6440_v60 = vpop.permute.xlu1 %6439  ;;  %9623 = vmatprep.subr.msk.bf16.mxu1 %vm2468_vm3, %v9653_v0  ;;  %v7644_v3 = vsel %vm2468_vm3, %v9653_v0, 0 }
 0x61d   : > { %6195 = vst.msk [vmem:[%s9997_s17 + $0x80] sm:$0xff] %vm177_vm0, %v6163_v18  ;;  %v6164_v37 = vadd.f32 %v6132_v44, %v6100_v33  ;;  %v6219_v50 = vpack.c.bf16 %v6100_v33, %v6099_v28  ;;  %v6774_v5 = vpop.permute.xlu0 %6773  ;;  %v7025_v18 = vrot.slane %v6952_v46, 4  ;;  %v6677_v44 = vld [vmem:[#allocation2 + $0x240] sm:$0xf0]  ;;  %9542 = vmatpush3.bf16.msra.mxu1 %v7644_v3 }
 0x61e   : > { %6478 = vst.msk [vmem:[#allocation3 + $0x48] sm:$0xff] %vm725_vm4, %v6440_v60 }
 0x61f   : > { %6198 = vst.msk [vmem:[%s9997_s17 + $0x98] sm:$0xff] %vm177_vm0, %v6166_v17  ;;  %6236 = vst.msk [vmem:[#allocation2 + $0x260] sm:$0xff] %vm177_vm0, %v6220_v4 }
 0x620   : > { %6821 = vst.msk [vmem:[#allocation3] sm:$0xff] %vm1304_vm6, %v6774_v5  ;;  %v6438_v8 = vpop.permute.xlu1 %6437 }
 0x621   : > { %6196 = vst.msk [vmem:[%s9997_s17 + $0x88] sm:$0xff] %vm177_vm0, %v6164_v37  ;;  %6235 = vst.msk [vmem:[#allocation2 + $0x248] sm:$0xff] %vm177_vm0, %v6219_v50  ;;  %v7046_v23 = vpop.permute.xlu0 %7045 }
 0x622   : > { %6917 = vst.msk [vmem:[#allocation3] sm:$0xff] %vm1401_vm7, %v6870_v57  ;;  %v7383_v57 = vld [vmem:[#allocation2 + $0x250] sm:$0xf] }
 0x623   : > { %6477 = vst.msk [vmem:[#allocation3 + $0x40] sm:$0xff] %vm725_vm4, %v6438_v8  ;;  %v7447_v4 = vrot.slane %v7383_v57, 4  ;;  %v6137_v8 = vld [vmem:[%s9997_s17 + $0xb0] sm:$0xff] }
 0x624   : > { %7093 = vst.msk [vmem:[#allocation3] sm:$0xff] %vm1690_vm8, %v7046_v23  ;;  %v6776_v38 = vpop.permute.xlu1 %6775  ;;  %v6141_v57 = vld [vmem:[%s9997_s17 + $0xd0] sm:$0xff] }
 0x625   : > { %6822 = vst.msk [vmem:[#allocation3 + $0x8] sm:$0xff] %vm1304_vm6, %v6776_v38  ;;  %v6614_v47 = vpop.permute.xlu0 %6613 }
 0x626   : > { %v7287_v13 = vld [vmem:[#allocation2 + $0x260] sm:$0xff]  ;;  %6918 = vst.msk [vmem:[#allocation3 + $0x8] sm:$0xff] %vm1401_vm7, %v6872_v48 }
 0x627   : > { %6653 = vst.msk [vmem:[#allocation3 + $0x40] sm:$0xff] %vm1015_vm5, %v6614_v47  ;;  %7320 = vrot.lane.b32.xlu1 %v7287_v13, %s9669_s21  ;;  %v7113_v35 = vld [vmem:[#allocation2 + $0x260] sm:$0xf]  ;;  %v7384_v11 = vld [vmem:[#allocation2 + $0x260] sm:$0xf0] }
 0x628   : > { %v7286_v34 = vld [vmem:[#allocation2 + $0x248] sm:$0xff]  ;;  %v7048_v15 = vpop.permute.xlu1 %7047  ;;  %v7178_v21 = vrot.slane %v7113_v35, 4  ;;  %v7449_v22 = vrot.slane %v7384_v11, 4  ;;  %v6680_v6 = vld [vmem:[#allocation2 + $0x260] sm:$0xf] }
 0x629   : > { %7318 = vrot.lane.b32.xlu0 %v7286_v34, %s9669_s21  ;;  %7094 = vst.msk [vmem:[#allocation3 + $0x8] sm:$0xff] %vm1690_vm8, %v7048_v15  ;;  %v7111_v12 = vld [vmem:[#allocation2 + $0x248] sm:$0xf]  ;;  %v6753_v2 = vrot.slane %v6680_v6, 4  ;;  %v6951_v51 = vld [vmem:[#allocation2 + $0x260] sm:$0xf0] }
 0x62a   : > { %v7179_v32 = vsel %vm6308_vm1, %v7177_v19, %v7178_v21  ;;  %v7451_v48 = vsel %vm6308_vm1, %v7449_v22, %v7450_v24  ;;  %v7175_v28 = vrot.slane %v7111_v12, 4  ;;  %v7382_v62 = vld [vmem:[#allocation2 + $0x248] sm:$0xf0]  ;;  %v7024_v54 = vrot.slane %v6951_v51, 4  ;;  %v6678_v37 = vld [vmem:[#allocation2 + $0x248] sm:$0xf] }
 0x62b   : > { %6887 = vrot.lane.b32.xlu1 %v7287_v13, %s9668_s20  ;;  %v6754_v1 = vsel %vm6308_vm1, %v6752_v42, %v6753_v2  ;;  %v7446_v17 = vrot.slane %v7382_v62, 4  ;;  %v6749_v13 = vrot.slane %v6677_v44, 4  ;;  %v6750_v14 = vrot.slane %v6678_v37, 4  ;;  %v6138_v19 = vld [vmem:[%s9997_s17 + $0xb8] sm:$0xff]  ;;  %v6949_v22 = vld [vmem:[#allocation2 + $0x248] sm:$0xf0] }
 0x62c   : > { %v6616_v31 = vpop.permute.xlu1 %6615  ;;  %v7176_v33 = vsel %vm6308_vm1, %v7174_v49, %v7175_v28  ;;  %v7026_v47 = vsel %vm6308_vm1, %v7024_v54, %v7025_v18  ;;  %v6950_v24 = vld [vmem:[#allocation2 + $0x250] sm:$0xf]  ;;  %v7021_v2 = vrot.slane %v6949_v22, 4  ;;  %v6139_v18 = vld [vmem:[%s9997_s17 + $0xc0] sm:$0xff]  ;;  %v6142_v44 = vld [vmem:[%s9997_s17 + $0xd8] sm:$0xff] }
 0x62d   : > { %6885 = vrot.lane.b32.xlu0 %v7286_v34, %s9668_s20  ;;  %6654 = vst.msk [vmem:[#allocation3 + $0x48] sm:$0xff] %vm1015_vm5, %v6616_v31  ;;  %v7448_v26 = vsel %vm6308_vm1, %v7446_v17, %v7447_v4  ;;  %v6751_v42 = vsel %vm6308_vm1, %v6749_v13, %v6750_v14  ;;  %v7022_v46 = vrot.slane %v6950_v24, 4  ;;  %v7389_v14 = vld [vmem:[#allocation2 + $0x298] sm:$0xf]  ;;  %v6143_v24 = vld [vmem:[%s9997_s17 + $0xe0] sm:$0xff] }
 0x62f   : > { %7224 = vrot.lane.b32.xlu1 %v7179_v32, %s9672_s26  ;;  %v7023_v17 = vsel %vm6308_vm1, %v7021_v2, %v7022_v46 }
 0x631   : > { %7496 = vrot.lane.b32.xlu0 %v7451_v48, %s9673_s27 }
 0x632   : > { %v9527_v60 = vpop.f32.mrb[36].mxu0 }
 0x633   : > { %6791 = vrot.lane.b32.xlu1 %v6754_v1, %s9670_s22  ;;  %v6105_v50 = vmax.f32 %v9527_v60, 0.0  ;;  %v6036_v5 = vpop.f32.mrb[37].mxu0 }
 0x634   : > { %v6103_v23 = vmax.f32 %v6036_v5, 0.0  ;;  %v9528_v38 = vpop.f32.mrb[38].mxu0  ;;  %v6140_v5 = vld [vmem:[%s9997_s17 + $0xc8] sm:$0xff] }
 0x635   : > { %7222 = vrot.lane.b32.xlu0 %v7176_v33, %s9672_s26  ;;  %v6169_v34 = vadd.f32 %v6137_v8, %v6105_v50  ;;  %v6106_v35 = vmax.f32 %v9528_v38, 0.0  ;;  %v6039_v11 = vpop.f32.mrb[39].mxu0 }
 0x636   : > { %v6167_v15 = vadd.f32 %v6135_v7, %v6103_v23  ;;  %v6104_v21 = vmax.f32 %v6039_v11, 0.0  ;;  %v7116_v7 = vld [vmem:[#allocation2 + $0x288] sm:$0xf0] }
 0x637   : > { %7063 = vrot.lane.b32.xlu1 %v7026_v47, %s9671_s23  ;;  %6201 = vst.msk [vmem:[%s9997_s17 + $0xb0] sm:$0xff] %vm177_vm0, %v6169_v34  ;;  %v6170_v20 = vadd.f32 %v6138_v19, %v6106_v35  ;;  %v6222_v6 = vpack.c.bf16 %v6106_v35, %v6105_v50  ;;  %v6145_v19 = vld [vmem:[%s9997_s17 + $0xf0] sm:$0xff] }
 0x638   : > { %v12272_v12 = vpop.permute.xlu1 %6875  ;;  %6199 = vst.msk [vmem:[%s9997_s17 + $0xa0] sm:$0xff] %vm177_vm0, %v6167_v15  ;;  %v6168_v31 = vadd.f32 %v6136_v55, %v6104_v21  ;;  %v6221_v41 = vpack.c.bf16 %v6104_v21, %v6103_v23 }
 0x639   : > { %7494 = vrot.lane.b32.xlu0 %v7448_v26, %s9673_s27  ;;  %v6874_v32 = vpop.permute.xlu0 %6873  ;;  %6202 = vst.msk [vmem:[%s9997_s17 + $0xb8] sm:$0xff] %vm177_vm0, %v6170_v20  ;;  %6238 = vst.msk [vmem:[#allocation2 + $0x290] sm:$0xff] %vm177_vm0, %v6222_v6 }
 0x63a   : > { %6200 = vst.msk [vmem:[%s9997_s17 + $0xa8] sm:$0xff] %vm177_vm0, %v6168_v31  ;;  %6237 = vst.msk [vmem:[#allocation2 + $0x278] sm:$0xff] %vm177_vm0, %v6221_v41  ;;  %v9531_v48 = vpop.f32.mrb[40].mxu0  ;;  %v7183_v31 = vrot.slane %v7116_v7, 4 }
 0x63b   : > { %v6109_v49 = vmax.f32 %v9531_v48, 0.0  ;;  %v6052_v51 = vpop.f32.mrb[41].mxu0 }
 0x63c   : > { %v6444_v28 = vpop.permute.xlu1 %6443  ;;  %v6107_v62 = vmax.f32 %v6052_v51, 0.0  ;;  %v9532_v0 = vpop.f32.mrb[42].mxu0 }
 0x63d   : > { %6789 = vrot.lane.b32.xlu0 %v6751_v42, %s9670_s22  ;;  %6480 = vst.msk [vmem:[#allocation3 + $0x58] sm:$0xff] %vm725_vm4, %v6444_v28  ;;  %v6778_v1 = vpop.permute.xlu0 %6777  ;;  %v6173_v54 = vadd.f32 %v6141_v57, %v6109_v49  ;;  %v6110_v3 = vmax.f32 %v9532_v0, 0.0  ;;  %v6055_v33 = vpop.f32.mrb[43].mxu0  ;;  %v6146_v57 = vld [vmem:[%s9997_s17 + $0xf8] sm:$0xff]  ;;  %v7114_v0 = vld [vmem:[#allocation2 + $0x270] sm:$0xf0] }
 0x63e   : > { %6823 = vst.msk [vmem:[#allocation3 + $0x10] sm:$0xff] %vm1304_vm6, %v6778_v1  ;;  %v6171_v4 = vadd.f32 %v6139_v18, %v6107_v62  ;;  %v6108_v60 = vmax.f32 %v6055_v33, 0.0  ;;  %v6144_v18 = vld [vmem:[%s9997_s17 + $0xe8] sm:$0xff] }
 0x63f   : > { %6919 = vst.msk [vmem:[#allocation3 + $0x10] sm:$0xff] %vm1401_vm7, %v6874_v32  ;;  %v6174_v37 = vadd.f32 %v6142_v44, %v6110_v3  ;;  %v6224_v50 = vpack.c.bf16 %v6110_v3, %v6109_v49  ;;  %v6683_v32 = vld [vmem:[#allocation2 + $0x288] sm:$0xf0]  ;;  %v7456_v49 = vrot.slane %v7389_v14, 4 }
 0x640   : > { %6205 = vst.msk [vmem:[%s9997_s17 + $0xd0] sm:$0xff] %vm177_vm0, %v6173_v54  ;;  %v6442_v8 = vpop.permute.xlu1 %6441  ;;  %6203 = vst.msk [vmem:[%s9997_s17 + $0xc0] sm:$0xff] %vm177_vm0, %v6171_v4  ;;  %v6172_v23 = vadd.f32 %v6140_v5, %v6108_v60  ;;  %v6223_v38 = vpack.c.bf16 %v6108_v60, %v6107_v62  ;;  %v7289_v13 = vld [vmem:[#allocation2 + $0x290] sm:$0xff]  ;;  %v6758_v33 = vrot.slane %v6683_v32, 4 }
 0x641   : > { %7061 = vrot.lane.b32.xlu0 %v7023_v17, %s9671_s23  ;;  %6479 = vst.msk [vmem:[#allocation3 + $0x50] sm:$0xff] %vm725_vm4, %v6442_v8  ;;  %v7050_v47 = vpop.permute.xlu0 %7049  ;;  %7324 = vrot.lane.b32.xlu1 %v7289_v13, %s9669_s21  ;;  %v7288_v34 = vld [vmem:[#allocation2 + $0x278] sm:$0xff]  ;;  %v7117_v35 = vld [vmem:[#allocation2 + $0x290] sm:$0xf]  ;;  %v7388_v26 = vld [vmem:[#allocation2 + $0x290] sm:$0xf0] }
 0x642   : > { %6206 = vst.msk [vmem:[%s9997_s17 + $0xd8] sm:$0xff] %vm177_vm0, %v6174_v37  ;;  %6240 = vst.msk [vmem:[#allocation2 + $0x2c0] sm:$0xff] %vm177_vm0, %v6224_v50  ;;  %v9535_v11 = vpop.f32.mrb[44].mxu0  ;;  %v7184_v41 = vrot.slane %v7117_v35, 4  ;;  %v7455_v48 = vrot.slane %v7388_v26, 4  ;;  %v7180_v50 = vrot.slane %v7114_v0, 4 }
 0x643   : > { %7095 = vst.msk [vmem:[#allocation3 + $0x10] sm:$0xff] %vm1690_vm8, %v7050_v47  ;;  %v6113_v15 = vmax.f32 %v9535_v11, 0.0  ;;  %v6068_v22 = vpop.f32.mrb[45].mxu0  ;;  %v6684_v28 = vld [vmem:[#allocation2 + $0x290] sm:$0xf] }
 0x644   : > { %6204 = vst.msk [vmem:[%s9997_s17 + $0xc8] sm:$0xff] %vm177_vm0, %v6172_v23  ;;  %6239 = vst.msk [vmem:[#allocation2 + $0x2a8] sm:$0xff] %vm177_vm0, %v6223_v38  ;;  %v6780_v21 = vpop.permute.xlu1 %6779  ;;  %v6111_v20 = vmax.f32 %v6068_v22, 0.0  ;;  %v9536_v6 = vpop.f32.mrb[46].mxu0  ;;  %v7115_v1 = vld [vmem:[#allocation2 + $0x278] sm:$0xf]  ;;  %v7185_v44 = vsel %vm6308_vm1, %v7183_v31, %v7184_v41  ;;  %v7457_v37 = vsel %vm6308_vm1, %v7455_v48, %v7456_v49 }
 0x645   : > { %7322 = vrot.lane.b32.xlu0 %v7288_v34, %s9669_s21  ;;  %6824 = vst.msk [vmem:[#allocation3 + $0x18] sm:$0xff] %vm1304_vm6, %v6780_v21  ;;  %v6618_v55 = vpop.permute.xlu0 %6617  ;;  %v6177_v42 = vadd.f32 %v6145_v19, %v6113_v15  ;;  %v6114_v2 = vmax.f32 %v9536_v6, 0.0  ;;  %6891 = vrot.lane.b32.xlu1 %v7289_v13, %s9668_s20  ;;  %v6071_v46 = vpop.f32.mrb[47].mxu0  ;;  %v6759_v60 = vrot.slane %v6684_v28, 4  ;;  %v7181_v5 = vrot.slane %v7115_v1, 4 }
 0x646   : > { %6920 = vst.msk [vmem:[#allocation3 + $0x18] sm:$0xff] %vm1401_vm7, %v12272_v12  ;;  %v6175_v51 = vadd.f32 %v6143_v24, %v6111_v20  ;;  %v6112_v62 = vmax.f32 %v6071_v46, 0.0  ;;  %v6955_v8 = vld [vmem:[#allocation2 + $0x290] sm:$0xf0]  ;;  %v6956_v23 = vld [vmem:[#allocation2 + $0x298] sm:$0xf] }
 0x647   : > { %6655 = vst.msk [vmem:[#allocation3 + $0x50] sm:$0xff] %vm1015_vm5, %v6618_v55  ;;  %v6178_v12 = vadd.f32 %v6146_v57, %v6114_v2  ;;  %v6226_v54 = vpack.c.bf16 %v6114_v2, %v6113_v15  ;;  %v7386_v38 = vld [vmem:[#allocation2 + $0x278] sm:$0xf0]  ;;  %v7387_v47 = vld [vmem:[#allocation2 + $0x280] sm:$0xf]  ;;  %v7030_v7 = vrot.slane %v6955_v8, 4  ;;  %v7182_v11 = vsel %vm6308_vm1, %v7180_v50, %v7181_v5 }
 0x648   : > { %6209 = vst.msk [vmem:[%s9997_s17 + $0xf0] sm:$0xff] %vm177_vm0, %v6177_v42  ;;  %v7052_v3 = vpop.permute.xlu1 %7051  ;;  %6207 = vst.msk [vmem:[%s9997_s17 + $0xe0] sm:$0xff] %vm177_vm0, %v6175_v51  ;;  %v6176_v17 = vadd.f32 %v6144_v18, %v6112_v62  ;;  %v6225_v4 = vpack.c.bf16 %v6112_v62, %v6111_v20  ;;  %v7031_v35 = vrot.slane %v6956_v23, 4  ;;  %v7452_v26 = vrot.slane %v7386_v38, 4  ;;  %v6681_v15 = vld [vmem:[#allocation2 + $0x270] sm:$0xf0] }
 0x649   : > { %6889 = vrot.lane.b32.xlu0 %v7288_v34, %s9668_s20  ;;  %7096 = vst.msk [vmem:[#allocation3 + $0x18] sm:$0xff] %vm1690_vm8, %v7052_v3  ;;  %7228 = vrot.lane.b32.xlu1 %v7185_v44, %s9672_s26  ;;  %v6760_v34 = vsel %vm6308_vm1, %v6758_v33, %v6759_v60  ;;  %v7453_v14 = vrot.slane %v7387_v47, 4  ;;  %v6682_v19 = vld [vmem:[#allocation2 + $0x278] sm:$0xf]  ;;  %v6755_v24 = vrot.slane %v6681_v15, 4  ;;  %v7291_v31 = vld [vmem:[#allocation2 + $0x2c0] sm:$0xff] }
 0x64a   : > { %6210 = vst.msk [vmem:[%s9997_s17 + $0xf8] sm:$0xff] %vm177_vm0, %v6178_v12  ;;  %6242 = vst.msk [vmem:[#allocation2 + $0x2f0] sm:$0xff] %vm177_vm0, %v6226_v54  ;;  %v7032_v21 = vsel %vm6308_vm1, %v7030_v7, %v7031_v35  ;;  %v6756_v20 = vrot.slane %v6682_v19, 4  ;;  %v6953_v6 = vld [vmem:[#allocation2 + $0x278] sm:$0xf0] }
 0x64b   : > { %6208 = vst.msk [vmem:[%s9997_s17 + $0xe8] sm:$0xff] %vm177_vm0, %v6176_v17  ;;  %6241 = vst.msk [vmem:[#allocation2 + $0x2d8] sm:$0xff] %vm177_vm0, %v6225_v4  ;;  %v7454_v22 = vsel %vm6308_vm1, %v7452_v26, %v7453_v14  ;;  %v6954_v55 = vld [vmem:[#allocation2 + $0x280] sm:$0xf]  ;;  %v7027_v32 = vrot.slane %v6953_v6, 4  ;;  %v7290_v33 = vld [vmem:[#allocation2 + $0x2a8] sm:$0xff] }
 0x64c   : > { %v6620_v13 = vpop.permute.xlu1 %6619  ;;  %v6757_v41 = vsel %vm6308_vm1, %v6755_v24, %v6756_v20  ;;  %v7028_v42 = vrot.slane %v6954_v55, 4  ;;  %v7120_v2 = vld [vmem:[#allocation2 + $0x2b8] sm:$0xf0]  ;;  %v7121_v46 = vld [vmem:[#allocation2 + $0x2c0] sm:$0xf] }
 0x64d   : > { %7500 = vrot.lane.b32.xlu0 %v7457_v37, %s9673_s27  ;;  %6656 = vst.msk [vmem:[#allocation3 + $0x58] sm:$0xff] %vm1015_vm5, %v6620_v13  ;;  %6795 = vrot.lane.b32.xlu1 %v6760_v34, %s9670_s22  ;;  %v7189_v28 = vrot.slane %v7120_v2, 4  ;;  %v7190_v51 = vrot.slane %v7121_v46, 4  ;;  %v6687_v62 = vld [vmem:[#allocation2 + $0x2b8] sm:$0xf0] }
 0x64e   : > { %v7029_v57 = vsel %vm6308_vm1, %v7027_v32, %v7028_v42  ;;  %v6688_v0 = vld [vmem:[#allocation2 + $0x2c0] sm:$0xf]  ;;  %v6764_v18 = vrot.slane %v6687_v62, 4  ;;  %v6959_v17 = vld [vmem:[#allocation2 + $0x2c0] sm:$0xf0] }
 0x64f   : > { %v7191_v54 = vsel %vm6308_vm1, %v7189_v28, %v7190_v51  ;;  %v6765_v3 = vrot.slane %v6688_v0, 4  ;;  %v6960_v4 = vld [vmem:[#allocation2 + $0x2c8] sm:$0xf]  ;;  %v7392_v44 = vld [vmem:[#allocation2 + $0x2c0] sm:$0xf0]  ;;  %v7036_v8 = vrot.slane %v6959_v17, 4 }
 0x650   : > { %v7393_v60 = vld [vmem:[#allocation2 + $0x2c8] sm:$0xf]  ;;  %v7037_v23 = vrot.slane %v6960_v4, 4  ;;  %v7461_v38 = vrot.slane %v7392_v44, 4  ;;  %v7118_v13 = vld [vmem:[#allocation2 + $0x2a0] sm:$0xf0] }
 0x651   : > { %7226 = vrot.lane.b32.xlu0 %v7182_v11, %s9672_s26  ;;  %7067 = vrot.lane.b32.xlu1 %v7032_v21, %s9671_s23  ;;  %v6766_v5 = vsel %vm6308_vm1, %v6764_v18, %v6765_v3  ;;  %v7462_v47 = vrot.slane %v7393_v60, 4  ;;  %v7119_v34 = vld [vmem:[#allocation2 + $0x2a8] sm:$0xf]  ;;  %v7124_v35 = vld [vmem:[#allocation2 + $0x2e8] sm:$0xf0]  ;;  %v7186_v19 = vrot.slane %v7118_v13, 4 }
 0x652   : > { %v7125_v11 = vld [vmem:[#allocation2 + $0x2f0] sm:$0xf]  ;;  %v7038_v14 = vsel %vm6308_vm1, %v7036_v8, %v7037_v23  ;;  %v7187_v21 = vrot.slane %v7119_v34, 4  ;;  %v7195_v20 = vrot.slane %v7124_v35, 4  ;;  %v7390_v55 = vld [vmem:[#allocation2 + $0x2a8] sm:$0xf0] }
 0x653   : > { %v7463_v15 = vsel %vm6308_vm1, %v7461_v38, %v7462_v47  ;;  %v12365_v24 = vld [vmem:[#allocation2 + $0x2f0] sm:$0xff]  ;;  %v7196_v6 = vrot.slane %v7125_v11, 4  ;;  %v7458_v32 = vrot.slane %v7390_v55, 4  ;;  %v6685_v46 = vld [vmem:[#allocation2 + $0x2a0] sm:$0xf0]  ;;  %v12387_v47 = vld [vmem:[#allocation2 + $0x2d8] sm:$0xff] }
 0x654   : > { %v6761_v51 = vrot.slane %v6685_v46, 4  ;;  %v6957_v62 = vld [vmem:[#allocation2 + $0x2a8] sm:$0xf0]  ;;  %v6958_v0 = vld [vmem:[#allocation2 + $0x2b0] sm:$0xf] }
 0x655   : > { %7498 = vrot.lane.b32.xlu0 %v7454_v22, %s9673_s27  ;;  %7328 = vrot.lane.b32.xlu1 %v7291_v31, %s9669_s21  ;;  %v7391_v22 = vld [vmem:[#allocation2 + $0x2b0] sm:$0xf]  ;;  %v7197_v2 = vsel %vm6308_vm1, %v7195_v20, %v7196_v6  ;;  %v6515_v18 = vld [vmem:[#allocation2 + $0x230] sm:$0xf0]  ;;  %v6516_v3 = vld [vmem:[#allocation2 + $0x238] sm:$0xf] }
 0x656   : > { %v7459_v42 = vrot.slane %v7391_v22, 4  ;;  %v6595_v17 = vrot.slane %v6516_v3, 4  ;;  %v6691_v44 = vld [vmem:[#allocation2 + $0x2e8] sm:$0xf0]  ;;  %v6692_v60 = vld [vmem:[#allocation2 + $0x2f0] sm:$0xf] }
 0x657   : > { %v6770_v23 = vrot.slane %v6691_v44, 4  ;;  %v6771_v38 = vrot.slane %v6692_v60, 4  ;;  %v7122_v34 = vld [vmem:[#allocation2 + $0x2d0] sm:$0xf0]  ;;  %v6964_v22 = vld [vmem:[#allocation2 + $0x2f8] sm:$0xf] }
 0x658   : > { %v6880_v48 = vpop.permute.xlu1 %6879  ;;  %v7460_v28 = vsel %vm6308_vm1, %v7458_v32, %v7459_v42  ;;  %v7394_v20 = vld [vmem:[#allocation2 + $0x2d8] sm:$0xf0]  ;;  %v7395_v6 = vld [vmem:[#allocation2 + $0x2e0] sm:$0xf]  ;;  %v7408_v46 = vld [vmem:[#allocation2 + $0x380] sm:$0xf0] }
 0x659   : > { %6793 = vrot.lane.b32.xlu0 %v6757_v41, %s9670_s22  ;;  %v6878_v49 = vpop.permute.xlu0 %6877  ;;  %6895 = vrot.lane.b32.xlu1 %v7291_v31, %s9668_s20  ;;  %v7188_v41 = vsel %vm6308_vm1, %v7186_v19, %v7187_v21  ;;  %v6963_v21 = vld [vmem:[#allocation2 + $0x2f0] sm:$0xf0] }
 0x65a   : > { %v7042_v42 = vrot.slane %v6963_v21, 4 }
 0x65c   : > { %v6448_v1 = vpop.permute.xlu1 %6447 }
 0x65d   : > { %7065 = vrot.lane.b32.xlu0 %v7029_v57, %s9671_s23  ;;  %6482 = vst.msk [vmem:[#allocation3 + $0x68] sm:$0xff] %vm725_vm4, %v6448_v1  ;;  %v6782_v12 = vpop.permute.xlu0 %6781  ;;  %7232 = vrot.lane.b32.xlu1 %v7191_v54, %s9672_s26  ;;  %v7034_v54 = vrot.slane %v6958_v0, 4  ;;  %v7485_v0 = vrot.slane %v7408_v46, 4 }
 0x65e   : > { %6825 = vst.msk [vmem:[#allocation3 + $0x20] sm:$0xff] %vm1304_vm6, %v6782_v12  ;;  %v7033_v12 = vrot.slane %v6957_v62, 4 }
 0x65f   : > { %6921 = vst.msk [vmem:[#allocation3 + $0x20] sm:$0xff] %vm1401_vm7, %v6878_v49 }
 0x660   : > { %v6446_v37 = vpop.permute.xlu1 %6445  ;;  %v7035_v4 = vsel %vm6308_vm1, %v7033_v12, %v7034_v54 }
 0x661   : > { %7326 = vrot.lane.b32.xlu0 %v7290_v33, %s9669_s21  ;;  %6481 = vst.msk [vmem:[#allocation3 + $0x60] sm:$0xff] %vm725_vm4, %v6446_v37  ;;  %v7054_v50 = vpop.permute.xlu0 %7053  ;;  %6799 = vrot.lane.b32.xlu1 %v6766_v5, %s9670_s22  ;;  %v7397_v37 = vld [vmem:[#allocation2 + $0x2f8] sm:$0xf] }
 0x662   : > { %7097 = vst.msk [vmem:[#allocation3 + $0x20] sm:$0xff] %vm1690_vm8, %v7054_v50 }
 0x664   : > { %v6784_v7 = vpop.permute.xlu1 %6783 }
 0x665   : > { %6893 = vrot.lane.b32.xlu0 %v7290_v33, %s9668_s20  ;;  %6826 = vst.msk [vmem:[#allocation3 + $0x28] sm:$0xff] %vm1304_vm6, %v6784_v7  ;;  %v6622_v26 = vpop.permute.xlu0 %6621  ;;  %7071 = vrot.lane.b32.xlu1 %v7038_v14, %s9671_s23  ;;  %v6594_v33 = vrot.slane %v6515_v18, 4  ;;  %v7123_v7 = vld [vmem:[#allocation2 + $0x2d8] sm:$0xf]  ;;  %v6513_v18 = vld [vmem:[#allocation2 + $0x218] sm:$0xf0] }
 0x666   : > { %6922 = vst.msk [vmem:[#allocation3 + $0x28] sm:$0xff] %vm1401_vm7, %v6880_v48  ;;  %v6686_v48 = vld [vmem:[#allocation2 + $0x2a8] sm:$0xf]  ;;  %v7193_v19 = vrot.slane %v7123_v7, 4  ;;  %v6591_v44 = vrot.slane %v6513_v18, 4  ;;  %v8577_v18 = vld [vmem:[#allocation2 + $0x320] sm:$0xff] }
 0x667   : > { %6657 = vst.msk [vmem:[#allocation3 + $0x60] sm:$0xff] %vm1015_vm5, %v6622_v26  ;;  %v6762_v57 = vrot.slane %v6686_v48, 4  ;;  %v6596_v8 = vsel %vm6308_vm1, %v6594_v33, %v6595_v17  ;;  %v6772_v26 = vsel %vm6308_vm1, %v6770_v23, %v6771_v38  ;;  %v7409_v48 = vld [vmem:[#allocation2 + $0x388] sm:$0xf]  ;;  %v7412_v17 = vld [vmem:[#allocation2 + $0x3b0] sm:$0xf0] }
 0x668   : > { %v7056_v31 = vpop.permute.xlu1 %7055 }
 0x669   : > { %7504 = vrot.lane.b32.xlu0 %v7463_v15, %s9673_s27  ;;  %7098 = vst.msk [vmem:[#allocation3 + $0x28] sm:$0xff] %vm1690_vm8, %v7056_v31  ;;  %7332 = vrot.lane.b32.xlu1 %v12365_v24, %s9669_s21  ;;  %v6763_v1 = vsel %vm6308_vm1, %v6761_v51, %v6762_v57  ;;  %v7192_v15 = vrot.slane %v7122_v34, 4  ;;  %v7140_v31 = vld [vmem:[#allocation2 + $0x3a8] sm:$0xf0]  ;;  %v7465_v51 = vrot.slane %v7395_v6, 4  ;;  %v8000_v34 = vld [vmem:[#allocation2 + $0x20] sm:$0xff] }
 0x66a   : > { %v7219_v57 = vrot.slane %v7140_v31, 4  ;;  %v8192_v6 = vld [vmem:[#allocation2 + $0x198] sm:$0xff] }
 0x66c   : > { %v6624_v49 = vpop.permute.xlu1 %6623 }
 0x66d   : > { %7230 = vrot.lane.b32.xlu0 %v7188_v41, %s9672_s26  ;;  %6658 = vst.msk [vmem:[#allocation3 + $0x68] sm:$0xff] %vm1015_vm5, %v6624_v49  ;;  %7236 = vrot.lane.b32.xlu1 %v7197_v2, %s9672_s26  ;;  %v7141_v41 = vld [vmem:[#allocation2 + $0x3b0] sm:$0xf]  ;;  %v7043_v2 = vrot.slane %v6964_v22, 4  ;;  %v7194_v49 = vsel %vm6308_vm1, %v7192_v15, %v7193_v19  ;;  %v12426_v15 = vld [vmem:[#allocation2 + $0x398] sm:$0xff] }
 0x66e   : > { %v7220_v62 = vrot.slane %v7141_v41, 4  ;;  %v7410_v41 = vld [vmem:[#allocation2 + $0x398] sm:$0xf0] }
 0x66f   : > { %v7044_v12 = vsel %vm6308_vm1, %v7042_v42, %v7043_v2 }
 0x670   : > { %v7221_v3 = vsel %vm6308_vm1, %v7219_v57, %v7220_v62 }
 0x671   : > { %7502 = vrot.lane.b32.xlu0 %v7460_v28, %s9673_s27  ;;  %6449 = vrot.lane.b32.xlu1 %v12187_v59, %s9666_s18  ;;  %v7396_v59 = vld [vmem:[#allocation2 + $0x2f0] sm:$0xf0]  ;;  %v7464_v28 = vrot.slane %v7394_v20, 4  ;;  %v6962_v20 = vld [vmem:[#allocation2 + $0x2e0] sm:$0xf] }
 0x672   : > { %v7467_v13 = vrot.slane %v7396_v59, 4  ;;  %v12413_v59 = vld [vmem:[#allocation2 + $0x3b0] sm:$0xff]  ;;  %v7040_v46 = vrot.slane %v6962_v20, 4  ;;  %v8673_v20 = vld [vmem:[#allocation2 + $0x328] sm:$0xff] }
 0x673   : > { %v7466_v54 = vsel %vm6308_vm1, %v7464_v28, %v7465_v51  ;;  %v7488_v28 = vrot.slane %v7410_v41, 4  ;;  %v8003_v41 = vld [vmem:[#allocation2 + $0x68] sm:$0xff] }
 0x675   : > { %6797 = vrot.lane.b32.xlu0 %v6763_v1, %s9670_s22  ;;  %6451 = vrot.lane.b32.xlu1 %v12183_v36, %s9666_s18  ;;  %v7468_v36 = vrot.slane %v7397_v37, 4  ;;  %v7486_v1 = vrot.slane %v7409_v48, 4  ;;  %v7491_v37 = vrot.slane %v7412_v17, 4  ;;  %v8384_v48 = vld [vmem:[#allocation2 + $0x1a8] sm:$0xff] }
 0x677   : > { %v7469_v14 = vsel %vm6308_vm1, %v7467_v13, %v7468_v36  ;;  %v7487_v33 = vsel %vm6308_vm1, %v7485_v0, %v7486_v1  ;;  %v8481_v0 = vld [vmem:[#allocation2 + $0x318] sm:$0xff] }
 0x678   : > { %v6884_v50 = vpop.permute.xlu1 %6883 }
 0x679   : > { %7069 = vrot.lane.b32.xlu0 %v7035_v4, %s9671_s23  ;;  %v6882_v5 = vpop.permute.xlu0 %6881  ;;  %6627 = vrot.lane.b32.xlu1 %v6596_v8, %s9667_s19  ;;  %v7413_v4 = vld [vmem:[#allocation2 + $0x3b8] sm:$0xf] }
 0x67a   : > { %v7139_v8 = vld [vmem:[#allocation2 + $0x398] sm:$0xf] }
 0x67b   : > { %v7217_v36 = vrot.slane %v7139_v8, 4 }
 0x67c   : > { %v6788_v35 = vpop.permute.xlu1 %6787 }
 0x67d   : > { %7330 = vrot.lane.b32.xlu0 %v12387_v47, %s9669_s21  ;;  %6828 = vst.msk [vmem:[#allocation3 + $0x38] sm:$0xff] %vm1304_vm6, %v6788_v35  ;;  %v6786_v11 = vpop.permute.xlu0 %6785  ;;  %6803 = vrot.lane.b32.xlu1 %v6772_v26, %s9670_s22  ;;  %v6689_v35 = vld [vmem:[#allocation2 + $0x2d0] sm:$0xf0]  ;;  %v8096_v26 = vld [vmem:[#allocation2 + $0x28] sm:$0xff] }
 0x67e   : > { %6924 = vst.msk [vmem:[#allocation3 + $0x38] sm:$0xff] %vm1401_vm7, %v6884_v50  ;;  %v7492_v50 = vrot.slane %v7413_v4, 4  ;;  %v6767_v21 = vrot.slane %v6689_v35, 4  ;;  %v8386_v35 = vld [vmem:[#allocation2 + $0x1d8] sm:$0xff] }
 0x67f   : > { %6827 = vst.msk [vmem:[#allocation3 + $0x30] sm:$0xff] %vm1304_vm6, %v6786_v11  ;;  %v6690_v11 = vld [vmem:[#allocation2 + $0x2d8] sm:$0xf] }
 0x680   : > { %6923 = vst.msk [vmem:[#allocation3 + $0x30] sm:$0xff] %vm1401_vm7, %v6882_v5  ;;  %v7060_v55 = vpop.permute.xlu1 %7059  ;;  %v7138_v5 = vld [vmem:[#allocation2 + $0x390] sm:$0xf0]  ;;  %v7493_v38 = vsel %vm6308_vm1, %v7491_v37, %v7492_v50  ;;  %v6768_v22 = vrot.slane %v6690_v11, 4  ;;  %v8191_v50 = vld [vmem:[#allocation2 + $0x180] sm:$0xff]  ;;  %v8576_v11 = vld [vmem:[#allocation2 + $0x308] sm:$0xff] }
 0x681   : > { %7508 = vrot.lane.b32.xlu0 %v7469_v14, %s9673_s27  ;;  %7100 = vst.msk [vmem:[#allocation3 + $0x38] sm:$0xff] %vm1690_vm8, %v7060_v55  ;;  %v7058_v32 = vpop.permute.xlu0 %7057  ;;  %6899 = vrot.lane.b32.xlu1 %v12365_v24, %s9668_s20  ;;  %v6514_v24 = vld [vmem:[#allocation2 + $0x220] sm:$0xf]  ;;  %v7216_v13 = vrot.slane %v7138_v5, 4 }
 0x682   : > { %7099 = vst.msk [vmem:[#allocation3 + $0x30] sm:$0xff] %vm1690_vm8, %v7058_v32  ;;  %v6592_v60 = vrot.slane %v6514_v24, 4  ;;  %v7411_v32 = vld [vmem:[#allocation2 + $0x3a0] sm:$0xf]  ;;  %v6769_v42 = vsel %vm6308_vm1, %v6767_v21, %v6768_v22  ;;  %v8579_v22 = vld [vmem:[#allocation2 + $0x350] sm:$0xff] }
 0x683   : > { %v7218_v7 = vsel %vm6308_vm1, %v7216_v13, %v7217_v36  ;;  %v7489_v51 = vrot.slane %v7411_v32, 4  ;;  %v8194_v36 = vld [vmem:[#allocation2 + $0x1c8] sm:$0xff] }
 0x684   : > { %v6593_v23 = vsel %vm6308_vm1, %v6591_v44, %v6592_v60  ;;  %v8001_v44 = vld [vmem:[#allocation2 + $0x38] sm:$0xff]  ;;  %v8095_v60 = vld [vmem:[#allocation2 + $0x10] sm:$0xff] }
 0x685   : > { %7234 = vrot.lane.b32.xlu0 %v7194_v49, %s9672_s26  ;;  %7075 = vrot.lane.b32.xlu1 %v7044_v12, %s9671_s23  ;;  %v7490_v12 = vsel %vm6308_vm1, %v7488_v28, %v7489_v51 }
 0x689   : > { %7506 = vrot.lane.b32.xlu0 %v7466_v54, %s9673_s27  ;;  %7252 = vrot.lane.b32.xlu1 %v7221_v3, %s9672_s26  ;;  %v7999_v3 = vld [vmem:[#allocation2 + $0x8] sm:$0xff] }
 0x68d   : > { %7520 = vrot.lane.b32.xlu0 %v7487_v33, %s9673_s27  ;;  %7348 = vrot.lane.b32.xlu1 %v12413_v59, %s9669_s21  ;;  %v7968_v33 = vld [vmem:[#allocation2 + $0x18] sm:$0xff] }
 0x691   : > { %6625 = vrot.lane.b32.xlu0 %v6593_v23, %s9667_s19  ;;  %7524 = vrot.lane.b32.xlu1 %v7493_v38, %s9673_s27  ;;  %v8383_v38 = vld [vmem:[#allocation2 + $0x190] sm:$0xff] }
 0x695   : > { %6897 = vrot.lane.b32.xlu0 %v12387_v47, %s9668_s20  ;;  %8033 = vrot.lane.b32.xlu1 %v8000_v34, %s9666_s18  ;;  %v6961_v47 = vld [vmem:[#allocation2 + $0x2d8] sm:$0xf0]  ;;  %v8480_v34 = vld [vmem:[#allocation2 + $0x300] sm:$0xff] }
 0x696   : > { %v7039_v2 = vrot.slane %v6961_v47, 4 }
 0x698   : > { %v7041_v62 = vsel %vm6308_vm1, %v7039_v2, %v7040_v46 }
 0x699   : > { %7250 = vrot.lane.b32.xlu0 %v7218_v7, %s9672_s26  ;;  %v7321_v14 = vpop.permute.xlu1 %7320  ;;  %8129 = vrot.lane.b32.xlu1 %v8096_v26, %s9667_s19 }
 0x69b   : > { %v7319_v19 = vpop.permute.xlu0 %7318 }
 0x69d   : > { %7346 = vrot.lane.b32.xlu0 %v12426_v15, %s9669_s21  ;;  %v6888_v55 = vpop.permute.xlu1 %6887  ;;  %8225 = vrot.lane.b32.xlu1 %v8192_v6, %s9670_s22  ;;  %v7970_v6 = vld [vmem:[#allocation2 + $0x48] sm:$0xff] }
 0x69f   : > { %v6886_v31 = vpop.permute.xlu0 %6885 }
 0x6a1   : > { %6801 = vrot.lane.b32.xlu0 %v6769_v42, %s9670_s22  ;;  %v7225_v49 = vpop.permute.xlu1 %7224  ;;  %8417 = vrot.lane.b32.xlu1 %v8384_v48, %s9671_s23  ;;  %v8097_v42 = vld [vmem:[#allocation2 + $0x40] sm:$0xff]  ;;  %v8193_v48 = vld [vmem:[#allocation2 + $0x1b0] sm:$0xff] }
 0x6a2   : > { %7271 = vst.msk [vmem:[#allocation3 + $0x8] sm:$0xff] %vm1980_vm9, %v7225_v49 }
 0x6a3   : > { %v7497_v57 = vpop.permute.xlu0 %7496  ;;  %7367 = vst.msk [vmem:[#allocation3 + $0x8] sm:$0xff] %vm2077_vm10, %v7321_v14 }
 0x6a4   : > { %7543 = vst.msk [vmem:[#allocation3 + $0x8] sm:$0xff] %vm2366_vm11, %v7497_v57  ;;  %v8385_v57 = vld [vmem:[#allocation2 + $0x1c0] sm:$0xff] }
 0x6a5   : > { %7073 = vrot.lane.b32.xlu0 %v7041_v62, %s9671_s23  ;;  %v6792_v1 = vpop.permute.xlu1 %6791  ;;  %8514 = vrot.lane.b32.xlu1 %v8481_v0, %s9672_s26 }
 0x6a6   : > { %6830 = vst.msk [vmem:[#allocation3 + $0x48] sm:$0xff] %vm1304_vm6, %v6792_v1  ;;  %v8482_v1 = vld [vmem:[#allocation2 + $0x330] sm:$0xff] }
 0x6a7   : > { %v7223_v54 = vpop.permute.xlu0 %7222  ;;  %6926 = vst.msk [vmem:[#allocation3 + $0x48] sm:$0xff] %vm1401_vm7, %v6888_v55 }
 0x6a8   : > { %7270 = vst.msk [vmem:[#allocation3] sm:$0xff] %vm1980_vm9, %v7223_v54  ;;  %v8578_v54 = vld [vmem:[#allocation2 + $0x338] sm:$0xff] }
 0x6a9   : > { %7366 = vst.msk [vmem:[#allocation3] sm:$0xff] %vm2077_vm10, %v7319_v19  ;;  %7522 = vrot.lane.b32.xlu0 %v7490_v12, %s9673_s27  ;;  %v7064_v24 = vpop.permute.xlu1 %7063  ;;  %8610 = vrot.lane.b32.xlu1 %v8577_v18, %s9669_s21  ;;  %v8672_v19 = vld [vmem:[#allocation2 + $0x310] sm:$0xff] }
 0x6aa   : > { %7102 = vst.msk [vmem:[#allocation3 + $0x48] sm:$0xff] %vm1690_vm8, %v7064_v24  ;;  %v8485_v24 = vld [vmem:[#allocation2 + $0x378] sm:$0xff] }
 0x6ab   : > { %v7495_v17 = vpop.permute.xlu0 %7494  ;;  %7279 = vst.msk [vmem:[#allocation3 + $0x48] sm:$0xff] %vm1980_vm9, %v12153_v27  ;;  %v7559_v4 = vld [vmem:[#allocation3 + $0x8] sm:$0xff]  ;;  %v8002_v27 = vld [vmem:[#allocation2 + $0x50] sm:$0xff] }
 0x6ac   : > { %7542 = vst.msk [vmem:[#allocation3] sm:$0xff] %vm2366_vm11, %v7495_v17 }
 0x6ad   : > { %7375 = vst.msk [vmem:[#allocation3 + $0x48] sm:$0xff] %vm2077_vm10, %v12163_v56  ;;  %8031 = vrot.lane.b32.xlu0 %v7999_v3, %s9666_s18  ;;  %8035 = vrot.lane.b32.xlu1 %v8001_v44, %s9666_s18  ;;  %v7967_v56 = vld [vmem:[#allocation2] sm:$0xff] }
 0x6ae   : > { %7984 = vst.msk [vmem:[#allocation3 + $0x8] sm:$0xff] %vm177_vm0, %v7968_v33  ;;  %v8674_v33 = vld [vmem:[#allocation2 + $0x340] sm:$0xff] }
 0x6af   : > { %7551 = vst.msk [vmem:[#allocation3 + $0x48] sm:$0xff] %vm2366_vm11, %v12136_v61  ;;  %v6790_v37 = vpop.permute.xlu0 %6789  ;;  %v8098_v61 = vld [vmem:[#allocation2 + $0x58] sm:$0xff] }
 0x6b0   : > { %6829 = vst.msk [vmem:[#allocation3 + $0x40] sm:$0xff] %vm1304_vm6, %v6790_v37 }
 0x6b1   : > { %6925 = vst.msk [vmem:[#allocation3 + $0x40] sm:$0xff] %vm1401_vm7, %v6886_v31  ;;  %8127 = vrot.lane.b32.xlu0 %v8095_v60, %s9667_s19  ;;  %8037 = vrot.lane.b32.xlu1 %v8002_v27, %s9666_s18  ;;  %v8675_v60 = vld [vmem:[#allocation2 + $0x358] sm:$0xff] }
 0x6b2   : > { %v8005_v27 = vld [vmem:[#allocation2 + $0x98] sm:$0xff] }
 0x6b3   : > { %v7062_v5 = vpop.permute.xlu0 %7061  ;;  %v7558_v8 = vld [vmem:[#allocation3] sm:$0xff]  ;;  %v7325_v23 = vpop.permute.xlu1 %7324 }
 0x6b4   : > { %7101 = vst.msk [vmem:[#allocation3 + $0x40] sm:$0xff] %vm1690_vm8, %v7062_v5  ;;  %9543 = vmatprep.mubr.msk.bf16.mxu1 %vm2419_vm12, %v7558_v8  ;;  %v8006_v8 = vld [vmem:[#allocation2 + $0xb0] sm:$0xff] }
 0x6b5   : > { %7983 = vst.msk [vmem:[#allocation3] sm:$0xff] %vm177_vm0, %v7967_v56  ;;  %9544 = vmatmul.mubr.msk.bf16.vlgmr.msra.gmra.mrb[48].mxu1 %vm2419_vm12, %v7559_v4  ;;  %8223 = vrot.lane.b32.xlu0 %v8191_v50, %s9670_s22  ;;  %v7972_v4 = vld [vmem:[#allocation2 + $0x78] sm:$0xff]  ;;  %v8099_v50 = vld [vmem:[#allocation2 + $0x70] sm:$0xff] }
 0x6b6   : > { %7278 = vst.msk [vmem:[#allocation3 + $0x40] sm:$0xff] %vm1980_vm9, %v12111_v10  ;;  %8133 = vrot.lane.b32.xlu1 %v8098_v61, %s9667_s19  ;;  %v7971_v61 = vld [vmem:[#allocation2 + $0x60] sm:$0xff] }
 0x6b7   : > { %7374 = vst.msk [vmem:[#allocation3 + $0x40] sm:$0xff] %vm2077_vm10, %v12123_v16  ;;  %v7323_v13 = vpop.permute.xlu0 %7322  ;;  %v6892_v10 = vpop.permute.xlu1 %6891 }
 0x6b8   : > { %7550 = vst.msk [vmem:[#allocation3 + $0x40] sm:$0xff] %vm2366_vm11, %v12131_v25  ;;  %v8483_v25 = vld [vmem:[#allocation2 + $0x348] sm:$0xff] }
 0x6b9   : > { %8415 = vrot.lane.b32.xlu0 %v8383_v38, %s9671_s23  ;;  %v8195_v38 = vld [vmem:[#allocation2 + $0x1e0] sm:$0xff] }
 0x6ba   : > { %8229 = vrot.lane.b32.xlu1 %v8194_v36, %s9670_s22 }
 0x6bb   : > { %v6890_v7 = vpop.permute.xlu0 %6889  ;;  %v7229_v16 = vpop.permute.xlu1 %7228 }
 0x6bc   : > { %7273 = vst.msk [vmem:[#allocation3 + $0x18] sm:$0xff] %vm1980_vm9, %v7229_v16 }
 0x6bd   : > { %8512 = vrot.lane.b32.xlu0 %v8480_v34, %s9672_s26  ;;  %7369 = vst.msk [vmem:[#allocation3 + $0x18] sm:$0xff] %vm2077_vm10, %v7325_v23 }
 0x6be   : > { %8421 = vrot.lane.b32.xlu1 %v8386_v35, %s9671_s23 }
 0x6bf   : > { %v7501_v26 = vpop.permute.xlu0 %7500  ;;  %v6796_v14 = vpop.permute.xlu1 %6795 }
 0x6c0   : > { %7545 = vst.msk [vmem:[#allocation3 + $0x18] sm:$0xff] %vm2366_vm11, %v7501_v26 }
 0x6c1   : > { %8608 = vrot.lane.b32.xlu0 %v8576_v11, %s9669_s21  ;;  %6832 = vst.msk [vmem:[#allocation3 + $0x58] sm:$0xff] %vm1304_vm6, %v6796_v14  ;;  %v8484_v11 = vld [vmem:[#allocation2 + $0x360] sm:$0xff] }
 0x6c2   : > { %6928 = vst.msk [vmem:[#allocation3 + $0x58] sm:$0xff] %vm1401_vm7, %v6892_v10  ;;  %8518 = vrot.lane.b32.xlu1 %v8483_v25, %s9672_s26  ;;  %v8102_v10 = vld [vmem:[#allocation2 + $0xb8] sm:$0xff]  ;;  %v8580_v25 = vld [vmem:[#allocation2 + $0x368] sm:$0xff] }
 0x6c3   : > { %v7227_v21 = vpop.permute.xlu0 %7226  ;;  %v7068_v47 = vpop.permute.xlu1 %7067 }
 0x6c4   : > { %7272 = vst.msk [vmem:[#allocation3 + $0x10] sm:$0xff] %vm1980_vm9, %v7227_v21 }
 0x6c5   : > { %7368 = vst.msk [vmem:[#allocation3 + $0x10] sm:$0xff] %vm2077_vm10, %v7323_v13  ;;  %8704 = vrot.lane.b32.xlu0 %v8672_v19, %s9673_s27  ;;  %v8487_v19 = vld [vmem:[#allocation2 + $0x3a8] sm:$0xff] }
 0x6c6   : > { %7104 = vst.msk [vmem:[#allocation3 + $0x58] sm:$0xff] %vm1690_vm8, %v7068_v47  ;;  %8614 = vrot.lane.b32.xlu1 %v8579_v22, %s9669_s21  ;;  %v8676_v22 = vld [vmem:[#allocation2 + $0x370] sm:$0xff] }
 0x6c7   : > { %v7499_v55 = vpop.permute.xlu0 %7498  ;;  %7281 = vst.msk [vmem:[#allocation3 + $0x58] sm:$0xff] %vm1980_vm9, %v12179_v58  ;;  %v7561_v31 = vld [vmem:[#allocation3 + $0x18] sm:$0xff]  ;;  %v7329_v32 = vpop.permute.xlu1 %7328  ;;  %v8004_v58 = vld [vmem:[#allocation2 + $0x80] sm:$0xff] }
 0x6c8   : > { %7544 = vst.msk [vmem:[#allocation3 + $0x10] sm:$0xff] %vm2366_vm11, %v7499_v55 }
 0x6c9   : > { %7377 = vst.msk [vmem:[#allocation3 + $0x58] sm:$0xff] %vm2077_vm10, %v12189_v9  ;;  %8706 = vrot.lane.b32.xlu0 %v8673_v20, %s9673_s27  ;;  %v7969_v9 = vld [vmem:[#allocation2 + $0x30] sm:$0xff] }
 0x6ca   : > { %7986 = vst.msk [vmem:[#allocation3 + $0x18] sm:$0xff] %vm177_vm0, %v7970_v6  ;;  %8039 = vrot.lane.b32.xlu1 %v8003_v41, %s9666_s18  ;;  %v8677_v6 = vld [vmem:[#allocation2 + $0x388] sm:$0xff] }
 0x6cb   : > { %7553 = vst.msk [vmem:[#allocation3 + $0x58] sm:$0xff] %vm2366_vm11, %v12181_v43  ;;  %v6794_v2 = vpop.permute.xlu0 %6793  ;;  %v6896_v46 = vpop.permute.xlu1 %6895  ;;  %v8100_v43 = vld [vmem:[#allocation2 + $0x88] sm:$0xff] }
 0x6cc   : > { %6831 = vst.msk [vmem:[#allocation3 + $0x50] sm:$0xff] %vm1304_vm6, %v6794_v2 }
 0x6cd   : > { %6927 = vst.msk [vmem:[#allocation3 + $0x50] sm:$0xff] %vm1401_vm7, %v6890_v7  ;;  %8131 = vrot.lane.b32.xlu0 %v8097_v42, %s9667_s19  ;;  %v8387_v7 = vld [vmem:[#allocation2 + $0x1f0] sm:$0xff] }
 0x6ce   : > { %8041 = vrot.lane.b32.xlu1 %v8004_v58, %s9666_s18 }
 0x6cf   : > { %v7066_v49 = vpop.permute.xlu0 %7065  ;;  %v7560_v28 = vld [vmem:[#allocation3 + $0x10] sm:$0xff]  ;;  %v7233_v51 = vpop.permute.xlu1 %7232 }
 0x6d0   : > { %7103 = vst.msk [vmem:[#allocation3 + $0x50] sm:$0xff] %vm1690_vm8, %v7066_v49  ;;  %9547 = vmatprep.mubr.msk.bf16.mxu1 %vm2419_vm12, %v7560_v28  ;;  %v8104_v28 = vld [vmem:[#allocation2 + $0xe8] sm:$0xff] }
 0x6d1   : > { %7985 = vst.msk [vmem:[#allocation3 + $0x10] sm:$0xff] %vm177_vm0, %v7969_v9  ;;  %9548 = vmatmul.mubr.msk.bf16.gmra.mrb[52].mxu1 %vm2419_vm12, %v7561_v31  ;;  %8227 = vrot.lane.b32.xlu0 %v8193_v48, %s9670_s22  ;;  %v8007_v31 = vld [vmem:[#allocation2 + $0xc8] sm:$0xff]  ;;  %v7566_v9 = vld [vmem:[#allocation3 + $0x40] sm:$0xff]  ;;  %v8197_v48 = vld [vmem:[#allocation2 + $0x210] sm:$0xff] }
 0x6d2   : > { %7280 = vst.msk [vmem:[#allocation3 + $0x50] sm:$0xff] %vm1980_vm9, %v12147_v30  ;;  %7275 = vst.msk [vmem:[#allocation3 + $0x28] sm:$0xff] %vm1980_vm9, %v7233_v51  ;;  %8137 = vrot.lane.b32.xlu1 %v8100_v43, %s9667_s19  ;;  %v8196_v30 = vld [vmem:[#allocation2 + $0x1f8] sm:$0xff]  ;;  %v8389_v43 = vld [vmem:[#allocation2 + $0x220] sm:$0xff] }
 0x6d3   : > { %7376 = vst.msk [vmem:[#allocation3 + $0x50] sm:$0xff] %vm2077_vm10, %v12156_v39  ;;  %v7327_v62 = vpop.permute.xlu0 %7326  ;;  %7371 = vst.msk [vmem:[#allocation3 + $0x28] sm:$0xff] %vm2077_vm10, %v7329_v32  ;;  %v6800_v0 = vpop.permute.xlu1 %6799  ;;  %v8101_v32 = vld [vmem:[#allocation2 + $0xa0] sm:$0xff] }
 0x6d4   : > { %7552 = vst.msk [vmem:[#allocation3 + $0x50] sm:$0xff] %vm2366_vm11, %v12166_v45  ;;  %v8388_v45 = vld [vmem:[#allocation2 + $0x208] sm:$0xff] }
 0x6d5   : > { %8419 = vrot.lane.b32.xlu0 %v8385_v57, %s9671_s23  ;;  %6834 = vst.msk [vmem:[#allocation3 + $0x68] sm:$0xff] %vm1304_vm6, %v6800_v0  ;;  %v8200_v0 = vld [vmem:[#allocation2 + $0x258] sm:$0xff] }
 0x6d6   : > { %6930 = vst.msk [vmem:[#allocation3 + $0x68] sm:$0xff] %vm1401_vm7, %v6896_v46  ;;  %8233 = vrot.lane.b32.xlu1 %v8196_v30, %s9670_s22 }
 0x6d7   : > { %v6894_v39 = vpop.permute.xlu0 %6893  ;;  %v7072_v12 = vpop.permute.xlu1 %7071 }
 0x6d8   : > { %7106 = vst.msk [vmem:[#allocation3 + $0x68] sm:$0xff] %vm1690_vm8, %v7072_v12  ;;  %v8392_v12 = vld [vmem:[#allocation2 + $0x268] sm:$0xff] }
 0x6d9   : > { %8516 = vrot.lane.b32.xlu0 %v8482_v1, %s9672_s26  ;;  %7283 = vst.msk [vmem:[#allocation3 + $0x68] sm:$0xff] %vm1980_vm9, %v12199_v52  ;;  %v8581_v52 = vld [vmem:[#allocation2 + $0x380] sm:$0xff]  ;;  %v8486_v1 = vld [vmem:[#allocation2 + $0x390] sm:$0xff] }
 0x6da   : > { %8425 = vrot.lane.b32.xlu1 %v8388_v45, %s9671_s23  ;;  %7379 = vst.msk [vmem:[#allocation3 + $0x68] sm:$0xff] %vm2077_vm10, %v12211_v63 }
 0x6db   : > { %v7505_v18 = vpop.permute.xlu0 %7504  ;;  %v7333_v3 = vpop.permute.xlu1 %7332  ;;  %v7568_v30 = vld [vmem:[#allocation3 + $0x50] sm:$0xff] }
 0x6dc   : > { %7547 = vst.msk [vmem:[#allocation3 + $0x28] sm:$0xff] %vm2366_vm11, %v7505_v18 }
 0x6dd   : > { %8612 = vrot.lane.b32.xlu0 %v8578_v54, %s9669_s21 }
 0x6de   : > { %8522 = vrot.lane.b32.xlu1 %v8485_v24, %s9672_s26  ;;  %v7569_v24 = vld [vmem:[#allocation3 + $0x58] sm:$0xff] }
 0x6df   : > { %v7231_v17 = vpop.permute.xlu0 %7230  ;;  %v7237_v44 = vpop.permute.xlu1 %7236 }
 0x6e0   : > { %7274 = vst.msk [vmem:[#allocation3 + $0x20] sm:$0xff] %vm1980_vm9, %v7231_v17  ;;  %7277 = vst.msk [vmem:[#allocation3 + $0x38] sm:$0xff] %vm1980_vm9, %v7237_v44  ;;  %v8678_v17 = vld [vmem:[#allocation2 + $0x3a0] sm:$0xff]  ;;  %v7973_v44 = vld [vmem:[#allocation2 + $0x90] sm:$0xff] }
 0x6e1   : > { %7370 = vst.msk [vmem:[#allocation3 + $0x20] sm:$0xff] %vm2077_vm10, %v7327_v62  ;;  %8708 = vrot.lane.b32.xlu0 %v8674_v33, %s9673_s27  ;;  %7373 = vst.msk [vmem:[#allocation3 + $0x38] sm:$0xff] %vm2077_vm10, %v7333_v3  ;;  %v7567_v62 = vld [vmem:[#allocation3 + $0x48] sm:$0xff]  ;;  %v8489_v33 = vld [vmem:[#allocation2 + $0x3d8] sm:$0xff] }
 0x6e2   : > { %8618 = vrot.lane.b32.xlu1 %v8581_v52, %s9669_s21 }
 0x6e3   : > { %v7503_v63 = vpop.permute.xlu0 %7502  ;;  %v7563_v37 = vld [vmem:[#allocation3 + $0x28] sm:$0xff]  ;;  %v6450_v56 = vpop.permute.xlu1 %6449 }
 0x6e4   : > { %7546 = vst.msk [vmem:[#allocation3 + $0x20] sm:$0xff] %vm2366_vm11, %v7503_v63  ;;  %v8585_v63 = vld [vmem:[#allocation2 + $0x3e0] sm:$0xff] }
 0x6e5   : > { %7988 = vst.msk [vmem:[#allocation3 + $0x28] sm:$0xff] %vm177_vm0, %v7972_v4  ;;  %8710 = vrot.lane.b32.xlu0 %v8675_v60, %s9673_s27  ;;  %v7974_v60 = vld [vmem:[#allocation2 + $0xa8] sm:$0xff] }
 0x6e6   : > { %6483 = vst.msk [vmem:[#allocation3 + $0x70] sm:$0xff] %vm725_vm4, %v6450_v56  ;;  %8043 = vrot.lane.b32.xlu1 %v8005_v27, %s9666_s18 }
 0x6e7   : > { %v6798_v5 = vpop.permute.xlu0 %6797  ;;  %v6452_v23 = vpop.permute.xlu1 %6451 }
 0x6e8   : > { %6833 = vst.msk [vmem:[#allocation3 + $0x60] sm:$0xff] %vm1304_vm6, %v6798_v5  ;;  %v8103_v5 = vld [vmem:[#allocation2 + $0xd0] sm:$0xff] }
 0x6e9   : > { %6929 = vst.msk [vmem:[#allocation3 + $0x60] sm:$0xff] %vm1401_vm7, %v6894_v39  ;;  %8135 = vrot.lane.b32.xlu0 %v8099_v50, %s9667_s19  ;;  %v8009_v50 = vld [vmem:[#allocation2 + $0xf8] sm:$0xff] }
 0x6ea   : > { %6484 = vst.msk [vmem:[#allocation3 + $0x78] sm:$0xff] %vm725_vm4, %v6452_v23  ;;  %8045 = vrot.lane.b32.xlu1 %v8006_v8, %s9666_s18  ;;  %v8010_v23 = vld [vmem:[#allocation2 + $0x110] sm:$0xff] }
 0x6eb   : > { %v7070_v13 = vpop.permute.xlu0 %7069  ;;  %v7562_v36 = vld [vmem:[#allocation3 + $0x20] sm:$0xff]  ;;  %v6628_v34 = vpop.permute.xlu1 %6627 }
 0x6ec   : > { %7105 = vst.msk [vmem:[#allocation3 + $0x60] sm:$0xff] %vm1690_vm8, %v7070_v13  ;;  %9551 = vmatprep.mubr.msk.bf16.mxu1 %vm2419_vm12, %v7562_v36  ;;  %v8199_v13 = vld [vmem:[#allocation2 + $0x240] sm:$0xff] }
 0x6ed   : > { %7987 = vst.msk [vmem:[#allocation3 + $0x20] sm:$0xff] %vm177_vm0, %v7971_v61  ;;  %9552 = vmatmul.mubr.msk.bf16.gmra.mrb[56].mxu1 %vm2419_vm12, %v7563_v37  ;;  %8231 = vrot.lane.b32.xlu0 %v8195_v38, %s9670_s22 }
 0x6ee   : > { %7282 = vst.msk [vmem:[#allocation3 + $0x60] sm:$0xff] %vm1980_vm9, %v12193_v53  ;;  %8141 = vrot.lane.b32.xlu1 %v8102_v10, %s9667_s19  ;;  %v8198_v53 = vld [vmem:[#allocation2 + $0x228] sm:$0xff] }
 0x6ef   : > { %7378 = vst.msk [vmem:[#allocation3 + $0x60] sm:$0xff] %vm2077_vm10, %v12203_v29  ;;  %v7331_v35 = vpop.permute.xlu0 %7330  ;;  %v6804_v16 = vpop.permute.xlu1 %6803  ;;  %v8390_v29 = vld [vmem:[#allocation2 + $0x238] sm:$0xff] }
 0x6f0   : > { %7554 = vst.msk [vmem:[#allocation3 + $0x60] sm:$0xff] %vm2366_vm11, %v12213_v40 }
 0x6f1   : > { %6660 = vst.msk [vmem:[#allocation3 + $0x78] sm:$0xff] %vm1015_vm5, %v6628_v34  ;;  %8423 = vrot.lane.b32.xlu0 %v8387_v7, %s9671_s23  ;;  %v8106_v7 = vld [vmem:[#allocation2 + $0x118] sm:$0xff] }
 0x6f2   : > { %6836 = vst.msk [vmem:[#allocation3 + $0x78] sm:$0xff] %vm1304_vm6, %v6804_v16  ;;  %8237 = vrot.lane.b32.xlu1 %v8198_v53, %s9670_s22 }
 0x6f3   : > { %v7509_v26 = vpop.permute.xlu0 %7508  ;;  %v6900_v40 = vpop.permute.xlu1 %6899 }
 0x6f4   : > { %7549 = vst.msk [vmem:[#allocation3 + $0x38] sm:$0xff] %vm2366_vm11, %v7509_v26  ;;  %v8488_v26 = vld [vmem:[#allocation2 + $0x3c0] sm:$0xff] }
 0x6f5   : > { %8520 = vrot.lane.b32.xlu0 %v8484_v11, %s9672_s26  ;;  %6932 = vst.msk [vmem:[#allocation3 + $0x78] sm:$0xff] %vm1401_vm7, %v6900_v40  ;;  %v8202_v11 = vld [vmem:[#allocation2 + $0x288] sm:$0xff] }
 0x6f6   : > { %8429 = vrot.lane.b32.xlu1 %v8390_v29, %s9671_s23 }
 0x6f7   : > { %v7235_v14 = vpop.permute.xlu0 %7234  ;;  %v7076_v21 = vpop.permute.xlu1 %7075  ;;  %v7570_v3 = vld [vmem:[#allocation3 + $0x60] sm:$0xff] }
 0x6f8   : > { %7276 = vst.msk [vmem:[#allocation3 + $0x30] sm:$0xff] %vm1980_vm9, %v7235_v14  ;;  %v8584_v14 = vld [vmem:[#allocation2 + $0x3c8] sm:$0xff] }
 0x6f9   : > { %7372 = vst.msk [vmem:[#allocation3 + $0x30] sm:$0xff] %vm2077_vm10, %v7331_v35  ;;  %8616 = vrot.lane.b32.xlu0 %v8580_v25, %s9669_s21  ;;  %v8391_v35 = vld [vmem:[#allocation2 + $0x250] sm:$0xff]  ;;  %v8394_v25 = vld [vmem:[#allocation2 + $0x298] sm:$0xff] }
 0x6fa   : > { %7108 = vst.msk [vmem:[#allocation3 + $0x78] sm:$0xff] %vm1690_vm8, %v7076_v21  ;;  %8526 = vrot.lane.b32.xlu1 %v8487_v19, %s9672_s26 }
 0x6fb   : > { %v7507_v47 = vpop.permute.xlu0 %7506  ;;  %v7253_v20 = vpop.permute.xlu1 %7252  ;;  %v7565_v58 = vld [vmem:[#allocation3 + $0x38] sm:$0xff] }
 0x6fc   : > { %7548 = vst.msk [vmem:[#allocation3 + $0x30] sm:$0xff] %vm2366_vm11, %v7507_v47  ;;  %v8680_v47 = vld [vmem:[#allocation2 + $0x3d0] sm:$0xff] }
 0x6fd   : > { %8712 = vrot.lane.b32.xlu0 %v8676_v22, %s9673_s27  ;;  %7285 = vst.msk [vmem:[#allocation3 + $0x78] sm:$0xff] %vm1980_vm9, %v7253_v20  ;;  %v8491_v22 = vld [vmem:[#allocation2 + $0x408] sm:$0xff] }
 0x6fe   : > { %8622 = vrot.lane.b32.xlu1 %v12413_v59, %s9669_s21  ;;  %v8008_v59 = vld [vmem:[#allocation2 + $0xe0] sm:$0xff]  ;;  %7990 = vst.msk [vmem:[#allocation3 + $0x38] sm:$0xff] %vm177_vm0, %v7974_v60  ;;  %v7978_v60 = vld [vmem:[#allocation2 + $0x108] sm:$0xff] }
 0x6ff   : > { %v7521_v55 = vpop.permute.xlu0 %7520  ;;  %v7349_v41 = vpop.permute.xlu1 %7348  ;;  %7994 = vst.msk [vmem:[#allocation3 + $0x58] sm:$0xff] %vm177_vm0, %v7978_v60 }
 0x700   : > { %7555 = vst.msk [vmem:[#allocation3 + $0x68] sm:$0xff] %vm2366_vm11, %v7521_v55  ;;  %v7975_v55 = vld [vmem:[#allocation2 + $0xc0] sm:$0xff] }
 0x701   : > { %8714 = vrot.lane.b32.xlu0 %v8677_v6, %s9673_s27  ;;  %7381 = vst.msk [vmem:[#allocation3 + $0x78] sm:$0xff] %vm2077_vm10, %v7349_v41  ;;  %v8587_v41 = vld [vmem:[#allocation2 + $0x410] sm:$0xff] }
 0x702   : > { %8047 = vrot.lane.b32.xlu1 %v8007_v31, %s9666_s18  ;;  %v7976_v31 = vld [vmem:[#allocation2 + $0xd8] sm:$0xff]  ;;  %7991 = vst.msk [vmem:[#allocation3 + $0x40] sm:$0xff] %vm177_vm0, %v7975_v55 }
 0x703   : > { %v6626_v42 = vpop.permute.xlu0 %6625  ;;  %v7564_v2 = vld [vmem:[#allocation3 + $0x30] sm:$0xff]  ;;  %v7525_v46 = vpop.permute.xlu1 %7524  ;;  %7992 = vst.msk [vmem:[#allocation3 + $0x48] sm:$0xff] %vm177_vm0, %v7976_v31  ;;  %v7980_v31 = vld [vmem:[#allocation2 + $0x138] sm:$0xff] }
 0x704   : > { %6659 = vst.msk [vmem:[#allocation3 + $0x70] sm:$0xff] %vm1015_vm5, %v6626_v42  ;;  %9555 = vmatprep.mubr.msk.bf16.mxu1 %vm2419_vm12, %v7564_v2 }
 0x705   : > { %9556 = vmatmul.mubr.msk.bf16.gmra.mrb[60].mxu1 %vm2419_vm12, %v7565_v58  ;;  %8139 = vrot.lane.b32.xlu0 %v8101_v32, %s9667_s19  ;;  %7557 = vst.msk [vmem:[#allocation3 + $0x78] sm:$0xff] %vm2366_vm11, %v7525_v46  ;;  %v8681_v32 = vld [vmem:[#allocation2 + $0x3e8] sm:$0xff] }
 0x706   : > { %9559 = vmatprep.mubr.msk.bf16.mxu1 %vm2419_vm12, %v7566_v9  ;;  %8049 = vrot.lane.b32.xlu1 %v8008_v59, %s9666_s18  ;;  %7989 = vst.msk [vmem:[#allocation3 + $0x30] sm:$0xff] %vm177_vm0, %v7973_v44  ;;  %v8011_v58 = vld [vmem:[#allocation2 + $0x128] sm:$0xff]  ;;  %v8105_v9 = vld [vmem:[#allocation2 + $0x100] sm:$0xff]  ;;  %v7977_v44 = vld [vmem:[#allocation2 + $0xf0] sm:$0xff] }
 0x707   : > { %v6898_v49 = vpop.permute.xlu0 %6897  ;;  %v8034_v51 = vpop.permute.xlu1 %8033  ;;  %v7571_v56 = vld [vmem:[#allocation3 + $0x68] sm:$0xff]  ;;  %7993 = vst.msk [vmem:[#allocation3 + $0x50] sm:$0xff] %vm177_vm0, %v7977_v44 }
 0x708   : > { %8080 = vst.msk [vmem:[#allocation3 + $0x8] sm:$0xff] %vm725_vm4, %v8034_v51  ;;  %v8108_v51 = vld [vmem:[#allocation2 + $0x148] sm:$0xff] }
 0x709   : > { %8235 = vrot.lane.b32.xlu0 %v8197_v48, %s9670_s22  ;;  %v8012_v48 = vld [vmem:[#allocation2 + $0x140] sm:$0xff]  ;;  %7996 = vst.msk [vmem:[#allocation3 + $0x68] sm:$0xff] %vm177_vm0, %v7980_v31 }
 0x70a   : > { %8145 = vrot.lane.b32.xlu1 %v8104_v28, %s9667_s19  ;;  %v9656_v31 = vld [vmem:[%s13225_s1 + $0x60] ss:$0 sps:$4 sm:$0x33]  }
 0x70b   : > { %v7251_v57 = vpop.permute.xlu0 %7250  ;;  %v8130_v39 = vpop.permute.xlu1 %8129 }
 0x70c   : > { %8176 = vst.msk [vmem:[#allocation3 + $0x8] sm:$0xff] %vm1015_vm5, %v8130_v39  ;;  %v7573_v38 = vld [vmem:[#allocation3 + $0x78] sm:$0xff] }
 0x70d   : > { %9560 = vmatmul.mubr.msk.bf16.gmra.mrb[64].mxu1 %vm2419_vm12, %v7567_v62  ;;  %8427 = vrot.lane.b32.xlu0 %v8389_v43, %s9671_s23 }
 0x70e   : > { %9563 = vmatprep.mubr.msk.bf16.mxu1 %vm2419_vm12, %v7568_v30  ;;  %8241 = vrot.lane.b32.xlu1 %v8200_v0, %s9670_s22  ;;  %v8204_v0 = vld [vmem:[#allocation2 + $0x2b8] sm:$0xff] }
 0x70f   : > { %v7347_v45 = vpop.permute.xlu0 %7346  ;;  %v8226_v54 = vpop.permute.xlu1 %8225 }
 0x710   : > { %8272 = vst.msk [vmem:[#allocation3 + $0x8] sm:$0xff] %vm1304_vm6, %v8226_v54  ;;  %v8586_v54 = vld [vmem:[#allocation2 + $0x3f8] sm:$0xff] }
 0x711   : > { %8524 = vrot.lane.b32.xlu0 %v8486_v1, %s9672_s26  ;;  %v8490_v1 = vld [vmem:[#allocation2 + $0x3f0] sm:$0xff] }
 0x712   : > { %8433 = vrot.lane.b32.xlu1 %v8392_v12, %s9671_s23  ;;  %v8396_v12 = vld [vmem:[#allocation2 + $0x2c8] sm:$0xff] }
 0x713   : > { %v6802_v18 = vpop.permute.xlu0 %6801  ;;  %v12607_v52 = vpop.permute.xlu1 %8417 }
 0x714   : > { %6835 = vst.msk [vmem:[#allocation3 + $0x70] sm:$0xff] %vm1304_vm6, %v6802_v18 }
 0x715   : > { %6931 = vst.msk [vmem:[#allocation3 + $0x70] sm:$0xff] %vm1401_vm7, %v6898_v49  ;;  %9564 = vmatmul.mubr.msk.bf16.gmra.mrb[68].mxu1 %vm2419_vm12, %v7569_v24  ;;  %8620 = vrot.lane.b32.xlu0 %v12426_v15, %s9669_s21  ;;  %v8679_v15 = vld [vmem:[#allocation2 + $0x3b8] sm:$0xff]  ;;  %v8201_v49 = vld [vmem:[#allocation2 + $0x270] sm:$0xff] }
 0x716   : > { %9567 = vmatprep.mubr.msk.bf16.mxu1 %vm2419_vm12, %v7570_v3  ;;  %8530 = vrot.lane.b32.xlu1 %v8489_v33, %s9672_s26  ;;  %v8493_v3 = vld [vmem:[#allocation2 + $0x438] sm:$0xff]  ;;  %v8682_v33 = vld [vmem:[#allocation2 + $0x400] sm:$0xff] }
 0x717   : > { %v7074_v4 = vpop.permute.xlu0 %7073  ;;  %v12616_v37 = vpop.permute.xlu1 %8514 }
 0x718   : > { %7107 = vst.msk [vmem:[#allocation3 + $0x70] sm:$0xff] %vm1690_vm8, %v7074_v4 }
 0x719   : > { %7284 = vst.msk [vmem:[#allocation3 + $0x70] sm:$0xff] %vm1980_vm9, %v7251_v57  ;;  %8716 = vrot.lane.b32.xlu0 %v8678_v17, %s9673_s27  ;;  %v8393_v57 = vld [vmem:[#allocation2 + $0x280] sm:$0xff] }
 0x71a   : > { %7380 = vst.msk [vmem:[#allocation3 + $0x70] sm:$0xff] %vm2077_vm10, %v7347_v45  ;;  %8626 = vrot.lane.b32.xlu1 %v8585_v63, %s9669_s21  ;;  %v8589_v63 = vld [vmem:[#allocation2 + $0x440] sm:$0xff] }
 0x71b   : > { %v7523_v27 = vpop.permute.xlu0 %7522  ;;  %v12622_v8 = vpop.permute.xlu1 %8610 }
 0x71c   : > { %7556 = vst.msk [vmem:[#allocation3 + $0x70] sm:$0xff] %vm2366_vm11, %v7523_v27 }
 0x71d   : > { %9568 = vmatmul.mubr.msk.bf16.gmra.mrb[72].mxu1 %vm2419_vm12, %v7571_v56  ;;  %8718 = vrot.lane.b32.xlu0 %v8679_v15, %s9673_s27  ;;  %v8683_v15 = vld [vmem:[#allocation2 + $0x418] sm:$0xff] }
 0x71e   : > { %8051 = vrot.lane.b32.xlu1 %v8009_v50, %s9666_s18  ;;  %v8107_v50 = vld [vmem:[#allocation2 + $0x130] sm:$0xff] }
 0x71f   : > { %v8032_v61 = vpop.permute.xlu0 %8031  ;;  %v8036_v36 = vpop.permute.xlu1 %8035 }
 0x720   : > { %8079 = vst.msk [vmem:[#allocation3] sm:$0xff] %vm725_vm4, %v8032_v61  ;;  %8081 = vst.msk [vmem:[#allocation3 + $0x10] sm:$0xff] %vm725_vm4, %v8036_v36  ;;  %v8395_v36 = vld [vmem:[#allocation2 + $0x2b0] sm:$0xff] }
 0x721   : > { %8143 = vrot.lane.b32.xlu0 %v8103_v5, %s9667_s19 }
 0x722   : > { %8053 = vrot.lane.b32.xlu1 %v8010_v23, %s9666_s18  ;;  %v8203_v23 = vld [vmem:[#allocation2 + $0x2a0] sm:$0xff] }
 0x723   : > { %v7572_v10 = vld [vmem:[#allocation3 + $0x70] sm:$0xff]  ;;  %v8128_v34 = vpop.permute.xlu0 %8127  ;;  %v8038_v53 = vpop.permute.xlu1 %8037 }
 0x724   : > { %9571 = vmatprep.mubr.msk.bf16.mxu1 %vm2419_vm12, %v7572_v10  ;;  %8175 = vst.msk [vmem:[#allocation3] sm:$0xff] %vm1015_vm5, %v8128_v34 }
 0x725   : > { %9572 = vmatmul.mubr.msk.bf16.gmra.mrb[76].mxu1 %vm2419_vm12, %v7573_v38  ;;  %8239 = vrot.lane.b32.xlu0 %v8199_v13, %s9670_s22  ;;  %8082 = vst.msk [vmem:[#allocation3 + $0x18] sm:$0xff] %vm725_vm4, %v8038_v53 }
 0x726   : > { %8149 = vrot.lane.b32.xlu1 %v8106_v7, %s9667_s19  ;;  %v8492_v7 = vld [vmem:[#allocation2 + $0x420] sm:$0xff] }
 0x727   : > { %v8224_v16 = vpop.permute.xlu0 %8223 }
 0x728   : > { %8271 = vst.msk [vmem:[#allocation3] sm:$0xff] %vm1304_vm6, %v8224_v16  ;;  %v8134_v29 = vpop.permute.xlu1 %8133  ;;  %v8588_v16 = vld [vmem:[#allocation2 + $0x428] sm:$0xff] }
 0x729   : > { %8431 = vrot.lane.b32.xlu0 %v8391_v35, %s9671_s23  ;;  %8178 = vst.msk [vmem:[#allocation3 + $0x18] sm:$0xff] %vm1015_vm5, %v8134_v29 }
 0x72a   : > { %8245 = vrot.lane.b32.xlu1 %v8202_v11, %s9670_s22 }
 0x72b   : > { %v12637_v40 = vpop.permute.xlu0 %8415 }
 0x72c   : > { %v8230_v19 = vpop.permute.xlu1 %8229 }
 0x72d   : > { %8528 = vrot.lane.b32.xlu0 %v8488_v26, %s9672_s26  ;;  %8274 = vst.msk [vmem:[#allocation3 + $0x18] sm:$0xff] %vm1304_vm6, %v8230_v19 }
 0x72e   : > { %8437 = vrot.lane.b32.xlu1 %v8394_v25, %s9671_s23 }
 0x72f   : > { %v12642_v21 = vpop.permute.xlu0 %8512 }
 0x730   : > { %v12647_v20 = vpop.permute.xlu1 %8421 }
 0x731   : > { %8624 = vrot.lane.b32.xlu0 %v8584_v14, %s9669_s21 }
 0x732   : > { %8534 = vrot.lane.b32.xlu1 %v8491_v22, %s9672_s26  ;;  %v7979_v22 = vld [vmem:[#allocation2 + $0x120] sm:$0xff] }
 0x733   : > { %v12649_v6 = vpop.permute.xlu0 %8608  ;;  %7995 = vst.msk [vmem:[#allocation3 + $0x60] sm:$0xff] %vm177_vm0, %v7979_v22 }
 0x734   : > { %v12655_v42 = vpop.permute.xlu1 %8518 }
 0x735   : > { %8720 = vrot.lane.b32.xlu0 %v8680_v47, %s9673_s27 }
 0x736   : > { %8630 = vrot.lane.b32.xlu1 %v8587_v41, %s9669_s21 }
 0x737   : > { %v12657_v2 = vpop.permute.xlu0 %8704 }
 0x738   : > { %v12661_v59 = vpop.permute.xlu1 %8614 }
 0x739   : > { %8722 = vrot.lane.b32.xlu0 %v8681_v32, %s9673_s27 }
 0x73a   : > { %8055 = vrot.lane.b32.xlu1 %v8011_v58, %s9666_s18 }
 0x73b   : > { %v12663_v46 = vpop.permute.xlu0 %8706 }
 0x73c   : > { %v8040_v28 = vpop.permute.xlu1 %8039 }
 0x73d   : > { %8147 = vrot.lane.b32.xlu0 %v8105_v9, %s9667_s19  ;;  %8083 = vst.msk [vmem:[#allocation3 + $0x20] sm:$0xff] %vm725_vm4, %v8040_v28 }
 0x73e   : > { %8057 = vrot.lane.b32.xlu1 %v8012_v48, %s9666_s18 }
 0x73f   : > { %v8132_v43 = vpop.permute.xlu0 %8131 }
 0x740   : > { %8177 = vst.msk [vmem:[#allocation3 + $0x10] sm:$0xff] %vm1015_vm5, %v8132_v43  ;;  %v8042_v62 = vpop.permute.xlu1 %8041 }
 0x741   : > { %8243 = vrot.lane.b32.xlu0 %v8201_v49, %s9670_s22  ;;  %8084 = vst.msk [vmem:[#allocation3 + $0x28] sm:$0xff] %vm725_vm4, %v8042_v62 }
 0x742   : > { %8153 = vrot.lane.b32.xlu1 %v8108_v51, %s9667_s19 }
 0x743   : > { %v8228_v30 = vpop.permute.xlu0 %8227 }
 0x744   : > { %8273 = vst.msk [vmem:[#allocation3 + $0x10] sm:$0xff] %vm1304_vm6, %v8228_v30  ;;  %v8138_v39 = vpop.permute.xlu1 %8137 }
 0x745   : > { %8435 = vrot.lane.b32.xlu0 %v8393_v57, %s9671_s23  ;;  %8180 = vst.msk [vmem:[#allocation3 + $0x28] sm:$0xff] %vm1015_vm5, %v8138_v39 }
 0x746   : > { %8249 = vrot.lane.b32.xlu1 %v8204_v0, %s9670_s22 }
 0x747   : > { %v12675_v45 = vpop.permute.xlu0 %8419 }
 0x748   : > { %v8234_v18 = vpop.permute.xlu1 %8233 }
 0x749   : > { %8532 = vrot.lane.b32.xlu0 %v8490_v1, %s9672_s26  ;;  %8276 = vst.msk [vmem:[#allocation3 + $0x28] sm:$0xff] %vm1304_vm6, %v8234_v18  ;;  %v7841_v1 = vld [vmem:[%s9997_s17 + $0x10] sm:$0xff] }
 0x74a   : > { %8441 = vrot.lane.b32.xlu1 %v8396_v12, %s9671_s23 }
 0x74b   : > { %v12680_v24 = vpop.permute.xlu0 %8516 }
 0x74c   : > { %v12685_v17 = vpop.permute.xlu1 %8425 }
 0x74d   : > { %8628 = vrot.lane.b32.xlu0 %v8586_v54, %s9669_s21 }
 0x74e   : > { %8538 = vrot.lane.b32.xlu1 %v8493_v3, %s9672_s26  ;;  %v7839_v3 = vld [vmem:[%s9997_s17] sm:$0xff] }
 0x74f   : > { %v12687_v4 = vpop.permute.xlu0 %8612 }
 0x750   : > { %v12693_v27 = vpop.permute.xlu1 %8522 }
 0x751   : > { %8724 = vrot.lane.b32.xlu0 %v8682_v33, %s9673_s27 }
 0x752   : > { %8634 = vrot.lane.b32.xlu1 %v8589_v63, %s9669_s21 }
 0x753   : > { %v12695_v56 = vpop.permute.xlu0 %8708 }
 0x754   : > { %v12699_v5 = vpop.permute.xlu1 %8618 }
 0x755   : > { %8726 = vrot.lane.b32.xlu0 %v8683_v15, %s9673_s27  ;;  %v7842_v15 = vld [vmem:[%s9997_s17 + $0x18] sm:$0xff] }
 0x757   : > { %v12701_v61 = vpop.permute.xlu0 %8710 }
 0x758   : > { %v8044_v38 = vpop.permute.xlu1 %8043 }
 0x759   : > { %8151 = vrot.lane.b32.xlu0 %v8107_v50, %s9667_s19  ;;  %8085 = vst.msk [vmem:[#allocation3 + $0x30] sm:$0xff] %vm725_vm4, %v8044_v38 }
 0x75b   : > { %v8136_v13 = vpop.permute.xlu0 %8135 }
 0x75c   : > { %8179 = vst.msk [vmem:[#allocation3 + $0x20] sm:$0xff] %vm1015_vm5, %v8136_v13  ;;  %v8046_v10 = vpop.permute.xlu1 %8045  ;;  %v7840_v13 = vld [vmem:[%s9997_s17 + $0x8] sm:$0xff] }
 0x75d   : > { %8247 = vrot.lane.b32.xlu0 %v8203_v23, %s9670_s22  ;;  %8086 = vst.msk [vmem:[#allocation3 + $0x38] sm:$0xff] %vm725_vm4, %v8046_v10 }
 0x75f   : > { %v8232_v34 = vpop.permute.xlu0 %8231 }
 0x760   : > { %8275 = vst.msk [vmem:[#allocation3 + $0x20] sm:$0xff] %vm1304_vm6, %v8232_v34  ;;  %v8142_v35 = vpop.permute.xlu1 %8141 }
 0x761   : > { %8439 = vrot.lane.b32.xlu0 %v8395_v36, %s9671_s23  ;;  %8182 = vst.msk [vmem:[#allocation3 + $0x38] sm:$0xff] %vm1015_vm5, %v8142_v35  ;;  %v9654_v35 = vld [vmem:[%s13225_s1 + $0x50] sm:$0xff]  }
 0x762   : > { %9575 = vmatprep.subr.bf16.mxu0 %v9654_v35 }
 0x763   : > { %v12710_v53 = vpop.permute.xlu0 %8423  ;;  %9576 = vmatpush3.bf16.msra.mxu0 %v9654_v35 }
 0x764   : > { %v8238_v11 = vpop.permute.xlu1 %8237 }
 0x765   : > { %8536 = vrot.lane.b32.xlu0 %v8492_v7, %s9672_s26  ;;  %8278 = vst.msk [vmem:[#allocation3 + $0x38] sm:$0xff] %vm1304_vm6, %v8238_v11 }
 0x767   : > { %v12714_v26 = vpop.permute.xlu0 %8520 }
 0x768   : > { %v12718_v29 = vpop.permute.xlu1 %8429 }
 0x769   : > { %8632 = vrot.lane.b32.xlu0 %v8588_v16, %s9669_s21  ;;  %v9655_v16 = vld [vmem:[%s13225_s1 + $0x58] sm:$0xff]  }
 0x76a   : > { %9577 = vmatprep.subr.bf16.mxu0 %v9655_v16 }
 0x76b   : > { %v12720_v25 = vpop.permute.xlu0 %8616  ;;  %9578 = vmatpush3.bf16.msra.mxu0 %v9655_v16 }
 0x76c   : > { %v12722_v14 = vpop.permute.xlu1 %8526  ;;  %9624 = vmatprep.subr.msk.bf16.mxu0 %vm2468_vm3, %v9656_v31 }
 0x76f   : > { %v12724_v19 = vpop.permute.xlu0 %8712 }
 0x770   : > { %v12727_v47 = vpop.permute.xlu1 %8622 }
 0x773   : > { %v12729_v55 = vpop.permute.xlu0 %8714 }
 0x774   : > { %v8048_v41 = vpop.permute.xlu1 %8047 }
 0x775   : > { %8087 = vst.msk [vmem:[#allocation3 + $0x40] sm:$0xff] %vm725_vm4, %v8048_v41 }
 0x777   : > { %v8140_v32 = vpop.permute.xlu0 %8139 }
 0x778   : > { %8181 = vst.msk [vmem:[#allocation3 + $0x30] sm:$0xff] %vm1015_vm5, %v8140_v32  ;;  %v8050_v58 = vpop.permute.xlu1 %8049 }
 0x779   : > { %8088 = vst.msk [vmem:[#allocation3 + $0x48] sm:$0xff] %vm725_vm4, %v8050_v58 }
 0x77b   : > { %v8236_v9 = vpop.permute.xlu0 %8235 }
 0x77c   : > { %8277 = vst.msk [vmem:[#allocation3 + $0x30] sm:$0xff] %vm1304_vm6, %v8236_v9  ;;  %v8146_v48 = vpop.permute.xlu1 %8145 }
 0x77d   : > { %8184 = vst.msk [vmem:[#allocation3 + $0x48] sm:$0xff] %vm1015_vm5, %v8146_v48  ;;  %v8854_v48 = vsel %vm2468_vm3, %v9656_v31, 0 }
 0x77e   : > { %9580 = vmatpush3.bf16.msra.mxu0 %v8854_v48 }
 0x77f   : > { %v12736_v49 = vpop.permute.xlu0 %8427 }
 0x780   : > { %v8242_v28 = vpop.permute.xlu1 %8241 }
 0x781   : > { %8280 = vst.msk [vmem:[#allocation3 + $0x48] sm:$0xff] %vm1304_vm6, %v8242_v28  ;;  %v8013_v28 = vld [vmem:[#allocation2 + $0x158] sm:$0xff] }
 0x783   : > { %v12739_v43 = vpop.permute.xlu0 %8524 }
 0x784   : > { %v12742_v51 = vpop.permute.xlu1 %8433 }
 0x787   : > { %v12744_v57 = vpop.permute.xlu0 %8620 }
 0x788   : > { %v9545_v62 = vpop.f32.mrb[48].mxu1  ;;  %v12747_v54 = vpop.permute.xlu1 %8530 }
 0x789   : > { %v7809_v30 = vmax.f32 %v9545_v62, 0.0  ;;  %v7680_v0 = vpop.f32.mrb[49].mxu1  ;;  %v7981_v62 = vld [vmem:[#allocation2 + $0x150] sm:$0xff] }
 0x78a   : > { %v7807_v39 = vmax.f32 %v7680_v0, 0.0  ;;  %v9546_v12 = vpop.f32.mrb[50].mxu1  ;;  %7997 = vst.msk [vmem:[#allocation3 + $0x70] sm:$0xff] %vm177_vm0, %v7981_v62 }
 0x78b   : > { %v7873_v18 = vadd.f32 %v7841_v1, %v7809_v30  ;;  %v7810_v33 = vmax.f32 %v9546_v12, 0.0  ;;  %v7683_v44 = vpop.f32.mrb[51].mxu1  ;;  %v12750_v60 = vpop.permute.xlu0 %8716 }
 0x78c   : > { %v7871_v63 = vadd.f32 %v7839_v3, %v7807_v39  ;;  %v7808_v50 = vmax.f32 %v7683_v44, 0.0  ;;  %v12758_v34 = vpop.permute.xlu1 %8626 }
 0x78d   : > { %7905 = vst.msk [vmem:[%s9997_s17 + $0x10] sm:$0xff] %vm177_vm0, %v7873_v18  ;;  %v7874_v23 = vadd.f32 %v7842_v15, %v7810_v33  ;;  %v7936_v38 = vpack.c.bf16 %v7810_v33, %v7809_v30  ;;  %v8684_v30 = vld [vmem:[#allocation2 + $0x430] sm:$0xff] }
 0x78e   : > { %7903 = vst.msk [vmem:[%s9997_s17] sm:$0xff] %vm177_vm0, %v7871_v63  ;;  %v7872_v36 = vadd.f32 %v7840_v13, %v7808_v50  ;;  %v7935_v10 = vpack.c.bf16 %v7808_v50, %v7807_v39  ;;  %v7845_v15 = vld [vmem:[%s9997_s17 + $0x30] sm:$0xff] }
 0x78f   : > { %7906 = vst.msk [vmem:[%s9997_s17 + $0x18] sm:$0xff] %vm177_vm0, %v7874_v23  ;;  %7952 = vst.msk [vmem:[#allocation2 + $0x1a0] sm:$0xff] %vm177_vm0, %v7936_v38  ;;  %v12763_v7 = vpop.permute.xlu0 %8718 }
 0x790   : > { %7904 = vst.msk [vmem:[%s9997_s17 + $0x8] sm:$0xff] %vm177_vm0, %v7872_v36  ;;  %7951 = vst.msk [vmem:[#allocation2 + $0x188] sm:$0xff] %vm177_vm0, %v7935_v10  ;;  %v8052_v11 = vpop.permute.xlu1 %8051  ;;  %v7843_v36 = vld [vmem:[%s9997_s17 + $0x20] sm:$0xff] }
 0x791   : > { %8089 = vst.msk [vmem:[#allocation3 + $0x50] sm:$0xff] %vm725_vm4, %v8052_v11 }
 0x793   : > { %v8144_v22 = vpop.permute.xlu0 %8143 }
 0x794   : > { %8183 = vst.msk [vmem:[#allocation3 + $0x40] sm:$0xff] %vm1015_vm5, %v8144_v22  ;;  %v8054_v32 = vpop.permute.xlu1 %8053  ;;  %v7846_v22 = vld [vmem:[%s9997_s17 + $0x38] sm:$0xff] }
 0x795   : > { %8090 = vst.msk [vmem:[#allocation3 + $0x58] sm:$0xff] %vm725_vm4, %v8054_v32 }
 0x796   : > { %v8288_v41 = vld [vmem:[#allocation2 + $0x1a0] sm:$0xff] }
 0x797   : > { %8321 = vrot.lane.b32.xlu1 %v8288_v41, %s9668_s20  ;;  %v8287_v58 = vld [vmem:[#allocation2 + $0x188] sm:$0xff]  ;;  %v8240_v9 = vpop.permute.xlu0 %8239 }
 0x798   : > { %8319 = vrot.lane.b32.xlu0 %v8287_v58, %s9668_s20  ;;  %8279 = vst.msk [vmem:[#allocation3 + $0x40] sm:$0xff] %vm1304_vm6, %v8240_v9  ;;  %v8150_v0 = vpop.permute.xlu1 %8149  ;;  %v7844_v58 = vld [vmem:[%s9997_s17 + $0x28] sm:$0xff] }
 0x799   : > { %8186 = vst.msk [vmem:[#allocation3 + $0x58] sm:$0xff] %vm1015_vm5, %v8150_v0 }
 0x79b   : > { %8059 = vrot.lane.b32.xlu1 %v8013_v28, %s9666_s18  ;;  %v12787_v1 = vpop.permute.xlu0 %8431 }
 0x79c   : > { %8728 = vrot.lane.b32.xlu0 %v8684_v30, %s9673_s27  ;;  %v8246_v39 = vpop.permute.xlu1 %8245 }
 0x79d   : > { %8282 = vst.msk [vmem:[#allocation3 + $0x58] sm:$0xff] %vm1304_vm6, %v8246_v39 }
 0x79f   : > { %v12791_v12 = vpop.permute.xlu0 %8528 }
 0x7a0   : > { %v12794_v18 = vpop.permute.xlu1 %8437 }
 0x7a3   : > { %v12796_v3 = vpop.permute.xlu0 %8624 }
 0x7a4   : > { %v9549_v33 = vpop.f32.mrb[52].mxu1  ;;  %v12799_v38 = vpop.permute.xlu1 %8534 }
 0x7a5   : > { %v7813_v44 = vmax.f32 %v9549_v33, 0.0  ;;  %v7696_v63 = vpop.f32.mrb[53].mxu1 }
 0x7a6   : > { %v7811_v50 = vmax.f32 %v7696_v63, 0.0  ;;  %v9550_v23 = vpop.f32.mrb[54].mxu1 }
 0x7a7   : > { %v7877_v13 = vadd.f32 %v7845_v15, %v7813_v44  ;;  %v7814_v10 = vmax.f32 %v9550_v23, 0.0  ;;  %v7699_v35 = vpop.f32.mrb[55].mxu1  ;;  %v12802_v16 = vpop.permute.xlu0 %8720  ;;  %v8014_v15 = vld [vmem:[#allocation2 + $0x170] sm:$0xff]  ;;  %v8685_v23 = vld [vmem:[#allocation2 + $0x448] sm:$0xff] }
 0x7a8   : > { %v7875_v11 = vadd.f32 %v7843_v36, %v7811_v50  ;;  %v7812_v31 = vmax.f32 %v7699_v35, 0.0  ;;  %v12810_v28 = vpop.permute.xlu1 %8630 }
 0x7a9   : > { %7909 = vst.msk [vmem:[%s9997_s17 + $0x30] sm:$0xff] %vm177_vm0, %v7877_v13  ;;  %v7878_v41 = vadd.f32 %v7846_v22, %v7814_v10  ;;  %v7938_v32 = vpack.c.bf16 %v7814_v10, %v7813_v44 }
 0x7aa   : > { %7907 = vst.msk [vmem:[%s9997_s17 + $0x20] sm:$0xff] %vm177_vm0, %v7875_v11  ;;  %v7876_v9 = vadd.f32 %v7844_v58, %v7812_v31  ;;  %v7937_v48 = vpack.c.bf16 %v7812_v31, %v7811_v50  ;;  %v7982_v50 = vld [vmem:[#allocation2 + $0x168] sm:$0xff] }
 0x7ab   : > { %7910 = vst.msk [vmem:[%s9997_s17 + $0x38] sm:$0xff] %vm177_vm0, %v7878_v41  ;;  %7954 = vst.msk [vmem:[#allocation2 + $0x1d0] sm:$0xff] %vm177_vm0, %v7938_v32  ;;  %v12815_v62 = vpop.permute.xlu0 %8722  ;;  %v7849_v32 = vld [vmem:[%s9997_s17 + $0x50] sm:$0xff] }
 0x7ac   : > { %7908 = vst.msk [vmem:[%s9997_s17 + $0x28] sm:$0xff] %vm177_vm0, %v7876_v9  ;;  %7953 = vst.msk [vmem:[#allocation2 + $0x1b8] sm:$0xff] %vm177_vm0, %v7937_v48  ;;  %v8056_v30 = vpop.permute.xlu1 %8055 }
 0x7ad   : > { %8091 = vst.msk [vmem:[#allocation3 + $0x60] sm:$0xff] %vm725_vm4, %v8056_v30  ;;  %v7847_v30 = vld [vmem:[%s9997_s17 + $0x40] sm:$0xff] }
 0x7ae   : > { %7998 = vst.msk [vmem:[#allocation3 + $0x78] sm:$0xff] %vm177_vm0, %v7982_v50 }
 0x7af   : > { %v8148_v0 = vpop.permute.xlu0 %8147 }
 0x7b0   : > { %8185 = vst.msk [vmem:[#allocation3 + $0x50] sm:$0xff] %vm1015_vm5, %v8148_v0  ;;  %v8058_v33 = vpop.permute.xlu1 %8057 }
 0x7b1   : > { %8092 = vst.msk [vmem:[#allocation3 + $0x68] sm:$0xff] %vm725_vm4, %v8058_v33 }
 0x7b2   : > { %v8290_v39 = vld [vmem:[#allocation2 + $0x1d0] sm:$0xff] }
 0x7b3   : > { %8325 = vrot.lane.b32.xlu1 %v8290_v39, %s9668_s20  ;;  %v8289_v44 = vld [vmem:[#allocation2 + $0x1b8] sm:$0xff]  ;;  %v8244_v63 = vpop.permute.xlu0 %8243 }
 0x7b4   : > { %8323 = vrot.lane.b32.xlu0 %v8289_v44, %s9668_s20  ;;  %8281 = vst.msk [vmem:[#allocation3 + $0x50] sm:$0xff] %vm1304_vm6, %v8244_v63  ;;  %v8154_v13 = vpop.permute.xlu1 %8153  ;;  %v7850_v63 = vld [vmem:[%s9997_s17 + $0x58] sm:$0xff] }
 0x7b5   : > { %8188 = vst.msk [vmem:[#allocation3 + $0x68] sm:$0xff] %vm1015_vm5, %v8154_v13  ;;  %v7848_v13 = vld [vmem:[%s9997_s17 + $0x48] sm:$0xff] }
 0x7b7   : > { %8061 = vrot.lane.b32.xlu1 %v8014_v15, %s9666_s18  ;;  %v12828_v36 = vpop.permute.xlu0 %8435 }
 0x7b8   : > { %8730 = vrot.lane.b32.xlu0 %v8685_v23, %s9673_s27  ;;  %v8250_v10 = vpop.permute.xlu1 %8249 }
 0x7b9   : > { %8284 = vst.msk [vmem:[#allocation3 + $0x68] sm:$0xff] %vm1304_vm6, %v8250_v10 }
 0x7bb   : > { %v12832_v35 = vpop.permute.xlu0 %8532 }
 0x7bf   : > { %v12835_v11 = vpop.permute.xlu0 %8628 }
 0x7c0   : > { %13227 = vst [vmem:[#allocation4_spill] sm:$0xff] %v12835_v11  ;;  %v9553_v22 = vpop.f32.mrb[56].mxu1 }
 0x7c1   : > { %v7817_v31 = vmax.f32 %v9553_v22, 0.0  ;;  %v7712_v41 = vpop.f32.mrb[57].mxu1 }
 0x7c2   : > { %v7815_v58 = vmax.f32 %v7712_v41, 0.0  ;;  %v9554_v9 = vpop.f32.mrb[58].mxu1 }
 0x7c3   : > { %v7881_v48 = vadd.f32 %v7849_v32, %v7817_v31  ;;  %v7818_v0 = vmax.f32 %v9554_v9, 0.0  ;;  %v7715_v39 = vpop.f32.mrb[59].mxu1  ;;  %v12839_v33 = vpop.permute.xlu0 %8724 }
 0x7c4   : > { %13228 = vst [vmem:[#allocation5_spill] sm:$0xff] %v12839_v33  ;;  %v7879_v44 = vadd.f32 %v7847_v30, %v7815_v58  ;;  %v7816_v15 = vmax.f32 %v7715_v39, 0.0  ;;  %v8109_v30 = vld [vmem:[#allocation2 + $0x160] sm:$0xff] }
 0x7c5   : > { %7913 = vst.msk [vmem:[%s9997_s17 + $0x50] sm:$0xff] %vm177_vm0, %v7881_v48  ;;  %v7882_v50 = vadd.f32 %v7850_v63, %v7818_v0  ;;  %v7940_v23 = vpack.c.bf16 %v7818_v0, %v7817_v31  ;;  %v8110_v48 = vld [vmem:[#allocation2 + $0x178] sm:$0xff]  ;;  %v7853_v63 = vld [vmem:[%s9997_s17 + $0x70] sm:$0xff] }
 0x7c6   : > { %7911 = vst.msk [vmem:[%s9997_s17 + $0x40] sm:$0xff] %vm177_vm0, %v7879_v44  ;;  %v7880_v10 = vadd.f32 %v7848_v13, %v7816_v15  ;;  %v7939_v22 = vpack.c.bf16 %v7816_v15, %v7815_v58  ;;  %v7851_v13 = vld [vmem:[%s9997_s17 + $0x60] sm:$0xff] }
 0x7c7   : > { %7914 = vst.msk [vmem:[%s9997_s17 + $0x58] sm:$0xff] %vm177_vm0, %v7882_v50  ;;  %7956 = vst.msk [vmem:[#allocation2 + $0x200] sm:$0xff] %vm177_vm0, %v7940_v23  ;;  %v12850_v41 = vpop.permute.xlu0 %8726 }
 0x7c8   : > { %7912 = vst.msk [vmem:[%s9997_s17 + $0x48] sm:$0xff] %vm177_vm0, %v7880_v10  ;;  %7955 = vst.msk [vmem:[#allocation2 + $0x1e8] sm:$0xff] %vm177_vm0, %v7939_v22 }
 0x7cb   : > { %v8152_v32 = vpop.permute.xlu0 %8151 }
 0x7cc   : > { %8187 = vst.msk [vmem:[#allocation3 + $0x60] sm:$0xff] %vm1015_vm5, %v8152_v32 }
 0x7ce   : > { %v8292_v31 = vld [vmem:[#allocation2 + $0x200] sm:$0xff] }
 0x7cf   : > { %8329 = vrot.lane.b32.xlu1 %v8292_v31, %s9668_s20  ;;  %v8291_v9 = vld [vmem:[#allocation2 + $0x1e8] sm:$0xff]  ;;  %v8248_v58 = vpop.permute.xlu0 %8247  ;;  %v7854_v31 = vld [vmem:[%s9997_s17 + $0x78] sm:$0xff] }
 0x7d0   : > { %8327 = vrot.lane.b32.xlu0 %v8291_v9, %s9668_s20  ;;  %8283 = vst.msk [vmem:[#allocation3 + $0x60] sm:$0xff] %vm1304_vm6, %v8248_v58 }
 0x7d3   : > { %8157 = vrot.lane.b32.xlu1 %v8110_v48, %s9667_s19 }
 0x7d4   : > { %8155 = vrot.lane.b32.xlu0 %v8109_v30, %s9667_s19  ;;  %v7852_v30 = vld [vmem:[%s9997_s17 + $0x68] sm:$0xff] }
 0x7d8   : > { %v9557_v0 = vpop.f32.mrb[60].mxu1 }
 0x7d9   : > { %v7821_v39 = vmax.f32 %v9557_v0, 0.0  ;;  %v7728_v44 = vpop.f32.mrb[61].mxu1 }
 0x7da   : > { %v7819_v15 = vmax.f32 %v7728_v44, 0.0  ;;  %v9558_v50 = vpop.f32.mrb[62].mxu1 }
 0x7db   : > { %v7885_v23 = vadd.f32 %v7853_v63, %v7821_v39  ;;  %v7822_v10 = vmax.f32 %v9558_v50, 0.0  ;;  %v7731_v22 = vpop.f32.mrb[63].mxu1 }
 0x7dc   : > { %v7883_v32 = vadd.f32 %v7851_v13, %v7819_v15  ;;  %v7820_v9 = vmax.f32 %v7731_v22, 0.0  ;;  %v7855_v22 = vld [vmem:[%s9997_s17 + $0x80] sm:$0xff] }
 0x7dd   : > { %7917 = vst.msk [vmem:[%s9997_s17 + $0x70] sm:$0xff] %vm177_vm0, %v7885_v23  ;;  %v7886_v58 = vadd.f32 %v7854_v31, %v7822_v10  ;;  %v7942_v48 = vpack.c.bf16 %v7822_v10, %v7821_v39  ;;  %v7857_v23 = vld [vmem:[%s9997_s17 + $0x90] sm:$0xff] }
 0x7de   : > { %7915 = vst.msk [vmem:[%s9997_s17 + $0x60] sm:$0xff] %vm177_vm0, %v7883_v32  ;;  %v7884_v0 = vadd.f32 %v7852_v30, %v7820_v9  ;;  %v7941_v44 = vpack.c.bf16 %v7820_v9, %v7819_v15 }
 0x7df   : > { %7918 = vst.msk [vmem:[%s9997_s17 + $0x78] sm:$0xff] %vm177_vm0, %v7886_v58  ;;  %7958 = vst.msk [vmem:[#allocation2 + $0x230] sm:$0xff] %vm177_vm0, %v7942_v48  ;;  %v7858_v58 = vld [vmem:[%s9997_s17 + $0x98] sm:$0xff] }
 0x7e0   : > { %7916 = vst.msk [vmem:[%s9997_s17 + $0x68] sm:$0xff] %vm177_vm0, %v7884_v0  ;;  %7957 = vst.msk [vmem:[#allocation2 + $0x218] sm:$0xff] %vm177_vm0, %v7941_v44  ;;  %v9561_v63 = vpop.f32.mrb[64].mxu1  ;;  %v7856_v44 = vld [vmem:[%s9997_s17 + $0x88] sm:$0xff] }
 0x7e1   : > { %v7825_v50 = vmax.f32 %v9561_v63, 0.0  ;;  %v7744_v39 = vpop.f32.mrb[65].mxu1 }
 0x7e2   : > { %v7823_v13 = vmax.f32 %v7744_v39, 0.0  ;;  %v9562_v10 = vpop.f32.mrb[66].mxu1 }
 0x7e3   : > { %v7889_v15 = vadd.f32 %v7857_v23, %v7825_v50  ;;  %v7826_v32 = vmax.f32 %v9562_v10, 0.0  ;;  %v7747_v31 = vpop.f32.mrb[67].mxu1  ;;  %v8206_v10 = vld [vmem:[#allocation2 + $0x2e8] sm:$0xff] }
 0x7e4   : > { %v7887_v9 = vadd.f32 %v7855_v22, %v7823_v13  ;;  %v7824_v48 = vmax.f32 %v7747_v31, 0.0  ;;  %v8205_v22 = vld [vmem:[#allocation2 + $0x2d0] sm:$0xff] }
 0x7e5   : > { %7921 = vst.msk [vmem:[%s9997_s17 + $0x90] sm:$0xff] %vm177_vm0, %v7889_v15  ;;  %v7890_v30 = vadd.f32 %v7858_v58, %v7826_v32  ;;  %v7944_v0 = vpack.c.bf16 %v7826_v32, %v7825_v50  ;;  %v7861_v32 = vld [vmem:[%s9997_s17 + $0xb0] sm:$0xff]  ;;  %v7859_v58 = vld [vmem:[%s9997_s17 + $0xa0] sm:$0xff] }
 0x7e6   : > { %7919 = vst.msk [vmem:[%s9997_s17 + $0x80] sm:$0xff] %vm177_vm0, %v7887_v9  ;;  %v7888_v63 = vadd.f32 %v7856_v44, %v7824_v48  ;;  %v7943_v39 = vpack.c.bf16 %v7824_v48, %v7823_v13  ;;  %v8294_v33 = vld [vmem:[#allocation2 + $0x230] sm:$0xff]  ;;  %v7862_v44 = vld [vmem:[%s9997_s17 + $0xb8] sm:$0xff] }
 0x7e7   : > { %7922 = vst.msk [vmem:[%s9997_s17 + $0x98] sm:$0xff] %vm177_vm0, %v7890_v30  ;;  %7960 = vst.msk [vmem:[#allocation2 + $0x260] sm:$0xff] %vm177_vm0, %v7944_v0  ;;  %8333 = vrot.lane.b32.xlu1 %v8294_v33, %s9668_s20  ;;  %v8293_v23 = vld [vmem:[#allocation2 + $0x218] sm:$0xff] }
 0x7e8   : > { %7920 = vst.msk [vmem:[%s9997_s17 + $0x88] sm:$0xff] %vm177_vm0, %v7888_v63  ;;  %7959 = vst.msk [vmem:[#allocation2 + $0x248] sm:$0xff] %vm177_vm0, %v7943_v39  ;;  %v9565_v50 = vpop.f32.mrb[68].mxu1  ;;  %8331 = vrot.lane.b32.xlu0 %v8293_v23, %s9668_s20 }
 0x7e9   : > { %v7829_v13 = vmax.f32 %v9565_v50, 0.0  ;;  %v7760_v15 = vpop.f32.mrb[69].mxu1  ;;  %v7860_v50 = vld [vmem:[%s9997_s17 + $0xa8] sm:$0xff] }
 0x7ea   : > { %v7827_v31 = vmax.f32 %v7760_v15, 0.0  ;;  %v9566_v9 = vpop.f32.mrb[70].mxu1 }
 0x7eb   : > { %v7893_v33 = vadd.f32 %v7861_v32, %v7829_v13  ;;  %v7830_v48 = vmax.f32 %v9566_v9, 0.0  ;;  %8253 = vrot.lane.b32.xlu1 %v8206_v10, %s9670_s22  ;;  %v7763_v30 = vpop.f32.mrb[71].mxu1 }
 0x7ec   : > { %v7891_v0 = vadd.f32 %v7859_v58, %v7827_v31  ;;  %v7828_v63 = vmax.f32 %v7763_v30, 0.0  ;;  %8251 = vrot.lane.b32.xlu0 %v8205_v22, %s9670_s22  ;;  %v8398_v22 = vld [vmem:[#allocation2 + $0x2f8] sm:$0xff]  ;;  %v8397_v58 = vld [vmem:[#allocation2 + $0x2e0] sm:$0xff] }
 0x7ed   : > { %7925 = vst.msk [vmem:[%s9997_s17 + $0xb0] sm:$0xff] %vm177_vm0, %v7893_v33  ;;  %v7894_v39 = vadd.f32 %v7862_v44, %v7830_v48  ;;  %v7946_v23 = vpack.c.bf16 %v7830_v48, %v7829_v13  ;;  %v7865_v48 = vld [vmem:[%s9997_s17 + $0xd0] sm:$0xff] }
 0x7ee   : > { %7923 = vst.msk [vmem:[%s9997_s17 + $0xa0] sm:$0xff] %vm177_vm0, %v7891_v0  ;;  %v7892_v15 = vadd.f32 %v7860_v50, %v7828_v63  ;;  %v7945_v32 = vpack.c.bf16 %v7828_v63, %v7827_v31  ;;  %v8296_v9 = vld [vmem:[#allocation2 + $0x260] sm:$0xff] }
 0x7ef   : > { %7926 = vst.msk [vmem:[%s9997_s17 + $0xb8] sm:$0xff] %vm177_vm0, %v7894_v39  ;;  %7962 = vst.msk [vmem:[#allocation2 + $0x290] sm:$0xff] %vm177_vm0, %v7946_v23  ;;  %8337 = vrot.lane.b32.xlu1 %v8296_v9, %s9668_s20  ;;  %v8295_v10 = vld [vmem:[#allocation2 + $0x248] sm:$0xff]  ;;  %v7863_v63 = vld [vmem:[%s9997_s17 + $0xc0] sm:$0xff] }
 0x7f0   : > { %7924 = vst.msk [vmem:[%s9997_s17 + $0xa8] sm:$0xff] %vm177_vm0, %v7892_v15  ;;  %7961 = vst.msk [vmem:[#allocation2 + $0x278] sm:$0xff] %vm177_vm0, %v7945_v32  ;;  %v9569_v13 = vpop.f32.mrb[72].mxu1  ;;  %8335 = vrot.lane.b32.xlu0 %v8295_v10, %s9668_s20  ;;  %v7866_v15 = vld [vmem:[%s9997_s17 + $0xd8] sm:$0xff] }
 0x7f1   : > { %v7833_v31 = vmax.f32 %v9569_v13, 0.0  ;;  %v7776_v33 = vpop.f32.mrb[73].mxu1  ;;  %v7864_v13 = vld [vmem:[%s9997_s17 + $0xc8] sm:$0xff] }
 0x7f2   : > { %v7831_v30 = vmax.f32 %v7776_v33, 0.0  ;;  %v9570_v0 = vpop.f32.mrb[74].mxu1 }
 0x7f3   : > { %v7897_v44 = vadd.f32 %v7865_v48, %v7833_v31  ;;  %v7834_v39 = vmax.f32 %v9570_v0, 0.0  ;;  %8445 = vrot.lane.b32.xlu1 %v8398_v22, %s9671_s23  ;;  %v7779_v23 = vpop.f32.mrb[75].mxu1 }
 0x7f4   : > { %v7895_v50 = vadd.f32 %v7863_v63, %v7831_v30  ;;  %v7832_v32 = vmax.f32 %v7779_v23, 0.0  ;;  %8443 = vrot.lane.b32.xlu0 %v8397_v58, %s9671_s23  ;;  %v12923_v58 = vpop.permute.xlu1 %8441  ;;  %v8494_v23 = vld [vmem:[#allocation2 + $0x450] sm:$0xff] }
 0x7f5   : > { %7929 = vst.msk [vmem:[%s9997_s17 + $0xd0] sm:$0xff] %vm177_vm0, %v7897_v44  ;;  %v7898_v9 = vadd.f32 %v7866_v15, %v7834_v39  ;;  %v7948_v10 = vpack.c.bf16 %v7834_v39, %v7833_v31  ;;  %13229 = vst [vmem:[#allocation6_spill] sm:$0xff] %v12923_v58  ;;  %v12929_v44 = vpop.permute.xlu0 %8439 }
 0x7f6   : > { %7927 = vst.msk [vmem:[%s9997_s17 + $0xc0] sm:$0xff] %vm177_vm0, %v7895_v50  ;;  %v7896_v33 = vadd.f32 %v7864_v13, %v7832_v32  ;;  %v7947_v48 = vpack.c.bf16 %v7832_v32, %v7831_v30  ;;  %v8298_v0 = vld [vmem:[#allocation2 + $0x290] sm:$0xff]  ;;  %v8495_v30 = vld [vmem:[#allocation2 + $0x468] sm:$0xff]  ;;  %13230 = vst [vmem:[#allocation7_spill] sm:$0xff] %v12929_v44 }
 0x7f7   : > { %7930 = vst.msk [vmem:[%s9997_s17 + $0xd8] sm:$0xff] %vm177_vm0, %v7898_v9  ;;  %7964 = vst.msk [vmem:[#allocation2 + $0x2c0] sm:$0xff] %vm177_vm0, %v7948_v10  ;;  %8341 = vrot.lane.b32.xlu1 %v8298_v0, %s9668_s20  ;;  %v8297_v22 = vld [vmem:[#allocation2 + $0x278] sm:$0xff]  ;;  %v7869_v50 = vld [vmem:[%s9997_s17 + $0xf0] sm:$0xff] }
 0x7f8   : > { %7928 = vst.msk [vmem:[%s9997_s17 + $0xc8] sm:$0xff] %vm177_vm0, %v7896_v33  ;;  %7963 = vst.msk [vmem:[#allocation2 + $0x2a8] sm:$0xff] %vm177_vm0, %v7947_v48  ;;  %v9573_v31 = vpop.f32.mrb[76].mxu1  ;;  %8339 = vrot.lane.b32.xlu0 %v8297_v22, %s9668_s20  ;;  %v7867_v10 = vld [vmem:[%s9997_s17 + $0xe0] sm:$0xff]  ;;  %v7870_v0 = vld [vmem:[%s9997_s17 + $0xf8] sm:$0xff]  ;;  %v12939_v58 = vpop.permute.xlu1 %8538 }
 0x7f9   : > { %v7837_v63 = vmax.f32 %v9573_v31, 0.0  ;;  %v7792_v39 = vpop.f32.mrb[77].mxu1  ;;  %v12943_v11 = vpop.permute.xlu0 %8536 }
 0x7fa   : > { %v7835_v15 = vmax.f32 %v7792_v39, 0.0  ;;  %v9574_v32 = vpop.f32.mrb[78].mxu1  ;;  %v7868_v39 = vld [vmem:[%s9997_s17 + $0xe8] sm:$0xff] }
 0x7fb   : > { %v7901_v9 = vadd.f32 %v7869_v50, %v7837_v63  ;;  %v7838_v13 = vmax.f32 %v9574_v32, 0.0  ;;  %8542 = vrot.lane.b32.xlu1 %v8495_v30, %s9672_s26  ;;  %v7795_v33 = vpop.f32.mrb[79].mxu1 }
 0x7fc   : > { %v7899_v48 = vadd.f32 %v7867_v10, %v7835_v15  ;;  %v7836_v22 = vmax.f32 %v7795_v33, 0.0  ;;  %8540 = vrot.lane.b32.xlu0 %v8494_v23, %s9672_s26  ;;  %v8687_v33 = vld [vmem:[#allocation2 + $0x478] sm:$0xff] }
 0x7fd   : > { %7933 = vst.msk [vmem:[%s9997_s17 + $0xf0] sm:$0xff] %vm177_vm0, %v7901_v9  ;;  %v7902_v31 = vadd.f32 %v7870_v0, %v7838_v13  ;;  %v7950_v44 = vpack.c.bf16 %v7838_v13, %v7837_v63  ;;  %v8591_v63 = vld [vmem:[#allocation2 + $0x470] sm:$0xff]  ;;  %v8590_v9 = vld [vmem:[#allocation2 + $0x458] sm:$0xff]  ;;  %v12957_v10 = vpop.permute.xlu0 %8632  ;;  %v8686_v0 = vld [vmem:[#allocation2 + $0x460] sm:$0xff] }
 0x7fe   : > { %7931 = vst.msk [vmem:[%s9997_s17 + $0xe0] sm:$0xff] %vm177_vm0, %v7899_v48  ;;  %v7900_v50 = vadd.f32 %v7868_v39, %v7836_v22  ;;  %v7949_v32 = vpack.c.bf16 %v7836_v22, %v7835_v15  ;;  %v8300_v30 = vld [vmem:[#allocation2 + $0x2c0] sm:$0xff]  ;;  %v12954_v15 = vpop.permute.xlu1 %8634 }
 0x7ff   : > { %7934 = vst.msk [vmem:[%s9997_s17 + $0xf8] sm:$0xff] %vm177_vm0, %v7902_v31  ;;  %7966 = vst.msk [vmem:[#allocation2 + $0x2f0] sm:$0xff] %vm177_vm0, %v7950_v44  ;;  %8345 = vrot.lane.b32.xlu1 %v8300_v30, %s9668_s20  ;;  %v8299_v23 = vld [vmem:[#allocation2 + $0x2a8] sm:$0xff] }
 0x800   : > { %7932 = vst.msk [vmem:[%s9997_s17 + $0xe8] sm:$0xff] %vm177_vm0, %v7900_v50  ;;  %7965 = vst.msk [vmem:[#allocation2 + $0x2d8] sm:$0xff] %vm177_vm0, %v7949_v32  ;;  %8343 = vrot.lane.b32.xlu0 %v8299_v23, %s9668_s20  ;;  %v9051_v23 = vld [vmem:[%s9997_s17 + $0x10] sm:$0xff] }
 0x803   : > { %8638 = vrot.lane.b32.xlu1 %v8591_v63, %s9669_s21 }
 0x804   : > { %8636 = vrot.lane.b32.xlu0 %v8590_v9, %s9669_s21 }
 0x806   : > { %v8302_v44 = vld [vmem:[#allocation2 + $0x2f0] sm:$0xff] }
 0x807   : > { %8349 = vrot.lane.b32.xlu1 %v8302_v44, %s9668_s20  ;;  %v8301_v13 = vld [vmem:[#allocation2 + $0x2d8] sm:$0xff] }
 0x808   : > { %8347 = vrot.lane.b32.xlu0 %v8301_v13, %s9668_s20 }
 0x809   : > { %v8322_v48 = vpop.permute.xlu1 %8321 }
 0x80a   : > { %8368 = vst.msk [vmem:[#allocation3 + $0x8] sm:$0xff] %vm1401_vm7, %v8322_v48  ;;  %v8320_v22 = vpop.permute.xlu0 %8319  ;;  %v9052_v48 = vld [vmem:[%s9997_s17 + $0x18] sm:$0xff] }
 0x80b   : > { %8464 = vst.msk [vmem:[#allocation3 + $0x8] sm:$0xff] %vm1690_vm8, %v12607_v52  ;;  %8734 = vrot.lane.b32.xlu1 %v8687_v33, %s9673_s27 }
 0x80c   : > { %8367 = vst.msk [vmem:[#allocation3] sm:$0xff] %vm1401_vm7, %v8320_v22  ;;  %8732 = vrot.lane.b32.xlu0 %v8686_v0, %s9673_s27 }
 0x80d   : > { %8561 = vst.msk [vmem:[#allocation3 + $0x8] sm:$0xff] %vm1980_vm9, %v12616_v37  ;;  %v8060_v31 = vpop.permute.xlu1 %8059 }
 0x80e   : > { %8463 = vst.msk [vmem:[#allocation3] sm:$0xff] %vm1690_vm8, %v12637_v40 }
 0x80f   : > { %8657 = vst.msk [vmem:[#allocation3 + $0x8] sm:$0xff] %vm2077_vm10, %v12622_v8  ;;  %v12984_v8 = vpop.permute.xlu0 %8728 }
 0x810   : > { %8560 = vst.msk [vmem:[#allocation3] sm:$0xff] %vm1980_vm9, %v12642_v21 }
 0x811   : > { %8753 = vst.msk [vmem:[#allocation3 + $0x8] sm:$0xff] %vm2366_vm11, %v12663_v46 }
 0x812   : > { %8656 = vst.msk [vmem:[#allocation3] sm:$0xff] %vm2077_vm10, %v12649_v6 }
 0x813   : > { %8093 = vst.msk [vmem:[#allocation3 + $0x70] sm:$0xff] %vm725_vm4, %v8060_v31  ;;  %v9050_v31 = vld [vmem:[%s9997_s17 + $0x8] sm:$0xff] }
 0x814   : > { %8752 = vst.msk [vmem:[#allocation3] sm:$0xff] %vm2366_vm11, %v12657_v2 }
 0x818   : > { %v8769_v37 = vld [vmem:[#allocation3 + $0x8] sm:$0xff] }
 0x81b   : > { %v8768_v52 = vld [vmem:[#allocation3] sm:$0xff] }
 0x81c   : > { %9581 = vmatprep.mubr.msk.bf16.mxu0 %vm2419_vm12, %v8768_v52 }
 0x81d   : > { %9582 = vmatmul.mubr.msk.bf16.vlgmr.msra.gmra.mrb[48].mxu0 %vm2419_vm12, %v8769_v37 }
 0x825   : > { %v8326_v40 = vpop.permute.xlu1 %8325 }
 0x826   : > { %8370 = vst.msk [vmem:[#allocation3 + $0x18] sm:$0xff] %vm1401_vm7, %v8326_v40  ;;  %v8324_v21 = vpop.permute.xlu0 %8323 }
 0x827   : > { %8466 = vst.msk [vmem:[#allocation3 + $0x18] sm:$0xff] %vm1690_vm8, %v12647_v20 }
 0x828   : > { %8369 = vst.msk [vmem:[#allocation3 + $0x10] sm:$0xff] %vm1401_vm7, %v8324_v21  ;;  %v9055_v21 = vld [vmem:[%s9997_s17 + $0x30] sm:$0xff] }
 0x829   : > { %8563 = vst.msk [vmem:[#allocation3 + $0x18] sm:$0xff] %vm1980_vm9, %v12655_v42  ;;  %v8062_v6 = vpop.permute.xlu1 %8061 }
 0x82a   : > { %8465 = vst.msk [vmem:[#allocation3 + $0x10] sm:$0xff] %vm1690_vm8, %v12675_v45  ;;  %v13007_v2 = vpop.permute.xlu0 %8730 }
 0x82b   : > { %8659 = vst.msk [vmem:[#allocation3 + $0x18] sm:$0xff] %vm2077_vm10, %v12661_v59 }
 0x82c   : > { %8562 = vst.msk [vmem:[#allocation3 + $0x10] sm:$0xff] %vm1980_vm9, %v12680_v24 }
 0x82d   : > { %8755 = vst.msk [vmem:[#allocation3 + $0x18] sm:$0xff] %vm2366_vm11, %v12701_v61 }
 0x82e   : > { %8658 = vst.msk [vmem:[#allocation3 + $0x10] sm:$0xff] %vm2077_vm10, %v12687_v4 }
 0x82f   : > { %8094 = vst.msk [vmem:[#allocation3 + $0x78] sm:$0xff] %vm725_vm4, %v8062_v6 }
 0x830   : > { %8754 = vst.msk [vmem:[#allocation3 + $0x10] sm:$0xff] %vm2366_vm11, %v12695_v56 }
 0x834   : > { %v8771_v42 = vld [vmem:[#allocation3 + $0x18] sm:$0xff] }
 0x837   : > { %v8770_v20 = vld [vmem:[#allocation3 + $0x10] sm:$0xff] }
 0x838   : > { %9585 = vmatprep.mubr.msk.bf16.mxu0 %vm2419_vm12, %v8770_v20 }
 0x839   : > { %9586 = vmatmul.mubr.msk.bf16.gmra.mrb[52].mxu0 %vm2419_vm12, %v8771_v42 }
 0x841   : > { %v8330_v59 = vpop.permute.xlu1 %8329 }
 0x842   : > { %8372 = vst.msk [vmem:[#allocation3 + $0x28] sm:$0xff] %vm1401_vm7, %v8330_v59  ;;  %v8328_v46 = vpop.permute.xlu0 %8327 }
 0x843   : > { %8468 = vst.msk [vmem:[#allocation3 + $0x28] sm:$0xff] %vm1690_vm8, %v12685_v17 }
 0x844   : > { %8371 = vst.msk [vmem:[#allocation3 + $0x20] sm:$0xff] %vm1401_vm7, %v8328_v46 }
 0x845   : > { %8565 = vst.msk [vmem:[#allocation3 + $0x28] sm:$0xff] %vm1980_vm9, %v12693_v27  ;;  %v8158_v45 = vpop.permute.xlu1 %8157 }
 0x846   : > { %8467 = vst.msk [vmem:[#allocation3 + $0x20] sm:$0xff] %vm1690_vm8, %v12710_v53  ;;  %v8156_v24 = vpop.permute.xlu0 %8155 }
 0x847   : > { %8661 = vst.msk [vmem:[#allocation3 + $0x28] sm:$0xff] %vm2077_vm10, %v12699_v5 }
 0x848   : > { %8564 = vst.msk [vmem:[#allocation3 + $0x20] sm:$0xff] %vm1980_vm9, %v12714_v26 }
 0x849   : > { %8757 = vst.msk [vmem:[#allocation3 + $0x28] sm:$0xff] %vm2366_vm11, %v12729_v55 }
 0x84a   : > { %8660 = vst.msk [vmem:[#allocation3 + $0x20] sm:$0xff] %vm2077_vm10, %v12720_v25 }
 0x84b   : > { %8190 = vst.msk [vmem:[#allocation3 + $0x78] sm:$0xff] %vm1015_vm5, %v8158_v45  ;;  %8189 = vst.msk [vmem:[#allocation3 + $0x70] sm:$0xff] %vm1015_vm5, %v8156_v24  ;;  %v9056_v24 = vld [vmem:[%s9997_s17 + $0x38] sm:$0xff] }
 0x84c   : > { %8756 = vst.msk [vmem:[#allocation3 + $0x20] sm:$0xff] %vm2366_vm11, %v12724_v19 }
 0x850   : > { %v8773_v4 = vld [vmem:[#allocation3 + $0x28] sm:$0xff] }
 0x853   : > { %v8772_v17 = vld [vmem:[#allocation3 + $0x20] sm:$0xff] }
 0x854   : > { %9589 = vmatprep.mubr.msk.bf16.mxu0 %vm2419_vm12, %v8772_v17 }
 0x855   : > { %9590 = vmatmul.mubr.msk.bf16.gmra.mrb[56].mxu0 %vm2419_vm12, %v8773_v4 }
 0x859   : > { %v8334_v27 = vpop.permute.xlu1 %8333 }
 0x85a   : > { %8374 = vst.msk [vmem:[#allocation3 + $0x38] sm:$0xff] %vm1401_vm7, %v8334_v27  ;;  %v8332_v56 = vpop.permute.xlu0 %8331  ;;  %v9054_v27 = vld [vmem:[%s9997_s17 + $0x28] sm:$0xff] }
 0x85b   : > { %8470 = vst.msk [vmem:[#allocation3 + $0x38] sm:$0xff] %vm1690_vm8, %v12718_v29 }
 0x85c   : > { %8373 = vst.msk [vmem:[#allocation3 + $0x30] sm:$0xff] %vm1401_vm7, %v8332_v56 }
 0x85d   : > { %8567 = vst.msk [vmem:[#allocation3 + $0x38] sm:$0xff] %vm1980_vm9, %v12722_v14  ;;  %v8254_v5 = vpop.permute.xlu1 %8253 }
 0x85e   : > { %8469 = vst.msk [vmem:[#allocation3 + $0x30] sm:$0xff] %vm1690_vm8, %v12736_v49  ;;  %v8252_v61 = vpop.permute.xlu0 %8251 }
 0x85f   : > { %8663 = vst.msk [vmem:[#allocation3 + $0x38] sm:$0xff] %vm2077_vm10, %v12727_v47 }
 0x860   : > { %8566 = vst.msk [vmem:[#allocation3 + $0x30] sm:$0xff] %vm1980_vm9, %v12739_v43  ;;  %v13231_v43 = vld [vmem:[#allocation4_spill] sm:$0xff] }
 0x861   : > { %8759 = vst.msk [vmem:[#allocation3 + $0x38] sm:$0xff] %vm2366_vm11, %v12763_v7  ;;  %v8338_v53 = vpop.permute.xlu1 %8337 }
 0x862   : > { %8662 = vst.msk [vmem:[#allocation3 + $0x30] sm:$0xff] %vm2077_vm10, %v12744_v57  ;;  %v8336_v26 = vpop.permute.xlu0 %8335 }
 0x863   : > { %8286 = vst.msk [vmem:[#allocation3 + $0x78] sm:$0xff] %vm1304_vm6, %v8254_v5  ;;  %8285 = vst.msk [vmem:[#allocation3 + $0x70] sm:$0xff] %vm1304_vm6, %v8252_v61 }
 0x864   : > { %8758 = vst.msk [vmem:[#allocation3 + $0x30] sm:$0xff] %vm2366_vm11, %v12750_v60 }
 0x865   : > { %8376 = vst.msk [vmem:[#allocation3 + $0x48] sm:$0xff] %vm1401_vm7, %v8338_v53  ;;  %8375 = vst.msk [vmem:[#allocation3 + $0x40] sm:$0xff] %vm1401_vm7, %v8336_v26  ;;  %v8446_v29 = vpop.permute.xlu1 %8445  ;;  %v9059_v26 = vld [vmem:[%s9997_s17 + $0x50] sm:$0xff] }
 0x866   : > { %8472 = vst.msk [vmem:[#allocation3 + $0x48] sm:$0xff] %vm1690_vm8, %v12742_v51  ;;  %8471 = vst.msk [vmem:[#allocation3 + $0x40] sm:$0xff] %vm1690_vm8, %v12787_v1  ;;  %v8444_v25 = vpop.permute.xlu0 %8443  ;;  %v13233_v1 = vld [vmem:[#allocation6_spill] sm:$0xff] }
 0x867   : > { %8569 = vst.msk [vmem:[#allocation3 + $0x48] sm:$0xff] %vm1980_vm9, %v12747_v54  ;;  %8568 = vst.msk [vmem:[#allocation3 + $0x40] sm:$0xff] %vm1980_vm9, %v12791_v12  ;;  %v13232_v54 = vld [vmem:[#allocation5_spill] sm:$0xff]  ;;  %v13234_v12 = vld [vmem:[#allocation7_spill] sm:$0xff] }
 0x868   : > { %8665 = vst.msk [vmem:[#allocation3 + $0x48] sm:$0xff] %vm2077_vm10, %v12758_v34  ;;  %8664 = vst.msk [vmem:[#allocation3 + $0x40] sm:$0xff] %vm2077_vm10, %v12796_v3  ;;  %v8775_v19 = vld [vmem:[#allocation3 + $0x38] sm:$0xff] }
 0x869   : > { %8761 = vst.msk [vmem:[#allocation3 + $0x48] sm:$0xff] %vm2366_vm11, %v12815_v62  ;;  %8760 = vst.msk [vmem:[#allocation3 + $0x40] sm:$0xff] %vm2366_vm11, %v12802_v16  ;;  %v8342_v47 = vpop.permute.xlu1 %8341 }
 0x86a   : > { %8378 = vst.msk [vmem:[#allocation3 + $0x58] sm:$0xff] %vm1401_vm7, %v8342_v47  ;;  %v8340_v55 = vpop.permute.xlu0 %8339 }
 0x86b   : > { %v8774_v14 = vld [vmem:[#allocation3 + $0x30] sm:$0xff]  ;;  %8474 = vst.msk [vmem:[#allocation3 + $0x58] sm:$0xff] %vm1690_vm8, %v12794_v18 }
 0x86c   : > { %9593 = vmatprep.mubr.msk.bf16.mxu0 %vm2419_vm12, %v8774_v14  ;;  %8377 = vst.msk [vmem:[#allocation3 + $0x50] sm:$0xff] %vm1401_vm7, %v8340_v55 }
 0x86d   : > { %9594 = vmatmul.mubr.msk.bf16.gmra.mrb[60].mxu0 %vm2419_vm12, %v8775_v19  ;;  %8571 = vst.msk [vmem:[#allocation3 + $0x58] sm:$0xff] %vm1980_vm9, %v12799_v38  ;;  %v8543_v49 = vpop.permute.xlu1 %8542  ;;  %v9057_v19 = vld [vmem:[%s9997_s17 + $0x40] sm:$0xff] }
 0x86e   : > { %8473 = vst.msk [vmem:[#allocation3 + $0x50] sm:$0xff] %vm1690_vm8, %v12828_v36  ;;  %v8541_v51 = vpop.permute.xlu0 %8540 }
 0x86f   : > { %8667 = vst.msk [vmem:[#allocation3 + $0x58] sm:$0xff] %vm2077_vm10, %v12810_v28 }
 0x870   : > { %8570 = vst.msk [vmem:[#allocation3 + $0x50] sm:$0xff] %vm1980_vm9, %v12832_v35  ;;  %v8776_v57 = vld [vmem:[#allocation3 + $0x40] sm:$0xff]  ;;  %v8777_v60 = vld [vmem:[#allocation3 + $0x48] sm:$0xff] }
 0x871   : > { %8763 = vst.msk [vmem:[#allocation3 + $0x58] sm:$0xff] %vm2366_vm11, %v12850_v41  ;;  %9597 = vmatprep.mubr.msk.bf16.mxu0 %vm2419_vm12, %v8776_v57  ;;  %v8346_v34 = vpop.permute.xlu1 %8345 }
 0x872   : > { %8666 = vst.msk [vmem:[#allocation3 + $0x50] sm:$0xff] %vm2077_vm10, %v13231_v43  ;;  %v8344_v7 = vpop.permute.xlu0 %8343  ;;  %v9060_v43 = vld [vmem:[%s9997_s17 + $0x58] sm:$0xff] }
 0x873   : > { %8762 = vst.msk [vmem:[#allocation3 + $0x50] sm:$0xff] %vm2366_vm11, %v13232_v54  ;;  %v9058_v54 = vld [vmem:[%s9997_s17 + $0x48] sm:$0xff] }
 0x874   : > { %8380 = vst.msk [vmem:[#allocation3 + $0x68] sm:$0xff] %vm1401_vm7, %v8346_v34  ;;  %8379 = vst.msk [vmem:[#allocation3 + $0x60] sm:$0xff] %vm1401_vm7, %v8344_v7 }
 0x875   : > { %9598 = vmatmul.mubr.msk.bf16.gmra.mrb[64].mxu0 %vm2419_vm12, %v8777_v60  ;;  %8476 = vst.msk [vmem:[#allocation3 + $0x68] sm:$0xff] %vm1690_vm8, %v13233_v1  ;;  %8475 = vst.msk [vmem:[#allocation3 + $0x60] sm:$0xff] %vm1690_vm8, %v13234_v12  ;;  %v8639_v18 = vpop.permute.xlu1 %8638  ;;  %v9063_v12 = vld [vmem:[%s9997_s17 + $0x70] sm:$0xff] }
 0x876   : > { %8573 = vst.msk [vmem:[#allocation3 + $0x68] sm:$0xff] %vm1980_vm9, %v12939_v58  ;;  %8572 = vst.msk [vmem:[#allocation3 + $0x60] sm:$0xff] %vm1980_vm9, %v12943_v11  ;;  %v8637_v3 = vpop.permute.xlu0 %8636 }
 0x877   : > { %8669 = vst.msk [vmem:[#allocation3 + $0x68] sm:$0xff] %vm2077_vm10, %v12954_v15  ;;  %8668 = vst.msk [vmem:[#allocation3 + $0x60] sm:$0xff] %vm2077_vm10, %v12957_v10  ;;  %v9049_v10 = vld [vmem:[%s9997_s17] sm:$0xff] }
 0x878   : > { %8765 = vst.msk [vmem:[#allocation3 + $0x68] sm:$0xff] %vm2366_vm11, %v13007_v2  ;;  %8764 = vst.msk [vmem:[#allocation3 + $0x60] sm:$0xff] %vm2366_vm11, %v12984_v8  ;;  %v8779_v16 = vld [vmem:[#allocation3 + $0x58] sm:$0xff]  ;;  %v9053_v2 = vld [vmem:[%s9997_s17 + $0x20] sm:$0xff] }
 0x879   : > { %v8350_v28 = vpop.permute.xlu1 %8349 }
 0x87a   : > { %v8778_v38 = vld [vmem:[#allocation3 + $0x50] sm:$0xff]  ;;  %8382 = vst.msk [vmem:[#allocation3 + $0x78] sm:$0xff] %vm1401_vm7, %v8350_v28  ;;  %v8348_v62 = vpop.permute.xlu0 %8347 }
 0x87b   : > { %9601 = vmatprep.mubr.msk.bf16.mxu0 %vm2419_vm12, %v8778_v38  ;;  %8478 = vst.msk [vmem:[#allocation3 + $0x78] sm:$0xff] %vm1690_vm8, %v8446_v29 }
 0x87c   : > { %8381 = vst.msk [vmem:[#allocation3 + $0x70] sm:$0xff] %vm1401_vm7, %v8348_v62 }
 0x87d   : > { %9602 = vmatmul.mubr.msk.bf16.gmra.mrb[68].mxu0 %vm2419_vm12, %v8779_v16  ;;  %8575 = vst.msk [vmem:[#allocation3 + $0x78] sm:$0xff] %vm1980_vm9, %v8543_v49  ;;  %v8735_v36 = vpop.permute.xlu1 %8734  ;;  %v9061_v16 = vld [vmem:[%s9997_s17 + $0x60] sm:$0xff] }
 0x87e   : > { %8477 = vst.msk [vmem:[#allocation3 + $0x70] sm:$0xff] %vm1690_vm8, %v8444_v25  ;;  %v8733_v35 = vpop.permute.xlu0 %8732 }
 0x87f   : > { %8574 = vst.msk [vmem:[#allocation3 + $0x70] sm:$0xff] %vm1980_vm9, %v8541_v51  ;;  %v8780_v11 = vld [vmem:[#allocation3 + $0x60] sm:$0xff]  ;;  %v8781_v41 = vld [vmem:[#allocation3 + $0x68] sm:$0xff] }
 0x880   : > { %8671 = vst.msk [vmem:[#allocation3 + $0x78] sm:$0xff] %vm2077_vm10, %v8639_v18  ;;  %8670 = vst.msk [vmem:[#allocation3 + $0x70] sm:$0xff] %vm2077_vm10, %v8637_v3  ;;  %9605 = vmatprep.mubr.msk.bf16.mxu0 %vm2419_vm12, %v8780_v11 }
 0x881   : > { %8767 = vst.msk [vmem:[#allocation3 + $0x78] sm:$0xff] %vm2366_vm11, %v8735_v36  ;;  %8766 = vst.msk [vmem:[#allocation3 + $0x70] sm:$0xff] %vm2366_vm11, %v8733_v35  ;;  %v9064_v35 = vld [vmem:[%s9997_s17 + $0x78] sm:$0xff] }
 0x885   : > { %9606 = vmatmul.mubr.msk.bf16.gmra.mrb[72].mxu0 %vm2419_vm12, %v8781_v41 }
 0x888   : > { %v8783_v58 = vld [vmem:[#allocation3 + $0x78] sm:$0xff]  ;;  %v8782_v39 = vld [vmem:[#allocation3 + $0x70] sm:$0xff] }
 0x889   : > { %9609 = vmatprep.mubr.msk.bf16.mxu0 %vm2419_vm12, %v8782_v39 }
 0x88d   : > { %9610 = vmatmul.mubr.msk.bf16.gmra.mrb[76].mxu0 %vm2419_vm12, %v8783_v58  ;;  %v9062_v58 = vld [vmem:[%s9997_s17 + $0x68] sm:$0xff] }
 0x8f0   : > { %v9583_v50 = vpop.f32.mrb[48].mxu0 }
 0x8f1   : > { %v9019_v32 = vmax.f32 %v9583_v50, 0.0  ;;  %v8890_v30 = vpop.f32.mrb[49].mxu0 }
 0x8f2   : > { %v9017_v63 = vmax.f32 %v8890_v30, 0.0  ;;  %v9584_v9 = vpop.f32.mrb[50].mxu0 }
 0x8f3   : > { %v9083_v15 = vadd.f32 %v9051_v23, %v9019_v32  ;;  %v9020_v44 = vmax.f32 %v9584_v9, 0.0  ;;  %v8893_v13 = vpop.f32.mrb[51].mxu0  ;;  %v9067_v23 = vld [vmem:[%s9997_s17 + $0x90] sm:$0xff] }
 0x8f4   : > { %v9081_v33 = vadd.f32 %v9049_v10, %v9017_v63  ;;  %v9018_v0 = vmax.f32 %v8893_v13, 0.0  ;;  %v9065_v10 = vld [vmem:[%s9997_s17 + $0x80] sm:$0xff] }
 0x8f5   : > { %9115 = vst.msk [vmem:[%s9997_s17 + $0x10] sm:$0xff] %vm177_vm0, %v9083_v15  ;;  %v9084_v22 = vadd.f32 %v9052_v48, %v9020_v44  ;;  %v9068_v48 = vld [vmem:[%s9997_s17 + $0x98] sm:$0xff] }
 0x8f6   : > { %9113 = vst.msk [vmem:[%s9997_s17] sm:$0xff] %vm177_vm0, %v9081_v33  ;;  %v9082_v52 = vadd.f32 %v9050_v31, %v9018_v0  ;;  %v9066_v31 = vld [vmem:[%s9997_s17 + $0x88] sm:$0xff] }
 0x8f7   : > { %9116 = vst.msk [vmem:[%s9997_s17 + $0x18] sm:$0xff] %vm177_vm0, %v9084_v22 }
 0x8f8   : > { %9114 = vst.msk [vmem:[%s9997_s17 + $0x8] sm:$0xff] %vm177_vm0, %v9082_v52 }
 0x90c   : > { %v9587_v37 = vpop.f32.mrb[52].mxu0 }
 0x90d   : > { %v9023_v8 = vmax.f32 %v9587_v37, 0.0  ;;  %v8906_v40 = vpop.f32.mrb[53].mxu0 }
 0x90e   : > { %v9021_v6 = vmax.f32 %v8906_v40, 0.0  ;;  %v9588_v20 = vpop.f32.mrb[54].mxu0 }
 0x90f   : > { %v9087_v42 = vadd.f32 %v9055_v21, %v9023_v8  ;;  %v9024_v59 = vmax.f32 %v9588_v20, 0.0  ;;  %v8909_v46 = vpop.f32.mrb[55].mxu0  ;;  %v9071_v21 = vld [vmem:[%s9997_s17 + $0xb0] sm:$0xff] }
 0x910   : > { %v9085_v45 = vadd.f32 %v9053_v2, %v9021_v6  ;;  %v9022_v17 = vmax.f32 %v8909_v46, 0.0  ;;  %v9069_v2 = vld [vmem:[%s9997_s17 + $0xa0] sm:$0xff] }
 0x911   : > { %9119 = vst.msk [vmem:[%s9997_s17 + $0x30] sm:$0xff] %vm177_vm0, %v9087_v42  ;;  %v9088_v4 = vadd.f32 %v9056_v24, %v9024_v59  ;;  %v9072_v24 = vld [vmem:[%s9997_s17 + $0xb8] sm:$0xff] }
 0x912   : > { %9117 = vst.msk [vmem:[%s9997_s17 + $0x20] sm:$0xff] %vm177_vm0, %v9085_v45  ;;  %v9086_v56 = vadd.f32 %v9054_v27, %v9022_v17  ;;  %v9070_v27 = vld [vmem:[%s9997_s17 + $0xa8] sm:$0xff] }
 0x913   : > { %9120 = vst.msk [vmem:[%s9997_s17 + $0x38] sm:$0xff] %vm177_vm0, %v9088_v4 }
 0x914   : > { %9118 = vst.msk [vmem:[%s9997_s17 + $0x28] sm:$0xff] %vm177_vm0, %v9086_v56 }
 0x928   : > { %v9591_v5 = vpop.f32.mrb[56].mxu0 }
 0x929   : > { %v9027_v61 = vmax.f32 %v9591_v5, 0.0  ;;  %v8922_v53 = vpop.f32.mrb[57].mxu0 }
 0x92a   : > { %v9025_v29 = vmax.f32 %v8922_v53, 0.0  ;;  %v9592_v25 = vpop.f32.mrb[58].mxu0 }
 0x92b   : > { %v9091_v14 = vadd.f32 %v9059_v26, %v9027_v61  ;;  %v9028_v47 = vmax.f32 %v9592_v25, 0.0  ;;  %v8925_v55 = vpop.f32.mrb[59].mxu0  ;;  %v9075_v26 = vld [vmem:[%s9997_s17 + $0xd0] sm:$0xff] }
 0x92c   : > { %v9089_v49 = vadd.f32 %v9057_v19, %v9025_v29  ;;  %v9026_v51 = vmax.f32 %v8925_v55, 0.0  ;;  %v9073_v19 = vld [vmem:[%s9997_s17 + $0xc0] sm:$0xff] }
 0x92d   : > { %9123 = vst.msk [vmem:[%s9997_s17 + $0x50] sm:$0xff] %vm177_vm0, %v9091_v14  ;;  %v9092_v57 = vadd.f32 %v9060_v43, %v9028_v47  ;;  %v9076_v43 = vld [vmem:[%s9997_s17 + $0xd8] sm:$0xff] }
 0x92e   : > { %9121 = vst.msk [vmem:[%s9997_s17 + $0x40] sm:$0xff] %vm177_vm0, %v9089_v49  ;;  %v9090_v60 = vadd.f32 %v9058_v54, %v9026_v51  ;;  %v9074_v54 = vld [vmem:[%s9997_s17 + $0xc8] sm:$0xff] }
 0x92f   : > { %9124 = vst.msk [vmem:[%s9997_s17 + $0x58] sm:$0xff] %vm177_vm0, %v9092_v57 }
 0x930   : > { %9122 = vst.msk [vmem:[%s9997_s17 + $0x48] sm:$0xff] %vm177_vm0, %v9090_v60 }
 0x940   : > { %v9595_v34 = vpop.f32.mrb[60].mxu0 }
 0x941   : > { %v9031_v7 = vmax.f32 %v9595_v34, 0.0  ;;  %v8938_v1 = vpop.f32.mrb[61].mxu0 }
 0x942   : > { %v9029_v18 = vmax.f32 %v8938_v1, 0.0  ;;  %v9596_v3 = vpop.f32.mrb[62].mxu0 }
 0x943   : > { %v9095_v38 = vadd.f32 %v9063_v12, %v9031_v7  ;;  %v9032_v28 = vmax.f32 %v9596_v3, 0.0  ;;  %v8941_v62 = vpop.f32.mrb[63].mxu0  ;;  %v9079_v12 = vld [vmem:[%s9997_s17 + $0xf0] sm:$0xff] }
 0x944   : > { %v9093_v36 = vadd.f32 %v9061_v16, %v9029_v18  ;;  %v9030_v11 = vmax.f32 %v8941_v62, 0.0  ;;  %v9077_v16 = vld [vmem:[%s9997_s17 + $0xe0] sm:$0xff] }
 0x945   : > { %9127 = vst.msk [vmem:[%s9997_s17 + $0x70] sm:$0xff] %vm177_vm0, %v9095_v38  ;;  %v9096_v41 = vadd.f32 %v9064_v35, %v9032_v28  ;;  %v9080_v35 = vld [vmem:[%s9997_s17 + $0xf8] sm:$0xff] }
 0x946   : > { %9125 = vst.msk [vmem:[%s9997_s17 + $0x60] sm:$0xff] %vm177_vm0, %v9093_v36  ;;  %v9094_v39 = vadd.f32 %v9062_v58, %v9030_v11  ;;  %v9078_v58 = vld [vmem:[%s9997_s17 + $0xe8] sm:$0xff] }
 0x947   : > { %9128 = vst.msk [vmem:[%s9997_s17 + $0x78] sm:$0xff] %vm177_vm0, %v9096_v41 }
 0x948   : > { %9126 = vst.msk [vmem:[%s9997_s17 + $0x68] sm:$0xff] %vm177_vm0, %v9094_v39  ;;  %v9599_v50 = vpop.f32.mrb[64].mxu0 }
 0x949   : > { %v9035_v32 = vmax.f32 %v9599_v50, 0.0  ;;  %v8954_v30 = vpop.f32.mrb[65].mxu0 }
 0x94a   : > { %v9033_v63 = vmax.f32 %v8954_v30, 0.0  ;;  %v9600_v9 = vpop.f32.mrb[66].mxu0 }
 0x94b   : > { %v9099_v15 = vadd.f32 %v9067_v23, %v9035_v32  ;;  %v9036_v44 = vmax.f32 %v9600_v9, 0.0  ;;  %v8957_v13 = vpop.f32.mrb[67].mxu0 }
 0x94c   : > { %v9097_v33 = vadd.f32 %v9065_v10, %v9033_v63  ;;  %v9034_v0 = vmax.f32 %v8957_v13, 0.0 }
 0x94d   : > { %9131 = vst.msk [vmem:[%s9997_s17 + $0x90] sm:$0xff] %vm177_vm0, %v9099_v15  ;;  %v9100_v22 = vadd.f32 %v9068_v48, %v9036_v44 }
 0x94e   : > { %9129 = vst.msk [vmem:[%s9997_s17 + $0x80] sm:$0xff] %vm177_vm0, %v9097_v33  ;;  %v9098_v52 = vadd.f32 %v9066_v31, %v9034_v0 }
 0x94f   : > { %9132 = vst.msk [vmem:[%s9997_s17 + $0x98] sm:$0xff] %vm177_vm0, %v9100_v22 }
 0x950   : > { %9130 = vst.msk [vmem:[%s9997_s17 + $0x88] sm:$0xff] %vm177_vm0, %v9098_v52  ;;  %v9603_v37 = vpop.f32.mrb[68].mxu0 }
 0x951   : > { %v9039_v8 = vmax.f32 %v9603_v37, 0.0  ;;  %v8970_v40 = vpop.f32.mrb[69].mxu0 }
 0x952   : > { %v9037_v6 = vmax.f32 %v8970_v40, 0.0  ;;  %v9604_v20 = vpop.f32.mrb[70].mxu0 }
 0x953   : > { %v9103_v42 = vadd.f32 %v9071_v21, %v9039_v8  ;;  %v9040_v59 = vmax.f32 %v9604_v20, 0.0  ;;  %v8973_v46 = vpop.f32.mrb[71].mxu0 }
 0x954   : > { %v9101_v45 = vadd.f32 %v9069_v2, %v9037_v6  ;;  %v9038_v17 = vmax.f32 %v8973_v46, 0.0 }
 0x955   : > { %9135 = vst.msk [vmem:[%s9997_s17 + $0xb0] sm:$0xff] %vm177_vm0, %v9103_v42  ;;  %v9104_v4 = vadd.f32 %v9072_v24, %v9040_v59 }
 0x956   : > { %9133 = vst.msk [vmem:[%s9997_s17 + $0xa0] sm:$0xff] %vm177_vm0, %v9101_v45  ;;  %v9102_v56 = vadd.f32 %v9070_v27, %v9038_v17 }
 0x957   : > { %9136 = vst.msk [vmem:[%s9997_s17 + $0xb8] sm:$0xff] %vm177_vm0, %v9104_v4 }
 0x958   : > { %9134 = vst.msk [vmem:[%s9997_s17 + $0xa8] sm:$0xff] %vm177_vm0, %v9102_v56  ;;  %v9607_v5 = vpop.f32.mrb[72].mxu0 }
 0x959   : > { %v9043_v61 = vmax.f32 %v9607_v5, 0.0  ;;  %v8986_v53 = vpop.f32.mrb[73].mxu0 }
 0x95a   : > { %v9041_v29 = vmax.f32 %v8986_v53, 0.0  ;;  %v9608_v25 = vpop.f32.mrb[74].mxu0 }
 0x95b   : > { %v9107_v14 = vadd.f32 %v9075_v26, %v9043_v61  ;;  %v9044_v47 = vmax.f32 %v9608_v25, 0.0  ;;  %v8989_v55 = vpop.f32.mrb[75].mxu0 }
 0x95c   : > { %v9105_v49 = vadd.f32 %v9073_v19, %v9041_v29  ;;  %v9042_v51 = vmax.f32 %v8989_v55, 0.0 }
 0x95d   : > { %9139 = vst.msk [vmem:[%s9997_s17 + $0xd0] sm:$0xff] %vm177_vm0, %v9107_v14  ;;  %v9108_v57 = vadd.f32 %v9076_v43, %v9044_v47 }
 0x95e   : > { %9137 = vst.msk [vmem:[%s9997_s17 + $0xc0] sm:$0xff] %vm177_vm0, %v9105_v49  ;;  %v9106_v60 = vadd.f32 %v9074_v54, %v9042_v51 }
 0x95f   : > { %9140 = vst.msk [vmem:[%s9997_s17 + $0xd8] sm:$0xff] %vm177_vm0, %v9108_v57 }
 0x960   : > { %9138 = vst.msk [vmem:[%s9997_s17 + $0xc8] sm:$0xff] %vm177_vm0, %v9106_v60  ;;  %v9611_v34 = vpop.f32.mrb[76].mxu0 }
 0x961   : > { %v9047_v7 = vmax.f32 %v9611_v34, 0.0  ;;  %v9002_v1 = vpop.f32.mrb[77].mxu0 }
 0x962   : > { %v9045_v18 = vmax.f32 %v9002_v1, 0.0  ;;  %v9612_v3 = vpop.f32.mrb[78].mxu0 }
 0x963   : > { %v9111_v38 = vadd.f32 %v9079_v12, %v9047_v7  ;;  %v9048_v28 = vmax.f32 %v9612_v3, 0.0  ;;  %v9005_v62 = vpop.f32.mrb[79].mxu0 }
 0x964   : > { %v9109_v36 = vadd.f32 %v9077_v16, %v9045_v18  ;;  %v9046_v11 = vmax.f32 %v9005_v62, 0.0 }
 0x965   : > { %9143 = vst.msk [vmem:[%s9997_s17 + $0xf0] sm:$0xff] %vm177_vm0, %v9111_v38  ;;  %v9112_v41 = vadd.f32 %v9080_v35, %v9048_v28 }
 0x966   : > { %9141 = vst.msk [vmem:[%s9997_s17 + $0xe0] sm:$0xff] %vm177_vm0, %v9109_v36  ;;  %v9110_v39 = vadd.f32 %v9078_v58, %v9046_v11 }
 0x967   : > { %9144 = vst.msk [vmem:[%s9997_s17 + $0xf8] sm:$0xff] %vm177_vm0, %v9112_v41 }
 0x968   : > { %9142 = vst.msk [vmem:[%s9997_s17 + $0xe8] sm:$0xff] %vm177_vm0, %v9110_v39 }
 0x969 PF: > { %s12_s9 = sadd.s32 1, %s9663_s9  }
 0x96a   : > { %p9_p4 = scmp.ge.s32.totalorder %s12_s9, 4  }
 0x96c   :  { %11 = sbr.rel (!%p9_p4) target bundleno = 1 (0x1), region = 72 }

</bundles_post_ra>
